<compile_context>
chip_gen: v6e
topology: v6e:2x2x1
jax: 0.10.0
libtpu: 0.0.40
codegen_flags: <defaults>
</compile_context>

<pallas_src>
import functools
import math

import jax
import jax.numpy as jnp
from jax import lax
from jax.experimental import pallas as pl
from jax.experimental.pallas import tpu as pltpu


def _erf(x):
    # Abramowitz & Stegun 7.1.26 polynomial (|err| < 1.5e-7): reproduces the exact
    # (erf-based) torch.nn.GELU() in f32.  TODO(synk): tanh-approx GELU would move most of
    # this to the EUP if the small numeric deviation is acceptable.
    a1, a2, a3, a4, a5 = 0.254829592, -0.284496736, 1.421413741, -1.453152027, 1.061405429
    p = 0.3275911
    s = jnp.where(x >= 0.0, 1.0, -1.0)
    ax = jnp.abs(x)
    t = 1.0 / (1.0 + p * ax)
    poly = ((((a5 * t + a4) * t + a3) * t + a2) * t + a1) * t
    return s * (1.0 - poly * jnp.exp(-ax * ax))


def _gelu_exact(x):
    return 0.5 * x * (1.0 + _erf(x * (1.0 / math.sqrt(2.0))))


def _layer_norm(v, g, b, eps=1e-5):
    mu = jnp.mean(v, axis=-1, keepdims=True)
    var = jnp.mean((v - mu) ** 2, axis=-1, keepdims=True)
    return (v - mu) * lax.rsqrt(var + eps) * g + b


def _rel_shift_tile(bd_h, T, tq):
    """bd_h: (tq, T + tq) -> (tq, T) with shifted[r, j] = bd_h[r, j + tq - r].

    Single strided lane rotation on the XLU: row r is rotated by (T + r), which lands the
    wanted diagonal band in columns [0, T).  All per-row amounts are < T + tq (no wrap).
    """
    return pltpu.roll(bd_h, shift=T, axis=1, stride=1, stride_axis=0)[:, :T]


def _branchformer_kernel(
    # per-batch tiles / resident tensors
    x_ref, pos_ref, mask_row_ref, mask_col_ref,
    # layer norms (self-att / mlp / final)
    g_att_ref, b_att_ref, g_mlp_ref, b_mlp_ref, g_fin_ref, b_fin_ref,
    # rel-pos multi-head attention params (fused / per-head packed)
    w_qkv_ref, b_qkv_ref, wp_ref, pbu_ref, pbv_ref, wo_ref, bo_ref,
    # cgMLP / CSGU params
    cp1_w_ref, cp1_b_ref, csgu_g_ref, csgu_b_ref, conv_w_ref, conv_b_ref,
    cp2_w_ref, cp2_b_ref,
    # merge projection (split halves)
    mrg_w1_ref, mrg_w2_ref, mrg_b_ref,
    # output
    out_ref,
    # scratch
    qh_ref, kh_ref, vh_ref, ph_ref, att_ref, cpad_ref,
    *, num_heads, kernel_size, q_tile,
):
    T, D = x_ref.shape[1], x_ref.shape[2]
    H = num_heads
    dk = D // H
    tq = q_tile
    num_q = T // tq
    scale = 1.0 / math.sqrt(dk)
    f32 = jnp.float32
    cdt = w_qkv_ref.dtype            # MXU input dtype (bf16 by default, f32 accumulation)

    x = x_ref[0]                                  # (T, D) f32
    key_mask = mask_row_ref[...] > 0.5            # (1, 1, T)  True = padded key frame

    # ---------------- branch 1: relative-position multi-head self-attention -------------
    x1 = _layer_norm(x, g_att_ref[...], b_att_ref[...])

    # fused Q/K/V projection: one wide (D, 3D) matmul; pos projection (no bias).
    qkv = jnp.dot(x1.astype(cdt), w_qkv_ref[...],
                  preferred_element_type=f32) + b_qkv_ref[...]            # (T, 3D) f32
    p_all = jnp.dot(pos_ref[...], wp_ref[...],
                    preferred_element_type=f32)                           # (2T, D) f32

    # split heads once into VMEM scratch (head on the major axis -> batched einsums below)
    for h in range(H):
        sl = slice(h * dk, (h + 1) * dk)
        qh_ref[h] = qkv[:, sl]
        kh_ref[h] = qkv[:, D + h * dk:D + (h + 1) * dk].astype(cdt)
        vh_ref[h] = qkv[:, 2 * D + h * dk:2 * D + (h + 1) * dk].astype(cdt)
        ph_ref[h] = p_all[:, sl].astype(cdt)

    pbu = pbu_ref[...]                # (H, 1, dk) f32
    pbv = pbv_ref[...]                # (H, 1, dk) f32
    bo = bo_ref[...]                  # (1, D)     f32

    def attn_tile(qi, carry):
        q0 = qi * tq
        s0 = T - tq - q0              # start row of the padded rel-pos slice for this tile
        if tq % 8 == 0:
            q0 = pl.multiple_of(q0, 8)
            s0 = pl.multiple_of(s0, 8)

        q_t = qh_ref[:, pl.ds(q0, tq), :]                                  # (H, tq, dk) f32
        q_u = (q_t + pbu).astype(cdt)
        q_v = (q_t + pbv).astype(cdt)
        k_all = kh_ref[...]                                                # (H, T, dk)
        v_all = vh_ref[...]

        ac = jnp.einsum("hqd,hkd->hqk", q_u, k_all,
                        preferred_element_type=f32)                        # (H, tq, T)
        p_t = ph_ref[:, pl.ds(s0, T + tq), :]                              # (H, T+tq, dk)
        bd = jnp.einsum("hqd,hpd->hqp", q_v, p_t,
                        preferred_element_type=f32)                        # (H, tq, T+tq)
        # vectorized rel_shift (strided XLU rotation per head, no T-way concat)
        bd = jnp.stack([_rel_shift_tile(bd[h], T, tq) for h in range(H)],
                       axis=0)                                             # (H, tq, T)

        scores = (ac + bd) * scale
        # finite fill: partially-masked rows match espnet exactly; fully-masked rows give a
        # (harmless) uniform attention instead of NaN / zeros.
        scores = jnp.where(key_mask, -1e30, scores)
        m = jnp.max(scores, axis=-1, keepdims=True)
        e = jnp.exp(scores - m)
        attn = e * pl.reciprocal(jnp.sum(e, axis=-1, keepdims=True), approx=True)

        pv = jnp.einsum("hqk,hkd->hqd", attn.astype(cdt), v_all,
                        preferred_element_type=f32)                        # (H, tq, dk)

        # output projection: accumulate per-head (dk, D) matmuls (no lane concat of heads)
        out_t = bo
        for h in range(H):
            out_t = out_t + jnp.dot(pv[h].astype(cdt), wo_ref[h],
                                    preferred_element_type=f32)            # (tq, D)
        att_ref[pl.ds(q0, tq), :] = out_t
        return carry

    lax.fori_loop(0, num_q, attn_tile, None)
    x1 = att_ref[...]                                                      # (T, D) f32

    # ---------------- branch 2: cgMLP (channel_proj1 + CSGU + channel_proj2) ------------
    Lh = csgu_g_ref.shape[1]
    pad = (kernel_size - 1) // 2

    x2 = _layer_norm(x, g_mlp_ref[...], b_mlp_ref[...])
    h1 = jnp.dot(x2.astype(cdt), cp1_w_ref[...],
                 preferred_element_type=f32) + cp1_b_ref[...]              # (T, L)
    h1 = _gelu_exact(h1)
    x_r = h1[:, :Lh]
    x_g = _layer_norm(h1[:, Lh:], csgu_g_ref[...], csgu_b_ref[...])
    # zero padded frames before the depthwise conv (masked_fill in torch CSGU)
    x_g = jnp.where(mask_col_ref[0] > 0.5, 0.0, x_g)

    # depthwise Conv1d (groups = Lh, stride 1, 'same' zero padding): pre-pad into a VMEM
    # scratch once, then K static-offset loads accumulated on the VPU.
    cpad_ref[...] = jnp.zeros_like(cpad_ref)
    cpad_ref[pad:pad + T, :] = x_g
    acc = jnp.zeros((T, Lh), dtype=f32)
    for kk in range(kernel_size):
        acc = acc + cpad_ref[kk:kk + T, :] * conv_w_ref[kk:kk + 1, :]
    x_g = acc + conv_b_ref[...]

    x2 = x_r * x_g                                                         # (T, Lh)
    x2 = jnp.dot(x2.astype(cdt), cp2_w_ref[...],
                 preferred_element_type=f32) + cp2_b_ref[...]              # (T, D)

    # ---------------- merge (split weights: no (T, 2D) concat) + residual + final norm --
    merged = (jnp.dot(x1.astype(cdt), mrg_w1_ref[...], preferred_element_type=f32)
              + jnp.dot(x2.astype(cdt), mrg_w2_ref[...], preferred_element_type=f32)
              + mrg_b_ref[...])
    out_ref[0] = _layer_norm(x + merged, g_fin_ref[...], b_fin_ref[...])


def branchformer_forward(x, pos_enc, mask, params, *, num_heads, kernel_size,
                         mxu_dtype=jnp.bfloat16):
    """x: (B,T,D) f32, pos_enc: (B,2T-1,D) f32, mask: (B,T) bool (True = pad)."""
    B, T, D = x.shape
    H = num_heads
    assert D % H == 0, "block_size must be divisible by num_heads"
    assert kernel_size % 2 == 1, "depthwise conv expects odd kernel_size ('same' padding)"
    dk = D // H
    Lh = params["cp2_w"].shape[0]
    K = kernel_size
    f32 = jnp.float32
    cdt = mxu_dtype

    # in-kernel flash-style query tile
    tq = T if T <= 128 else 128
    assert T % tq == 0, "T must be <= 128 or a multiple of 128"

    mask_f = mask.astype(f32)
    mask_row = mask_f.reshape(B, 1, T)
    mask_col = mask_f.reshape(B, T, 1)

    # pos_enc is batch-invariant: keep ONE resident copy (constant index_map, no per-batch
    # DMA), padded with a leading zero row so the rel-shift slice arithmetic is edge-free.
    pos_pad = jnp.concatenate(
        [jnp.zeros((1, D), f32), pos_enc[0].astype(f32)], axis=0).astype(cdt)   # (2T, D)

    # ---- pack / fuse parameters for the kernel -----------------------------------------
    w_qkv = jnp.concatenate(
        [params["wq"], params["wk"], params["wv"]], axis=1).astype(cdt)         # (D, 3D)
    b_qkv = jnp.concatenate([params["bq"], params["bk"], params["bv"]], axis=1)  # (1, 3D)
    wp = params["wp"].astype(cdt)
    pbu = params["pbu"].reshape(H, 1, dk)
    pbv = params["pbv"].reshape(H, 1, dk)
    wo_h = params["wo"].reshape(H, dk, D).astype(cdt)
    mrg_w1 = params["mrg_w"][:D].astype(cdt)
    mrg_w2 = params["mrg_w"][D:].astype(cdt)

    param_arrays = [
        params["g_att"], params["b_att"], params["g_mlp"], params["b_mlp"],
        params["g_fin"], params["b_fin"],
        w_qkv, b_qkv, wp, pbu, pbv, wo_h, params["bo"],
        params["cp1_w"].astype(cdt), params["cp1_b"],
        params["csgu_g"], params["csgu_b"], params["conv_w"], params["conv_b"],
        params["cp2_w"].astype(cdt), params["cp2_b"],
        mrg_w1, mrg_w2, params["mrg_b"],
    ]

    def batch_spec(shape):
        return pl.BlockSpec(shape, lambda b: (b, 0, 0))

    def const_spec(arr):
        nd = arr.ndim
        return pl.BlockSpec(arr.shape, lambda b, _nd=nd: (0,) * _nd)

    in_specs = [
        batch_spec((1, T, D)),        # x
        const_spec(pos_pad),          # pos (resident across the batch grid)
        batch_spec((1, 1, T)),        # key mask (row layout)
        batch_spec((1, T, 1)),        # frame mask (col layout)
    ] + [const_spec(a) for a in param_arrays]

    kernel = functools.partial(
        _branchformer_kernel, num_heads=H, kernel_size=K, q_tile=tq)

    out = pl.pallas_call(
        kernel,
        out_shape=jax.ShapeDtypeStruct((B, T, D), f32),
        grid_spec=pltpu.PrefetchScalarGridSpec(
            num_scalar_prefetch=0,
            grid=(B,),
            in_specs=in_specs,
            out_specs=batch_spec((1, T, D)),
            scratch_shapes=[
                pltpu.VMEM((H, T, dk), f32),       # q heads (bias added per tile)
                pltpu.VMEM((H, T, dk), cdt),       # k heads
                pltpu.VMEM((H, T, dk), cdt),       # v heads
                pltpu.VMEM((H, 2 * T, dk), cdt),   # projected (padded) rel-pos, per head
                pltpu.VMEM((T, D), f32),           # attention-branch output
                pltpu.VMEM((T + K - 1, Lh), f32),  # zero-padded depthwise-conv input
            ],
        ),
        compiler_params=pltpu.CompilerParams(
            dimension_semantics=("parallel",),     # batch shards across v7x TensorCores
            # modest explicit cap; safe on v5e/v6e (128 MiB) and v7x (64 MiB physical)
            vmem_limit_bytes=32 * 1024 * 1024,
        ),
    )(x.astype(f32), pos_pad, mask_row, mask_col, *param_arrays)

    # module returns (x, mask, pos_enc)
    return out, mask, pos_enc


def init_params(key, D, L, H, K):
    """Deterministic synthetic parameters (shapes follow the torch module __init__)."""
    Lh = L // 2
    ks = jax.random.split(key, 12)

    def lin(k, fan_in, fan_out):
        return (jax.random.normal(k, (fan_in, fan_out), jnp.float32)
                / jnp.sqrt(jnp.float32(fan_in)))

    params = {
        # LayerNorms
        "g_att": jnp.ones((1, D), jnp.float32), "b_att": jnp.zeros((1, D), jnp.float32),
        "g_mlp": jnp.ones((1, D), jnp.float32), "b_mlp": jnp.zeros((1, D), jnp.float32),
        "g_fin": jnp.ones((1, D), jnp.float32), "b_fin": jnp.zeros((1, D), jnp.float32),
        # RelPositionMultiHeadedAttention
        "wq": lin(ks[0], D, D), "bq": jnp.zeros((1, D), jnp.float32),
        "wk": lin(ks[1], D, D), "bk": jnp.zeros((1, D), jnp.float32),
        "wv": lin(ks[2], D, D), "bv": jnp.zeros((1, D), jnp.float32),
        "wp": lin(ks[3], D, D),                      # linear_pos (no bias)
        "pbu": 0.02 * jax.random.normal(ks[4], (1, D), jnp.float32),   # pos_bias_u
        "pbv": 0.02 * jax.random.normal(ks[5], (1, D), jnp.float32),   # pos_bias_v
        "wo": lin(ks[6], D, D), "bo": jnp.zeros((1, D), jnp.float32),
        # channel_proj1: Linear(D -> L) + GELU
        "cp1_w": lin(ks[7], D, L), "cp1_b": jnp.zeros((1, L), jnp.float32),
        # CSGU: LayerNorm(Lh) + depthwise Conv1d(Lh, Lh, K, groups=Lh)
        "csgu_g": jnp.ones((1, Lh), jnp.float32), "csgu_b": jnp.zeros((1, Lh), jnp.float32),
        "conv_w": (jax.random.normal(ks[8], (K, Lh), jnp.float32)
                   / jnp.sqrt(jnp.float32(K))),
        "conv_b": jnp.zeros((1, Lh), jnp.float32),
        # channel_proj2: Linear(Lh -> D)
        "cp2_w": lin(ks[9], Lh, D), "cp2_b": jnp.zeros((1, D), jnp.float32),
        # merge_proj: Linear(2D -> D)
        "mrg_w": lin(ks[10], 2 * D, D), "mrg_b": jnp.zeros((1, D), jnp.float32),
    }
    return params


if __name__ == "__main__":
    # block_size=64, linear_size=128, 4 heads, realistic cgMLP kernel_size=31.
    # T=64 keeps the rel-shift rotation width (T + tq = 128) lane-aligned.
    B, T, D, L, H, K = 2, 64, 64, 128, 4, 31
    key = jax.random.PRNGKey(0)
    k_x, k_pos, k_p = jax.random.split(key, 3)

    x = jax.random.normal(k_x, (B, T, D), jnp.float32)
    pos_enc = jax.random.normal(k_pos, (B, 2 * T - 1, D), jnp.float32)
    lengths = jnp.array([T, T - 9], dtype=jnp.int32)
    mask = jnp.arange(T)[None, :] >= lengths[:, None]       # (B, T), True = padded frame

    params = init_params(k_p, D, L, H, K)

    out, mask_out, pos_out = branchformer_forward(
        x, pos_enc, mask, params, num_heads=H, kernel_size=K)
    out = jax.block_until_ready(out)

    assert out.shape == (B, T, D)
    assert jnp.all(jnp.isfinite(out))
    print("KERNEL_OK")
</pallas_src>

<mosaic_0001>
module attributes {stable_mosaic.version = 11 : i64} {
  func.func @_branchformer_kernel(%arg0: i32, %arg1: memref<1x64x64xf32, #tpu.memory_space<vmem>>, %arg2: memref<128x64xbf16, #tpu.memory_space<vmem>>, %arg3: memref<1x1x64xf32, #tpu.memory_space<vmem>>, %arg4: memref<1x64x1xf32, #tpu.memory_space<vmem>>, %arg5: memref<1x64xf32, #tpu.memory_space<vmem>>, %arg6: memref<1x64xf32, #tpu.memory_space<vmem>>, %arg7: memref<1x64xf32, #tpu.memory_space<vmem>>, %arg8: memref<1x64xf32, #tpu.memory_space<vmem>>, %arg9: memref<1x64xf32, #tpu.memory_space<vmem>>, %arg10: memref<1x64xf32, #tpu.memory_space<vmem>>, %arg11: memref<64x192xbf16, #tpu.memory_space<vmem>>, %arg12: memref<1x192xf32, #tpu.memory_space<vmem>>, %arg13: memref<64x64xbf16, #tpu.memory_space<vmem>>, %arg14: memref<4x1x16xf32, #tpu.memory_space<vmem>>, %arg15: memref<4x1x16xf32, #tpu.memory_space<vmem>>, %arg16: memref<4x16x64xbf16, #tpu.memory_space<vmem>>, %arg17: memref<1x64xf32, #tpu.memory_space<vmem>>, %arg18: memref<64x128xbf16, #tpu.memory_space<vmem>>, %arg19: memref<1x128xf32, #tpu.memory_space<vmem>>, %arg20: memref<1x64xf32, #tpu.memory_space<vmem>>, %arg21: memref<1x64xf32, #tpu.memory_space<vmem>>, %arg22: memref<31x64xf32, #tpu.memory_space<vmem>>, %arg23: memref<1x64xf32, #tpu.memory_space<vmem>>, %arg24: memref<64x64xbf16, #tpu.memory_space<vmem>>, %arg25: memref<1x64xf32, #tpu.memory_space<vmem>>, %arg26: memref<64x64xbf16, #tpu.memory_space<vmem>>, %arg27: memref<64x64xbf16, #tpu.memory_space<vmem>>, %arg28: memref<1x64xf32, #tpu.memory_space<vmem>>, %arg29: memref<1x64x64xf32, #tpu.memory_space<vmem>>, %arg30: memref<4x64x16xf32, #tpu.memory_space<vmem>>, %arg31: memref<4x64x16xbf16, #tpu.memory_space<vmem>>, %arg32: memref<4x64x16xbf16, #tpu.memory_space<vmem>>, %arg33: memref<4x128x16xbf16, #tpu.memory_space<vmem>>, %arg34: memref<64x64xf32, #tpu.memory_space<vmem>>, %arg35: memref<94x64xf32, #tpu.memory_space<vmem>>) attributes {dimension_semantics = [#tpu.dimension_semantics<parallel>], iteration_bounds = array<i64: 2>, scalar_prefetch = 0 : i64, scratch_operands = 6 : i64, tpu.core_type = #tpu.core_type<tc>, window_params = [{transform_indices = @transform_0, window_bounds = array<i64: 1, 64, 64>}, {pipeline_mode = #tpu.pipeline_mode<synchronous>, transform_indices = @transform_1, window_bounds = array<i64: 128, 64>}, {transform_indices = @transform_2, window_bounds = array<i64: 1, 1, 64>}, {transform_indices = @transform_3, window_bounds = array<i64: 1, 64, 1>}, {pipeline_mode = #tpu.pipeline_mode<synchronous>, transform_indices = @transform_4, window_bounds = array<i64: 1, 64>}, {pipeline_mode = #tpu.pipeline_mode<synchronous>, transform_indices = @transform_5, window_bounds = array<i64: 1, 64>}, {pipeline_mode = #tpu.pipeline_mode<synchronous>, transform_indices = @transform_6, window_bounds = array<i64: 1, 64>}, {pipeline_mode = #tpu.pipeline_mode<synchronous>, transform_indices = @transform_7, window_bounds = array<i64: 1, 64>}, {pipeline_mode = #tpu.pipeline_mode<synchronous>, transform_indices = @transform_8, window_bounds = array<i64: 1, 64>}, {pipeline_mode = #tpu.pipeline_mode<synchronous>, transform_indices = @transform_9, window_bounds = array<i64: 1, 64>}, {pipeline_mode = #tpu.pipeline_mode<synchronous>, transform_indices = @transform_10, window_bounds = array<i64: 64, 192>}, {pipeline_mode = #tpu.pipeline_mode<synchronous>, transform_indices = @transform_11, window_bounds = array<i64: 1, 192>}, {pipeline_mode = #tpu.pipeline_mode<synchronous>, transform_indices = @transform_12, window_bounds = array<i64: 64, 64>}, {pipeline_mode = #tpu.pipeline_mode<synchronous>, transform_indices = @transform_13, window_bounds = array<i64: 4, 1, 16>}, {pipeline_mode = #tpu.pipeline_mode<synchronous>, transform_indices = @transform_14, window_bounds = array<i64: 4, 1, 16>}, {pipeline_mode = #tpu.pipeline_mode<synchronous>, transform_indices = @transform_15, window_bounds = array<i64: 4, 16, 64>}, {pipeline_mode = #tpu.pipeline_mode<synchronous>, transform_indices = @transform_16, window_bounds = array<i64: 1, 64>}, {pipeline_mode = #tpu.pipeline_mode<synchronous>, transform_indices = @transform_17, window_bounds = array<i64: 64, 128>}, {pipeline_mode = #tpu.pipeline_mode<synchronous>, transform_indices = @transform_18, window_bounds = array<i64: 1, 128>}, {pipeline_mode = #tpu.pipeline_mode<synchronous>, transform_indices = @transform_19, window_bounds = array<i64: 1, 64>}, {pipeline_mode = #tpu.pipeline_mode<synchronous>, transform_indices = @transform_20, window_bounds = array<i64: 1, 64>}, {pipeline_mode = #tpu.pipeline_mode<synchronous>, transform_indices = @transform_21, window_bounds = array<i64: 31, 64>}, {pipeline_mode = #tpu.pipeline_mode<synchronous>, transform_indices = @transform_22, window_bounds = array<i64: 1, 64>}, {pipeline_mode = #tpu.pipeline_mode<synchronous>, transform_indices = @transform_23, window_bounds = array<i64: 64, 64>}, {pipeline_mode = #tpu.pipeline_mode<synchronous>, transform_indices = @transform_24, window_bounds = array<i64: 1, 64>}, {pipeline_mode = #tpu.pipeline_mode<synchronous>, transform_indices = @transform_25, window_bounds = array<i64: 64, 64>}, {pipeline_mode = #tpu.pipeline_mode<synchronous>, transform_indices = @transform_26, window_bounds = array<i64: 64, 64>}, {pipeline_mode = #tpu.pipeline_mode<synchronous>, transform_indices = @transform_27, window_bounds = array<i64: 1, 64>}, {transform_indices = @transform_28, window_bounds = array<i64: 1, 64, 64>}]} {
    %c0 = arith.constant 0 : index
    %c0_0 = arith.constant 0 : index
    %c0_1 = arith.constant 0 : index
    %0 = vector.load %arg1[%c0, %c0_0, %c0_1] : memref<1x64x64xf32, #tpu.memory_space<vmem>>, vector<1x64x64xf32>
    %1 = vector.shape_cast %0 : vector<1x64x64xf32> to vector<64x64xf32>
    %c0_2 = arith.constant 0 : index
    %c0_3 = arith.constant 0 : index
    %c0_4 = arith.constant 0 : index
    %2 = vector.load %arg3[%c0_2, %c0_3, %c0_4] : memref<1x1x64xf32, #tpu.memory_space<vmem>>, vector<1x1x64xf32>
    %cst = arith.constant 5.000000e-01 : f32
    %3 = vector.broadcast %cst : f32 to vector<1x1x64xf32>
    %4 = arith.cmpf ogt, %2, %3 : vector<1x1x64xf32>
    %c0_5 = arith.constant 0 : index
    %c0_6 = arith.constant 0 : index
    %5 = vector.load %arg5[%c0_5, %c0_6] : memref<1x64xf32, #tpu.memory_space<vmem>>, vector<1x64xf32>
    %c0_7 = arith.constant 0 : index
    %c0_8 = arith.constant 0 : index
    %6 = vector.load %arg6[%c0_7, %c0_8] : memref<1x64xf32, #tpu.memory_space<vmem>>, vector<1x64xf32>
    %cst_9 = arith.constant dense<0.000000e+00> : vector<64xf32>
    %7 = vector.multi_reduction <add>, %1, %cst_9 [1] : vector<64x64xf32> to vector<64xf32>
    %8 = vector.shape_cast %7 : vector<64xf32> to vector<64x1xf32>
    %cst_10 = arith.constant 6.400000e+01 : f32
    %9 = vector.broadcast %cst_10 : f32 to vector<64x1xf32>
    %10 = arith.divf %8, %9 : vector<64x1xf32>
    %11 = vector.broadcast %10 : vector<64x1xf32> to vector<64x64xf32>
    %12 = arith.subf %1, %11 : vector<64x64xf32>
    %13 = arith.mulf %12, %12 : vector<64x64xf32>
    %cst_11 = arith.constant dense<0.000000e+00> : vector<64xf32>
    %14 = vector.multi_reduction <add>, %13, %cst_11 [1] : vector<64x64xf32> to vector<64xf32>
    %15 = vector.shape_cast %14 : vector<64xf32> to vector<64x1xf32>
    %cst_12 = arith.constant 6.400000e+01 : f32
    %16 = vector.broadcast %cst_12 : f32 to vector<64x1xf32>
    %17 = arith.divf %15, %16 : vector<64x1xf32>
    %18 = vector.broadcast %10 : vector<64x1xf32> to vector<64x64xf32>
    %19 = arith.subf %1, %18 : vector<64x64xf32>
    %cst_13 = arith.constant 9.99999974E-6 : f32
    %20 = vector.broadcast %cst_13 : f32 to vector<64x1xf32>
    %21 = arith.addf %17, %20 : vector<64x1xf32>
    %22 = math.rsqrt %21 : vector<64x1xf32>
    %23 = vector.broadcast %22 : vector<64x1xf32> to vector<64x64xf32>
    %24 = arith.mulf %19, %23 : vector<64x64xf32>
    %25 = vector.broadcast %5 : vector<1x64xf32> to vector<64x64xf32>
    %26 = arith.mulf %24, %25 : vector<64x64xf32>
    %27 = vector.broadcast %6 : vector<1x64xf32> to vector<64x64xf32>
    %28 = arith.addf %26, %27 : vector<64x64xf32>
    %29 = arith.truncf %28 : vector<64x64xf32> to vector<64x64xbf16>
    %c0_14 = arith.constant 0 : index
    %c0_15 = arith.constant 0 : index
    %30 = vector.load %arg11[%c0_14, %c0_15] : memref<64x192xbf16, #tpu.memory_space<vmem>>, vector<64x192xbf16>
    %cst_16 = arith.constant dense<0.000000e+00> : vector<64x192xf32>
    %31 = tpu.matmul %29, %30, %cst_16 {dimension_numbers = #tpu.dot_dimension_numbers<[1], [0], [0], [1], [0, 0, 1, 1], [], []>} : vector<64x64xbf16>, vector<64x192xbf16>, vector<64x192xf32> -> vector<64x192xf32>
    %c0_17 = arith.constant 0 : index
    %c0_18 = arith.constant 0 : index
    %32 = vector.load %arg12[%c0_17, %c0_18] : memref<1x192xf32, #tpu.memory_space<vmem>>, vector<1x192xf32>
    %33 = vector.broadcast %32 : vector<1x192xf32> to vector<64x192xf32>
    %34 = arith.addf %31, %33 : vector<64x192xf32>
    %c0_19 = arith.constant 0 : index
    %c0_20 = arith.constant 0 : index
    %35 = vector.load %arg2[%c0_19, %c0_20] : memref<128x64xbf16, #tpu.memory_space<vmem>>, vector<128x64xbf16>
    %c0_21 = arith.constant 0 : index
    %c0_22 = arith.constant 0 : index
    %36 = vector.load %arg13[%c0_21, %c0_22] : memref<64x64xbf16, #tpu.memory_space<vmem>>, vector<64x64xbf16>
    %cst_23 = arith.constant dense<0.000000e+00> : vector<128x64xf32>
    %37 = tpu.matmul %35, %36, %cst_23 {dimension_numbers = #tpu.dot_dimension_numbers<[1], [0], [0], [1], [0, 0, 1, 1], [], []>} : vector<128x64xbf16>, vector<64x64xbf16>, vector<128x64xf32> -> vector<128x64xf32>
    %38 = vector.extract_strided_slice %34 {offsets = [0, 0], sizes = [64, 16], strides = [1, 1]} : vector<64x192xf32> to vector<64x16xf32>
    %c0_24 = arith.constant 0 : index
    %c0_25 = arith.constant 0 : index
    %c0_26 = arith.constant 0 : index
    %39 = vector.load %arg30[%c0_24, %c0_25, %c0_26] : memref<4x64x16xf32, #tpu.memory_space<vmem>>, vector<1x64x16xf32>
    %40 = vector.shape_cast %39 : vector<1x64x16xf32> to vector<64x16xf32>
    %41 = vector.shape_cast %38 : vector<64x16xf32> to vector<1x64x16xf32>
    tpu.vector_store %arg30[%c0_24, %c0_25, %c0_26], %41 {strides = array<i32>} : memref<4x64x16xf32, #tpu.memory_space<vmem>>, vector<1x64x16xf32>,
    %42 = vector.extract_strided_slice %34 {offsets = [0, 64], sizes = [64, 16], strides = [1, 1]} : vector<64x192xf32> to vector<64x16xf32>
    %43 = arith.truncf %42 : vector<64x16xf32> to vector<64x16xbf16>
    %c0_27 = arith.constant 0 : index
    %c0_28 = arith.constant 0 : index
    %c0_29 = arith.constant 0 : index
    %44 = vector.load %arg31[%c0_27, %c0_28, %c0_29] : memref<4x64x16xbf16, #tpu.memory_space<vmem>>, vector<1x64x16xbf16>
    %45 = vector.shape_cast %44 : vector<1x64x16xbf16> to vector<64x16xbf16>
    %46 = vector.shape_cast %43 : vector<64x16xbf16> to vector<1x64x16xbf16>
    tpu.vector_store %arg31[%c0_27, %c0_28, %c0_29], %46 {strides = array<i32>} : memref<4x64x16xbf16, #tpu.memory_space<vmem>>, vector<1x64x16xbf16>,
    %47 = vector.extract_strided_slice %34 {offsets = [0, 128], sizes = [64, 16], strides = [1, 1]} : vector<64x192xf32> to vector<64x16xf32>
    %48 = arith.truncf %47 : vector<64x16xf32> to vector<64x16xbf16>
    %c0_30 = arith.constant 0 : index
    %c0_31 = arith.constant 0 : index
    %c0_32 = arith.constant 0 : index
    %49 = vector.load %arg32[%c0_30, %c0_31, %c0_32] : memref<4x64x16xbf16, #tpu.memory_space<vmem>>, vector<1x64x16xbf16>
    %50 = vector.shape_cast %49 : vector<1x64x16xbf16> to vector<64x16xbf16>
    %51 = vector.shape_cast %48 : vector<64x16xbf16> to vector<1x64x16xbf16>
    tpu.vector_store %arg32[%c0_30, %c0_31, %c0_32], %51 {strides = array<i32>} : memref<4x64x16xbf16, #tpu.memory_space<vmem>>, vector<1x64x16xbf16>,
    %52 = vector.extract_strided_slice %37 {offsets = [0, 0], sizes = [128, 16], strides = [1, 1]} : vector<128x64xf32> to vector<128x16xf32>
    %53 = arith.truncf %52 : vector<128x16xf32> to vector<128x16xbf16>
    %c0_33 = arith.constant 0 : index
    %c0_34 = arith.constant 0 : index
    %c0_35 = arith.constant 0 : index
    %54 = vector.load %arg33[%c0_33, %c0_34, %c0_35] : memref<4x128x16xbf16, #tpu.memory_space<vmem>>, vector<1x128x16xbf16>
    %55 = vector.shape_cast %54 : vector<1x128x16xbf16> to vector<128x16xbf16>
    %56 = vector.shape_cast %53 : vector<128x16xbf16> to vector<1x128x16xbf16>
    tpu.vector_store %arg33[%c0_33, %c0_34, %c0_35], %56 {strides = array<i32>} : memref<4x128x16xbf16, #tpu.memory_space<vmem>>, vector<1x128x16xbf16>,
    %57 = vector.extract_strided_slice %34 {offsets = [0, 16], sizes = [64, 16], strides = [1, 1]} : vector<64x192xf32> to vector<64x16xf32>
    %c1 = arith.constant 1 : index
    %c0_36 = arith.constant 0 : index
    %c0_37 = arith.constant 0 : index
    %58 = vector.load %arg30[%c1, %c0_36, %c0_37] : memref<4x64x16xf32, #tpu.memory_space<vmem>>, vector<1x64x16xf32>
    %59 = vector.shape_cast %58 : vector<1x64x16xf32> to vector<64x16xf32>
    %60 = vector.shape_cast %57 : vector<64x16xf32> to vector<1x64x16xf32>
    tpu.vector_store %arg30[%c1, %c0_36, %c0_37], %60 {strides = array<i32>} : memref<4x64x16xf32, #tpu.memory_space<vmem>>, vector<1x64x16xf32>,
    %61 = vector.extract_strided_slice %34 {offsets = [0, 80], sizes = [64, 16], strides = [1, 1]} : vector<64x192xf32> to vector<64x16xf32>
    %62 = arith.truncf %61 : vector<64x16xf32> to vector<64x16xbf16>
    %c1_38 = arith.constant 1 : index
    %c0_39 = arith.constant 0 : index
    %c0_40 = arith.constant 0 : index
    %63 = vector.load %arg31[%c1_38, %c0_39, %c0_40] : memref<4x64x16xbf16, #tpu.memory_space<vmem>>, vector<1x64x16xbf16>
    %64 = vector.shape_cast %63 : vector<1x64x16xbf16> to vector<64x16xbf16>
    %65 = vector.shape_cast %62 : vector<64x16xbf16> to vector<1x64x16xbf16>
    tpu.vector_store %arg31[%c1_38, %c0_39, %c0_40], %65 {strides = array<i32>} : memref<4x64x16xbf16, #tpu.memory_space<vmem>>, vector<1x64x16xbf16>,
    %66 = vector.extract_strided_slice %34 {offsets = [0, 144], sizes = [64, 16], strides = [1, 1]} : vector<64x192xf32> to vector<64x16xf32>
    %67 = arith.truncf %66 : vector<64x16xf32> to vector<64x16xbf16>
    %c1_41 = arith.constant 1 : index
    %c0_42 = arith.constant 0 : index
    %c0_43 = arith.constant 0 : index
    %68 = vector.load %arg32[%c1_41, %c0_42, %c0_43] : memref<4x64x16xbf16, #tpu.memory_space<vmem>>, vector<1x64x16xbf16>
    %69 = vector.shape_cast %68 : vector<1x64x16xbf16> to vector<64x16xbf16>
    %70 = vector.shape_cast %67 : vector<64x16xbf16> to vector<1x64x16xbf16>
    tpu.vector_store %arg32[%c1_41, %c0_42, %c0_43], %70 {strides = array<i32>} : memref<4x64x16xbf16, #tpu.memory_space<vmem>>, vector<1x64x16xbf16>,
    %71 = vector.extract_strided_slice %37 {offsets = [0, 16], sizes = [128, 16], strides = [1, 1]} : vector<128x64xf32> to vector<128x16xf32>
    %72 = arith.truncf %71 : vector<128x16xf32> to vector<128x16xbf16>
    %c1_44 = arith.constant 1 : index
    %c0_45 = arith.constant 0 : index
    %c0_46 = arith.constant 0 : index
    %73 = vector.load %arg33[%c1_44, %c0_45, %c0_46] : memref<4x128x16xbf16, #tpu.memory_space<vmem>>, vector<1x128x16xbf16>
    %74 = vector.shape_cast %73 : vector<1x128x16xbf16> to vector<128x16xbf16>
    %75 = vector.shape_cast %72 : vector<128x16xbf16> to vector<1x128x16xbf16>
    tpu.vector_store %arg33[%c1_44, %c0_45, %c0_46], %75 {strides = array<i32>} : memref<4x128x16xbf16, #tpu.memory_space<vmem>>, vector<1x128x16xbf16>,
    %76 = vector.extract_strided_slice %34 {offsets = [0, 32], sizes = [64, 16], strides = [1, 1]} : vector<64x192xf32> to vector<64x16xf32>
    %c2 = arith.constant 2 : index
    %c0_47 = arith.constant 0 : index
    %c0_48 = arith.constant 0 : index
    %77 = vector.load %arg30[%c2, %c0_47, %c0_48] : memref<4x64x16xf32, #tpu.memory_space<vmem>>, vector<1x64x16xf32>
    %78 = vector.shape_cast %77 : vector<1x64x16xf32> to vector<64x16xf32>
    %79 = vector.shape_cast %76 : vector<64x16xf32> to vector<1x64x16xf32>
    tpu.vector_store %arg30[%c2, %c0_47, %c0_48], %79 {strides = array<i32>} : memref<4x64x16xf32, #tpu.memory_space<vmem>>, vector<1x64x16xf32>,
    %80 = vector.extract_strided_slice %34 {offsets = [0, 96], sizes = [64, 16], strides = [1, 1]} : vector<64x192xf32> to vector<64x16xf32>
    %81 = arith.truncf %80 : vector<64x16xf32> to vector<64x16xbf16>
    %c2_49 = arith.constant 2 : index
    %c0_50 = arith.constant 0 : index
    %c0_51 = arith.constant 0 : index
    %82 = vector.load %arg31[%c2_49, %c0_50, %c0_51] : memref<4x64x16xbf16, #tpu.memory_space<vmem>>, vector<1x64x16xbf16>
    %83 = vector.shape_cast %82 : vector<1x64x16xbf16> to vector<64x16xbf16>
    %84 = vector.shape_cast %81 : vector<64x16xbf16> to vector<1x64x16xbf16>
    tpu.vector_store %arg31[%c2_49, %c0_50, %c0_51], %84 {strides = array<i32>} : memref<4x64x16xbf16, #tpu.memory_space<vmem>>, vector<1x64x16xbf16>,
    %85 = vector.extract_strided_slice %34 {offsets = [0, 160], sizes = [64, 16], strides = [1, 1]} : vector<64x192xf32> to vector<64x16xf32>
    %86 = arith.truncf %85 : vector<64x16xf32> to vector<64x16xbf16>
    %c2_52 = arith.constant 2 : index
    %c0_53 = arith.constant 0 : index
    %c0_54 = arith.constant 0 : index
    %87 = vector.load %arg32[%c2_52, %c0_53, %c0_54] : memref<4x64x16xbf16, #tpu.memory_space<vmem>>, vector<1x64x16xbf16>
    %88 = vector.shape_cast %87 : vector<1x64x16xbf16> to vector<64x16xbf16>
    %89 = vector.shape_cast %86 : vector<64x16xbf16> to vector<1x64x16xbf16>
    tpu.vector_store %arg32[%c2_52, %c0_53, %c0_54], %89 {strides = array<i32>} : memref<4x64x16xbf16, #tpu.memory_space<vmem>>, vector<1x64x16xbf16>,
    %90 = vector.extract_strided_slice %37 {offsets = [0, 32], sizes = [128, 16], strides = [1, 1]} : vector<128x64xf32> to vector<128x16xf32>
    %91 = arith.truncf %90 : vector<128x16xf32> to vector<128x16xbf16>
    %c2_55 = arith.constant 2 : index
    %c0_56 = arith.constant 0 : index
    %c0_57 = arith.constant 0 : index
    %92 = vector.load %arg33[%c2_55, %c0_56, %c0_57] : memref<4x128x16xbf16, #tpu.memory_space<vmem>>, vector<1x128x16xbf16>
    %93 = vector.shape_cast %92 : vector<1x128x16xbf16> to vector<128x16xbf16>
    %94 = vector.shape_cast %91 : vector<128x16xbf16> to vector<1x128x16xbf16>
    tpu.vector_store %arg33[%c2_55, %c0_56, %c0_57], %94 {strides = array<i32>} : memref<4x128x16xbf16, #tpu.memory_space<vmem>>, vector<1x128x16xbf16>,
    %95 = vector.extract_strided_slice %34 {offsets = [0, 48], sizes = [64, 16], strides = [1, 1]} : vector<64x192xf32> to vector<64x16xf32>
    %c3 = arith.constant 3 : index
    %c0_58 = arith.constant 0 : index
    %c0_59 = arith.constant 0 : index
    %96 = vector.load %arg30[%c3, %c0_58, %c0_59] : memref<4x64x16xf32, #tpu.memory_space<vmem>>, vector<1x64x16xf32>
    %97 = vector.shape_cast %96 : vector<1x64x16xf32> to vector<64x16xf32>
    %98 = vector.shape_cast %95 : vector<64x16xf32> to vector<1x64x16xf32>
    tpu.vector_store %arg30[%c3, %c0_58, %c0_59], %98 {strides = array<i32>} : memref<4x64x16xf32, #tpu.memory_space<vmem>>, vector<1x64x16xf32>,
    %99 = vector.extract_strided_slice %34 {offsets = [0, 112], sizes = [64, 16], strides = [1, 1]} : vector<64x192xf32> to vector<64x16xf32>
    %100 = arith.truncf %99 : vector<64x16xf32> to vector<64x16xbf16>
    %c3_60 = arith.constant 3 : index
    %c0_61 = arith.constant 0 : index
    %c0_62 = arith.constant 0 : index
    %101 = vector.load %arg31[%c3_60, %c0_61, %c0_62] : memref<4x64x16xbf16, #tpu.memory_space<vmem>>, vector<1x64x16xbf16>
    %102 = vector.shape_cast %101 : vector<1x64x16xbf16> to vector<64x16xbf16>
    %103 = vector.shape_cast %100 : vector<64x16xbf16> to vector<1x64x16xbf16>
    tpu.vector_store %arg31[%c3_60, %c0_61, %c0_62], %103 {strides = array<i32>} : memref<4x64x16xbf16, #tpu.memory_space<vmem>>, vector<1x64x16xbf16>,
    %104 = vector.extract_strided_slice %34 {offsets = [0, 176], sizes = [64, 16], strides = [1, 1]} : vector<64x192xf32> to vector<64x16xf32>
    %105 = arith.truncf %104 : vector<64x16xf32> to vector<64x16xbf16>
    %c3_63 = arith.constant 3 : index
    %c0_64 = arith.constant 0 : index
    %c0_65 = arith.constant 0 : index
    %106 = vector.load %arg32[%c3_63, %c0_64, %c0_65] : memref<4x64x16xbf16, #tpu.memory_space<vmem>>, vector<1x64x16xbf16>
    %107 = vector.shape_cast %106 : vector<1x64x16xbf16> to vector<64x16xbf16>
    %108 = vector.shape_cast %105 : vector<64x16xbf16> to vector<1x64x16xbf16>
    tpu.vector_store %arg32[%c3_63, %c0_64, %c0_65], %108 {strides = array<i32>} : memref<4x64x16xbf16, #tpu.memory_space<vmem>>, vector<1x64x16xbf16>,
    %109 = vector.extract_strided_slice %37 {offsets = [0, 48], sizes = [128, 16], strides = [1, 1]} : vector<128x64xf32> to vector<128x16xf32>
    %110 = arith.truncf %109 : vector<128x16xf32> to vector<128x16xbf16>
    %c3_66 = arith.constant 3 : index
    %c0_67 = arith.constant 0 : index
    %c0_68 = arith.constant 0 : index
    %111 = vector.load %arg33[%c3_66, %c0_67, %c0_68] : memref<4x128x16xbf16, #tpu.memory_space<vmem>>, vector<1x128x16xbf16>
    %112 = vector.shape_cast %111 : vector<1x128x16xbf16> to vector<128x16xbf16>
    %113 = vector.shape_cast %110 : vector<128x16xbf16> to vector<1x128x16xbf16>
    tpu.vector_store %arg33[%c3_66, %c0_67, %c0_68], %113 {strides = array<i32>} : memref<4x128x16xbf16, #tpu.memory_space<vmem>>, vector<1x128x16xbf16>,
    %c0_69 = arith.constant 0 : index
    %c0_70 = arith.constant 0 : index
    %c0_71 = arith.constant 0 : index
    %114 = vector.load %arg14[%c0_69, %c0_70, %c0_71] : memref<4x1x16xf32, #tpu.memory_space<vmem>>, vector<4x1x16xf32>
    %c0_72 = arith.constant 0 : index
    %c0_73 = arith.constant 0 : index
    %c0_74 = arith.constant 0 : index
    %115 = vector.load %arg15[%c0_72, %c0_73, %c0_74] : memref<4x1x16xf32, #tpu.memory_space<vmem>>, vector<4x1x16xf32>
    %c0_75 = arith.constant 0 : index
    %c0_76 = arith.constant 0 : index
    %116 = vector.load %arg17[%c0_75, %c0_76] : memref<1x64xf32, #tpu.memory_space<vmem>>, vector<1x64xf32>
    %c0_i32 = arith.constant 0 : i32
    %c64_i32 = arith.constant 64 : i32
    %117 = arith.muli %c0_i32, %c64_i32 : i32
    %c0_i32_77 = arith.constant 0 : i32
    %118 = arith.subi %c0_i32_77, %117 : i32
    %119 = tpu.assume_multiple %117, 8 : i32
    %120 = tpu.assume_multiple %118, 8 : i32
    %c0_78 = arith.constant 0 : index
    %121 = arith.index_cast %119 : i32 to index
    %c0_79 = arith.constant 0 : index
    %122 = vector.load %arg30[%c0_78, %121, %c0_79] : memref<4x64x16xf32, #tpu.memory_space<vmem>>, vector<4x64x16xf32>
    %123 = vector.broadcast %114 : vector<4x1x16xf32> to vector<4x64x16xf32>
    %124 = arith.addf %122, %123 : vector<4x64x16xf32>
    %125 = arith.truncf %124 : vector<4x64x16xf32> to vector<4x64x16xbf16>
    %126 = vector.broadcast %115 : vector<4x1x16xf32> to vector<4x64x16xf32>
    %127 = arith.addf %122, %126 : vector<4x64x16xf32>
    %128 = arith.truncf %127 : vector<4x64x16xf32> to vector<4x64x16xbf16>
    %c0_80 = arith.constant 0 : index
    %c0_81 = arith.constant 0 : index
    %c0_82 = arith.constant 0 : index
    %129 = vector.load %arg31[%c0_80, %c0_81, %c0_82] : memref<4x64x16xbf16, #tpu.memory_space<vmem>>, vector<4x64x16xbf16>
    %c0_83 = arith.constant 0 : index
    %c0_84 = arith.constant 0 : index
    %c0_85 = arith.constant 0 : index
    %130 = vector.load %arg32[%c0_83, %c0_84, %c0_85] : memref<4x64x16xbf16, #tpu.memory_space<vmem>>, vector<4x64x16xbf16>
    "tpu.trace_start"() <{level = 10 : i32, message = "hqd,hkd->hqk"}> : () -> ()
    %cst_86 = arith.constant dense<0.000000e+00> : vector<4x64x64xf32>
    %131 = tpu.matmul %125, %129, %cst_86 {dimension_numbers = #tpu.dot_dimension_numbers<[2], [2], [1], [1], [0, 0, 0, 1, 1, 1], [0], [0]>} : vector<4x64x16xbf16>, vector<4x64x16xbf16>, vector<4x64x64xf32> -> vector<4x64x64xf32>
    "tpu.trace_stop"() : () -> ()
    %c0_87 = arith.constant 0 : index
    %132 = arith.index_cast %120 : i32 to index
    %c0_88 = arith.constant 0 : index
    %133 = vector.load %arg33[%c0_87, %132, %c0_88] : memref<4x128x16xbf16, #tpu.memory_space<vmem>>, vector<4x128x16xbf16>
    "tpu.trace_start"() <{level = 10 : i32, message = "hqd,hpd->hqp"}> : () -> ()
    %cst_89 = arith.constant dense<0.000000e+00> : vector<4x64x128xf32>
    %134 = tpu.matmul %128, %133, %cst_89 {dimension_numbers = #tpu.dot_dimension_numbers<[2], [2], [1], [1], [0, 0, 0, 1, 1, 1], [0], [0]>} : vector<4x64x16xbf16>, vector<4x128x16xbf16>, vector<4x64x128xf32> -> vector<4x64x128xf32>
    "tpu.trace_stop"() : () -> ()
    %135 = vector.extract_strided_slice %134 {offsets = [0, 0, 0], sizes = [1, 64, 128], strides = [1, 1, 1]} : vector<4x64x128xf32> to vector<1x64x128xf32>
    %136 = vector.shape_cast %135 : vector<1x64x128xf32> to vector<64x128xf32>
    %c64_i32_90 = arith.constant 64 : i32
    %137 = tpu.dynamic_rotate %136 by %c64_i32_90 dim 1 {stride = 1 : si32, stride_dimension = 0 : si32} : vector<64x128xf32>, i32 -> vector<64x128xf32>
    %138 = vector.extract_strided_slice %137 {offsets = [0, 0], sizes = [64, 64], strides = [1, 1]} : vector<64x128xf32> to vector<64x64xf32>
    %139 = vector.extract_strided_slice %134 {offsets = [1, 0, 0], sizes = [1, 64, 128], strides = [1, 1, 1]} : vector<4x64x128xf32> to vector<1x64x128xf32>
    %140 = vector.shape_cast %139 : vector<1x64x128xf32> to vector<64x128xf32>
    %c64_i32_91 = arith.constant 64 : i32
    %141 = tpu.dynamic_rotate %140 by %c64_i32_91 dim 1 {stride = 1 : si32, stride_dimension = 0 : si32} : vector<64x128xf32>, i32 -> vector<64x128xf32>
    %142 = vector.extract_strided_slice %141 {offsets = [0, 0], sizes = [64, 64], strides = [1, 1]} : vector<64x128xf32> to vector<64x64xf32>
    %143 = vector.extract_strided_slice %134 {offsets = [2, 0, 0], sizes = [1, 64, 128], strides = [1, 1, 1]} : vector<4x64x128xf32> to vector<1x64x128xf32>
    %144 = vector.shape_cast %143 : vector<1x64x128xf32> to vector<64x128xf32>
    %c64_i32_92 = arith.constant 64 : i32
    %145 = tpu.dynamic_rotate %144 by %c64_i32_92 dim 1 {stride = 1 : si32, stride_dimension = 0 : si32} : vector<64x128xf32>, i32 -> vector<64x128xf32>
    %146 = vector.extract_strided_slice %145 {offsets = [0, 0], sizes = [64, 64], strides = [1, 1]} : vector<64x128xf32> to vector<64x64xf32>
    %147 = vector.extract_strided_slice %134 {offsets = [3, 0, 0], sizes = [1, 64, 128], strides = [1, 1, 1]} : vector<4x64x128xf32> to vector<1x64x128xf32>
    %148 = vector.shape_cast %147 : vector<1x64x128xf32> to vector<64x128xf32>
    %c64_i32_93 = arith.constant 64 : i32
    %149 = tpu.dynamic_rotate %148 by %c64_i32_93 dim 1 {stride = 1 : si32, stride_dimension = 0 : si32} : vector<64x128xf32>, i32 -> vector<64x128xf32>
    %150 = vector.extract_strided_slice %149 {offsets = [0, 0], sizes = [64, 64], strides = [1, 1]} : vector<64x128xf32> to vector<64x64xf32>
    %151 = vector.shape_cast %138 : vector<64x64xf32> to vector<1x64x64xf32>
    %152 = vector.shape_cast %142 : vector<64x64xf32> to vector<1x64x64xf32>
    %153 = vector.shape_cast %146 : vector<64x64xf32> to vector<1x64x64xf32>
    %154 = vector.shape_cast %150 : vector<64x64xf32> to vector<1x64x64xf32>
    %155 = tpu.concatenate %151, %152, %153, %154 in 0 : vector<1x64x64xf32>, vector<1x64x64xf32>, vector<1x64x64xf32>, vector<1x64x64xf32> -> vector<4x64x64xf32>
    %156 = arith.addf %131, %155 : vector<4x64x64xf32>
    %cst_94 = arith.constant 2.500000e-01 : f32
    %157 = vector.broadcast %cst_94 : f32 to vector<4x64x64xf32>
    %158 = arith.mulf %156, %157 : vector<4x64x64xf32>
    %cst_95 = arith.constant -1.000000e+30 : f32
    %159 = vector.shape_cast %4 : vector<1x1x64xi1> to vector<1x1x64xi1>
    %160 = vector.broadcast %159 : vector<1x1x64xi1> to vector<4x64x64xi1>
    %161 = vector.broadcast %cst_95 : f32 to vector<4x64x64xf32>
    %162 = arith.select %160, %161, %158 : vector<4x64x64xi1>, vector<4x64x64xf32>
    %cst_96 = arith.constant dense<0xFF800000> : vector<4x64xf32>
    %163 = vector.multi_reduction <maximumf>, %162, %cst_96 [2] : vector<4x64x64xf32> to vector<4x64xf32>
    %164 = vector.shape_cast %163 : vector<4x64xf32> to vector<4x64x1xf32>
    %165 = vector.broadcast %164 : vector<4x64x1xf32> to vector<4x64x64xf32>
    %166 = arith.subf %162, %165 : vector<4x64x64xf32>
    %167 = math.exp %166 : vector<4x64x64xf32>
    %cst_97 = arith.constant dense<0.000000e+00> : vector<4x64xf32>
    %168 = vector.multi_reduction <add>, %167, %cst_97 [2] : vector<4x64x64xf32> to vector<4x64xf32>
    %169 = vector.shape_cast %168 : vector<4x64xf32> to vector<4x64x1xf32>
    %170 = tpu.reciprocal %169 {approx = true} : vector<4x64x1xf32> -> vector<4x64x1xf32>
    %171 = vector.broadcast %170 : vector<4x64x1xf32> to vector<4x64x64xf32>
    %172 = arith.mulf %167, %171 : vector<4x64x64xf32>
    %173 = arith.truncf %172 : vector<4x64x64xf32> to vector<4x64x64xbf16>
    "tpu.trace_start"() <{level = 10 : i32, message = "hqk,hkd->hqd"}> : () -> ()
    %cst_98 = arith.constant dense<0.000000e+00> : vector<4x64x16xf32>
    %174 = tpu.matmul %173, %130, %cst_98 {dimension_numbers = #tpu.dot_dimension_numbers<[2], [1], [1], [2], [0, 0, 0, 1, 1, 2], [0], [0]>} : vector<4x64x64xbf16>, vector<4x64x16xbf16>, vector<4x64x16xf32> -> vector<4x64x16xf32>
    "tpu.trace_stop"() : () -> ()
    %175 = vector.extract_strided_slice %174 {offsets = [0, 0, 0], sizes = [1, 64, 16], strides = [1, 1, 1]} : vector<4x64x16xf32> to vector<1x64x16xf32>
    %176 = vector.shape_cast %175 : vector<1x64x16xf32> to vector<64x16xf32>
    %177 = arith.truncf %176 : vector<64x16xf32> to vector<64x16xbf16>
    %c0_99 = arith.constant 0 : index
    %c0_100 = arith.constant 0 : index
    %c0_101 = arith.constant 0 : index
    %178 = vector.load %arg16[%c0_99, %c0_100, %c0_101] : memref<4x16x64xbf16, #tpu.memory_space<vmem>>, vector<1x16x64xbf16>
    %179 = vector.shape_cast %178 : vector<1x16x64xbf16> to vector<16x64xbf16>
    %cst_102 = arith.constant dense<0.000000e+00> : vector<64x64xf32>
    %180 = tpu.matmul %177, %179, %cst_102 {dimension_numbers = #tpu.dot_dimension_numbers<[1], [0], [0], [1], [0, 0, 1, 1], [], []>} : vector<64x16xbf16>, vector<16x64xbf16>, vector<64x64xf32> -> vector<64x64xf32>
    %181 = vector.broadcast %116 : vector<1x64xf32> to vector<64x64xf32>
    %182 = arith.addf %181, %180 : vector<64x64xf32>
    %183 = vector.extract_strided_slice %174 {offsets = [1, 0, 0], sizes = [1, 64, 16], strides = [1, 1, 1]} : vector<4x64x16xf32> to vector<1x64x16xf32>
    %184 = vector.shape_cast %183 : vector<1x64x16xf32> to vector<64x16xf32>
    %185 = arith.truncf %184 : vector<64x16xf32> to vector<64x16xbf16>
    %c1_103 = arith.constant 1 : index
    %c0_104 = arith.constant 0 : index
    %c0_105 = arith.constant 0 : index
    %186 = vector.load %arg16[%c1_103, %c0_104, %c0_105] : memref<4x16x64xbf16, #tpu.memory_space<vmem>>, vector<1x16x64xbf16>
    %187 = vector.shape_cast %186 : vector<1x16x64xbf16> to vector<16x64xbf16>
    %cst_106 = arith.constant dense<0.000000e+00> : vector<64x64xf32>
    %188 = tpu.matmul %185, %187, %cst_106 {dimension_numbers = #tpu.dot_dimension_numbers<[1], [0], [0], [1], [0, 0, 1, 1], [], []>} : vector<64x16xbf16>, vector<16x64xbf16>, vector<64x64xf32> -> vector<64x64xf32>
    %189 = arith.addf %182, %188 : vector<64x64xf32>
    %190 = vector.extract_strided_slice %174 {offsets = [2, 0, 0], sizes = [1, 64, 16], strides = [1, 1, 1]} : vector<4x64x16xf32> to vector<1x64x16xf32>
    %191 = vector.shape_cast %190 : vector<1x64x16xf32> to vector<64x16xf32>
    %192 = arith.truncf %191 : vector<64x16xf32> to vector<64x16xbf16>
    %c2_107 = arith.constant 2 : index
    %c0_108 = arith.constant 0 : index
    %c0_109 = arith.constant 0 : index
    %193 = vector.load %arg16[%c2_107, %c0_108, %c0_109] : memref<4x16x64xbf16, #tpu.memory_space<vmem>>, vector<1x16x64xbf16>
    %194 = vector.shape_cast %193 : vector<1x16x64xbf16> to vector<16x64xbf16>
    %cst_110 = arith.constant dense<0.000000e+00> : vector<64x64xf32>
    %195 = tpu.matmul %192, %194, %cst_110 {dimension_numbers = #tpu.dot_dimension_numbers<[1], [0], [0], [1], [0, 0, 1, 1], [], []>} : vector<64x16xbf16>, vector<16x64xbf16>, vector<64x64xf32> -> vector<64x64xf32>
    %196 = arith.addf %189, %195 : vector<64x64xf32>
    %197 = vector.extract_strided_slice %174 {offsets = [3, 0, 0], sizes = [1, 64, 16], strides = [1, 1, 1]} : vector<4x64x16xf32> to vector<1x64x16xf32>
    %198 = vector.shape_cast %197 : vector<1x64x16xf32> to vector<64x16xf32>
    %199 = arith.truncf %198 : vector<64x16xf32> to vector<64x16xbf16>
    %c3_111 = arith.constant 3 : index
    %c0_112 = arith.constant 0 : index
    %c0_113 = arith.constant 0 : index
    %200 = vector.load %arg16[%c3_111, %c0_112, %c0_113] : memref<4x16x64xbf16, #tpu.memory_space<vmem>>, vector<1x16x64xbf16>
    %201 = vector.shape_cast %200 : vector<1x16x64xbf16> to vector<16x64xbf16>
    %cst_114 = arith.constant dense<0.000000e+00> : vector<64x64xf32>
    %202 = tpu.matmul %199, %201, %cst_114 {dimension_numbers = #tpu.dot_dimension_numbers<[1], [0], [0], [1], [0, 0, 1, 1], [], []>} : vector<64x16xbf16>, vector<16x64xbf16>, vector<64x64xf32> -> vector<64x64xf32>
    %203 = arith.addf %196, %202 : vector<64x64xf32>
    %204 = arith.index_cast %119 : i32 to index
    %c0_115 = arith.constant 0 : index
    %205 = vector.load %arg34[%204, %c0_115] : memref<64x64xf32, #tpu.memory_space<vmem>>, vector<64x64xf32>
    tpu.vector_store %arg34[%204, %c0_115], %203 {strides = array<i32>} : memref<64x64xf32, #tpu.memory_space<vmem>>, vector<64x64xf32>,
    %c1_i32 = arith.constant 1 : i32
    %c0_116 = arith.constant 0 : index
    %c0_117 = arith.constant 0 : index
    %206 = vector.load %arg34[%c0_116, %c0_117] : memref<64x64xf32, #tpu.memory_space<vmem>>, vector<64x64xf32>
    %c0_118 = arith.constant 0 : index
    %c0_119 = arith.constant 0 : index
    %207 = vector.load %arg7[%c0_118, %c0_119] : memref<1x64xf32, #tpu.memory_space<vmem>>, vector<1x64xf32>
    %c0_120 = arith.constant 0 : index
    %c0_121 = arith.constant 0 : index
    %208 = vector.load %arg8[%c0_120, %c0_121] : memref<1x64xf32, #tpu.memory_space<vmem>>, vector<1x64xf32>
    %cst_122 = arith.constant dense<0.000000e+00> : vector<64xf32>
    %209 = vector.multi_reduction <add>, %1, %cst_122 [1] : vector<64x64xf32> to vector<64xf32>
    %210 = vector.shape_cast %209 : vector<64xf32> to vector<64x1xf32>
    %cst_123 = arith.constant 6.400000e+01 : f32
    %211 = vector.broadcast %cst_123 : f32 to vector<64x1xf32>
    %212 = arith.divf %210, %211 : vector<64x1xf32>
    %213 = vector.broadcast %212 : vector<64x1xf32> to vector<64x64xf32>
    %214 = arith.subf %1, %213 : vector<64x64xf32>
    %215 = arith.mulf %214, %214 : vector<64x64xf32>
    %cst_124 = arith.constant dense<0.000000e+00> : vector<64xf32>
    %216 = vector.multi_reduction <add>, %215, %cst_124 [1] : vector<64x64xf32> to vector<64xf32>
    %217 = vector.shape_cast %216 : vector<64xf32> to vector<64x1xf32>
    %cst_125 = arith.constant 6.400000e+01 : f32
    %218 = vector.broadcast %cst_125 : f32 to vector<64x1xf32>
    %219 = arith.divf %217, %218 : vector<64x1xf32>
    %220 = vector.broadcast %212 : vector<64x1xf32> to vector<64x64xf32>
    %221 = arith.subf %1, %220 : vector<64x64xf32>
    %cst_126 = arith.constant 9.99999974E-6 : f32
    %222 = vector.broadcast %cst_126 : f32 to vector<64x1xf32>
    %223 = arith.addf %219, %222 : vector<64x1xf32>
    %224 = math.rsqrt %223 : vector<64x1xf32>
    %225 = vector.broadcast %224 : vector<64x1xf32> to vector<64x64xf32>
    %226 = arith.mulf %221, %225 : vector<64x64xf32>
    %227 = vector.broadcast %207 : vector<1x64xf32> to vector<64x64xf32>
    %228 = arith.mulf %226, %227 : vector<64x64xf32>
    %229 = vector.broadcast %208 : vector<1x64xf32> to vector<64x64xf32>
    %230 = arith.addf %228, %229 : vector<64x64xf32>
    %231 = arith.truncf %230 : vector<64x64xf32> to vector<64x64xbf16>
    %c0_127 = arith.constant 0 : index
    %c0_128 = arith.constant 0 : index
    %232 = vector.load %arg18[%c0_127, %c0_128] : memref<64x128xbf16, #tpu.memory_space<vmem>>, vector<64x128xbf16>
    %cst_129 = arith.constant dense<0.000000e+00> : vector<64x128xf32>
    %233 = tpu.matmul %231, %232, %cst_129 {dimension_numbers = #tpu.dot_dimension_numbers<[1], [0], [0], [1], [0, 0, 1, 1], [], []>} : vector<64x64xbf16>, vector<64x128xbf16>, vector<64x128xf32> -> vector<64x128xf32>
    %c0_130 = arith.constant 0 : index
    %c0_131 = arith.constant 0 : index
    %234 = vector.load %arg19[%c0_130, %c0_131] : memref<1x128xf32, #tpu.memory_space<vmem>>, vector<1x128xf32>
    %235 = vector.broadcast %234 : vector<1x128xf32> to vector<64x128xf32>
    %236 = arith.addf %233, %235 : vector<64x128xf32>
    %cst_132 = arith.constant 5.000000e-01 : f32
    %237 = vector.broadcast %cst_132 : f32 to vector<64x128xf32>
    %238 = arith.mulf %237, %236 : vector<64x128xf32>
    %cst_133 = arith.constant 0.707106769 : f32
    %239 = vector.broadcast %cst_133 : f32 to vector<64x128xf32>
    %240 = arith.mulf %236, %239 : vector<64x128xf32>
    %cst_134 = arith.constant 0.000000e+00 : f32
    %241 = vector.broadcast %cst_134 : f32 to vector<64x128xf32>
    %242 = arith.cmpf oge, %240, %241 : vector<64x128xf32>
    %cst_135 = arith.constant 1.000000e+00 : f32
    %cst_136 = arith.constant -1.000000e+00 : f32
    %243 = vector.broadcast %cst_135 : f32 to vector<64x128xf32>
    %244 = vector.broadcast %cst_136 : f32 to vector<64x128xf32>
    %245 = arith.select %242, %243, %244 : vector<64x128xi1>, vector<64x128xf32>
    %246 = math.absf %240 : vector<64x128xf32>
    %cst_137 = arith.constant 0.327591091 : f32
    %247 = vector.broadcast %cst_137 : f32 to vector<64x128xf32>
    %248 = arith.mulf %247, %246 : vector<64x128xf32>
    %cst_138 = arith.constant 1.000000e+00 : f32
    %249 = vector.broadcast %cst_138 : f32 to vector<64x128xf32>
    %250 = arith.addf %249, %248 : vector<64x128xf32>
    %cst_139 = arith.constant 1.000000e+00 : f32
    %251 = vector.broadcast %cst_139 : f32 to vector<64x128xf32>
    %252 = arith.divf %251, %250 : vector<64x128xf32>
    %cst_140 = arith.constant 1.06140542 : f32
    %253 = vector.broadcast %cst_140 : f32 to vector<64x128xf32>
    %254 = arith.mulf %253, %252 : vector<64x128xf32>
    %cst_141 = arith.constant -1.45315206 : f32
    %255 = vector.broadcast %cst_141 : f32 to vector<64x128xf32>
    %256 = arith.addf %254, %255 : vector<64x128xf32>
    %257 = arith.mulf %256, %252 : vector<64x128xf32>
    %cst_142 = arith.constant 1.42141378 : f32
    %258 = vector.broadcast %cst_142 : f32 to vector<64x128xf32>
    %259 = arith.addf %257, %258 : vector<64x128xf32>
    %260 = arith.mulf %259, %252 : vector<64x128xf32>
    %cst_143 = arith.constant -0.284496725 : f32
    %261 = vector.broadcast %cst_143 : f32 to vector<64x128xf32>
    %262 = arith.addf %260, %261 : vector<64x128xf32>
    %263 = arith.mulf %262, %252 : vector<64x128xf32>
    %cst_144 = arith.constant 0.254829586 : f32
    %264 = vector.broadcast %cst_144 : f32 to vector<64x128xf32>
    %265 = arith.addf %263, %264 : vector<64x128xf32>
    %266 = arith.mulf %265, %252 : vector<64x128xf32>
    %cst_145 = arith.constant 0.000000e+00 : f32
    %267 = vector.broadcast %cst_145 : f32 to vector<64x128xf32>
    %268 = arith.subf %267, %246 : vector<64x128xf32>
    %269 = arith.mulf %268, %246 : vector<64x128xf32>
    %270 = math.exp %269 : vector<64x128xf32>
    %271 = arith.mulf %266, %270 : vector<64x128xf32>
    %cst_146 = arith.constant 1.000000e+00 : f32
    %272 = vector.broadcast %cst_146 : f32 to vector<64x128xf32>
    %273 = arith.subf %272, %271 : vector<64x128xf32>
    %274 = arith.mulf %245, %273 : vector<64x128xf32>
    %cst_147 = arith.constant 1.000000e+00 : f32
    %275 = vector.broadcast %cst_147 : f32 to vector<64x128xf32>
    %276 = arith.addf %275, %274 : vector<64x128xf32>
    %277 = arith.mulf %238, %276 : vector<64x128xf32>
    %278 = vector.extract_strided_slice %277 {offsets = [0, 0], sizes = [64, 64], strides = [1, 1]} : vector<64x128xf32> to vector<64x64xf32>
    %279 = vector.extract_strided_slice %277 {offsets = [0, 64], sizes = [64, 64], strides = [1, 1]} : vector<64x128xf32> to vector<64x64xf32>
    %c0_148 = arith.constant 0 : index
    %c0_149 = arith.constant 0 : index
    %280 = vector.load %arg20[%c0_148, %c0_149] : memref<1x64xf32, #tpu.memory_space<vmem>>, vector<1x64xf32>
    %c0_150 = arith.constant 0 : index
    %c0_151 = arith.constant 0 : index
    %281 = vector.load %arg21[%c0_150, %c0_151] : memref<1x64xf32, #tpu.memory_space<vmem>>, vector<1x64xf32>
    %cst_152 = arith.constant dense<0.000000e+00> : vector<64xf32>
    %282 = vector.multi_reduction <add>, %279, %cst_152 [1] : vector<64x64xf32> to vector<64xf32>
    %283 = vector.shape_cast %282 : vector<64xf32> to vector<64x1xf32>
    %cst_153 = arith.constant 6.400000e+01 : f32
    %284 = vector.broadcast %cst_153 : f32 to vector<64x1xf32>
    %285 = arith.divf %283, %284 : vector<64x1xf32>
    %286 = vector.broadcast %285 : vector<64x1xf32> to vector<64x64xf32>
    %287 = arith.subf %279, %286 : vector<64x64xf32>
    %288 = arith.mulf %287, %287 : vector<64x64xf32>
    %cst_154 = arith.constant dense<0.000000e+00> : vector<64xf32>
    %289 = vector.multi_reduction <add>, %288, %cst_154 [1] : vector<64x64xf32> to vector<64xf32>
    %290 = vector.shape_cast %289 : vector<64xf32> to vector<64x1xf32>
    %cst_155 = arith.constant 6.400000e+01 : f32
    %291 = vector.broadcast %cst_155 : f32 to vector<64x1xf32>
    %292 = arith.divf %290, %291 : vector<64x1xf32>
    %293 = vector.broadcast %285 : vector<64x1xf32> to vector<64x64xf32>
    %294 = arith.subf %279, %293 : vector<64x64xf32>
    %cst_156 = arith.constant 9.99999974E-6 : f32
    %295 = vector.broadcast %cst_156 : f32 to vector<64x1xf32>
    %296 = arith.addf %292, %295 : vector<64x1xf32>
    %297 = math.rsqrt %296 : vector<64x1xf32>
    %298 = vector.broadcast %297 : vector<64x1xf32> to vector<64x64xf32>
    %299 = arith.mulf %294, %298 : vector<64x64xf32>
    %300 = vector.broadcast %280 : vector<1x64xf32> to vector<64x64xf32>
    %301 = arith.mulf %299, %300 : vector<64x64xf32>
    %302 = vector.broadcast %281 : vector<1x64xf32> to vector<64x64xf32>
    %303 = arith.addf %301, %302 : vector<64x64xf32>
    %c0_157 = arith.constant 0 : index
    %c0_158 = arith.constant 0 : index
    %c0_159 = arith.constant 0 : index
    %304 = vector.load %arg4[%c0_157, %c0_158, %c0_159] : memref<1x64x1xf32, #tpu.memory_space<vmem>>, vector<1x64x1xf32>
    %305 = vector.shape_cast %304 : vector<1x64x1xf32> to vector<64x1xf32>
    %cst_160 = arith.constant 5.000000e-01 : f32
    %306 = vector.broadcast %cst_160 : f32 to vector<64x1xf32>
    %307 = arith.cmpf ogt, %305, %306 : vector<64x1xf32>
    %cst_161 = arith.constant 0.000000e+00 : f32
    %308 = vector.shape_cast %307 : vector<64x1xi1> to vector<64x1xi1>
    %309 = vector.broadcast %308 : vector<64x1xi1> to vector<64x64xi1>
    %310 = vector.broadcast %cst_161 : f32 to vector<64x64xf32>
    %311 = arith.select %309, %310, %303 : vector<64x64xi1>, vector<64x64xf32>
    %cst_162 = arith.constant 0.000000e+00 : f32
    %312 = vector.broadcast %cst_162 : f32 to vector<94x64xf32>
    %c0_163 = arith.constant 0 : index
    %c0_164 = arith.constant 0 : index
    %313 = vector.load %arg35[%c0_163, %c0_164] : memref<94x64xf32, #tpu.memory_space<vmem>>, vector<94x64xf32>
    tpu.vector_store %arg35[%c0_163, %c0_164], %312 {strides = array<i32>} : memref<94x64xf32, #tpu.memory_space<vmem>>, vector<94x64xf32>,
    %c15 = arith.constant 15 : index
    %c0_165 = arith.constant 0 : index
    %314 = vector.load %arg35[%c15, %c0_165] : memref<94x64xf32, #tpu.memory_space<vmem>>, vector<64x64xf32>
    tpu.vector_store %arg35[%c15, %c0_165], %311 {strides = array<i32>} : memref<94x64xf32, #tpu.memory_space<vmem>>, vector<64x64xf32>,
    %cst_166 = arith.constant 0.000000e+00 : f32
    %315 = vector.broadcast %cst_166 : f32 to vector<64x64xf32>
    %c0_167 = arith.constant 0 : index
    %c0_168 = arith.constant 0 : index
    %316 = vector.load %arg35[%c0_167, %c0_168] : memref<94x64xf32, #tpu.memory_space<vmem>>, vector<64x64xf32>
    %c0_169 = arith.constant 0 : index
    %c0_170 = arith.constant 0 : index
    %317 = vector.load %arg22[%c0_169, %c0_170] : memref<31x64xf32, #tpu.memory_space<vmem>>, vector<1x64xf32>
    %318 = vector.broadcast %317 : vector<1x64xf32> to vector<64x64xf32>
    %319 = arith.mulf %316, %318 : vector<64x64xf32>
    %320 = arith.addf %315, %319 : vector<64x64xf32>
    %c1_171 = arith.constant 1 : index
    %c0_172 = arith.constant 0 : index
    %321 = vector.load %arg35[%c1_171, %c0_172] : memref<94x64xf32, #tpu.memory_space<vmem>>, vector<64x64xf32>
    %c1_173 = arith.constant 1 : index
    %c0_174 = arith.constant 0 : index
    %322 = vector.load %arg22[%c1_173, %c0_174] : memref<31x64xf32, #tpu.memory_space<vmem>>, vector<1x64xf32>
    %323 = vector.broadcast %322 : vector<1x64xf32> to vector<64x64xf32>
    %324 = arith.mulf %321, %323 : vector<64x64xf32>
    %325 = arith.addf %320, %324 : vector<64x64xf32>
    %c2_175 = arith.constant 2 : index
    %c0_176 = arith.constant 0 : index
    %326 = vector.load %arg35[%c2_175, %c0_176] : memref<94x64xf32, #tpu.memory_space<vmem>>, vector<64x64xf32>
    %c2_177 = arith.constant 2 : index
    %c0_178 = arith.constant 0 : index
    %327 = vector.load %arg22[%c2_177, %c0_178] : memref<31x64xf32, #tpu.memory_space<vmem>>, vector<1x64xf32>
    %328 = vector.broadcast %327 : vector<1x64xf32> to vector<64x64xf32>
    %329 = arith.mulf %326, %328 : vector<64x64xf32>
    %330 = arith.addf %325, %329 : vector<64x64xf32>
    %c3_179 = arith.constant 3 : index
    %c0_180 = arith.constant 0 : index
    %331 = vector.load %arg35[%c3_179, %c0_180] : memref<94x64xf32, #tpu.memory_space<vmem>>, vector<64x64xf32>
    %c3_181 = arith.constant 3 : index
    %c0_182 = arith.constant 0 : index
    %332 = vector.load %arg22[%c3_181, %c0_182] : memref<31x64xf32, #tpu.memory_space<vmem>>, vector<1x64xf32>
    %333 = vector.broadcast %332 : vector<1x64xf32> to vector<64x64xf32>
    %334 = arith.mulf %331, %333 : vector<64x64xf32>
    %335 = arith.addf %330, %334 : vector<64x64xf32>
    %c4 = arith.constant 4 : index
    %c0_183 = arith.constant 0 : index
    %336 = vector.load %arg35[%c4, %c0_183] : memref<94x64xf32, #tpu.memory_space<vmem>>, vector<64x64xf32>
    %c4_184 = arith.constant 4 : index
    %c0_185 = arith.constant 0 : index
    %337 = vector.load %arg22[%c4_184, %c0_185] : memref<31x64xf32, #tpu.memory_space<vmem>>, vector<1x64xf32>
    %338 = vector.broadcast %337 : vector<1x64xf32> to vector<64x64xf32>
    %339 = arith.mulf %336, %338 : vector<64x64xf32>
    %340 = arith.addf %335, %339 : vector<64x64xf32>
    %c5 = arith.constant 5 : index
    %c0_186 = arith.constant 0 : index
    %341 = vector.load %arg35[%c5, %c0_186] : memref<94x64xf32, #tpu.memory_space<vmem>>, vector<64x64xf32>
    %c5_187 = arith.constant 5 : index
    %c0_188 = arith.constant 0 : index
    %342 = vector.load %arg22[%c5_187, %c0_188] : memref<31x64xf32, #tpu.memory_space<vmem>>, vector<1x64xf32>
    %343 = vector.broadcast %342 : vector<1x64xf32> to vector<64x64xf32>
    %344 = arith.mulf %341, %343 : vector<64x64xf32>
    %345 = arith.addf %340, %344 : vector<64x64xf32>
    %c6 = arith.constant 6 : index
    %c0_189 = arith.constant 0 : index
    %346 = vector.load %arg35[%c6, %c0_189] : memref<94x64xf32, #tpu.memory_space<vmem>>, vector<64x64xf32>
    %c6_190 = arith.constant 6 : index
    %c0_191 = arith.constant 0 : index
    %347 = vector.load %arg22[%c6_190, %c0_191] : memref<31x64xf32, #tpu.memory_space<vmem>>, vector<1x64xf32>
    %348 = vector.broadcast %347 : vector<1x64xf32> to vector<64x64xf32>
    %349 = arith.mulf %346, %348 : vector<64x64xf32>
    %350 = arith.addf %345, %349 : vector<64x64xf32>
    %c7 = arith.constant 7 : index
    %c0_192 = arith.constant 0 : index
    %351 = vector.load %arg35[%c7, %c0_192] : memref<94x64xf32, #tpu.memory_space<vmem>>, vector<64x64xf32>
    %c7_193 = arith.constant 7 : index
    %c0_194 = arith.constant 0 : index
    %352 = vector.load %arg22[%c7_193, %c0_194] : memref<31x64xf32, #tpu.memory_space<vmem>>, vector<1x64xf32>
    %353 = vector.broadcast %352 : vector<1x64xf32> to vector<64x64xf32>
    %354 = arith.mulf %351, %353 : vector<64x64xf32>
    %355 = arith.addf %350, %354 : vector<64x64xf32>
    %c8 = arith.constant 8 : index
    %c0_195 = arith.constant 0 : index
    %356 = vector.load %arg35[%c8, %c0_195] : memref<94x64xf32, #tpu.memory_space<vmem>>, vector<64x64xf32>
    %c8_196 = arith.constant 8 : index
    %c0_197 = arith.constant 0 : index
    %357 = vector.load %arg22[%c8_196, %c0_197] : memref<31x64xf32, #tpu.memory_space<vmem>>, vector<1x64xf32>
    %358 = vector.broadcast %357 : vector<1x64xf32> to vector<64x64xf32>
    %359 = arith.mulf %356, %358 : vector<64x64xf32>
    %360 = arith.addf %355, %359 : vector<64x64xf32>
    %c9 = arith.constant 9 : index
    %c0_198 = arith.constant 0 : index
    %361 = vector.load %arg35[%c9, %c0_198] : memref<94x64xf32, #tpu.memory_space<vmem>>, vector<64x64xf32>
    %c9_199 = arith.constant 9 : index
    %c0_200 = arith.constant 0 : index
    %362 = vector.load %arg22[%c9_199, %c0_200] : memref<31x64xf32, #tpu.memory_space<vmem>>, vector<1x64xf32>
    %363 = vector.broadcast %362 : vector<1x64xf32> to vector<64x64xf32>
    %364 = arith.mulf %361, %363 : vector<64x64xf32>
    %365 = arith.addf %360, %364 : vector<64x64xf32>
    %c10 = arith.constant 10 : index
    %c0_201 = arith.constant 0 : index
    %366 = vector.load %arg35[%c10, %c0_201] : memref<94x64xf32, #tpu.memory_space<vmem>>, vector<64x64xf32>
    %c10_202 = arith.constant 10 : index
    %c0_203 = arith.constant 0 : index
    %367 = vector.load %arg22[%c10_202, %c0_203] : memref<31x64xf32, #tpu.memory_space<vmem>>, vector<1x64xf32>
    %368 = vector.broadcast %367 : vector<1x64xf32> to vector<64x64xf32>
    %369 = arith.mulf %366, %368 : vector<64x64xf32>
    %370 = arith.addf %365, %369 : vector<64x64xf32>
    %c11 = arith.constant 11 : index
    %c0_204 = arith.constant 0 : index
    %371 = vector.load %arg35[%c11, %c0_204] : memref<94x64xf32, #tpu.memory_space<vmem>>, vector<64x64xf32>
    %c11_205 = arith.constant 11 : index
    %c0_206 = arith.constant 0 : index
    %372 = vector.load %arg22[%c11_205, %c0_206] : memref<31x64xf32, #tpu.memory_space<vmem>>, vector<1x64xf32>
    %373 = vector.broadcast %372 : vector<1x64xf32> to vector<64x64xf32>
    %374 = arith.mulf %371, %373 : vector<64x64xf32>
    %375 = arith.addf %370, %374 : vector<64x64xf32>
    %c12 = arith.constant 12 : index
    %c0_207 = arith.constant 0 : index
    %376 = vector.load %arg35[%c12, %c0_207] : memref<94x64xf32, #tpu.memory_space<vmem>>, vector<64x64xf32>
    %c12_208 = arith.constant 12 : index
    %c0_209 = arith.constant 0 : index
    %377 = vector.load %arg22[%c12_208, %c0_209] : memref<31x64xf32, #tpu.memory_space<vmem>>, vector<1x64xf32>
    %378 = vector.broadcast %377 : vector<1x64xf32> to vector<64x64xf32>
    %379 = arith.mulf %376, %378 : vector<64x64xf32>
    %380 = arith.addf %375, %379 : vector<64x64xf32>
    %c13 = arith.constant 13 : index
    %c0_210 = arith.constant 0 : index
    %381 = vector.load %arg35[%c13, %c0_210] : memref<94x64xf32, #tpu.memory_space<vmem>>, vector<64x64xf32>
    %c13_211 = arith.constant 13 : index
    %c0_212 = arith.constant 0 : index
    %382 = vector.load %arg22[%c13_211, %c0_212] : memref<31x64xf32, #tpu.memory_space<vmem>>, vector<1x64xf32>
    %383 = vector.broadcast %382 : vector<1x64xf32> to vector<64x64xf32>
    %384 = arith.mulf %381, %383 : vector<64x64xf32>
    %385 = arith.addf %380, %384 : vector<64x64xf32>
    %c14 = arith.constant 14 : index
    %c0_213 = arith.constant 0 : index
    %386 = vector.load %arg35[%c14, %c0_213] : memref<94x64xf32, #tpu.memory_space<vmem>>, vector<64x64xf32>
    %c14_214 = arith.constant 14 : index
    %c0_215 = arith.constant 0 : index
    %387 = vector.load %arg22[%c14_214, %c0_215] : memref<31x64xf32, #tpu.memory_space<vmem>>, vector<1x64xf32>
    %388 = vector.broadcast %387 : vector<1x64xf32> to vector<64x64xf32>
    %389 = arith.mulf %386, %388 : vector<64x64xf32>
    %390 = arith.addf %385, %389 : vector<64x64xf32>
    %c15_216 = arith.constant 15 : index
    %c0_217 = arith.constant 0 : index
    %391 = vector.load %arg35[%c15_216, %c0_217] : memref<94x64xf32, #tpu.memory_space<vmem>>, vector<64x64xf32>
    %c15_218 = arith.constant 15 : index
    %c0_219 = arith.constant 0 : index
    %392 = vector.load %arg22[%c15_218, %c0_219] : memref<31x64xf32, #tpu.memory_space<vmem>>, vector<1x64xf32>
    %393 = vector.broadcast %392 : vector<1x64xf32> to vector<64x64xf32>
    %394 = arith.mulf %391, %393 : vector<64x64xf32>
    %395 = arith.addf %390, %394 : vector<64x64xf32>
    %c16 = arith.constant 16 : index
    %c0_220 = arith.constant 0 : index
    %396 = vector.load %arg35[%c16, %c0_220] : memref<94x64xf32, #tpu.memory_space<vmem>>, vector<64x64xf32>
    %c16_221 = arith.constant 16 : index
    %c0_222 = arith.constant 0 : index
    %397 = vector.load %arg22[%c16_221, %c0_222] : memref<31x64xf32, #tpu.memory_space<vmem>>, vector<1x64xf32>
    %398 = vector.broadcast %397 : vector<1x64xf32> to vector<64x64xf32>
    %399 = arith.mulf %396, %398 : vector<64x64xf32>
    %400 = arith.addf %395, %399 : vector<64x64xf32>
    %c17 = arith.constant 17 : index
    %c0_223 = arith.constant 0 : index
    %401 = vector.load %arg35[%c17, %c0_223] : memref<94x64xf32, #tpu.memory_space<vmem>>, vector<64x64xf32>
    %c17_224 = arith.constant 17 : index
    %c0_225 = arith.constant 0 : index
    %402 = vector.load %arg22[%c17_224, %c0_225] : memref<31x64xf32, #tpu.memory_space<vmem>>, vector<1x64xf32>
    %403 = vector.broadcast %402 : vector<1x64xf32> to vector<64x64xf32>
    %404 = arith.mulf %401, %403 : vector<64x64xf32>
    %405 = arith.addf %400, %404 : vector<64x64xf32>
    %c18 = arith.constant 18 : index
    %c0_226 = arith.constant 0 : index
    %406 = vector.load %arg35[%c18, %c0_226] : memref<94x64xf32, #tpu.memory_space<vmem>>, vector<64x64xf32>
    %c18_227 = arith.constant 18 : index
    %c0_228 = arith.constant 0 : index
    %407 = vector.load %arg22[%c18_227, %c0_228] : memref<31x64xf32, #tpu.memory_space<vmem>>, vector<1x64xf32>
    %408 = vector.broadcast %407 : vector<1x64xf32> to vector<64x64xf32>
    %409 = arith.mulf %406, %408 : vector<64x64xf32>
    %410 = arith.addf %405, %409 : vector<64x64xf32>
    %c19 = arith.constant 19 : index
    %c0_229 = arith.constant 0 : index
    %411 = vector.load %arg35[%c19, %c0_229] : memref<94x64xf32, #tpu.memory_space<vmem>>, vector<64x64xf32>
    %c19_230 = arith.constant 19 : index
    %c0_231 = arith.constant 0 : index
    %412 = vector.load %arg22[%c19_230, %c0_231] : memref<31x64xf32, #tpu.memory_space<vmem>>, vector<1x64xf32>
    %413 = vector.broadcast %412 : vector<1x64xf32> to vector<64x64xf32>
    %414 = arith.mulf %411, %413 : vector<64x64xf32>
    %415 = arith.addf %410, %414 : vector<64x64xf32>
    %c20 = arith.constant 20 : index
    %c0_232 = arith.constant 0 : index
    %416 = vector.load %arg35[%c20, %c0_232] : memref<94x64xf32, #tpu.memory_space<vmem>>, vector<64x64xf32>
    %c20_233 = arith.constant 20 : index
    %c0_234 = arith.constant 0 : index
    %417 = vector.load %arg22[%c20_233, %c0_234] : memref<31x64xf32, #tpu.memory_space<vmem>>, vector<1x64xf32>
    %418 = vector.broadcast %417 : vector<1x64xf32> to vector<64x64xf32>
    %419 = arith.mulf %416, %418 : vector<64x64xf32>
    %420 = arith.addf %415, %419 : vector<64x64xf32>
    %c21 = arith.constant 21 : index
    %c0_235 = arith.constant 0 : index
    %421 = vector.load %arg35[%c21, %c0_235] : memref<94x64xf32, #tpu.memory_space<vmem>>, vector<64x64xf32>
    %c21_236 = arith.constant 21 : index
    %c0_237 = arith.constant 0 : index
    %422 = vector.load %arg22[%c21_236, %c0_237] : memref<31x64xf32, #tpu.memory_space<vmem>>, vector<1x64xf32>
    %423 = vector.broadcast %422 : vector<1x64xf32> to vector<64x64xf32>
    %424 = arith.mulf %421, %423 : vector<64x64xf32>
    %425 = arith.addf %420, %424 : vector<64x64xf32>
    %c22 = arith.constant 22 : index
    %c0_238 = arith.constant 0 : index
    %426 = vector.load %arg35[%c22, %c0_238] : memref<94x64xf32, #tpu.memory_space<vmem>>, vector<64x64xf32>
    %c22_239 = arith.constant 22 : index
    %c0_240 = arith.constant 0 : index
    %427 = vector.load %arg22[%c22_239, %c0_240] : memref<31x64xf32, #tpu.memory_space<vmem>>, vector<1x64xf32>
    %428 = vector.broadcast %427 : vector<1x64xf32> to vector<64x64xf32>
    %429 = arith.mulf %426, %428 : vector<64x64xf32>
    %430 = arith.addf %425, %429 : vector<64x64xf32>
    %c23 = arith.constant 23 : index
    %c0_241 = arith.constant 0 : index
    %431 = vector.load %arg35[%c23, %c0_241] : memref<94x64xf32, #tpu.memory_space<vmem>>, vector<64x64xf32>
    %c23_242 = arith.constant 23 : index
    %c0_243 = arith.constant 0 : index
    %432 = vector.load %arg22[%c23_242, %c0_243] : memref<31x64xf32, #tpu.memory_space<vmem>>, vector<1x64xf32>
    %433 = vector.broadcast %432 : vector<1x64xf32> to vector<64x64xf32>
    %434 = arith.mulf %431, %433 : vector<64x64xf32>
    %435 = arith.addf %430, %434 : vector<64x64xf32>
    %c24 = arith.constant 24 : index
    %c0_244 = arith.constant 0 : index
    %436 = vector.load %arg35[%c24, %c0_244] : memref<94x64xf32, #tpu.memory_space<vmem>>, vector<64x64xf32>
    %c24_245 = arith.constant 24 : index
    %c0_246 = arith.constant 0 : index
    %437 = vector.load %arg22[%c24_245, %c0_246] : memref<31x64xf32, #tpu.memory_space<vmem>>, vector<1x64xf32>
    %438 = vector.broadcast %437 : vector<1x64xf32> to vector<64x64xf32>
    %439 = arith.mulf %436, %438 : vector<64x64xf32>
    %440 = arith.addf %435, %439 : vector<64x64xf32>
    %c25 = arith.constant 25 : index
    %c0_247 = arith.constant 0 : index
    %441 = vector.load %arg35[%c25, %c0_247] : memref<94x64xf32, #tpu.memory_space<vmem>>, vector<64x64xf32>
    %c25_248 = arith.constant 25 : index
    %c0_249 = arith.constant 0 : index
    %442 = vector.load %arg22[%c25_248, %c0_249] : memref<31x64xf32, #tpu.memory_space<vmem>>, vector<1x64xf32>
    %443 = vector.broadcast %442 : vector<1x64xf32> to vector<64x64xf32>
    %444 = arith.mulf %441, %443 : vector<64x64xf32>
    %445 = arith.addf %440, %444 : vector<64x64xf32>
    %c26 = arith.constant 26 : index
    %c0_250 = arith.constant 0 : index
    %446 = vector.load %arg35[%c26, %c0_250] : memref<94x64xf32, #tpu.memory_space<vmem>>, vector<64x64xf32>
    %c26_251 = arith.constant 26 : index
    %c0_252 = arith.constant 0 : index
    %447 = vector.load %arg22[%c26_251, %c0_252] : memref<31x64xf32, #tpu.memory_space<vmem>>, vector<1x64xf32>
    %448 = vector.broadcast %447 : vector<1x64xf32> to vector<64x64xf32>
    %449 = arith.mulf %446, %448 : vector<64x64xf32>
    %450 = arith.addf %445, %449 : vector<64x64xf32>
    %c27 = arith.constant 27 : index
    %c0_253 = arith.constant 0 : index
    %451 = vector.load %arg35[%c27, %c0_253] : memref<94x64xf32, #tpu.memory_space<vmem>>, vector<64x64xf32>
    %c27_254 = arith.constant 27 : index
    %c0_255 = arith.constant 0 : index
    %452 = vector.load %arg22[%c27_254, %c0_255] : memref<31x64xf32, #tpu.memory_space<vmem>>, vector<1x64xf32>
    %453 = vector.broadcast %452 : vector<1x64xf32> to vector<64x64xf32>
    %454 = arith.mulf %451, %453 : vector<64x64xf32>
    %455 = arith.addf %450, %454 : vector<64x64xf32>
    %c28 = arith.constant 28 : index
    %c0_256 = arith.constant 0 : index
    %456 = vector.load %arg35[%c28, %c0_256] : memref<94x64xf32, #tpu.memory_space<vmem>>, vector<64x64xf32>
    %c28_257 = arith.constant 28 : index
    %c0_258 = arith.constant 0 : index
    %457 = vector.load %arg22[%c28_257, %c0_258] : memref<31x64xf32, #tpu.memory_space<vmem>>, vector<1x64xf32>
    %458 = vector.broadcast %457 : vector<1x64xf32> to vector<64x64xf32>
    %459 = arith.mulf %456, %458 : vector<64x64xf32>
    %460 = arith.addf %455, %459 : vector<64x64xf32>
    %c29 = arith.constant 29 : index
    %c0_259 = arith.constant 0 : index
    %461 = vector.load %arg35[%c29, %c0_259] : memref<94x64xf32, #tpu.memory_space<vmem>>, vector<64x64xf32>
    %c29_260 = arith.constant 29 : index
    %c0_261 = arith.constant 0 : index
    %462 = vector.load %arg22[%c29_260, %c0_261] : memref<31x64xf32, #tpu.memory_space<vmem>>, vector<1x64xf32>
    %463 = vector.broadcast %462 : vector<1x64xf32> to vector<64x64xf32>
    %464 = arith.mulf %461, %463 : vector<64x64xf32>
    %465 = arith.addf %460, %464 : vector<64x64xf32>
    %c30 = arith.constant 30 : index
    %c0_262 = arith.constant 0 : index
    %466 = vector.load %arg35[%c30, %c0_262] : memref<94x64xf32, #tpu.memory_space<vmem>>, vector<64x64xf32>
    %c30_263 = arith.constant 30 : index
    %c0_264 = arith.constant 0 : index
    %467 = vector.load %arg22[%c30_263, %c0_264] : memref<31x64xf32, #tpu.memory_space<vmem>>, vector<1x64xf32>
    %468 = vector.broadcast %467 : vector<1x64xf32> to vector<64x64xf32>
    %469 = arith.mulf %466, %468 : vector<64x64xf32>
    %470 = arith.addf %465, %469 : vector<64x64xf32>
    %c0_265 = arith.constant 0 : index
    %c0_266 = arith.constant 0 : index
    %471 = vector.load %arg23[%c0_265, %c0_266] : memref<1x64xf32, #tpu.memory_space<vmem>>, vector<1x64xf32>
    %472 = vector.broadcast %471 : vector<1x64xf32> to vector<64x64xf32>
    %473 = arith.addf %470, %472 : vector<64x64xf32>
    %474 = arith.mulf %278, %473 : vector<64x64xf32>
    %475 = arith.truncf %474 : vector<64x64xf32> to vector<64x64xbf16>
    %c0_267 = arith.constant 0 : index
    %c0_268 = arith.constant 0 : index
    %476 = vector.load %arg24[%c0_267, %c0_268] : memref<64x64xbf16, #tpu.memory_space<vmem>>, vector<64x64xbf16>
    %cst_269 = arith.constant dense<0.000000e+00> : vector<64x64xf32>
    %477 = tpu.matmul %475, %476, %cst_269 {dimension_numbers = #tpu.dot_dimension_numbers<[1], [0], [0], [1], [0, 0, 1, 1], [], []>} : vector<64x64xbf16>, vector<64x64xbf16>, vector<64x64xf32> -> vector<64x64xf32>
    %c0_270 = arith.constant 0 : index
    %c0_271 = arith.constant 0 : index
    %478 = vector.load %arg25[%c0_270, %c0_271] : memref<1x64xf32, #tpu.memory_space<vmem>>, vector<1x64xf32>
    %479 = vector.broadcast %478 : vector<1x64xf32> to vector<64x64xf32>
    %480 = arith.addf %477, %479 : vector<64x64xf32>
    %481 = arith.truncf %206 : vector<64x64xf32> to vector<64x64xbf16>
    %c0_272 = arith.constant 0 : index
    %c0_273 = arith.constant 0 : index
    %482 = vector.load %arg26[%c0_272, %c0_273] : memref<64x64xbf16, #tpu.memory_space<vmem>>, vector<64x64xbf16>
    %cst_274 = arith.constant dense<0.000000e+00> : vector<64x64xf32>
    %483 = tpu.matmul %481, %482, %cst_274 {dimension_numbers = #tpu.dot_dimension_numbers<[1], [0], [0], [1], [0, 0, 1, 1], [], []>} : vector<64x64xbf16>, vector<64x64xbf16>, vector<64x64xf32> -> vector<64x64xf32>
    %484 = arith.truncf %480 : vector<64x64xf32> to vector<64x64xbf16>
    %c0_275 = arith.constant 0 : index
    %c0_276 = arith.constant 0 : index
    %485 = vector.load %arg27[%c0_275, %c0_276] : memref<64x64xbf16, #tpu.memory_space<vmem>>, vector<64x64xbf16>
    %cst_277 = arith.constant dense<0.000000e+00> : vector<64x64xf32>
    %486 = tpu.matmul %484, %485, %cst_277 {dimension_numbers = #tpu.dot_dimension_numbers<[1], [0], [0], [1], [0, 0, 1, 1], [], []>} : vector<64x64xbf16>, vector<64x64xbf16>, vector<64x64xf32> -> vector<64x64xf32>
    %487 = arith.addf %483, %486 : vector<64x64xf32>
    %c0_278 = arith.constant 0 : index
    %c0_279 = arith.constant 0 : index
    %488 = vector.load %arg28[%c0_278, %c0_279] : memref<1x64xf32, #tpu.memory_space<vmem>>, vector<1x64xf32>
    %489 = vector.broadcast %488 : vector<1x64xf32> to vector<64x64xf32>
    %490 = arith.addf %487, %489 : vector<64x64xf32>
    %491 = arith.addf %1, %490 : vector<64x64xf32>
    %c0_280 = arith.constant 0 : index
    %c0_281 = arith.constant 0 : index
    %492 = vector.load %arg9[%c0_280, %c0_281] : memref<1x64xf32, #tpu.memory_space<vmem>>, vector<1x64xf32>
    %c0_282 = arith.constant 0 : index
    %c0_283 = arith.constant 0 : index
    %493 = vector.load %arg10[%c0_282, %c0_283] : memref<1x64xf32, #tpu.memory_space<vmem>>, vector<1x64xf32>
    %cst_284 = arith.constant dense<0.000000e+00> : vector<64xf32>
    %494 = vector.multi_reduction <add>, %491, %cst_284 [1] : vector<64x64xf32> to vector<64xf32>
    %495 = vector.shape_cast %494 : vector<64xf32> to vector<64x1xf32>
    %cst_285 = arith.constant 6.400000e+01 : f32
    %496 = vector.broadcast %cst_285 : f32 to vector<64x1xf32>
    %497 = arith.divf %495, %496 : vector<64x1xf32>
    %498 = vector.broadcast %497 : vector<64x1xf32> to vector<64x64xf32>
    %499 = arith.subf %491, %498 : vector<64x64xf32>
    %500 = arith.mulf %499, %499 : vector<64x64xf32>
    %cst_286 = arith.constant dense<0.000000e+00> : vector<64xf32>
    %501 = vector.multi_reduction <add>, %500, %cst_286 [1] : vector<64x64xf32> to vector<64xf32>
    %502 = vector.shape_cast %501 : vector<64xf32> to vector<64x1xf32>
    %cst_287 = arith.constant 6.400000e+01 : f32
    %503 = vector.broadcast %cst_287 : f32 to vector<64x1xf32>
    %504 = arith.divf %502, %503 : vector<64x1xf32>
    %505 = vector.broadcast %497 : vector<64x1xf32> to vector<64x64xf32>
    %506 = arith.subf %491, %505 : vector<64x64xf32>
    %cst_288 = arith.constant 9.99999974E-6 : f32
    %507 = vector.broadcast %cst_288 : f32 to vector<64x1xf32>
    %508 = arith.addf %504, %507 : vector<64x1xf32>
    %509 = math.rsqrt %508 : vector<64x1xf32>
    %510 = vector.broadcast %509 : vector<64x1xf32> to vector<64x64xf32>
    %511 = arith.mulf %506, %510 : vector<64x64xf32>
    %512 = vector.broadcast %492 : vector<1x64xf32> to vector<64x64xf32>
    %513 = arith.mulf %511, %512 : vector<64x64xf32>
    %514 = vector.broadcast %493 : vector<1x64xf32> to vector<64x64xf32>
    %515 = arith.addf %513, %514 : vector<64x64xf32>
    %c0_289 = arith.constant 0 : index
    %c0_290 = arith.constant 0 : index
    %c0_291 = arith.constant 0 : index
    %516 = vector.load %arg29[%c0_289, %c0_290, %c0_291] : memref<1x64x64xf32, #tpu.memory_space<vmem>>, vector<1x64x64xf32>
    %517 = vector.shape_cast %516 : vector<1x64x64xf32> to vector<64x64xf32>
    %518 = vector.shape_cast %515 : vector<64x64xf32> to vector<1x64x64xf32>
    tpu.vector_store %arg29[%c0_289, %c0_290, %c0_291], %518 {strides = array<i32>} : memref<1x64x64xf32, #tpu.memory_space<vmem>>, vector<1x64x64xf32>,
    return
  }
  func.func @transform_0(%arg0: i32) -> (i32, i32, i32) {
    %c0_i32 = arith.constant 0 : i32
    %c0_i32_0 = arith.constant 0 : i32
    %c0_i32_1 = arith.constant 0 : i32
    return %arg0, %c0_i32, %c0_i32_0 : i32, i32, i32
  }
  func.func @transform_1(%arg0: i32) -> (i32, i32) {
    %c0_i32 = arith.constant 0 : i32
    %c0_i32_0 = arith.constant 0 : i32
    %c0_i32_1 = arith.constant 0 : i32
    return %c0_i32, %c0_i32_0 : i32, i32
  }
  func.func @transform_2(%arg0: i32) -> (i32, i32, i32) {
    %c0_i32 = arith.constant 0 : i32
    %c0_i32_0 = arith.constant 0 : i32
    %c0_i32_1 = arith.constant 0 : i32
    return %arg0, %c0_i32, %c0_i32_0 : i32, i32, i32
  }
  func.func @transform_3(%arg0: i32) -> (i32, i32, i32) {
    %c0_i32 = arith.constant 0 : i32
    %c0_i32_0 = arith.constant 0 : i32
    %c0_i32_1 = arith.constant 0 : i32
    return %arg0, %c0_i32, %c0_i32_0 : i32, i32, i32
  }
  func.func @transform_4(%arg0: i32) -> (i32, i32) {
    %c0_i32 = arith.constant 0 : i32
    %c0_i32_0 = arith.constant 0 : i32
    %c0_i32_1 = arith.constant 0 : i32
    return %c0_i32, %c0_i32_0 : i32, i32
  }
  func.func @transform_5(%arg0: i32) -> (i32, i32) {
    %c0_i32 = arith.constant 0 : i32
    %c0_i32_0 = arith.constant 0 : i32
    %c0_i32_1 = arith.constant 0 : i32
    return %c0_i32, %c0_i32_0 : i32, i32
  }
  func.func @transform_6(%arg0: i32) -> (i32, i32) {
    %c0_i32 = arith.constant 0 : i32
    %c0_i32_0 = arith.constant 0 : i32
    %c0_i32_1 = arith.constant 0 : i32
    return %c0_i32, %c0_i32_0 : i32, i32
  }
  func.func @transform_7(%arg0: i32) -> (i32, i32) {
    %c0_i32 = arith.constant 0 : i32
    %c0_i32_0 = arith.constant 0 : i32
    %c0_i32_1 = arith.constant 0 : i32
    return %c0_i32, %c0_i32_0 : i32, i32
  }
  func.func @transform_8(%arg0: i32) -> (i32, i32) {
    %c0_i32 = arith.constant 0 : i32
    %c0_i32_0 = arith.constant 0 : i32
    %c0_i32_1 = arith.constant 0 : i32
    return %c0_i32, %c0_i32_0 : i32, i32
  }
  func.func @transform_9(%arg0: i32) -> (i32, i32) {
    %c0_i32 = arith.constant 0 : i32
    %c0_i32_0 = arith.constant 0 : i32
    %c0_i32_1 = arith.constant 0 : i32
    return %c0_i32, %c0_i32_0 : i32, i32
  }
  func.func @transform_10(%arg0: i32) -> (i32, i32) {
    %c0_i32 = arith.constant 0 : i32
    %c0_i32_0 = arith.constant 0 : i32
    %c0_i32_1 = arith.constant 0 : i32
    return %c0_i32, %c0_i32_0 : i32, i32
  }
  func.func @transform_11(%arg0: i32) -> (i32, i32) {
    %c0_i32 = arith.constant 0 : i32
    %c0_i32_0 = arith.constant 0 : i32
    %c0_i32_1 = arith.constant 0 : i32
    return %c0_i32, %c0_i32_0 : i32, i32
  }
  func.func @transform_12(%arg0: i32) -> (i32, i32) {
    %c0_i32 = arith.constant 0 : i32
    %c0_i32_0 = arith.constant 0 : i32
    %c0_i32_1 = arith.constant 0 : i32
    return %c0_i32, %c0_i32_0 : i32, i32
  }
  func.func @transform_13(%arg0: i32) -> (i32, i32, i32) {
    %c0_i32 = arith.constant 0 : i32
    %c0_i32_0 = arith.constant 0 : i32
    %c0_i32_1 = arith.constant 0 : i32
    %c0_i32_2 = arith.constant 0 : i32
    return %c0_i32, %c0_i32_0, %c0_i32_1 : i32, i32, i32
  }
  func.func @transform_14(%arg0: i32) -> (i32, i32, i32) {
    %c0_i32 = arith.constant 0 : i32
    %c0_i32_0 = arith.constant 0 : i32
    %c0_i32_1 = arith.constant 0 : i32
    %c0_i32_2 = arith.constant 0 : i32
    return %c0_i32, %c0_i32_0, %c0_i32_1 : i32, i32, i32
  }
  func.func @transform_15(%arg0: i32) -> (i32, i32, i32) {
    %c0_i32 = arith.constant 0 : i32
    %c0_i32_0 = arith.constant 0 : i32
    %c0_i32_1 = arith.constant 0 : i32
    %c0_i32_2 = arith.constant 0 : i32
    return %c0_i32, %c0_i32_0, %c0_i32_1 : i32, i32, i32
  }
  func.func @transform_16(%arg0: i32) -> (i32, i32) {
    %c0_i32 = arith.constant 0 : i32
    %c0_i32_0 = arith.constant 0 : i32
    %c0_i32_1 = arith.constant 0 : i32
    return %c0_i32, %c0_i32_0 : i32, i32
  }
  func.func @transform_17(%arg0: i32) -> (i32, i32) {
    %c0_i32 = arith.constant 0 : i32
    %c0_i32_0 = arith.constant 0 : i32
    %c0_i32_1 = arith.constant 0 : i32
    return %c0_i32, %c0_i32_0 : i32, i32
  }
  func.func @transform_18(%arg0: i32) -> (i32, i32) {
    %c0_i32 = arith.constant 0 : i32
    %c0_i32_0 = arith.constant 0 : i32
    %c0_i32_1 = arith.constant 0 : i32
    return %c0_i32, %c0_i32_0 : i32, i32
  }
  func.func @transform_19(%arg0: i32) -> (i32, i32) {
    %c0_i32 = arith.constant 0 : i32
    %c0_i32_0 = arith.constant 0 : i32
    %c0_i32_1 = arith.constant 0 : i32
    return %c0_i32, %c0_i32_0 : i32, i32
  }
  func.func @transform_20(%arg0: i32) -> (i32, i32) {
    %c0_i32 = arith.constant 0 : i32
    %c0_i32_0 = arith.constant 0 : i32
    %c0_i32_1 = arith.constant 0 : i32
    return %c0_i32, %c0_i32_0 : i32, i32
  }
  func.func @transform_21(%arg0: i32) -> (i32, i32) {
    %c0_i32 = arith.constant 0 : i32
    %c0_i32_0 = arith.constant 0 : i32
    %c0_i32_1 = arith.constant 0 : i32
    return %c0_i32, %c0_i32_0 : i32, i32
  }
  func.func @transform_22(%arg0: i32) -> (i32, i32) {
    %c0_i32 = arith.constant 0 : i32
    %c0_i32_0 = arith.constant 0 : i32
    %c0_i32_1 = arith.constant 0 : i32
    return %c0_i32, %c0_i32_0 : i32, i32
  }
  func.func @transform_23(%arg0: i32) -> (i32, i32) {
    %c0_i32 = arith.constant 0 : i32
    %c0_i32_0 = arith.constant 0 : i32
    %c0_i32_1 = arith.constant 0 : i32
    return %c0_i32, %c0_i32_0 : i32, i32
  }
  func.func @transform_24(%arg0: i32) -> (i32, i32) {
    %c0_i32 = arith.constant 0 : i32
    %c0_i32_0 = arith.constant 0 : i32
    %c0_i32_1 = arith.constant 0 : i32
    return %c0_i32, %c0_i32_0 : i32, i32
  }
  func.func @transform_25(%arg0: i32) -> (i32, i32) {
    %c0_i32 = arith.constant 0 : i32
    %c0_i32_0 = arith.constant 0 : i32
    %c0_i32_1 = arith.constant 0 : i32
    return %c0_i32, %c0_i32_0 : i32, i32
  }
  func.func @transform_26(%arg0: i32) -> (i32, i32) {
    %c0_i32 = arith.constant 0 : i32
    %c0_i32_0 = arith.constant 0 : i32
    %c0_i32_1 = arith.constant 0 : i32
    return %c0_i32, %c0_i32_0 : i32, i32
  }
  func.func @transform_27(%arg0: i32) -> (i32, i32) {
    %c0_i32 = arith.constant 0 : i32
    %c0_i32_0 = arith.constant 0 : i32
    %c0_i32_1 = arith.constant 0 : i32
    return %c0_i32, %c0_i32_0 : i32, i32
  }
  func.func @transform_28(%arg0: i32) -> (i32, i32, i32) {
    %c0_i32 = arith.constant 0 : i32
    %c0_i32_0 = arith.constant 0 : i32
    %c0_i32_1 = arith.constant 0 : i32
    return %arg0, %c0_i32, %c0_i32_0 : i32, i32, i32
  }
}

</mosaic_0001>

<bundles_post_ra>
// kernel: tpu_custom_call.1
= control target key start
LH: loop header
LB: loop body
LE: loop exit
PB: predicated region body
PF: predicated region fallthrough
CT: control target
= control target key end

     0   :  { %s12740_s0 = inlined_call_operand.vmem [shape: f32[2,64,64], index: 0, kind: input, shape index: {}]   ;;  %s12741_s1 = inlined_call_operand.vmem [shape: bf16[128,64], index: 1, kind: input, shape index: {}]   ;;  %s12742_s2 = inlined_call_operand.vmem [shape: f32[2,1,64], index: 2, kind: input, shape index: {}]   ;;  %s12743_s3 = inlined_call_operand.vmem [shape: f32[2,64,1], index: 3, kind: input, shape index: {}]   ;;  %s12744_s4 = inlined_call_operand.hbm [shape: f32[1,64], index: 4, kind: input, shape index: {}]   ;;  %s12745_s5 = inlined_call_operand.hbm [shape: f32[1,64], index: 5, kind: input, shape index: {}]   ;;  %s12746_s6 = inlined_call_operand.hbm [shape: f32[1,64], index: 6, kind: input, shape index: {}]   ;;  %s12747_s7 = inlined_call_operand.hbm [shape: f32[1,64], index: 7, kind: input, shape index: {}]   ;;  %s12748_s8 = inlined_call_operand.hbm [shape: f32[1,64], index: 8, kind: input, shape index: {}]   ;;  %s12749_s9 = inlined_call_operand.hbm [shape: f32[1,64], index: 9, kind: input, shape index: {}]   ;;  %s12750_s10 = inlined_call_operand.vmem [shape: bf16[64,192], index: 10, kind: input, shape index: {}]   ;;  %s12751_s11 = inlined_call_operand.hbm [shape: f32[1,192], index: 11, kind: input, shape index: {}]   ;;  %s12752_s12 = inlined_call_operand.vmem [shape: bf16[64,64], index: 12, kind: input, shape index: {}]   ;;  %s12753_s13 = inlined_call_operand.hbm [shape: f32[4,1,16], index: 13, kind: input, shape index: {}]   ;;  %s12754_s14 = inlined_call_operand.hbm [shape: f32[4,1,16], index: 14, kind: input, shape index: {}]   ;;  %s12755_s15 = inlined_call_operand.hbm [shape: bf16[4,16,64], index: 15, kind: input, shape index: {}]   ;;  %s12756_s16 = inlined_call_operand.hbm [shape: f32[1,64], index: 16, kind: input, shape index: {}]   ;;  %s12757_s17 = inlined_call_operand.hbm [shape: bf16[64,128], index: 17, kind: input, shape index: {}]   ;;  %s12758_s18 = inlined_call_operand.hbm [shape: f32[1,128], index: 18, kind: input, shape index: {}]   ;;  %s12759_s19 = inlined_call_operand.hbm [shape: f32[1,64], index: 19, kind: input, shape index: {}]   ;;  %s12760_s20 = inlined_call_operand.vmem [shape: f32[1,64], index: 20, kind: input, shape index: {}]   ;;  %s12761_s21 = inlined_call_operand.vmem [shape: f32[31,64], index: 21, kind: input, shape index: {}]   ;;  %s12762_s22 = inlined_call_operand.vmem [shape: f32[1,64], index: 22, kind: input, shape index: {}]   ;;  %s12763_s23 = inlined_call_operand.hbm [shape: bf16[64,64], index: 23, kind: input, shape index: {}]   ;;  %s12764_s24 = inlined_call_operand.vmem [shape: f32[1,64], index: 24, kind: input, shape index: {}]   ;;  %s12765_s25 = inlined_call_operand.hbm [shape: bf16[64,64], index: 25, kind: input, shape index: {}]   ;;  %s12766_s26 = inlined_call_operand.hbm [shape: bf16[64,64], index: 26, kind: input, shape index: {}]   ;;  %s12767_s27 = inlined_call_operand.vmem [shape: f32[1,64], index: 27, kind: input, shape index: {}]   ;;  %s12768_s28 = inlined_call_operand.hbm [shape: f32[2,64,64], index: 28, kind: output, shape index: {}]  }
   0x1   :  { %12875 = sst [smem:[#allocation87_spill]] %s12740_s0 }
   0x2   :  { %12876 = sst [smem:[#allocation88_spill]] %s12741_s1 }
   0x3   :  { %12877 = sst [smem:[#allocation89_spill]] %s12742_s2 }
   0x4   :  { %12878 = sst [smem:[#allocation90_spill]] %s12743_s3 }
   0x5   :  { %12879 = sst [smem:[#allocation91_spill]] %s12744_s4 }
   0x6   :  { %12880 = sst [smem:[#allocation92_spill]] %s12745_s5 }
   0x7   :  { %12881 = sst [smem:[#allocation93_spill]] %s12746_s6 }
   0x8   :  { %12882 = sst [smem:[#allocation94_spill]] %s12747_s7 }
   0x9   :  { %12883 = sst [smem:[#allocation95_spill]] %s12748_s8 }
   0xa   :  { %12884 = sst [smem:[#allocation96_spill]] %s12749_s9 }
   0xb   :  { %12885 = sst [smem:[#allocation97_spill]] %s12750_s10 }
   0xc   :  { %12886 = sst [smem:[#allocation98_spill]] %s12751_s11 }
   0xd   :  { %12887 = sst [smem:[#allocation99_spill]] %s12752_s12 }
   0xe   :  { %12888 = sst [smem:[#allocation100_spill]] %s12753_s13 }
   0xf   :  { %12889 = sst [smem:[#allocation101_spill]] %s12768_s28 }
  0x10   :  { %33 = vsyncpa [#allocation9], 0 }
  0x11   :  { %34 = vsyncpa [#allocation12], 0 }
  0x12   :  { %35 = vsyncpa [#allocation15], 0 }
  0x13   :  { %36 = vsyncpa [#allocation18], 0 }
  0x14   :  { %37 = vsyncpa [#allocation21], 0 }
  0x15   :  { %38 = vsyncpa [#allocation24], 0 }
  0x16   :  { %39 = vsyncpa [#allocation27], 0 }
  0x17   :  { %40 = vsyncpa [#allocation30], 0 }
  0x18   :  { %41 = vsyncpa [#allocation33], 0 }
  0x19   :  { %42 = vsyncpa [#allocation10], 0 }
  0x1a   :  { %44 = vsyncpa [#allocation10 + $0x1], 0  ;;  %s9437_s8 = smov 0   ;;  %s9439_s5 = smov 0  }
  0x1b   :  { %s9441_s9 = smov 0   ;;  %s9443_s30 = smov 0  }
  0x1c LB: > { %12890 = sst [smem:[#allocation46_spill]] %s9236_s8  ;;  %s9458_s3 = sadd.s32 4294967295, %s9248_s30   ;;  %s9248_s30 = sphi %s9443_s30, %s13116_s30   ;;  %s9244_s9 = sphi %s9441_s9, %s13118_s9   ;;  %s9240_s5 = sphi %s9439_s5, %s13120_s5   ;;  %s9236_s8 = sphi %s9437_s8, %s13119_s8  }
  0x1d   : > { %12891 = sst [smem:[#allocation47_spill]] %s9244_s9  ;;  %s7210_s6 = sadd.s32 4294967294, %s9248_s30  }
  0x1e   : > { %12892 = sst [smem:[#allocation48_spill]] %s9248_s30  ;;  %s9462_s10 = sadd.s32 1, %s9248_s30  }
  0x1f   : > { %12893 = sst [smem:[#allocation49_spill]] %s9462_s10  ;;  %s660_s0 = sadd.s32 1, %s9244_s9 }
  0x20   : > { %s657_s11 = ssub.s32 %s9248_s30, %s9462_s10  ;;  %p670_p0 = scmp.ne.s32.totalorder %s9244_s9, %s9240_s5 }
  0x21   : > { %p658_p1 = scmp.eq.s32.totalorder %s657_s11, 0  ;;  %p671_p2 = scmp.eq.s32.totalorder %s9458_s3, 1 }
  0x22   : > { %p676_p3 = scmp.ne.s32.totalorder %s9240_s5, %s9236_s8  ;;  %p677_p4 = scmp.eq.s32.totalorder %s7210_s6, 1 }
  0x23   : > { %s9473_s29 = scalar_select %p658_p1, %s9244_s9, %s660_s0  }
  0x24   : > { %p9475_p5 = por %p671_p2, %p670_p0  ;;  %p9479_p6 = por %p677_p4, %p676_p3 }
  0x25   : > { %12894 = sst [smem:[#allocation50_spill]] %s9473_s29  ;;  %p7211_p7 = scmp.ge.s32.totalorder %s9248_s30, 1 }
  0x26   : > { %s12895_s2 = scalar_select %p9475_p5, 1, 0 }
  0x27   : > { %s12897_s7 = scalar_select %p9479_p6, 1, 0 }
  0x28   : > { %12896 = sst [smem:[#allocation51_spill]] %s12895_s2  ;;  %p684_p8 = scmp.lt.s32.totalorder %s9248_s30, 3 }
  0x29   : > { %12898 = sst [smem:[#allocation52_spill]] %s12897_s7  ;;  %p12778_p9 = scmp.eq.s32.totalorder %s9458_s3, 0 }
  0x2a   : > { %p9486_p10 = pnand %p7211_p7, %p684_p8  ;;  %s9250_s1 = smov [#allocation11]  }
  0x2b   : > { %s711_s4 = sshll.u32 %s9250_s1, 4  ;;  %s9251_s6 = smov [#allocation14]   ;;  %s712_s4 = int_to_ptr.vmem [resolvable:$true] %s711_s4 }
  0x2c   : > { %s12899_s12 = scalar_select %p9486_p10, 1, 0 }
  0x2d   : > { %p8219_p11 = pneg %p9486_p10  ;;  %s733_s0 = sshll.u32 %s9251_s6, 4  ;;  %s734_s0 = int_to_ptr.vmem [resolvable:$true] %s733_s0 }
  0x2e   : > { %s9252_s29 = smov [#allocation17]   ;;  %s8721_s1 = scalar_lea.vmem %s712_s4, 16 }
  0x2f   : > { %p9494_p12 = pnand %p12778_p9, %p8219_p11  ;;  %s755_s9 = sshll.u32 %s9252_s29, 4  ;;  %s9498_s9 = int_to_ptr.vmem [resolvable:$true] %s755_s9 }
  0x30   : > { %p8722_p0 = scmp.ne.s32.totalorder %s712_s4, %s8721_s1  ;;  %s8728_s6 = scalar_lea.vmem %s712_s4, 32 }
  0x31   : > { %p9502_p13 = pneg %p9494_p12  ;;  %p8729_p3 = scmp.lt.s32.totalorder %s712_s4, %s712_s4 }
  0x32   : > { %p8730_p4 = scmp.lt.s32.totalorder %s8728_s6, %s8721_s1 }
  0x33   : > { %p8724_p1 = pnand %p8722_p0, %p9502_p13 }
  0x34   : > { %p8731_p7 = por %p8730_p4, %p8729_p3 }
  0x35   : > { %p8725_p2 = pneg %p8724_p1 }
  0x37   : > { %p8732_p8 = pnand %p8731_p7, %p8725_p2 }
  0x39   : > { %8735 = shalt.err (!%p8732_p8)
}
  0x3a   : > { %s12902_s8 = sld [smem:[#allocation92_spill]]  ;;  %s8747_s30 = scalar_lea.vmem %s734_s0, 16 }
  0x3b   : > { %p8748_p11 = scmp.ne.s32.totalorder %s734_s0, %s8747_s30  ;;  %s8754_s28 = scalar_lea.vmem %s734_s0, 32 }
  0x3c   : > { %p8755_p0 = scmp.lt.s32.totalorder %s734_s0, %s734_s0  ;;  %p8756_p1 = scmp.lt.s32.totalorder %s8754_s28, %s8747_s30 }
  0x3d   : > { %p8750_p9 = pnand %p8748_p11, %p9502_p13 }
  0x3e   : > { %p8757_p5 = por %p8756_p1, %p8755_p0 }
  0x3f   : > { %p8751_p6 = pneg %p8750_p9 }
  0x40   : > { %8225 = dma.hbm_to_vmem [thread:$0]  (!%p9494_p12), %s12902_s8, 16, %s712_s4, [#allocation12]  }
  0x41   : > { %p8758_p10 = pnand %p8757_p5, %p8751_p6 }
  0x43   : > { %8761 = shalt.err (!%p8758_p10)
}
  0x44   : > { %s12903_s2 = sld [smem:[#allocation94_spill]]  ;;  %s8773_s8 = scalar_lea.vmem %s9498_s9, 16 }
  0x45   : > { %p8774_p2 = scmp.ne.s32.totalorder %s9498_s9, %s8773_s8  ;;  %s8780_s28 = scalar_lea.vmem %s9498_s9, 32 }
  0x46   : > { %p8781_p5 = scmp.lt.s32.totalorder %s9498_s9, %s9498_s9  ;;  %p8782_p6 = scmp.lt.s32.totalorder %s8780_s28, %s8773_s8 }
  0x47   : > { %p8776_p9 = pnand %p8774_p2, %p9502_p13 }
  0x48   : > { %p8783_p10 = por %p8782_p6, %p8781_p5 }
  0x49   : > { %p8777_p3 = pneg %p8776_p9 }
  0x4a   : > { %8231 = dma.hbm_to_vmem [thread:$0]  (!%p9494_p12), %s12903_s2, 16, %s734_s0, [#allocation15]  }
  0x4b   : > { %p8784_p4 = pnand %p8783_p10, %p8777_p3 }
  0x4d   : > { %8787 = shalt.err (!%p8784_p4)
}
  0x4e   : > { %s12904_s4 = sld [smem:[#allocation96_spill]]  ;;  %s9253_s2 = smov [#allocation20]  }
  0x4f   : > { %s782_s0 = sshll.u32 %s9253_s2, 4  ;;  %s783_s0 = int_to_ptr.vmem [resolvable:$true] %s782_s0 }
  0x50   : > { %s8799_s29 = scalar_lea.vmem %s783_s0, 64  ;;  %p8807_p0 = scmp.lt.s32.totalorder %s783_s0, %s783_s0 }
  0x51   : > { %p8800_p7 = scmp.ne.s32.totalorder %s783_s0, %s8799_s29  ;;  %p8808_p1 = scmp.lt.s32.totalorder %s8799_s29, %s8799_s29 }
  0x53   : > { %p8802_p8 = pnand %p8800_p7, %p9502_p13  ;;  %p8809_p2 = por %p8808_p1, %p8807_p0 }
  0x54   : > { %8237 = dma.hbm_to_vmem [thread:$0]  (!%p9494_p12), %s12904_s4, 16, %s9498_s9, [#allocation18]  }
  0x55   : > { %p8803_p11 = pneg %p8802_p8 }
  0x57   : > { %p8810_p9 = pnand %p8809_p2, %p8803_p11 }
  0x59   : > { %8813 = shalt.err (!%p8810_p9)
}
  0x5a   : > { %s12784_s1 = smov 16   ;;  %s12785_s6 = smov 1  }
  0x5b   : > { %s12905_s13 = sld [smem:[#allocation100_spill]]  ;;  %s9256_s28 = smov [#allocation23]  }
  0x5c   : > { %s808_s30 = sshll.u32 %s9256_s28, 4  ;;  %s809_s30 = int_to_ptr.vmem [resolvable:$true] %s808_s30 }
  0x5d   : > { %s8825_s7 = scalar_lea.vmem %s809_s30, 512  ;;  %p8833_p10 = scmp.lt.s32.totalorder %s809_s30, %s809_s30 }
  0x5e   : > { %p8826_p3 = scmp.ne.s32.totalorder %s809_s30, %s8825_s7  ;;  %p8834_p4 = scmp.lt.s32.totalorder %s8825_s7, %s8825_s7 }
  0x60   : > { %p8828_p5 = pnand %p8826_p3, %p9502_p13  ;;  %p8835_p7 = por %p8834_p4, %p8833_p10 }
  0x61   : > { %8243 = dma.hbm_to_vmem [thread:$0]  (!%p9494_p12), %s12905_s13, 64, %s783_s0, [#allocation21], %s12784_s1, %s12784_s1, %s12785_s6  }
  0x62   : > { %p8829_p6 = pneg %p8828_p5 }
  0x64   : > { %p8836_p8 = pnand %p8835_p7, %p8829_p6 }
  0x66   : > { %8839 = shalt.err (!%p8836_p8)
}
  0x67   : > { %s12786_s4 = smov 64   ;;  %s12788_s2 = smov 4  }
  0x68   : > { %8249 = dma.hbm_to_vmem [thread:$0]  (!%p9494_p12), %s12755_s15, 512, %s809_s30, [#allocation24], %s12786_s4, %s12786_s4, %s12788_s2  }
  0x69   : > { %s9259_s9 = smov [#allocation26]   ;;  %s9260_s28 = smov [#allocation29]  }
  0x6a   : > { %s832_s8 = sshll.u32 %s9259_s9, 4  ;;  %s857_s7 = sshll.u32 %s9260_s28, 4  ;;  %s833_s8 = int_to_ptr.vmem [resolvable:$true] %s832_s8  ;;  %s858_s7 = int_to_ptr.vmem [resolvable:$true] %s857_s7 }
  0x6b   : > { %s8851_s1 = scalar_lea.vmem %s833_s8, 512  ;;  %p8859_p2 = scmp.lt.s32.totalorder %s833_s8, %s833_s8 }
  0x6c   : > { %p8852_p11 = scmp.ne.s32.totalorder %s833_s8, %s8851_s1  ;;  %p8860_p9 = scmp.lt.s32.totalorder %s8851_s1, %s8851_s1 }
  0x6e   : > { %p8854_p0 = pnand %p8852_p11, %p9502_p13  ;;  %p8861_p3 = por %p8860_p9, %p8859_p2 }
  0x70   : > { %p8855_p1 = pneg %p8854_p0 }
  0x72   : > { %p8862_p5 = pnand %p8861_p3, %p8855_p1 }
  0x74   : > { %8865 = shalt.err (!%p8862_p5)
}
  0x75   : > { %8255 = dma.hbm_to_vmem [thread:$0]  (!%p9494_p12), %s12757_s17, 512, %s833_s8, [#allocation27], %s12786_s4, %s12786_s4, %s12788_s2  }
  0x76   : > { %s8877_s29 = scalar_lea.vmem %s858_s7, 16  ;;  %s8884_s1 = scalar_lea.vmem %s858_s7, 32 }
  0x77   : > { %p8878_p6 = scmp.ne.s32.totalorder %s858_s7, %s8877_s29  ;;  %p8885_p7 = scmp.lt.s32.totalorder %s858_s7, %s858_s7 }
  0x78   : > { %p8886_p8 = scmp.lt.s32.totalorder %s8884_s1, %s8877_s29 }
  0x79   : > { %p8880_p10 = pnand %p8878_p6, %p9502_p13 }
  0x7a   : > { %p8887_p11 = por %p8886_p8, %p8885_p7 }
  0x7b   : > { %p8881_p4 = pneg %p8880_p10 }
  0x7d   : > { %p8888_p0 = pnand %p8887_p11, %p8881_p4 }
  0x7f   : > { %8891 = shalt.err (!%p8888_p0)
}
  0x80   : > { %8261 = dma.hbm_to_vmem [thread:$0]  (!%p9494_p12), %s12759_s19, 16, %s858_s7, [#allocation30]  }
  0x81   : > { %s9261_s8 = smov [#allocation32]   ;;  %s9262_s0 = smov [#allocation8]  }
  0x82   : > { %s892_s30 = sshll.u32 %s9261_s8, 4  ;;  %s700_s6 = sshll.u32 %s9262_s0, 4  ;;  %s893_s30 = int_to_ptr.vmem [resolvable:$true] %s892_s30  ;;  %s701_s6 = int_to_ptr.vmem [resolvable:$true] %s700_s6 }
  0x83   : > { %s8903_s4 = scalar_lea.vmem %s893_s30, 512  ;;  %p8911_p3 = scmp.lt.s32.totalorder %s893_s30, %s893_s30 }
  0x84   : > { %p8904_p1 = scmp.ne.s32.totalorder %s893_s30, %s8903_s4  ;;  %p8912_p5 = scmp.lt.s32.totalorder %s8903_s4, %s8903_s4 }
  0x86   : > { %p8906_p2 = pnand %p8904_p1, %p9502_p13  ;;  %p8913_p6 = por %p8912_p5, %p8911_p3 }
  0x88   : > { %p8907_p9 = pneg %p8906_p2 }
  0x8a   : > { %p8914_p10 = pnand %p8913_p6, %p8907_p9 }
  0x8c   : > { %8917 = shalt.err (!%p8914_p10)
}
  0x8d   : > { %s12906_s29 = smov 64   ;;  %s8929_s9 = scalar_lea.vmem %s701_s6, 16 }
  0x8e   : > { %8267 = dma.hbm_to_vmem [thread:$0]  (!%p9494_p12), %s12765_s25, 512, %s893_s30, [#allocation33], %s12906_s29, %s12906_s29, %s12788_s2  }
  0x8f   : > { %p8930_p4 = scmp.ne.s32.totalorder %s701_s6, %s8929_s9  ;;  %s8936_s4 = scalar_lea.vmem %s701_s6, 32 }
  0x90   : > { %p8937_p11 = scmp.lt.s32.totalorder %s701_s6, %s701_s6  ;;  %p8938_p0 = scmp.lt.s32.totalorder %s8936_s4, %s8929_s9 }
  0x91   : > { %p8932_p7 = pnand %p8930_p4, %p9502_p13 }
  0x92   : > { %p8939_p1 = por %p8938_p0, %p8937_p11 }
  0x93   : > { %p8933_p8 = pneg %p8932_p7 }
  0x95   : > { %p8940_p2 = pnand %p8939_p1, %p8933_p8 }
  0x97   : > { %8943 = shalt.err (!%p8940_p2)
}
  0x98   : > { %s12907_s0 = sld [smem:[#allocation91_spill]]  ;;  %s9263_s30 = smov [#allocation13]  }
  0x99   : > { %s722_s7 = sshll.u32 %s9263_s30, 4  ;;  %s9264_s1 = smov [#allocation16]   ;;  %s723_s7 = int_to_ptr.vmem [resolvable:$true] %s722_s7 }
  0x9a   : > { %s744_s2 = sshll.u32 %s9264_s1, 4  ;;  %s8955_s13 = scalar_lea.vmem %s723_s7, 16  ;;  %s745_s2 = int_to_ptr.vmem [resolvable:$true] %s744_s2 }
  0x9b   : > { %p8956_p9 = scmp.ne.s32.totalorder %s723_s7, %s8955_s13  ;;  %s8962_s9 = scalar_lea.vmem %s723_s7, 32 }
  0x9c   : > { %p8963_p6 = scmp.lt.s32.totalorder %s723_s7, %s723_s7  ;;  %p8964_p10 = scmp.lt.s32.totalorder %s8962_s9, %s8955_s13 }
  0x9d   : > { %p8958_p3 = pnand %p8956_p9, %p9502_p13 }
  0x9e   : > { %8222 = dma.hbm_to_vmem [thread:$0]  (!%p9494_p12), %s12907_s0, 16, %s701_s6, [#allocation9]  }
  0x9f   : > { %p8959_p5 = pneg %p8958_p3  ;;  %p8965_p4 = por %p8964_p10, %p8963_p6 }
  0xa1   : > { %p8966_p7 = pnand %p8965_p4, %p8959_p5 }
  0xa3   : > { %8969 = shalt.err (!%p8966_p7)
}
  0xa4   : > { %s12908_s28 = sld [smem:[#allocation93_spill]]  ;;  %s8981_s8 = scalar_lea.vmem %s745_s2, 16 }
  0xa5   : > { %p8982_p8 = scmp.ne.s32.totalorder %s745_s2, %s8981_s8  ;;  %s8988_s0 = scalar_lea.vmem %s745_s2, 32 }
  0xa6   : > { %p8989_p1 = scmp.lt.s32.totalorder %s745_s2, %s745_s2  ;;  %p8990_p2 = scmp.lt.s32.totalorder %s8988_s0, %s8981_s8 }
  0xa7   : > { %p8984_p11 = pnand %p8982_p8, %p9502_p13 }
  0xa8   : > { %p8991_p9 = por %p8990_p2, %p8989_p1 }
  0xa9   : > { %p8985_p0 = pneg %p8984_p11 }
  0xaa   : > { %8228 = dma.hbm_to_vmem [thread:$0]  (!%p9494_p12), %s12908_s28, 16, %s723_s7, [#allocation12]  }
  0xab   : > { %p8992_p3 = pnand %p8991_p9, %p8985_p0 }
  0xad   : > { %8995 = shalt.err (!%p8992_p3)
}
  0xae   : > { %s12909_s1 = sld [smem:[#allocation95_spill]]  ;;  %s9265_s7 = smov [#allocation19]  }
  0xaf   : > { %s769_s9 = sshll.u32 %s9265_s7, 4  ;;  %s9266_s4 = smov [#allocation22]   ;;  %s770_s9 = int_to_ptr.vmem [resolvable:$true] %s769_s9 }
  0xb0   : > { %s795_s6 = sshll.u32 %s9266_s4, 4  ;;  %s9007_s28 = scalar_lea.vmem %s770_s9, 32  ;;  %s796_s6 = int_to_ptr.vmem [resolvable:$true] %s795_s6 }
  0xb1   : > { %p9008_p5 = scmp.ne.s32.totalorder %s770_s9, %s9007_s28  ;;  %p9015_p4 = scmp.lt.s32.totalorder %s770_s9, %s770_s9 }
  0xb2   : > { %p9016_p7 = scmp.lt.s32.totalorder %s9007_s28, %s9007_s28 }
  0xb3   : > { %p9010_p6 = pnand %p9008_p5, %p9502_p13 }
  0xb4   : > { %8234 = dma.hbm_to_vmem [thread:$0]  (!%p9494_p12), %s12909_s1, 16, %s745_s2, [#allocation15]  }
  0xb5   : > { %p9011_p10 = pneg %p9010_p6  ;;  %p9017_p8 = por %p9016_p7, %p9015_p4 }
  0xb7   : > { %p9018_p11 = pnand %p9017_p8, %p9011_p10 }
  0xb9   : > { %9021 = shalt.err (!%p9018_p11)
}
  0xba   : > { %s12910_s2 = sld [smem:[#allocation98_spill]]  ;;  %s9033_s13 = scalar_lea.vmem %s796_s6, 64 }
  0xbb   : > { %p9034_p0 = scmp.ne.s32.totalorder %s796_s6, %s9033_s13  ;;  %p9041_p9 = scmp.lt.s32.totalorder %s796_s6, %s796_s6 }
  0xbc   : > { %p9042_p3 = scmp.lt.s32.totalorder %s9033_s13, %s9033_s13 }
  0xbd   : > { %p9036_p1 = pnand %p9034_p0, %p9502_p13 }
  0xbe   : > { %p9043_p5 = por %p9042_p3, %p9041_p9 }
  0xbf   : > { %p9037_p2 = pneg %p9036_p1 }
  0xc0   : > { %8240 = dma.hbm_to_vmem [thread:$0]  (!%p9494_p12), %s12910_s2, 32, %s770_s9, [#allocation18]  }
  0xc1   : > { %p9044_p6 = pnand %p9043_p5, %p9037_p2 }
  0xc3   : > { %9047 = shalt.err (!%p9044_p6)
}
  0xc4   : > { %s12911_s30 = smov 1   ;;  %s12912_s1 = smov 16  }
  0xc5   : > { %8246 = dma.hbm_to_vmem [thread:$0]  (!%p9494_p12), %s12754_s14, 64, %s796_s6, [#allocation21], %s12912_s1, %s12912_s1, %s12911_s30  }
  0xc6   : > { %s9267_s9 = smov [#allocation25]   ;;  %s9268_s8 = smov [#allocation28]  }
  0xc7   : > { %s822_s28 = sshll.u32 %s9267_s9, 4  ;;  %s846_s0 = sshll.u32 %s9268_s8, 4  ;;  %s823_s28 = int_to_ptr.vmem [resolvable:$true] %s822_s28  ;;  %s847_s0 = int_to_ptr.vmem [resolvable:$true] %s846_s0 }
  0xc8   : > { %s9059_s2 = scalar_lea.vmem %s823_s28, 16  ;;  %s9066_s13 = scalar_lea.vmem %s823_s28, 32 }
  0xc9   : > { %p9060_p10 = scmp.ne.s32.totalorder %s823_s28, %s9059_s2  ;;  %p9067_p8 = scmp.lt.s32.totalorder %s823_s28, %s823_s28 }
  0xca   : > { %p9068_p11 = scmp.lt.s32.totalorder %s9066_s13, %s9059_s2 }
  0xcb   : > { %p9062_p4 = pnand %p9060_p10, %p9502_p13 }
  0xcc   : > { %p9069_p0 = por %p9068_p11, %p9067_p8 }
  0xcd   : > { %p9063_p7 = pneg %p9062_p4 }
  0xcf   : > { %p9070_p1 = pnand %p9069_p0, %p9063_p7 }
  0xd1   : > { %9073 = shalt.err (!%p9070_p1)
}
  0xd2   : > { %8252 = dma.hbm_to_vmem [thread:$0]  (!%p9494_p12), %s12756_s16, 16, %s823_s28, [#allocation24]  }
  0xd3   : > { %s9085_s30 = scalar_lea.vmem %s847_s0, 16  ;;  %s9092_s1 = scalar_lea.vmem %s847_s0, 32 }
  0xd4   : > { %p9086_p2 = scmp.ne.s32.totalorder %s847_s0, %s9085_s30  ;;  %p9093_p5 = scmp.lt.s32.totalorder %s847_s0, %s847_s0 }
  0xd5   : > { %p9094_p6 = scmp.lt.s32.totalorder %s9092_s1, %s9085_s30 }
  0xd6   : > { %p9088_p9 = pnand %p9086_p2, %p9502_p13 }
  0xd7   : > { %p9095_p10 = por %p9094_p6, %p9093_p5 }
  0xd8   : > { %p9089_p3 = pneg %p9088_p9 }
  0xda   : > { %p9096_p4 = pnand %p9095_p10, %p9089_p3 }
  0xdc   : > { %9099 = shalt.err (!%p9096_p4)
}
  0xdd   : > { %8258 = dma.hbm_to_vmem [thread:$0]  (!%p9494_p12), %s12758_s18, 16, %s847_s0, [#allocation27]  }
  0xde   : > { %s9269_s28 = smov [#allocation31]   ;;  %s9270_s2 = smov [#allocation34]  }
  0xdf   : > { %s876_s8 = sshll.u32 %s9269_s28, 4  ;;  %s905_s13 = sshll.u32 %s9270_s2, 4  ;;  %s877_s8 = int_to_ptr.vmem [resolvable:$true] %s876_s8  ;;  %s906_s13 = int_to_ptr.vmem [resolvable:$true] %s905_s13 }
  0xe0   : > { %s9111_s7 = scalar_lea.vmem %s877_s8, 512  ;;  %p9119_p0 = scmp.lt.s32.totalorder %s877_s8, %s877_s8 }
  0xe1   : > { %p9112_p7 = scmp.ne.s32.totalorder %s877_s8, %s9111_s7  ;;  %p9120_p1 = scmp.lt.s32.totalorder %s9111_s7, %s9111_s7 }
  0xe3   : > { %p9114_p8 = pnand %p9112_p7, %p9502_p13  ;;  %p9121_p2 = por %p9120_p1, %p9119_p0 }
  0xe5   : > { %p9115_p11 = pneg %p9114_p8 }
  0xe7   : > { %p9122_p9 = pnand %p9121_p2, %p9115_p11 }
  0xe9   : > { %9125 = shalt.err (!%p9122_p9)
}
  0xea   : > { %s12913_s6 = smov 4   ;;  %s9137_s1 = scalar_lea.vmem %s906_s13, 512 }
  0xeb   : > { %8264 = dma.hbm_to_vmem [thread:$0]  (!%p9494_p12), %s12763_s23, 512, %s877_s8, [#allocation30], %s12906_s29, %s12906_s29, %s12913_s6  }
  0xec   : > { %p9138_p3 = scmp.ne.s32.totalorder %s906_s13, %s9137_s1  ;;  %p9145_p10 = scmp.lt.s32.totalorder %s906_s13, %s906_s13 }
  0xed   : > { %p9146_p4 = scmp.lt.s32.totalorder %s9137_s1, %s9137_s1 }
  0xee   : > { %p9140_p5 = pnand %p9138_p3, %p9502_p13 }
  0xef   : > { %p9147_p7 = por %p9146_p4, %p9145_p10 }
  0xf0   : > { %p9141_p6 = pneg %p9140_p5 }
  0xf2   : > { %p9148_p8 = pnand %p9147_p7, %p9141_p6 }
  0xf4   : > { %9151 = shalt.err (!%p9148_p8)
}
  0xf5   : > { %8270 = dma.hbm_to_vmem [thread:$0]  (!%p9494_p12), %s12766_s26, 512, %s906_s13, [#allocation33], %s12906_s29, %s12906_s29, %s12913_s6  }
  0xf6   : > { %p12914_p11 = scmp.ne.s32.totalorder %s12899_s12, 0 }
  0xf8   : > { %946 = sbr.rel (%p12914_p11) target bundleno = 3893 (0xf35), region = 132 }
  0xfd   : > { %p12915_p13 = scmp.eq.s32.totalorder %s9458_s3, 0 }
  0xff   : > { %9195 = dma.done.wait (%p12915_p13), [#allocation9], 16   ;;  %p12916_p0 = pmov %p12915_p13 }
 0x101   : > { %9197 = vsyncadd (%p12916_p0), [#allocation9], 4294967280  ;;  %p12917_p1 = pmov %p12916_p0 }
 0x102   : > { %p12918_p2 = pmov %p12916_p0 }
 0x103   : > { %9199 = dma.done.wait (%p12917_p1), [#allocation12], 32  }
 0x104   : > { %9201 = vsyncadd (%p12918_p2), [#allocation12], 4294967264  ;;  %p12919_p9 = pmov %p12916_p0 }
 0x105   : > { %p12920_p12 = pmov %p12916_p0 }
 0x106   : > { %9203 = dma.done.wait (%p12919_p9), [#allocation15], 32  }
 0x107   : > { %9205 = vsyncadd (%p12920_p12), [#allocation15], 4294967264  ;;  %p12921_p3 = pmov %p12916_p0 }
 0x108   : > { %p12922_p5 = pmov %p12916_p0 }
 0x109   : > { %9207 = dma.done.wait (%p12921_p3), [#allocation18], 48  }
 0x10a   : > { %9209 = vsyncadd (%p12922_p5), [#allocation18], 4294967248  ;;  %p12923_p6 = pmov %p12916_p0 }
 0x10b   : > { %p12924_p10 = pmov %p12916_p0 }
 0x10c   : > { %9211 = dma.done.wait (%p12923_p6), [#allocation21], 128  }
 0x10d   : > { %9213 = vsyncadd (%p12924_p10), [#allocation21], 4294967168  ;;  %p12925_p4 = pmov %p12916_p0 }
 0x10e   : > { %p12926_p7 = pmov %p12916_p0 }
 0x10f   : > { %9215 = dma.done.wait (%p12925_p4), [#allocation24], 528  }
 0x110   : > { %9217 = vsyncadd (%p12926_p7), [#allocation24], 4294966768  ;;  %p12927_p8 = pmov %p12916_p0 }
 0x111   : > { %p12928_p11 = pmov %p12916_p0 }
 0x112   : > { %9219 = dma.done.wait (%p12927_p8), [#allocation27], 528  }
 0x113   : > { %9221 = vsyncadd (%p12928_p11), [#allocation27], 4294966768  ;;  %p12929_p13 = pmov %p12916_p0 }
 0x115   : > { %9223 = dma.done.wait (%p12929_p13), [#allocation30], 528  }
 0x116   : > { %9225 = vsyncadd (%p12916_p0), [#allocation30], 4294966768  ;;  %p12930_p1 = pmov %p12916_p0 }
 0x117   : > { %p12931_p2 = pmov %p12916_p0 }
 0x118   : > { %9227 = dma.done.wait (%p12930_p1), [#allocation33], 1024  }
 0x119   : > { %9229 = vsyncadd (%p12931_p2), [#allocation33], 4294966272  ;;  %p1092_p9 = scmp.lt.s32.totalorder %s9458_s3, 1  ;;  %v1266_v0 = vlaneseq  ;;  %v12791_v1 = vmov 0   ;;  %s12932_s28 = sld [smem:[#allocation89_spill]]  ;;  %vm1118_vm0 = vcmask 523264  }
 0x11a   : > { %1360 = vmatprep.mubr.bf16.mxu0 %v12791_v1  ;;  %8383 = vset.pattern.permute.xlu1 %v12791_v1  ;;  %s12933_s7 = sld [smem:[#allocation87_spill]]  ;;  %vm1667_vm2 = vcmask 125952   ;;  %vm1610_vm3 = vcmask 130048   ;;  %s12817_s30 = smov 64  }
 0x11b   : > { %s9694_s10 = scalar_select %p1092_p9, %s9458_s3, 1  ;;  %8384 = vset.pattern.permute.xlu0 %v12791_v1  ;;  %v9702_v2 = vshrl.u32 %v1266_v0, 7 }
 0x11c   : > { %s12934_s1 = sld [smem:[#allocation99_spill]]  ;;  %s9274_s4 = smov 32  }
 0x11d   : > { %s12790_s12 = sshll.u32 %s9694_s10, 6  ;;  %v1268_v6 = vsub.s32 0, %v9702_v2  ;;  %s9275_s9 = smov 336  }
 0x11e   : > { %s9276_s11 = smov 344   ;;  %s9277_s29 = smov 320  }
 0x11f   : > { %s1099_s8 = scalar_lea.vmem %s12932_s28, %s9694_s10  ;;  %s12936_s28 = sld [smem:[#allocation97_spill]] }
 0x120   : > { %s9709_s6 = scalar_lea.vmem %s12933_s7, %s12790_s12  ;;  %v1114_v4 = vld [vmem:[%s1099_s8] sm:$0x1]  ;;  %s12935_s7 = sld [smem:[#allocation88_spill]] }
 0x121   : > { %v1106_v3 = vld [vmem:[%s9709_s6] sm:$0xff]  ;;  %vm1115_vm1 = vcmp.gt.f32.partialorder %v1114_v4, 0.5  ;;  %v1108_v7 = vld [vmem:[%s9709_s6 + $0x10] sm:$0xff]  ;;  %v9716_v8 = vld [vmem:[%s9709_s6 + $0x8] sm:$0xff]  ;;  %s9272_s12 = smov 96   ;;  %s9278_s8 = smov 328  }
 0x122   : > { %v1119_v5 = vsel %vm1118_vm0, %v1106_v3, 0.0  ;;  %v9719_v9 = vld [vmem:[%s9709_s6 + $0x18] sm:$0xff]  ;;  %v3769_v10 = vsel %vm1115_vm1, 1, %v12791_v1  ;;  %v1125_v11 = vsel %vm1118_vm0, %v1108_v7, 0.0  ;;  %v9724_v12 = vld [vmem:[%s9709_s6 + $0x20] sm:$0xff]  ;;  %v9727_v13 = vld [vmem:[%s9709_s6 + $0x28] sm:$0xff] }
 0x123   : > { %1120 = vadd.xlane.f32.xlu0 %v1119_v5  ;;  %v9731_v14 = vrot.slane %v3769_v10, %v1268_v6  ;;  %1126 = vadd.xlane.f32.xlu1 %v1125_v11  ;;  %v1122_v15 = vsel %vm1118_vm0, %v9716_v8, 0.0  ;;  %v1128_v16 = vsel %vm1118_vm0, %v9719_v9, 0.0  ;;  %v9738_v17 = vld [vmem:[%s9709_s6 + $0x30] sm:$0xff]  ;;  %v1131_v18 = vsel %vm1118_vm0, %v9724_v12, 0.0  ;;  %v9747_v21 = vld [vmem:[%s9709_s6 + $0x38] sm:$0xff]  ;;  %v8387_v25 = vld [vmem:[%s12934_s1 + $0x8] sm:$0xff]  }
 0x124   : > { %v1134_v19 = vsel %vm1118_vm0, %v9727_v13, 0.0  ;;  %v1137_v20 = vsel %vm1118_vm0, %v9738_v17, 0.0  ;;  %v1140_v22 = vsel %vm1118_vm0, %v9747_v21, 0.0  ;;  %v8385_v23 = vld [vmem:[%s12934_s1 + $0x18] sm:$0xff]   ;;  %v8386_v24 = vld [vmem:[%s12934_s1 + $0x10] sm:$0xff]   ;;  %v8388_v26 = vld [vmem:[%s12934_s1] sm:$0xff]  }
 0x125   : > { %7749 = vmatprep.subr.bf16.mxu1 %v8385_v23  ;;  %s9279_s2 = smov 368   ;;  %s9280_s13 = smov 352   ;;  %vm3774_vm4 = vcmp.eq.s32.totalorder %v9731_v14, 1 }
 0x126   : > { %7750 = vmatpush3.bf16.msra.mxu1 %v8385_v23  ;;  %v8389_v27 = vld [vmem:[%s12935_s7] sm:$0xff]   ;;  %v8390_v28 = vld [vmem:[%s12935_s7 + $0x8] sm:$0xff]   ;;  %v8391_v29 = vld [vmem:[%s12935_s7 + $0x10] sm:$0xff]   ;;  %s12821_s0 = smov 376  }
 0x127   : > { %1123 = vadd.xlane.f32.xlu0 %v1122_v15  ;;  %1129 = vadd.xlane.f32.xlu1 %v1128_v16  ;;  %v8392_v30 = vld [vmem:[%s12935_s7 + $0x18] sm:$0xff]   ;;  %v8393_v31 = vld [vmem:[%s12935_s7 + $0x20] sm:$0xff]   ;;  %v8394_v32 = vld [vmem:[%s12935_s7 + $0x28] sm:$0xff]  }
 0x128   : > { %7751 = vmatprep.subr.bf16.mxu1 %v8386_v24  ;;  %7757 = vmatprep.mubr.msk.bf16.mxu1 %vm1118_vm0, %v8389_v27  ;;  %v8395_v33 = vld [vmem:[%s12935_s7 + $0x30] sm:$0xff]   ;;  %v8396_v34 = vld [vmem:[%s12935_s7 + $0x38] sm:$0xff]  }
 0x129   : > { %v8397_v15 = vld [vmem:[%s12936_s28 + $0x34] ss:$8 sps:$4 sm:$0xff]   ;;  %v8399_v16 = vld [vmem:[%s12936_s28 + $0x30] ss:$8 sps:$4 sm:$0xff]  }
 0x12a   : > { %7752 = vmatpush3.bf16.msra.mxu1 %v8386_v24  ;;  %1336 = vmatprep.subr.bf16.mxu0 %v8397_v15 }
 0x12b   : > { %1132 = vadd.xlane.f32.xlu0 %v1131_v18  ;;  %1135 = vadd.xlane.f32.xlu1 %v1134_v19  ;;  %v8402_v18 = vld [vmem:[%s12936_s28 + $0x20] ss:$8 sps:$4 sm:$0xff]   ;;  %v8403_v19 = vld [vmem:[%s12936_s28 + $0x14] ss:$8 sps:$4 sm:$0xff]  }
 0x12c   : > { %7753 = vmatprep.subr.bf16.mxu1 %v8387_v25  ;;  %1337 = vmatpush1.bf16.msra.mxu0 %v8399_v16 }
 0x12e   : > { %7754 = vmatpush3.bf16.msra.mxu1 %v8387_v25 }
 0x12f   : > { %1138 = vadd.xlane.f32.xlu0 %v1137_v20  ;;  %1141 = vadd.xlane.f32.xlu1 %v1140_v22  ;;  %v8405_v20 = vld [vmem:[%s12936_s28 + $0x10] ss:$8 sps:$4 sm:$0xff]   ;;  %v8408_v22 = vld [vmem:[%s12936_s28] ss:$8 sps:$4 sm:$0xff]  }
 0x130   : > { %7755 = vmatprep.subr.bf16.mxu1 %v8388_v26 }
 0x132   : > { %7756 = vmatpush3.bf16.msra.mxu1 %v8388_v26 }
 0x135   : > { %7758 = vmatmul.mubr.msk.bf16.vlgmr.msra.gmra.mxu1 %vm1118_vm0, %v8390_v28 }
 0x136   : > { %7761 = vmatprep.mubr.msk.bf16.mxu1 %vm1118_vm0, %v8391_v29 }
 0x13d   : > { %7762 = vmatmul.mubr.msk.bf16.gmra.mxu1 %vm1118_vm0, %v8392_v30 }
 0x13e   : > { %7765 = vmatprep.mubr.msk.bf16.mxu1 %vm1118_vm0, %v8393_v31 }
 0x145   : > { %7766 = vmatmul.mubr.msk.bf16.gmra.mxu1 %vm1118_vm0, %v8394_v32 }
 0x146   : > { %7769 = vmatprep.mubr.msk.bf16.mxu1 %vm1118_vm0, %v8395_v33 }
 0x14d   : > { %7770 = vmatmul.mubr.msk.bf16.gmra.mxu1 %vm1118_vm0, %v8396_v34 }
 0x1ac   : > { %v1121_v35 = vpop.xlane.xlu0 %1120  ;;  %v1127_v37 = vpop.xlane.xlu1 %1126 }
 0x1ad   : > { %v1144_v36 = vmul.f32 0.015625, %v1121_v35  ;;  %v1146_v38 = vmul.f32 0.015625, %v1127_v37 }
 0x1af   : > { %v9795_v39 = vsub.f32 %v1106_v3, %v1144_v36  ;;  %v9797_v40 = vsub.f32 %v1108_v7, %v1146_v38 }
 0x1b0   : > { %v1124_v41 = vpop.xlane.xlu0 %1123  ;;  %v1130_v43 = vpop.xlane.xlu1 %1129 }
 0x1b1   : > { %v1145_v42 = vmul.f32 0.015625, %v1124_v41  ;;  %v1160_v44 = vmul.f32 %v9795_v39, %v9795_v39  ;;  %v1147_v45 = vmul.f32 0.015625, %v1130_v43  ;;  %v1162_v46 = vmul.f32 %v9797_v40, %v9797_v40 }
 0x1b3   : > { %v9804_v47 = vsub.f32 %v9716_v8, %v1145_v42  ;;  %v1168_v48 = vsel %vm1118_vm0, %v1160_v44, 0.0  ;;  %v9808_v49 = vsub.f32 %v9719_v9, %v1147_v45  ;;  %v1174_v53 = vsel %vm1118_vm0, %v1162_v46, 0.0 }
 0x1b4   : > { %1169 = vadd.xlane.f32.xlu0 %v1168_v48  ;;  %v1133_v50 = vpop.xlane.xlu0 %1132  ;;  %v1136_v52 = vpop.xlane.xlu1 %1135 }
 0x1b5   : > { %v1148_v51 = vmul.f32 0.015625, %v1133_v50  ;;  %v1161_v54 = vmul.f32 %v9804_v47, %v9804_v47  ;;  %v1149_v55 = vmul.f32 0.015625, %v1136_v52  ;;  %v1163_v56 = vmul.f32 %v9808_v49, %v9808_v49 }
 0x1b7   : > { %v9816_v57 = vsub.f32 %v9724_v12, %v1148_v51  ;;  %v1171_v58 = vsel %vm1118_vm0, %v1161_v54, 0.0  ;;  %v9820_v59 = vsub.f32 %v9727_v13, %v1149_v55  ;;  %v1177_v63 = vsel %vm1118_vm0, %v1163_v56, 0.0 }
 0x1b8   : > { %1175 = vadd.xlane.f32.xlu0 %v1174_v53  ;;  %1172 = vadd.xlane.f32.xlu1 %v1171_v58  ;;  %v1139_v60 = vpop.xlane.xlu0 %1138  ;;  %v1142_v62 = vpop.xlane.xlu1 %1141 }
 0x1b9   : > { %v1150_v61 = vmul.f32 0.015625, %v1139_v60  ;;  %v1164_v0 = vmul.f32 %v9816_v57, %v9816_v57  ;;  %v1151_v3 = vmul.f32 0.015625, %v1142_v62  ;;  %v1165_v4 = vmul.f32 %v9820_v59, %v9820_v59 }
 0x1bb   : > { %v9828_v5 = vsub.f32 %v9738_v17, %v1150_v61  ;;  %v1180_v7 = vsel %vm1118_vm0, %v1164_v0, 0.0  ;;  %v9832_v8 = vsub.f32 %v9747_v21, %v1151_v3  ;;  %v1183_v9 = vsel %vm1118_vm0, %v1165_v4, 0.0  ;;  %v8400_v17 = vld [vmem:[%s12936_s28 + $0x24] ss:$8 sps:$4 sm:$0xff]  }
 0x1bc   : > { %1178 = vadd.xlane.f32.xlu1 %v1177_v63  ;;  %1181 = vadd.xlane.f32.xlu0 %v1180_v7  ;;  %v8406_v21 = vld [vmem:[%s12936_s28 + $0x4] ss:$8 sps:$4 sm:$0xff]  }
 0x1bd   : > { %v1166_v10 = vmul.f32 %v9828_v5, %v9828_v5  ;;  %v1167_v11 = vmul.f32 %v9832_v8, %v9832_v8  ;;  %1338 = vmatprep.subr.bf16.mxu0 %v8400_v17 }
 0x1be   : > { %1339 = vmatpush1.bf16.msra.mxu0 %v8402_v18 }
 0x1bf   : > { %v1186_v12 = vsel %vm1118_vm0, %v1166_v10, 0.0  ;;  %v1189_v13 = vsel %vm1118_vm0, %v1167_v11, 0.0  ;;  %1340 = vmatprep.subr.bf16.mxu0 %v8403_v19 }
 0x1c0   : > { %1184 = vadd.xlane.f32.xlu1 %v1183_v9  ;;  %1187 = vadd.xlane.f32.xlu0 %v1186_v12 }
 0x1c2   : > { %1341 = vmatpush1.bf16.msra.mxu0 %v8405_v20 }
 0x1c3   : > { %1342 = vmatprep.subr.bf16.mxu0 %v8406_v21 }
 0x1c4   : > { %1190 = vadd.xlane.f32.xlu1 %v1189_v13 }
 0x1c6   : > { %1343 = vmatpush1.bf16.msra.mxu0 %v8408_v22 }
 0x1f5   : > { %v7759_v23 = vpop.f32.mrf.mxu1 }
 0x1f6   : > { %v9865_v24 = vpack.c.bf16 %v7759_v23, %v7759_v23 }
 0x1f7   : > { %v1547_v25 = vpop.f32.mrf.mxu1 }
 0x1f8   : > { %1782 = vst.msk [vmem:[#allocation5 + $0x8] sm:$0xf] %vm1667_vm2, %v9865_v24  ;;  %v9869_v26 = vpack.c.bf16 %v1547_v25, %v1547_v25 }
 0x1f9   : > { %v7760_v27 = vpop.f32.mrf.mxu1 }
 0x1fa   : > { %1780 = vst.msk [vmem:[#allocation5] sm:$0xf] %vm1667_vm2, %v9869_v26  ;;  %v9873_v28 = vpack.c.bf16 %v7760_v27, %v7760_v27 }
 0x1fb   : > { %v1550_v29 = vpop.f32.mrf.mxu1 }
 0x1fc   : > { %1783 = vst.msk [vmem:[#allocation5 + $0xc] sm:$0xf] %vm1667_vm2, %v9873_v28  ;;  %v9877_v30 = vpack.c.bf16 %v1550_v29, %v1550_v29 }
 0x1fd   : > { %v7763_v31 = vpop.f32.mrf.mxu1 }
 0x1fe   : > { %1781 = vst.msk [vmem:[#allocation5 + $0x4] sm:$0xf] %vm1667_vm2, %v9877_v30  ;;  %v9881_v32 = vpack.c.bf16 %v7763_v31, %v7763_v31 }
 0x1ff   : > { %v1563_v33 = vpop.f32.mrf.mxu1 }
 0x200   : > { %1786 = vst.msk [vmem:[#allocation5 + $0x18] sm:$0xf] %vm1667_vm2, %v9881_v32  ;;  %v9885_v34 = vpack.c.bf16 %v1563_v33, %v1563_v33 }
 0x201   : > { %v7764_v35 = vpop.f32.mrf.mxu1 }
 0x202   : > { %1784 = vst.msk [vmem:[#allocation5 + $0x10] sm:$0xf] %vm1667_vm2, %v9885_v34  ;;  %v9889_v36 = vpack.c.bf16 %v7764_v35, %v7764_v35  ;;  %v9965_v35 = vld [vmem:[#allocation8] ss:$0 sm:$0xff] }
 0x203   : > { %v1566_v37 = vpop.f32.mrf.mxu1 }
 0x204   : > { %1787 = vst.msk [vmem:[#allocation5 + $0x1c] sm:$0xf] %vm1667_vm2, %v9889_v36  ;;  %v9893_v38 = vpack.c.bf16 %v1566_v37, %v1566_v37 }
 0x205   : > { %v7767_v41 = vpop.f32.mrf.mxu1 }
 0x206   : > { %1785 = vst.msk [vmem:[#allocation5 + $0x14] sm:$0xf] %vm1667_vm2, %v9893_v38  ;;  %v9897_v42 = vpack.c.bf16 %v7767_v41, %v7767_v41  ;;  %v7460_v41 = vld [vmem:[#allocation13] ss:$0 sm:$0xff] }
 0x207   : > { %v1579_v43 = vpop.f32.mrf.mxu1 }
 0x208   : > { %1790 = vst.msk [vmem:[#allocation5 + $0x28] sm:$0xf] %vm1667_vm2, %v9897_v42  ;;  %v9901_v44 = vpack.c.bf16 %v1579_v43, %v1579_v43 }
 0x209   : > { %v7768_v45 = vpop.f32.mrf.mxu1 }
 0x20a   : > { %1788 = vst.msk [vmem:[#allocation5 + $0x20] sm:$0xf] %vm1667_vm2, %v9901_v44  ;;  %v9905_v46 = vpack.c.bf16 %v7768_v45, %v7768_v45 }
 0x20b   : > { %v1582_v48 = vpop.f32.mrf.mxu1 }
 0x20c   : > { %1791 = vst.msk [vmem:[#allocation5 + $0x2c] sm:$0xf] %vm1667_vm2, %v9905_v46  ;;  %v9909_v50 = vpack.c.bf16 %v1582_v48, %v1582_v48 }
 0x20d   : > { %v7771_v51 = vpop.f32.mrf.mxu1 }
 0x20e   : > { %1789 = vst.msk [vmem:[#allocation5 + $0x24] sm:$0xf] %vm1667_vm2, %v9909_v50  ;;  %v9913_v52 = vpack.c.bf16 %v7771_v51, %v7771_v51 }
 0x20f   : > { %v1595_v53 = vpop.f32.mrf.mxu1 }
 0x210   : > { %1794 = vst.msk [vmem:[#allocation5 + $0x38] sm:$0xf] %vm1667_vm2, %v9913_v52  ;;  %v9917_v54 = vpack.c.bf16 %v1595_v53, %v1595_v53  ;;  %2095 = vrot.lane.b32.xlu0 %v9913_v52, %s9272_s12  ;;  %v9969_v53 = vld [vmem:[#allocation11] ss:$0 sm:$0xff] }
 0x211   : > { %v7772_v55 = vpop.f32.mrf.mxu1 }
 0x212   : > { %1792 = vst.msk [vmem:[#allocation5 + $0x30] sm:$0xf] %vm1667_vm2, %v9917_v54  ;;  %v9923_v56 = vpack.c.bf16 %v7772_v55, %v7772_v55 }
 0x213   : > { %v1598_v58 = vpop.f32.mrf.mxu1 }
 0x214   : > { %1795 = vst.msk [vmem:[#allocation5 + $0x3c] sm:$0xf] %vm1667_vm2, %v9923_v56  ;;  %v9927_v60 = vpack.c.bf16 %v1598_v58, %v1598_v58  ;;  %2097 = vrot.lane.b32.xlu1 %v9923_v56, %s9272_s12  ;;  %2087 = vrot.lane.b32.xlu0 %v9897_v42, %s9272_s12  ;;  %v7461_v58 = vld [vmem:[#allocation14] ss:$0 sm:$0xff] }
 0x216   : > { %1793 = vst.msk [vmem:[#allocation5 + $0x34] sm:$0xf] %vm1667_vm2, %v9927_v60 }
 0x218   : > { %2091 = vrot.lane.b32.xlu1 %v9917_v54, %s9272_s12  ;;  %2083 = vrot.lane.b32.xlu0 %v9901_v44, %s9272_s12 }
 0x21b   : > { %v9939_v61 = vld [vmem:[#allocation5 + $0x38] sm:$0xff]  }
 0x21c   : > { %2093 = vrot.lane.b32.xlu1 %v9927_v60, %s9272_s12  ;;  %2079 = vrot.lane.b32.xlu0 %v9881_v32, %s9272_s12 }
 0x21d   : > { %8101 = vmatprep.subr.msk.bf16.mxu0 %vm1610_vm3, %v9939_v61 }
 0x220   : > { %2089 = vrot.lane.b32.xlu1 %v9905_v46, %s9272_s12  ;;  %2075 = vrot.lane.b32.xlu0 %v9885_v34, %s9272_s12 }
 0x224   : > { %2085 = vrot.lane.b32.xlu1 %v9909_v50, %s9272_s12  ;;  %2071 = vrot.lane.b32.xlu0 %v9865_v24, %s9272_s12 }
 0x228   : > { %2081 = vrot.lane.b32.xlu1 %v9889_v36, %s9272_s12  ;;  %2067 = vrot.lane.b32.xlu0 %v9869_v26, %s9272_s12 }
 0x22c   : > { %2077 = vrot.lane.b32.xlu1 %v9893_v38, %s9272_s12 }
 0x230   : > { %2073 = vrot.lane.b32.xlu1 %v9873_v28, %s9272_s12 }
 0x234   : > { %2069 = vrot.lane.b32.xlu1 %v9877_v30, %s9272_s12 }
 0x23d   : > { %v1170_v62 = vpop.xlane.xlu0 %1169 }
 0x23e   : > { %v1192_v63 = vmul.f32 0.015625, %v1170_v62 }
 0x240   : > { %v1200_v0 = vadd.f32 1e-05, %v1192_v63 }
 0x241   : > { %v1173_v3 = vpop.xlane.xlu1 %1172  ;;  %v1176_v4 = vpop.xlane.xlu0 %1175 }
 0x242   : > { %8493 = vrsqrt.f32 %v1200_v0  ;;  %v1193_v7 = vmul.f32 0.015625, %v1173_v3  ;;  %v1194_v9 = vmul.f32 0.015625, %v1176_v4 }
 0x244   : > { %v1201_v10 = vadd.f32 1e-05, %v1193_v7  ;;  %v1202_v11 = vadd.f32 1e-05, %v1194_v9 }
 0x245   : > { %v1179_v12 = vpop.xlane.xlu1 %1178  ;;  %v1182_v13 = vpop.xlane.xlu0 %1181 }
 0x246   : > { %8495 = vrsqrt.f32 %v1201_v10  ;;  %v1195_v15 = vmul.f32 0.015625, %v1179_v12  ;;  %v1196_v16 = vmul.f32 0.015625, %v1182_v13 }
 0x247   : > { %8497 = vrsqrt.f32 %v1202_v11 }
 0x248   : > { %v1203_v17 = vadd.f32 1e-05, %v1195_v15  ;;  %v1204_v18 = vadd.f32 1e-05, %v1196_v16 }
 0x249   : > { %v1185_v19 = vpop.xlane.xlu1 %1184  ;;  %v1188_v20 = vpop.xlane.xlu0 %1187 }
 0x24a   : > { %8499 = vrsqrt.f32 %v1203_v17  ;;  %v1197_v21 = vmul.f32 0.015625, %v1185_v19  ;;  %v1198_v22 = vmul.f32 0.015625, %v1188_v20  ;;  %v8410_v17 = vld [vmem:[#allocation5 + $0x30] sm:$0xff]  }
 0x24b   : > { %8501 = vrsqrt.f32 %v1204_v18 }
 0x24c   : > { %v1205_v23 = vadd.f32 1e-05, %v1197_v21  ;;  %v1206_v25 = vadd.f32 1e-05, %v1198_v22 }
 0x24d   : > { %v1191_v27 = vpop.xlane.xlu1 %1190 }
 0x24e   : > { %8503 = vrsqrt.f32 %v1205_v23  ;;  %v1199_v29 = vmul.f32 0.015625, %v1191_v27 }
 0x24f   : > { %v8494_v31 = vpop.eup %8493  ;;  %8505 = vrsqrt.f32 %v1206_v25 }
 0x250   : > { %v1207_v33 = vadd.f32 1e-05, %v1199_v29  ;;  %v1216_v37 = vmul.f32 %v8494_v31, %v9795_v39 }
 0x252   : > { %8507 = vrsqrt.f32 %v1207_v33  ;;  %v1230_v45 = vmul.f32 %v9965_v35, %v1216_v37  ;;  %v5000_v48 = vmul.f32 %v7460_v41, %v1216_v37 }
 0x253   : > { %v8496_v43 = vpop.eup %8495 }
 0x254   : > { %v8498_v51 = vpop.eup %8497  ;;  %v1217_v55 = vmul.f32 %v8496_v43, %v9804_v47  ;;  %v1244_v39 = vadd.f32 %v9969_v53, %v1230_v45  ;;  %v9975_v4 = vadd.f32 %v7461_v58, %v5000_v48 }
 0x255   : > { %v1218_v62 = vmul.f32 %v8498_v51, %v9797_v40  ;;  %v2683_v40 = vsel %vm1610_vm3, %v9939_v61, 0 }
 0x256   : > { %v1231_v63 = vmul.f32 %v9965_v35, %v1217_v55  ;;  %v5001_v0 = vmul.f32 %v7460_v41, %v1217_v55  ;;  %12937 = vst [vmem:[#allocation53_spill] sm:$0xff] %v9975_v4  ;;  %v8411_v55 = vld [vmem:[#allocation5 + $0x28] sm:$0xff]  }
 0x257   : > { %v8500_v3 = vpop.eup %8499  ;;  %v5002_v11 = vmul.f32 %v7460_v41, %v1218_v62  ;;  %v1232_v20 = vmul.f32 %v9965_v35, %v1218_v62 }
 0x258   : > { %v8502_v7 = vpop.eup %8501  ;;  %v1245_v9 = vadd.f32 %v9969_v53, %v1231_v63  ;;  %v1219_v10 = vmul.f32 %v8500_v3, %v9808_v49  ;;  %v9979_v12 = vadd.f32 %v7461_v58, %v5001_v0 }
 0x259   : > { %v1220_v47 = vmul.f32 %v8502_v7, %v9816_v57  ;;  %v9989_v21 = vadd.f32 %v7461_v58, %v5002_v11  ;;  %v1246_v33 = vadd.f32 %v9969_v53, %v1232_v20  ;;  %v2677_v11 = vsel %vm1610_vm3, %v8411_v55, 0 }
 0x25a   : > { %12938 = vst [vmem:[#allocation54_spill] sm:$0xff] %v9979_v12  ;;  %v1252_v13 = vpack.c.bf16 %v1245_v9, %v1244_v39  ;;  %v1233_v15 = vmul.f32 %v9965_v35, %v1219_v10  ;;  %v5003_v16 = vmul.f32 %v7460_v41, %v1219_v10 }
 0x25b   : > { %v8504_v19 = vpop.eup %8503  ;;  %12939 = vst [vmem:[#allocation55_spill] sm:$0xff] %v9989_v21  ;;  %v5004_v22 = vmul.f32 %v7460_v41, %v1220_v47  ;;  %v1234_v0 = vmul.f32 %v9965_v35, %v1220_v47  ;;  %v8412_v47 = vld [vmem:[#allocation5 + $0x20] sm:$0xff]  }
 0x25c   : > { %v8506_v49 = vpop.eup %8505  ;;  %7263 = vmatmul.mubr.msk.bf16.vlgmr.msra.gmra.mxu0 %vm1118_vm0, %v1252_v13  ;;  %v9991_v57 = vadd.f32 %v7461_v58, %v5003_v16  ;;  %v1221_v61 = vmul.f32 %v8504_v19, %v9820_v59  ;;  %v1247_v25 = vadd.f32 %v9969_v53, %v1233_v15  ;;  %v2674_v16 = vsel %vm1610_vm3, %v8412_v47, 0  ;;  %v8414_v19 = vld [vmem:[#allocation5 + $0x10] sm:$0xff]  }
 0x25d   : > { %1370 = vmatprep.mubr.bf16.mxu0 %v12791_v1  ;;  %v1222_v23 = vmul.f32 %v8506_v49, %v9828_v5  ;;  %7774 = vmatpush3.bf16.xpose.msra.mxu0 %v2683_v40  ;;  %v10002_v59 = vadd.f32 %v7461_v58, %v5004_v22  ;;  %v2680_v5 = vsel %vm1610_vm3, %v8410_v17, 0  ;;  %v2668_v20 = vsel %vm1610_vm3, %v8414_v19, 0  ;;  %v8415_v49 = vld [vmem:[#allocation5 + $0x8] sm:$0xff]  }
 0x25e   : > { %12940 = vst [vmem:[#allocation56_spill] sm:$0xff] %v9991_v57  ;;  %8102 = vmatprep.subr.msk.bf16.mxu0 %vm1610_vm3, %v8410_v17  ;;  %v5005_v29 = vmul.f32 %v7460_v41, %v1221_v61  ;;  %v1253_v48 = vpack.c.bf16 %v1247_v25, %v1246_v33  ;;  %v1235_v51 = vmul.f32 %v9965_v35, %v1221_v61  ;;  %v8413_v17 = vld [vmem:[#allocation5 + $0x18] sm:$0xff]   ;;  %v8416_v61 = vld [vmem:[#allocation5] sm:$0xff]  }
 0x25f   : > { %v8508_v31 = vpop.eup %8507  ;;  %12941 = vst [vmem:[#allocation57_spill] sm:$0xff] %v10002_v59  ;;  %v5006_v45 = vmul.f32 %v7460_v41, %v1222_v23  ;;  %v2662_v22 = vsel %vm1610_vm3, %v8416_v61, 0 }
 0x260   : > { %v1223_v37 = vmul.f32 %v8508_v31, %v9832_v8  ;;  %v10004_v43 = vadd.f32 %v7461_v58, %v5005_v29  ;;  %v1249_v39 = vadd.f32 %v9969_v53, %v1235_v51 }
 0x261   : > { %v10012_v8 = vadd.f32 %v7461_v58, %v5006_v45 }
 0x262   : > { %12942 = vst [vmem:[#allocation58_spill] sm:$0xff] %v10004_v43  ;;  %v5007_v63 = vmul.f32 %v7460_v41, %v1223_v37  ;;  %v1248_v41 = vadd.f32 %v9969_v53, %v1234_v0  ;;  %v1237_v10 = vmul.f32 %v9965_v35, %v1223_v37 }
 0x263   : > { %12943 = vst [vmem:[#allocation59_spill] sm:$0xff] %v10012_v8 }
 0x264   : > { %7264 = vmatmul.mubr.msk.bf16.gmra.mxu0 %vm1118_vm0, %v1253_v48  ;;  %v10014_v3 = vadd.f32 %v7461_v58, %v5007_v63  ;;  %v1254_v9 = vpack.c.bf16 %v1249_v39, %v1248_v41  ;;  %v1236_v58 = vmul.f32 %v9965_v35, %v1222_v23  ;;  %v1251_v40 = vadd.f32 %v9969_v53, %v1237_v10 }
 0x265   : > { %1380 = vmatprep.mubr.bf16.mxu0 %v12791_v1  ;;  %7776 = vmatpush3.bf16.xpose.msra.mxu0 %v2680_v5  ;;  %v2671_v35 = vsel %vm1610_vm3, %v8413_v17, 0 }
 0x266   : > { %12944 = vst [vmem:[#allocation60_spill] sm:$0xff] %v10014_v3  ;;  %8103 = vmatprep.subr.msk.bf16.mxu0 %vm1610_vm3, %v8411_v55  ;;  %v1250_v13 = vadd.f32 %v9969_v53, %v1236_v58  ;;  %v2665_v53 = vsel %vm1610_vm3, %v8415_v49, 0 }
 0x268   : > { %v1255_v15 = vpack.c.bf16 %v1251_v40, %v1250_v13 }
 0x26c   : > { %7265 = vmatmul.mubr.msk.bf16.gmra.mxu0 %vm1118_vm0, %v1254_v9 }
 0x26d   : > { %1390 = vmatprep.mubr.bf16.mxu0 %v12791_v1  ;;  %7778 = vmatpush3.bf16.xpose.msra.mxu0 %v2677_v11  ;;  %v1264_v11 = vld [vmem:[#allocation19] sm:$0x3] }
 0x26e   : > { %8104 = vmatprep.subr.msk.bf16.mxu0 %vm1610_vm3, %v8412_v47  ;;  %v1272_v47 = vsub.s32 1, %v9702_v2  ;;  %v10063_v58 = vrot.slane %v1264_v11, %v1268_v6 }
 0x270   : > { %v10065_v40 = vrot.slane %v1264_v11, %v1272_v47 }
 0x274   : > { %7266 = vmatmul.mubr.msk.bf16.gmra.mxu0 %vm1118_vm0, %v1255_v15 }
 0x275   : > { %7780 = vmatpush3.bf16.xpose.msra.mxu0 %v2674_v16 }
 0x276   : > { %8105 = vmatprep.subr.msk.bf16.mxu0 %vm1610_vm3, %v8413_v17 }
 0x27d   : > { %7782 = vmatpush3.bf16.xpose.msra.mxu0 %v2671_v35 }
 0x27e   : > { %8106 = vmatprep.subr.msk.bf16.mxu0 %vm1610_vm3, %v8414_v19 }
 0x282   : > { %v2096_v25 = vpop.permute.xlu0 %2095 }
 0x283   : > { %2130 = vst.msk [vmem:[#allocation5 + $0xb8] sm:$0xf] %vm1667_vm2, %v2096_v25  ;;  %v10099_v25 = vld [vmem:[#allocation22] ss:$0 sm:$0xff] }
 0x285   : > { %7784 = vmatpush3.bf16.xpose.msra.mxu0 %v2668_v20 }
 0x286   : > { %8107 = vmatprep.subr.msk.bf16.mxu0 %vm1610_vm3, %v8415_v49  ;;  %v2098_v23 = vpop.permute.xlu1 %2097  ;;  %v2088_v45 = vpop.permute.xlu0 %2087 }
 0x287   : > { %2131 = vst.msk [vmem:[#allocation5 + $0xbc] sm:$0xf] %vm1667_vm2, %v2098_v23  ;;  %2126 = vst.msk [vmem:[#allocation5 + $0xa8] sm:$0xf] %vm1667_vm2, %v2088_v45 }
 0x28a   : > { %v2092_v29 = vpop.permute.xlu1 %2091  ;;  %v2084_v48 = vpop.permute.xlu0 %2083 }
 0x28b   : > { %2128 = vst.msk [vmem:[#allocation5 + $0xb0] sm:$0xf] %vm1667_vm2, %v2092_v29  ;;  %2124 = vst.msk [vmem:[#allocation5 + $0xa0] sm:$0xf] %vm1667_vm2, %v2084_v48 }
 0x28d   : > { %7786 = vmatpush3.bf16.xpose.msra.mxu0 %v2665_v53 }
 0x28e   : > { %8108 = vmatprep.subr.msk.bf16.mxu0 %vm1610_vm3, %v8416_v61  ;;  %v2094_v31 = vpop.permute.xlu1 %2093  ;;  %v10043_v33 = vld [vmem:[#allocation5 + $0xb8] sm:$0xff]   ;;  %v2080_v55 = vpop.permute.xlu0 %2079 }
 0x28f   : > { %2129 = vst.msk [vmem:[#allocation5 + $0xb4] sm:$0xf] %vm1667_vm2, %v2094_v31  ;;  %2122 = vst.msk [vmem:[#allocation5 + $0x98] sm:$0xf] %vm1667_vm2, %v2080_v55 }
 0x292   : > { %v2090_v37 = vpop.permute.xlu1 %2089  ;;  %v2076_v0 = vpop.permute.xlu0 %2075 }
 0x293   : > { %2127 = vst.msk [vmem:[#allocation5 + $0xac] sm:$0xf] %vm1667_vm2, %v2090_v37  ;;  %2120 = vst.msk [vmem:[#allocation5 + $0x90] sm:$0xf] %vm1667_vm2, %v2076_v0  ;;  %v10101_v37 = vld [vmem:[#allocation20] ss:$0 sm:$0xff] }
 0x295   : > { %7788 = vmatpush3.bf16.xpose.msra.mxu0 %v2662_v22 }
 0x296   : > { %8117 = vmatprep.subr.msk.bf16.mxu0 %vm1610_vm3, %v10043_v33  ;;  %v2086_v5 = vpop.permute.xlu1 %2085  ;;  %v2072_v41 = vpop.permute.xlu0 %2071 }
 0x297   : > { %2125 = vst.msk [vmem:[#allocation5 + $0xa4] sm:$0xf] %vm1667_vm2, %v2086_v5  ;;  %2118 = vst.msk [vmem:[#allocation5 + $0x88] sm:$0xf] %vm1667_vm2, %v2072_v41 }
 0x29a   : > { %v2082_v51 = vpop.permute.xlu1 %2081  ;;  %v2068_v10 = vpop.permute.xlu0 %2067  ;;  %v8419_v27 = vld [vmem:[#allocation5 + $0xa8] sm:$0xff]  }
 0x29b   : > { %2123 = vst.msk [vmem:[#allocation5 + $0x9c] sm:$0xf] %vm1667_vm2, %v2082_v51  ;;  %2116 = vst.msk [vmem:[#allocation5 + $0x80] sm:$0xf] %vm1667_vm2, %v2068_v10 }
 0x29e   : > { %v2078_v63 = vpop.permute.xlu1 %2077 }
 0x29f   : > { %2121 = vst.msk [vmem:[#allocation5 + $0x94] sm:$0xf] %vm1667_vm2, %v2078_v63 }
 0x2a2   : > { %v2074_v39 = vpop.permute.xlu1 %2073 }
 0x2a3   : > { %2119 = vst.msk [vmem:[#allocation5 + $0x8c] sm:$0xf] %vm1667_vm2, %v2074_v39 }
 0x2a6   : > { %v2070_v9 = vpop.permute.xlu1 %2069 }
 0x2a7   : > { %2117 = vst.msk [vmem:[#allocation5 + $0x84] sm:$0xf] %vm1667_vm2, %v2070_v9 }
 0x31c   : > { %v1362_v13 = vpop.f32.mrf.mxu0 }
 0x31d   : > { %v10068_v15 = vadd.f32 %v1362_v13, %v10063_v58  ;;  %v8420_v13 = vld [vmem:[#allocation5 + $0xa0] sm:$0xff]  }
 0x31e   : > { %v1364_v16 = vpop.f32.mrf.mxu0 }
 0x31f   : > { %1611 = vst.msk [vmem:[#allocation2] sm:$0xff] %vm1610_vm3, %v10068_v15  ;;  %v1365_v17 = vadd.f32 %v1364_v16, %v10065_v40  ;;  %1968 = vrot.lane.b32.xlu0 %v10068_v15, %s9272_s12 }
 0x320   : > { %v1366_v35 = vpop.f32.mrf.mxu0 }
 0x321   : > { %v10075_v19 = vpack.c.bf16 %v1365_v17, %v1365_v17  ;;  %v10078_v2 = vadd.f32 %v1366_v35, %v10063_v58 }
 0x322   : > { %v1368_v6 = vpop.f32.mrf.mxu0 }
 0x323   : > { %12945 = vst [vmem:[#allocation61_spill] sm:$0xff] %v10075_v19  ;;  %1708 = vst.msk [vmem:[#allocation4] sm:$0xf] %vm1667_vm2, %v10075_v19  ;;  %v1369_v20 = vadd.f32 %v1368_v6, %v10065_v40  ;;  %1970 = vrot.lane.b32.xlu1 %v10078_v2, %s9272_s12 }
 0x324   : > { %1612 = vst.msk [vmem:[#allocation2 + $0x8] sm:$0xff] %vm1610_vm3, %v10078_v2  ;;  %v1372_v49 = vpop.f32.mrf.mxu0 }
 0x325   : > { %v10087_v53 = vpack.c.bf16 %v1369_v20, %v1369_v20  ;;  %v10090_v61 = vadd.f32 %v1372_v49, %v10063_v58 }
 0x326   : > { %v1374_v22 = vpop.f32.mrf.mxu0  ;;  %v2305_v29 = vld [vmem:[#allocation2] sm:$0xff] }
 0x327   : > { %12946 = vst [vmem:[#allocation62_spill] sm:$0xff] %v10087_v53  ;;  %1709 = vst.msk [vmem:[#allocation4 + $0x4] sm:$0xf] %vm1667_vm2, %v10087_v53  ;;  %v1375_v23 = vadd.f32 %v1374_v22, %v10065_v40  ;;  %1972 = vrot.lane.b32.xlu0 %v10090_v61, %s9272_s12  ;;  %v2433_v55 = vadd.f32 %v10099_v25, %v2305_v29  ;;  %v10118_v39 = vadd.f32 %v10101_v37, %v2305_v29 }
 0x328   : > { %1613 = vst.msk [vmem:[#allocation2 + $0x10] sm:$0xff] %vm1610_vm3, %v10090_v61  ;;  %v1376_v31 = vpop.f32.mrf.mxu0 }
 0x329   : > { %v10103_v45 = vpack.c.bf16 %v1375_v23, %v1375_v23  ;;  %v10106_v5 = vadd.f32 %v1376_v31, %v10063_v58 }
 0x32a   : > { %v1378_v48 = vpop.f32.mrf.mxu0 }
 0x32b   : > { %12947 = vst [vmem:[#allocation63_spill] sm:$0xff] %v10103_v45  ;;  %v2306_v51 = vld [vmem:[#allocation2 + $0x8] sm:$0xff]  ;;  %1710 = vst.msk [vmem:[#allocation4 + $0x8] sm:$0xf] %vm1667_vm2, %v10103_v45  ;;  %v1379_v63 = vadd.f32 %v1378_v48, %v10065_v40  ;;  %1974 = vrot.lane.b32.xlu1 %v10106_v5, %s9272_s12 }
 0x32c   : > { %1614 = vst.msk [vmem:[#allocation2 + $0x18] sm:$0xff] %vm1610_vm3, %v10106_v5  ;;  %v2434_v0 = vadd.f32 %v10099_v25, %v2306_v51  ;;  %v10121_v41 = vadd.f32 %v10101_v37, %v2306_v51  ;;  %v1382_v9 = vpop.f32.mrf.mxu0 }
 0x32d   : > { %v10123_v10 = vpack.c.bf16 %v1379_v63, %v1379_v63  ;;  %v10126_v11 = vadd.f32 %v1382_v9, %v10063_v58 }
 0x32e   : > { %v2465_v47 = vpack.c.bf16 %v2434_v0, %v2433_v55  ;;  %v1384_v16 = vpop.f32.mrf.mxu0  ;;  %v2965_v0 = vsel %vm1610_vm3, %v10043_v33, 0 }
 0x32f   : > { %12948 = vst [vmem:[#allocation64_spill] sm:$0xff] %v10123_v10  ;;  %1711 = vst.msk [vmem:[#allocation4 + $0xc] sm:$0xf] %vm1667_vm2, %v10123_v10  ;;  %v1385_v17 = vadd.f32 %v1384_v16, %v10065_v40  ;;  %v2307_v35 = vld [vmem:[#allocation2 + $0x10] sm:$0xff] }
 0x330   : > { %1615 = vst.msk [vmem:[#allocation2 + $0x20] sm:$0xff] %vm1610_vm3, %v10126_v11  ;;  %7789 = vmatprep.mubr.msk.bf16.mxu0 %vm1610_vm3, %v2465_v47  ;;  %v1386_v6 = vpop.f32.mrf.mxu0  ;;  %v2435_v29 = vadd.f32 %v10099_v25, %v2307_v35  ;;  %v10149_v51 = vadd.f32 %v10101_v37, %v2307_v35 }
 0x331   : > { %v10136_v20 = vpack.c.bf16 %v1385_v17, %v1385_v17  ;;  %v10139_v49 = vadd.f32 %v1386_v6, %v10063_v58  ;;  %v8418_v17 = vld [vmem:[#allocation5 + $0xb0] sm:$0xff]  }
 0x332   : > { %v1388_v22 = vpop.f32.mrf.mxu0 }
 0x333   : > { %12949 = vst [vmem:[#allocation65_spill] sm:$0xff] %v10136_v20  ;;  %v2308_v23 = vld [vmem:[#allocation2 + $0x18] sm:$0xff]  ;;  %1712 = vst.msk [vmem:[#allocation4 + $0x10] sm:$0xf] %vm1667_vm2, %v10136_v20  ;;  %v1389_v31 = vadd.f32 %v1388_v22, %v10065_v40 }
 0x334   : > { %1616 = vst.msk [vmem:[#allocation2 + $0x28] sm:$0xff] %vm1610_vm3, %v10139_v49  ;;  %v2436_v48 = vadd.f32 %v10099_v25, %v2308_v23  ;;  %v10152_v55 = vadd.f32 %v10101_v37, %v2308_v23  ;;  %v1392_v63 = vpop.f32.mrf.mxu0 }
 0x335   : > { %v10156_v9 = vpack.c.bf16 %v1389_v31, %v1389_v31  ;;  %v10159_v47 = vadd.f32 %v1392_v63, %v10063_v58 }
 0x336   : > { %v2466_v16 = vpack.c.bf16 %v2436_v48, %v2435_v29  ;;  %v1394_v22 = vpop.f32.mrf.mxu0 }
 0x337   : > { %12950 = vst [vmem:[#allocation66_spill] sm:$0xff] %v10156_v9  ;;  %1713 = vst.msk [vmem:[#allocation4 + $0x14] sm:$0xf] %vm1667_vm2, %v10156_v9  ;;  %v1395_v35 = vadd.f32 %v1394_v22, %v10065_v40  ;;  %v10171_v33 = vpack.c.bf16 %v10159_v47, %v10159_v47  ;;  %v2309_v23 = vld [vmem:[#allocation2 + $0x20] sm:$0xff] }
 0x338   : > { %1617 = vst.msk [vmem:[#allocation2 + $0x30] sm:$0xff] %vm1610_vm3, %v10159_v47  ;;  %7790 = vmatmul.mubr.msk.bf16.vlgmr.msra.gmra.mxu0 %vm1610_vm3, %v2466_v16  ;;  %v1396_v29 = vpop.f32.mrf.mxu0  ;;  %v10183_v16 = vpack.c.bf16 %v10126_v11, %v10126_v11 }
 0x339   : > { %7822 = vmatpush3.bf16.xpose.msra.mxu0 %v2965_v0  ;;  %v10173_v31 = vpack.c.bf16 %v1395_v35, %v1395_v35  ;;  %v10176_v48 = vadd.f32 %v1396_v29, %v10063_v58  ;;  %1655 = vrot.lane.b32.xlu0 %v10171_v33, %s12817_s30  ;;  %v2437_v0 = vadd.f32 %v10099_v25, %v2309_v23 }
 0x33a   : > { %8118 = vmatprep.subr.msk.bf16.mxu0 %vm1610_vm3, %v8418_v17  ;;  %v1398_v63 = vpop.f32.mrf.mxu0  ;;  %12952 = vst [vmem:[#allocation68_spill] sm:$0xff] %v10183_v16  ;;  %v10187_v35 = vadd.f32 %v10101_v37, %v2309_v23 }
 0x33b   : > { %12951 = vst [vmem:[#allocation67_spill] sm:$0xff] %v10173_v31  ;;  %v2310_v22 = vld [vmem:[#allocation2 + $0x28] sm:$0xff]  ;;  %1714 = vst.msk [vmem:[#allocation4 + $0x18] sm:$0xf] %vm1667_vm2, %v10173_v31  ;;  %v1399_v58 = vadd.f32 %v1398_v63, %v10065_v40  ;;  %v10196_v29 = vpack.c.bf16 %v10176_v48, %v10176_v48  ;;  %v2962_v40 = vsel %vm1610_vm3, %v8418_v17, 0  ;;  %v2959_v63 = vsel %vm1610_vm3, %v8419_v27, 0 }
 0x33c   : > { %1618 = vst.msk [vmem:[#allocation2 + $0x38] sm:$0xff] %vm1610_vm3, %v10176_v48  ;;  %v2438_v1 = vadd.f32 %v10099_v25, %v2310_v22  ;;  %v10200_v7 = vadd.f32 %v10101_v37, %v2310_v22  ;;  %v10216_v22 = vpack.c.bf16 %v10139_v49, %v10139_v49 }
 0x33d   : > { %v10202_v62 = vpack.c.bf16 %v1399_v58, %v1399_v58  ;;  %1657 = vrot.lane.b32.xlu1 %v10196_v29, %s12817_s30  ;;  %1651 = vrot.lane.b32.xlu0 %v10183_v16, %s12817_s30 }
 0x33e   : > { %v2467_v23 = vpack.c.bf16 %v2438_v1, %v2437_v0 }
 0x33f   : > { %12953 = vst [vmem:[#allocation69_spill] sm:$0xff] %v10202_v62  ;;  %1715 = vst.msk [vmem:[#allocation4 + $0x1c] sm:$0xf] %vm1667_vm2, %v10202_v62  ;;  %v2311_v58 = vld [vmem:[#allocation2 + $0x30] sm:$0xff] }
 0x340   : > { %7793 = vmatprep.mubr.msk.bf16.mxu0 %vm1610_vm3, %v2467_v23  ;;  %v2439_v17 = vadd.f32 %v10099_v25, %v2311_v58  ;;  %v10226_v23 = vadd.f32 %v10101_v37, %v2311_v58  ;;  %v8421_v58 = vld [vmem:[#allocation5 + $0x98] sm:$0xff]  }
 0x341   : > { %7824 = vmatpush3.bf16.xpose.msra.mxu0 %v2962_v40  ;;  %1653 = vrot.lane.b32.xlu1 %v10216_v22, %s12817_s30 }
 0x342   : > { %1976 = vrot.lane.b32.xlu0 %v10126_v11, %s9272_s12  ;;  %8119 = vmatprep.subr.msk.bf16.mxu0 %vm1610_vm3, %v8419_v27  ;;  %v10250_v27 = vpack.c.bf16 %v10106_v5, %v10106_v5 }
 0x343   : > { %v2312_v1 = vld [vmem:[#allocation2 + $0x38] sm:$0xff] }
 0x344   : > { %v2440_v0 = vadd.f32 %v10099_v25, %v2312_v1  ;;  %v10229_v18 = vadd.f32 %v10101_v37, %v2312_v1  ;;  %v10241_v25 = vpack.c.bf16 %v10090_v61, %v10090_v61  ;;  %12955 = vst [vmem:[#allocation71_spill] sm:$0xff] %v10250_v27  ;;  %v10254_v37 = vpack.c.bf16 %v10068_v15, %v10068_v15 }
 0x345   : > { %1978 = vrot.lane.b32.xlu1 %v10139_v49, %s9272_s12  ;;  %v10263_v1 = vpack.c.bf16 %v10078_v2, %v10078_v2 }
 0x346   : > { %1980 = vrot.lane.b32.xlu0 %v10159_v47, %s9272_s12  ;;  %v2468_v40 = vpack.c.bf16 %v2440_v0, %v2439_v17  ;;  %12954 = vst [vmem:[#allocation70_spill] sm:$0xff] %v10241_v25  ;;  %12956 = vst [vmem:[#allocation72_spill] sm:$0xff] %v10254_v37  ;;  %v8422_v17 = vld [vmem:[#allocation5 + $0x90] sm:$0xff]  }
 0x347   : > { %12957 = vst [vmem:[#allocation73_spill] sm:$0xff] %v10263_v1  ;;  %v2950_v0 = vsel %vm1610_vm3, %v8422_v17, 0 }
 0x348   : > { %7794 = vmatmul.mubr.msk.bf16.gmra.mxu0 %vm1610_vm3, %v2468_v40  ;;  %v8423_v40 = vld [vmem:[#allocation5 + $0x88] sm:$0xff]  }
 0x349   : > { %7826 = vmatpush3.bf16.xpose.msra.mxu0 %v2959_v63  ;;  %1982 = vrot.lane.b32.xlu1 %v10176_v48, %s9272_s12  ;;  %v2956_v63 = vsel %vm1610_vm3, %v8420_v13, 0 }
 0x34a   : > { %1647 = vrot.lane.b32.xlu0 %v10241_v25, %s12817_s30  ;;  %8120 = vmatprep.subr.msk.bf16.mxu0 %vm1610_vm3, %v8420_v13  ;;  %v2953_v13 = vsel %vm1610_vm3, %v8421_v58, 0 }
 0x34d   : > { %1649 = vrot.lane.b32.xlu1 %v10250_v27, %s12817_s30 }
 0x34e   : > { %1643 = vrot.lane.b32.xlu0 %v10254_v37, %s12817_s30 }
 0x351   : > { %7828 = vmatpush3.bf16.xpose.msra.mxu0 %v2956_v63  ;;  %1645 = vrot.lane.b32.xlu1 %v10263_v1, %s12817_s30  ;;  %v2947_v63 = vsel %vm1610_vm3, %v8423_v40, 0  ;;  %s12819_s30 = smov 112  }
 0x352   : > { %2013 = vrot.lane.b32.xlu0 %v10171_v33, %s9274_s4  ;;  %8121 = vmatprep.subr.msk.bf16.mxu0 %vm1610_vm3, %v8421_v58  ;;  %v8424_v58 = vld [vmem:[#allocation5 + $0x80] sm:$0xff]  }
 0x355   : > { %2015 = vrot.lane.b32.xlu1 %v10196_v29, %s9274_s4 }
 0x356   : > { %2009 = vrot.lane.b32.xlu0 %v10183_v16, %s9274_s4 }
 0x359   : > { %7830 = vmatpush3.bf16.xpose.msra.mxu0 %v2953_v13  ;;  %2011 = vrot.lane.b32.xlu1 %v10216_v22, %s9274_s4  ;;  %v2944_v13 = vsel %vm1610_vm3, %v8424_v58, 0 }
 0x35a   : > { %2005 = vrot.lane.b32.xlu0 %v10241_v25, %s9274_s4  ;;  %8122 = vmatprep.subr.msk.bf16.mxu0 %vm1610_vm3, %v8422_v17 }
 0x35d   : > { %2007 = vrot.lane.b32.xlu1 %v10250_v27, %s9274_s4 }
 0x35e   : > { %2001 = vrot.lane.b32.xlu0 %v10254_v37, %s9274_s4 }
 0x361   : > { %7832 = vmatpush3.bf16.xpose.msra.mxu0 %v2950_v0  ;;  %2003 = vrot.lane.b32.xlu1 %v10263_v1, %s9274_s4  ;;  %s9282_s4 = smov 360  }
 0x362   : > { %8123 = vmatprep.subr.msk.bf16.mxu0 %vm1610_vm3, %v8423_v40  ;;  %2046 = vrot.lane.b32.xlu0 %v10173_v31, %s9272_s12  ;;  %v10290_v31 = vld [vmem:[#allocation22 + $0x2] ss:$0 sm:$0xff]  ;;  %v10292_v40 = vld [vmem:[#allocation20 + $0x2] ss:$0 sm:$0xff] }
 0x365   : > { %2048 = vrot.lane.b32.xlu1 %v10202_v62, %s9272_s12 }
 0x369   : > { %7834 = vmatpush3.bf16.xpose.msra.mxu0 %v2947_v63 }
 0x36a   : > { %8124 = vmatprep.subr.msk.bf16.mxu0 %vm1610_vm3, %v8424_v58 }
 0x371   : > { %7836 = vmatpush3.bf16.xpose.msra.mxu0 %v2944_v13 }
 0x391   : > { %v1969_v17 = vpop.permute.xlu0 %1968 }
 0x392   : > { %1993 = vst.msk [vmem:[#allocation2 + $0x80] sm:$0xff] %vm1610_vm3, %v1969_v17 }
 0x395   : > { %v1971_v0 = vpop.permute.xlu1 %1970 }
 0x396   : > { %1994 = vst.msk [vmem:[#allocation2 + $0x88] sm:$0xff] %vm1610_vm3, %v1971_v0 }
 0x399   : > { %v1973_v6 = vpop.permute.xlu0 %1972  ;;  %v2321_v62 = vld [vmem:[#allocation2 + $0x80] sm:$0xff] }
 0x39a   : > { %1995 = vst.msk [vmem:[#allocation2 + $0x90] sm:$0xff] %vm1610_vm3, %v1973_v6  ;;  %v2449_v58 = vadd.f32 %v10290_v31, %v2321_v62  ;;  %v10298_v17 = vadd.f32 %v10292_v40, %v2321_v62 }
 0x39d   : > { %v1975_v63 = vpop.permute.xlu1 %1974  ;;  %v2322_v8 = vld [vmem:[#allocation2 + $0x88] sm:$0xff] }
 0x39e   : > { %1996 = vst.msk [vmem:[#allocation2 + $0x98] sm:$0xff] %vm1610_vm3, %v1975_v63  ;;  %v2450_v13 = vadd.f32 %v10290_v31, %v2322_v8  ;;  %v10301_v0 = vadd.f32 %v10292_v40, %v2322_v8 }
 0x3a0   : > { %v2473_v6 = vpack.c.bf16 %v2450_v13, %v2449_v58 }
 0x3a1   : > { %v2323_v59 = vld [vmem:[#allocation2 + $0x90] sm:$0xff] }
 0x3a2   : > { %7837 = vmatprep.mubr.msk.bf16.mxu0 %vm1610_vm3, %v2473_v6  ;;  %v2451_v63 = vadd.f32 %v10290_v31, %v2323_v59  ;;  %v10309_v57 = vadd.f32 %v10292_v40, %v2323_v59 }
 0x3a5   : > { %v2324_v43 = vld [vmem:[#allocation2 + $0x98] sm:$0xff] }
 0x3a6   : > { %v2452_v21 = vadd.f32 %v10290_v31, %v2324_v43  ;;  %v10312_v62 = vadd.f32 %v10292_v40, %v2324_v43 }
 0x3a8   : > { %v2474_v8 = vpack.c.bf16 %v2452_v21, %v2451_v63 }
 0x3aa   : > { %7838 = vmatmul.mubr.msk.bf16.vlgmr.msra.gmra.mxu0 %vm1610_vm3, %v2474_v8 }
 0x3ab   : > { %v1656_v13 = vpop.permute.xlu0 %1655 }
 0x3ac   : > { %1674 = vst.msk [vmem:[#allocation3 + $0x18] sm:$0xf] %vm1667_vm2, %v1656_v13 }
 0x3af   : > { %v1658_v6 = vpop.permute.xlu1 %1657  ;;  %v1652_v3 = vpop.permute.xlu0 %1651 }
 0x3b0   : > { %1675 = vst.msk [vmem:[#allocation3 + $0x1c] sm:$0xf] %vm1667_vm2, %v1658_v6  ;;  %1672 = vst.msk [vmem:[#allocation3 + $0x10] sm:$0xf] %vm1667_vm2, %v1652_v3 }
 0x3b3   : > { %v1654_v59 = vpop.permute.xlu1 %1653 }
 0x3b4   : > { %v1977_v4 = vpop.permute.xlu0 %1976  ;;  %1673 = vst.msk [vmem:[#allocation3 + $0x14] sm:$0xf] %vm1667_vm2, %v1654_v59 }
 0x3b5   : > { %1997 = vst.msk [vmem:[#allocation2 + $0xa0] sm:$0xff] %vm1610_vm3, %v1977_v4 }
 0x3b7   : > { %v1979_v21 = vpop.permute.xlu1 %1978  ;;  %v8425_v63 = vld [vmem:[#allocation3 + $0x18] sm:$0xff]  }
 0x3b8   : > { %v1981_v43 = vpop.permute.xlu0 %1980  ;;  %1998 = vst.msk [vmem:[#allocation2 + $0xa8] sm:$0xff] %vm1610_vm3, %v1979_v21  ;;  %8133 = vmatprep.subr.msk.bf16.mxu0 %vm1610_vm3, %v8425_v63  ;;  %v3343_v8 = vsel %vm1610_vm3, %v8425_v63, 0 }
 0x3b9   : > { %1999 = vst.msk [vmem:[#allocation2 + $0xb0] sm:$0xff] %vm1610_vm3, %v1981_v43  ;;  %7870 = vmatpush3.bf16.xpose.msra.mxu0 %v3343_v8 }
 0x3bb   : > { %v1983_v13 = vpop.permute.xlu1 %1982  ;;  %v8426_v6 = vld [vmem:[#allocation3 + $0x10] sm:$0xff]  }
 0x3bc   : > { %v1648_v3 = vpop.permute.xlu0 %1647  ;;  %2000 = vst.msk [vmem:[#allocation2 + $0xb8] sm:$0xff] %vm1610_vm3, %v1983_v13  ;;  %8134 = vmatprep.subr.msk.bf16.mxu0 %vm1610_vm3, %v8426_v6  ;;  %v10329_v4 = vld [vmem:[#allocation2 + $0xa0] sm:$0xff]  ;;  %v3340_v8 = vsel %vm1610_vm3, %v8426_v6, 0 }
 0x3bd   : > { %1670 = vst.msk [vmem:[#allocation3 + $0x8] sm:$0xf] %vm1667_vm2, %v1648_v3  ;;  %v2453_v43 = vadd.f32 %v10290_v31, %v10329_v4 }
 0x3bf   : > { %v1650_v59 = vpop.permute.xlu1 %1649  ;;  %v10331_v58 = vld [vmem:[#allocation2 + $0xa8] sm:$0xff] }
 0x3c0   : > { %v1644_v21 = vpop.permute.xlu0 %1643  ;;  %1671 = vst.msk [vmem:[#allocation3 + $0xc] sm:$0xf] %vm1667_vm2, %v1650_v59  ;;  %v2454_v63 = vadd.f32 %v10290_v31, %v10331_v58  ;;  %v10340_v13 = vld [vmem:[#allocation2 + $0xb0] sm:$0xff] }
 0x3c1   : > { %1668 = vst.msk [vmem:[#allocation3] sm:$0xf] %vm1667_vm2, %v1644_v21  ;;  %7872 = vmatpush3.bf16.xpose.msra.mxu0 %v3340_v8  ;;  %v2455_v59 = vadd.f32 %v10290_v31, %v10340_v13 }
 0x3c2   : > { %v2475_v3 = vpack.c.bf16 %v2454_v63, %v2453_v43 }
 0x3c3   : > { %v1646_v12 = vpop.permute.xlu1 %1645  ;;  %v10342_v1 = vld [vmem:[#allocation2 + $0xb8] sm:$0xff] }
 0x3c4   : > { %v2014_v37 = vpop.permute.xlu0 %2013  ;;  %1669 = vst.msk [vmem:[#allocation3 + $0x4] sm:$0xf] %vm1667_vm2, %v1646_v12  ;;  %7841 = vmatprep.mubr.msk.bf16.mxu0 %vm1610_vm3, %v2475_v3  ;;  %v2456_v6 = vadd.f32 %v10290_v31, %v10342_v1  ;;  %v12958_v12 = vpack.c.bf16 %v10121_v41, %v10118_v39 }
 0x3c5   : > { %2032 = vst.msk [vmem:[#allocation3 + $0x58] sm:$0xf] %vm1667_vm2, %v2014_v37 }
 0x3c6   : > { %v2476_v21 = vpack.c.bf16 %v2456_v6, %v2455_v59 }
 0x3c7   : > { %v2016_v25 = vpop.permute.xlu1 %2015  ;;  %v8427_v43 = vld [vmem:[#allocation3 + $0x8] sm:$0xff]  }
 0x3c8   : > { %v2010_v8 = vpop.permute.xlu0 %2009  ;;  %2033 = vst.msk [vmem:[#allocation3 + $0x5c] sm:$0xf] %vm1667_vm2, %v2016_v25  ;;  %7842 = vmatmul.mubr.msk.bf16.gmra.mxu0 %vm1610_vm3, %v2476_v21  ;;  %8135 = vmatprep.subr.msk.bf16.mxu0 %vm1610_vm3, %v8427_v43  ;;  %v3337_v37 = vsel %vm1610_vm3, %v8427_v43, 0  ;;  %v12959_v43 = vpack.c.bf16 %v10152_v55, %v10149_v51 }
 0x3c9   : > { %2030 = vst.msk [vmem:[#allocation3 + $0x50] sm:$0xf] %vm1667_vm2, %v2010_v8  ;;  %7877 = vmatprep.mubr.msk.bf16.mxu0 %vm1610_vm3, %v12958_v12  ;;  %7874 = vmatpush3.bf16.xpose.msra.mxu0 %v3337_v37 }
 0x3cb   : > { %v2012_v31 = vpop.permute.xlu1 %2011  ;;  %v8428_v3 = vld [vmem:[#allocation3] sm:$0xff]  }
 0x3cc   : > { %v2006_v63 = vpop.permute.xlu0 %2005  ;;  %2031 = vst.msk [vmem:[#allocation3 + $0x54] sm:$0xf] %vm1667_vm2, %v2012_v31  ;;  %8136 = vmatprep.subr.msk.bf16.mxu0 %vm1610_vm3, %v8428_v3  ;;  %v3334_v39 = vsel %vm1610_vm3, %v8428_v3, 0  ;;  %v12960_v31 = vpack.c.bf16 %v10200_v7, %v10187_v35  ;;  %v12962_v3 = vpack.c.bf16 %v10301_v0, %v10298_v17  ;;  %v2381_v17 = vadd.f32 %v10292_v40, %v10329_v4  ;;  %v8435_v4 = vld [vmem:[#allocation4 + $0x8] sm:$0xff]  }
 0x3cd   : > { %2028 = vst.msk [vmem:[#allocation3 + $0x48] sm:$0xf] %vm1667_vm2, %v2006_v63  ;;  %v12961_v63 = vpack.c.bf16 %v10229_v18, %v10226_v23  ;;  %v8433_v23 = vld [vmem:[#allocation4 + $0x18] sm:$0xff]  }
 0x3cf   : > { %v2008_v25 = vpop.permute.xlu1 %2007  ;;  %v8429_v41 = vld [vmem:[#allocation3 + $0x58] sm:$0xff]  }
 0x3d0   : > { %v2002_v59 = vpop.permute.xlu0 %2001  ;;  %2029 = vst.msk [vmem:[#allocation3 + $0x4c] sm:$0xf] %vm1667_vm2, %v2008_v25  ;;  %v3561_v12 = vsel %vm1610_vm3, %v8429_v41, 0  ;;  %v2382_v25 = vadd.f32 %v10292_v40, %v10331_v58  ;;  %v2384_v58 = vadd.f32 %v10292_v40, %v10342_v1  ;;  %v8436_v1 = vld [vmem:[#allocation4] sm:$0xff]  }
 0x3d1   : > { %2026 = vst.msk [vmem:[#allocation3 + $0x40] sm:$0xf] %vm1667_vm2, %v2002_v59  ;;  %7876 = vmatpush3.bf16.xpose.msra.mxu0 %v3334_v39 }
 0x3d2   : > { %8141 = vmatprep.subr.msk.bf16.mxu0 %vm1610_vm3, %v8429_v41  ;;  %v2403_v59 = vpack.c.bf16 %v2382_v25, %v2381_v17  ;;  %v12963_v41 = vpack.c.bf16 %v10312_v62, %v10309_v57  ;;  %v2383_v57 = vadd.f32 %v10292_v40, %v10340_v13 }
 0x3d3   : > { %v2004_v6 = vpop.permute.xlu1 %2003  ;;  %v8430_v37 = vld [vmem:[#allocation3 + $0x50] sm:$0xff]  }
 0x3d4   : > { %2027 = vst.msk [vmem:[#allocation3 + $0x44] sm:$0xf] %vm1667_vm2, %v2004_v6  ;;  %v2047_v21 = vpop.permute.xlu0 %2046  ;;  %v3558_v51 = vsel %vm1610_vm3, %v8430_v37, 0  ;;  %v8434_v6 = vld [vmem:[#allocation4 + $0x10] sm:$0xff]  }
 0x3d5   : > { %2065 = vst.msk [vmem:[#allocation4 + $0x58] sm:$0xf] %vm1667_vm2, %v2047_v21 }
 0x3d7   : > { %v2049_v8 = vpop.permute.xlu1 %2048  ;;  %v8431_v55 = vld [vmem:[#allocation3 + $0x48] sm:$0xff]  }
 0x3d8   : > { %2066 = vst.msk [vmem:[#allocation4 + $0x5c] sm:$0xf] %vm1667_vm2, %v2049_v8  ;;  %7878 = vmatmul.mubr.msk.bf16.vlgmr.msra.gmra.mxu0 %vm1610_vm3, %v12959_v43  ;;  %v3555_v7 = vsel %vm1610_vm3, %v8431_v55, 0  ;;  %v2404_v8 = vpack.c.bf16 %v2384_v58, %v2383_v57 }
 0x3d9   : > { %7881 = vmatprep.mubr.msk.bf16.mxu0 %vm1610_vm3, %v12960_v31  ;;  %7902 = vmatpush3.bf16.xpose.msra.mxu0 %v3561_v12 }
 0x3da   : > { %8142 = vmatprep.subr.msk.bf16.mxu0 %vm1610_vm3, %v8430_v37 }
 0x3db   : > { %v8432_v35 = vld [vmem:[#allocation3 + $0x40] sm:$0xff]  }
 0x3dc   : > { %v3552_v18 = vsel %vm1610_vm3, %v8432_v35, 0 }
 0x3df   : > { %v10411_v43 = vld [vmem:[#allocation4 + $0x58] sm:$0xff]  }
 0x3e0   : > { %7882 = vmatmul.mubr.msk.bf16.gmra.mxu0 %vm1610_vm3, %v12961_v63 }
 0x3e1   : > { %7904 = vmatpush3.bf16.xpose.msra.mxu0 %v3558_v51  ;;  %7909 = vmatprep.mubr.msk.bf16.mxu0 %vm1610_vm3, %v12962_v3 }
 0x3e2   : > { %8143 = vmatprep.subr.msk.bf16.mxu0 %vm1610_vm3, %v8431_v55 }
 0x3e9   : > { %7906 = vmatpush3.bf16.xpose.msra.mxu0 %v3555_v7 }
 0x3ea   : > { %8144 = vmatprep.subr.msk.bf16.mxu0 %vm1610_vm3, %v8432_v35 }
 0x3f1   : > { %7908 = vmatpush3.bf16.xpose.msra.mxu0 %v3552_v18 }
 0x3f2   : > { %7933 = vmatprep.subr.bf16.mxu0 %v8433_v23 }
 0x3f8   : > { %v7791_v0 = vpop.f32.mrf.mxu0  ;;  %7910 = vmatmul.mubr.msk.bf16.vlgmr.msra.gmra.mxu0 %vm1610_vm3, %v12963_v41 }
 0x3f9   : > { %3183 = vrot.lane.b32.xlu0 %v7791_v0, %s9275_s9  ;;  %7913 = vmatprep.mubr.msk.bf16.mxu0 %vm1610_vm3, %v2403_v59 }
 0x3fa   : > { %v2719_v39 = vpop.f32.mrf.mxu0  ;;  %7934 = vmatpush3.bf16.msra.mxu0 %v8433_v23 }
 0x3fb   : > { %7935 = vmatprep.subr.bf16.mxu0 %v8434_v6 }
 0x3fc   : > { %v7792_v21 = vpop.f32.mrf.mxu0 }
 0x3fd   : > { %3187 = vrot.lane.b32.xlu1 %v7792_v21, %s9276_s11  ;;  %3175 = vrot.lane.b32.xlu0 %v2719_v39, %s9277_s29 }
 0x3fe   : > { %7936 = vmatpush3.bf16.msra.mxu0 %v8434_v6  ;;  %v2722_v62 = vpop.f32.mrf.mxu0 }
 0x3ff   : > { %7937 = vmatprep.subr.bf16.mxu0 %v8435_v4 }
 0x400   : > { %7914 = vmatmul.mubr.msk.bf16.gmra.mxu0 %vm1610_vm3, %v2404_v8 }
 0x401   : > { %3179 = vrot.lane.b32.xlu1 %v2722_v62, %s9278_s8 }
 0x402   : > { %7938 = vmatpush3.bf16.msra.mxu0 %v8435_v4 }
 0x403   : > { %7939 = vmatprep.subr.bf16.mxu0 %v8436_v1 }
 0x406   : > { %7940 = vmatpush3.bf16.msra.mxu0 %v8436_v1 }
 0x407   : > { %7965 = vmatprep.subr.bf16.mxu0 %v10411_v43 }
 0x408   : > { %v7795_v12 = vpop.f32.mrf.mxu0 }
 0x409   : > { %3199 = vrot.lane.b32.xlu0 %v7795_v12, %s9279_s2 }
 0x40a   : > { %v2735_v40 = vpop.f32.mrf.mxu0 }
 0x40c   : > { %v7796_v13 = vpop.f32.mrf.mxu0 }
 0x40d   : > { %3191 = vrot.lane.b32.xlu0 %v2735_v40, %s9280_s13  ;;  %3203 = vrot.lane.b32.xlu1 %v7796_v13, %s12821_s0 }
 0x40e   : > { %v2738_v37 = vpop.f32.mrf.mxu0 }
 0x411   : > { %3195 = vrot.lane.b32.xlu1 %v2738_v37, %s9282_s4 }
 0x46a   : > { %v7839_v31 = vpop.f32.mrf.mxu0 }
 0x46b   : > { %3247 = vrot.lane.b32.xlu0 %v7839_v31, %s9275_s9  ;;  %v3184_v17 = vpop.permute.xlu0 %3183 }
 0x46c   : > { %v3001_v63 = vpop.f32.mrf.mxu0 }
 0x46e   : > { %v7840_v51 = vpop.f32.mrf.mxu0 }
 0x46f   : > { %3239 = vrot.lane.b32.xlu0 %v3001_v63, %s9277_s29  ;;  %3251 = vrot.lane.b32.xlu1 %v7840_v51, %s9276_s11  ;;  %v3188_v39 = vpop.permute.xlu1 %3187  ;;  %v3176_v21 = vpop.permute.xlu0 %3175 }
 0x470   : > { %v3004_v55 = vpop.f32.mrf.mxu0 }
 0x473   : > { %3243 = vrot.lane.b32.xlu1 %v3004_v55, %s9278_s8  ;;  %v3180_v57 = vpop.permute.xlu1 %3179 }
 0x47b   : > { %v3200_v40 = vpop.permute.xlu0 %3199 }
 0x47f   : > { %v3204_v37 = vpop.permute.xlu1 %3203 }
 0x488   : > { %v7843_v3 = vpop.f32.mrf.mxu0 }
 0x489   : > { %3263 = vrot.lane.b32.xlu0 %v7843_v3, %s9279_s2 }
 0x48a   : > { %v3017_v7 = vpop.f32.mrf.mxu0 }
 0x48c   : > { %v7844_v35 = vpop.f32.mrf.mxu0 }
 0x48d   : > { %3255 = vrot.lane.b32.xlu0 %v3017_v7, %s9280_s13  ;;  %3267 = vrot.lane.b32.xlu1 %v7844_v35, %s12821_s0  ;;  %s9286_s0 = smov 16  }
 0x48e   : > { %v3020_v18 = vpop.f32.mrf.mxu0 }
 0x491   : > { %3259 = vrot.lane.b32.xlu1 %v3020_v18, %s9282_s4 }
 0x498   : > { %v7879_v23 = vpop.f32.mrf.mxu0 }
 0x499   : > { %v3388_v41 = vadd.f32 %v7879_v23, %v3184_v17  ;;  %v3192_v23 = vpop.permute.xlu0 %3191  ;;  %v3196_v17 = vpop.permute.xlu1 %3195 }
 0x49a   : > { %v3379_v25 = vpop.f32.mrf.mxu0 }
 0x49b   : > { %v3739_v58 = vmul.f32 0.25, %v3388_v41  ;;  %v3380_v4 = vadd.f32 %v3379_v25, %v3176_v21 }
 0x49c   : > { %v7880_v0 = vpop.f32.mrf.mxu0 }
 0x49d   : > { %v3737_v8 = vmul.f32 0.25, %v3380_v4  ;;  %v3391_v1 = vadd.f32 %v7880_v0, %v3188_v39  ;;  %v10429_v12 = vsel %vm3774_vm4, -1e+30, %v3739_v58 }
 0x49e   : > { %v3382_v59 = vpop.f32.mrf.mxu0  ;;  %v3813_v63 = vsel %vm1118_vm0, %v10429_v12, -inf }
 0x49f   : > { %v3383_v13 = vadd.f32 %v3382_v59, %v3180_v57  ;;  %v3740_v51 = vmul.f32 0.25, %v3391_v1  ;;  %v10435_v3 = vsel %vm3774_vm4, -1e+30, %v3737_v8 }
 0x4a0   : > { %v7883_v6 = vpop.f32.mrf.mxu0  ;;  %v3807_v25 = vsel %vm1118_vm0, %v10435_v3, -inf }
 0x4a1   : > { %v3404_v55 = vadd.f32 %v7883_v6, %v3200_v40  ;;  %v3738_v7 = vmul.f32 0.25, %v3383_v13  ;;  %v10441_v39 = vsel %vm3774_vm4, -1e+30, %v3740_v51 }
 0x4a2   : > { %v3395_v62 = vpop.f32.mrf.mxu0  ;;  %v3816_v58 = vsel %vm1118_vm0, %v10441_v39, -inf }
 0x4a3   : > { %v3743_v0 = vmul.f32 0.25, %v3404_v55  ;;  %v3396_v59 = vadd.f32 %v3395_v62, %v3192_v23  ;;  %v10445_v21 = vsel %vm3774_vm4, -1e+30, %v3738_v7 }
 0x4a4   : > { %v7884_v31 = vpop.f32.mrf.mxu0  ;;  %v3810_v57 = vsel %vm1118_vm0, %v10445_v21, -inf }
 0x4a5   : > { %v3407_v35 = vadd.f32 %v7884_v31, %v3204_v37  ;;  %v3741_v4 = vmul.f32 0.25, %v3396_v59  ;;  %v10453_v62 = vsel %vm3774_vm4, -1e+30, %v3743_v0 }
 0x4a6   : > { %v3398_v18 = vpop.f32.mrf.mxu0  ;;  %v3825_v40 = vsel %vm1118_vm0, %v10453_v62, -inf }
 0x4a7   : > { %v3744_v41 = vmul.f32 0.25, %v3407_v35  ;;  %v3399_v6 = vadd.f32 %v3398_v18, %v3196_v17  ;;  %v10465_v37 = vsel %vm3774_vm4, -1e+30, %v3741_v4 }
 0x4a9   : > { %v3742_v8 = vmul.f32 0.25, %v3399_v6  ;;  %v10457_v1 = vsel %vm3774_vm4, -1e+30, %v3744_v41 }
 0x4aa   : > { %v3828_v13 = vsel %vm1118_vm0, %v10457_v1, -inf }
 0x4ab   : > { %v10469_v31 = vsel %vm3774_vm4, -1e+30, %v3742_v8 }
 0x4ac   : > { %3814 = vmax.xlane.f32.xlu0 %v3813_v63  ;;  %v3819_v63 = vsel %vm1118_vm0, %v10465_v37, -inf  ;;  %v3822_v51 = vsel %vm1118_vm0, %v10469_v31, -inf }
 0x4b0   : > { %3808 = vmax.xlane.f32.xlu0 %v3807_v25 }
 0x4b4   : > { %3817 = vmax.xlane.f32.xlu0 %v3816_v58 }
 0x4b5   : > { %3811 = vmax.xlane.f32.xlu1 %v3810_v57 }
 0x4b8   : > { %3826 = vmax.xlane.f32.xlu0 %v3825_v40  ;;  %v7911_v55 = vpop.f32.mrf.mxu0 }
 0x4b9   : > { %3829 = vmax.xlane.f32.xlu1 %v3828_v13 }
 0x4ba   : > { %v3597_v7 = vpop.f32.mrf.mxu0 }
 0x4bc   : > { %3820 = vmax.xlane.f32.xlu0 %v3819_v63  ;;  %v7912_v23 = vpop.f32.mrf.mxu0 }
 0x4bd   : > { %3823 = vmax.xlane.f32.xlu1 %v3822_v51 }
 0x4be   : > { %v3600_v8 = vpop.f32.mrf.mxu0 }
 0x4dd   : > { %v3248_v35 = vpop.permute.xlu0 %3247 }
 0x4de   : > { %v3606_v18 = vadd.f32 %v7911_v55, %v3248_v35 }
 0x4e0   : > { %v3755_v25 = vmul.f32 0.25, %v3606_v18 }
 0x4e1   : > { %v3252_v17 = vpop.permute.xlu1 %3251  ;;  %v3240_v0 = vpop.permute.xlu0 %3239 }
 0x4e2   : > { %v3609_v59 = vadd.f32 %v7912_v23, %v3252_v17  ;;  %v3598_v41 = vadd.f32 %v3597_v7, %v3240_v0  ;;  %v10477_v6 = vsel %vm3774_vm4, -1e+30, %v3755_v25  ;;  %v7915_v25 = vpop.f32.mrf.mxu0 }
 0x4e3   : > { %v3861_v58 = vsel %vm1118_vm0, %v10477_v6, -inf }
 0x4e4   : > { %v3756_v4 = vmul.f32 0.25, %v3609_v59  ;;  %v3753_v57 = vmul.f32 0.25, %v3598_v41  ;;  %3862 = vmax.xlane.f32.xlu0 %v3861_v58  ;;  %v3613_v17 = vpop.f32.mrf.mxu0 }
 0x4e5   : > { %v3244_v40 = vpop.permute.xlu1 %3243 }
 0x4e6   : > { %v3601_v13 = vadd.f32 %v3600_v8, %v3244_v40  ;;  %v10483_v63 = vsel %vm3774_vm4, -1e+30, %v3756_v4  ;;  %v10487_v51 = vsel %vm3774_vm4, -1e+30, %v3753_v57  ;;  %v7916_v41 = vpop.f32.mrf.mxu0 }
 0x4e7   : > { %v3864_v55 = vsel %vm1118_vm0, %v10483_v63, -inf  ;;  %v3855_v7 = vsel %vm1118_vm0, %v10487_v51, -inf }
 0x4e8   : > { %v3754_v35 = vmul.f32 0.25, %v3601_v13  ;;  %3865 = vmax.xlane.f32.xlu1 %v3864_v55  ;;  %3856 = vmax.xlane.f32.xlu0 %v3855_v7 }
 0x4ea   : > { %v10495_v18 = vsel %vm3774_vm4, -1e+30, %v3754_v35 }
 0x4eb   : > { %v3858_v23 = vsel %vm1118_vm0, %v10495_v18, -inf }
 0x4ec   : > { %3859 = vmax.xlane.f32.xlu1 %v3858_v23  ;;  %v3616_v23 = vpop.f32.mrf.mxu0 }
 0x4fb   : > { %v3264_v0 = vpop.permute.xlu0 %3263 }
 0x4fc   : > { %v3622_v59 = vadd.f32 %v7915_v25, %v3264_v0 }
 0x4fe   : > { %v3759_v58 = vmul.f32 0.25, %v3622_v59 }
 0x4ff   : > { %v3268_v4 = vpop.permute.xlu1 %3267  ;;  %v3256_v57 = vpop.permute.xlu0 %3255 }
 0x500   : > { %v3625_v8 = vadd.f32 %v7916_v41, %v3268_v4  ;;  %v3614_v40 = vadd.f32 %v3613_v17, %v3256_v57  ;;  %v10501_v13 = vsel %vm3774_vm4, -1e+30, %v3759_v58 }
 0x501   : > { %v3873_v55 = vsel %vm1118_vm0, %v10501_v13, -inf }
 0x502   : > { %v3760_v7 = vmul.f32 0.25, %v3625_v8  ;;  %v3757_v35 = vmul.f32 0.25, %v3614_v40  ;;  %3874 = vmax.xlane.f32.xlu0 %v3873_v55 }
 0x503   : > { %v3260_v27 = vpop.permute.xlu1 %3259 }
 0x504   : > { %v3617_v16 = vadd.f32 %v3616_v23, %v3260_v27  ;;  %v10507_v25 = vsel %vm3774_vm4, -1e+30, %v3760_v7  ;;  %v10511_v17 = vsel %vm3774_vm4, -1e+30, %v3757_v35 }
 0x505   : > { %v3876_v0 = vsel %vm1118_vm0, %v10507_v25, -inf  ;;  %v3867_v59 = vsel %vm1118_vm0, %v10511_v17, -inf }
 0x506   : > { %v3758_v41 = vmul.f32 0.25, %v3617_v16  ;;  %3877 = vmax.xlane.f32.xlu1 %v3876_v0  ;;  %3868 = vmax.xlane.f32.xlu0 %v3867_v59 }
 0x508   : > { %v10519_v27 = vsel %vm3774_vm4, -1e+30, %v3758_v41 }
 0x509   : > { %v3870_v58 = vsel %vm1118_vm0, %v10519_v27, -inf }
 0x50a   : > { %3871 = vmax.xlane.f32.xlu1 %v3870_v58 }
 0x51b   : > { %2044 = vrot.lane.b32.xlu1 %v10156_v9, %s9272_s12 }
 0x51c   : > { %2042 = vrot.lane.b32.xlu0 %v10136_v20, %s9272_s12 }
 0x535   : > { %v3815_v4 = vpop.xlane.xlu0 %3814 }
 0x536   : > { %v3905_v57 = vsub.f32 %v10429_v12, %v3815_v4 }
 0x538   : > { %v3939_v16 = vmul.f32 1.442695, %v3905_v57 }
 0x539   : > { %v3809_v8 = vpop.xlane.xlu0 %3808 }
 0x53a   : > { %8509 = vpow2.f32 %v3939_v16  ;;  %v3903_v40 = vsub.f32 %v10435_v3, %v3809_v8 }
 0x53c   : > { %v3935_v55 = vmul.f32 1.442695, %v3903_v40 }
 0x53d   : > { %v3818_v7 = vpop.xlane.xlu0 %3817 }
 0x53e   : > { %8511 = vpow2.f32 %v3935_v55  ;;  %v3906_v35 = vsub.f32 %v10441_v39, %v3818_v7  ;;  %v3812_v23 = vpop.xlane.xlu1 %3811 }
 0x53f   : > { %v3904_v0 = vsub.f32 %v10445_v21, %v3812_v23 }
 0x540   : > { %v3941_v59 = vmul.f32 1.442695, %v3906_v35 }
 0x541   : > { %v3937_v41 = vmul.f32 1.442695, %v3904_v0  ;;  %v3827_v58 = vpop.xlane.xlu0 %3826 }
 0x542   : > { %8513 = vpow2.f32 %v3941_v59  ;;  %v3909_v20 = vsub.f32 %v10453_v62, %v3827_v58  ;;  %v3830_v12 = vpop.xlane.xlu1 %3829 }
 0x543   : > { %v3910_v4 = vsub.f32 %v10457_v1, %v3830_v12  ;;  %8515 = vpow2.f32 %v3937_v41 }
 0x544   : > { %v3947_v57 = vmul.f32 1.442695, %v3909_v20 }
 0x545   : > { %v3949_v3 = vmul.f32 1.442695, %v3910_v4  ;;  %v3821_v16 = vpop.xlane.xlu0 %3820 }
 0x546   : > { %8517 = vpow2.f32 %v3947_v57  ;;  %v3907_v8 = vsub.f32 %v10465_v37, %v3821_v16  ;;  %v3824_v39 = vpop.xlane.xlu1 %3823 }
 0x547   : > { %v10534_v40 = vpop.eup %8509  ;;  %v3908_v21 = vsub.f32 %v10469_v31, %v3824_v39  ;;  %8519 = vpow2.f32 %v3949_v3 }
 0x548   : > { %v3943_v55 = vmul.f32 1.442695, %v3907_v8  ;;  %v4005_v62 = vsel %vm1118_vm0, %v10534_v40, 0.0 }
 0x549   : > { %v3945_v7 = vmul.f32 1.442695, %v3908_v21  ;;  %4006 = vadd.xlane.f32.xlu0 %v4005_v62 }
 0x54a   : > { %8521 = vpow2.f32 %v3943_v55 }
 0x54b   : > { %v10539_v1 = vpop.eup %8511  ;;  %8523 = vpow2.f32 %v3945_v7 }
 0x54c   : > { %v3999_v20 = vsel %vm1118_vm0, %v10539_v1, 0.0 }
 0x54d   : > { %4000 = vadd.xlane.f32.xlu0 %v3999_v20 }
 0x54f   : > { %v10543_v37 = vpop.eup %8513 }
 0x550   : > { %v4008_v31 = vsel %vm1118_vm0, %v10543_v37, 0.0  ;;  %v10547_v35 = vpop.eup %8515 }
 0x551   : > { %4009 = vadd.xlane.f32.xlu1 %v4008_v31  ;;  %v4002_v0 = vsel %vm1118_vm0, %v10547_v35, 0.0 }
 0x553   : > { %v10549_v23 = vpop.eup %8517 }
 0x554   : > { %v4017_v59 = vsel %vm1118_vm0, %v10549_v23, 0.0  ;;  %v10555_v41 = vpop.eup %8519 }
 0x555   : > { %4003 = vadd.xlane.f32.xlu1 %v4002_v0  ;;  %4018 = vadd.xlane.f32.xlu0 %v4017_v59  ;;  %v4020_v12 = vsel %vm1118_vm0, %v10555_v41, 0.0 }
 0x557   : > { %v10557_v58 = vpop.eup %8521 }
 0x558   : > { %v4011_v4 = vsel %vm1118_vm0, %v10557_v58, 0.0  ;;  %v10563_v57 = vpop.eup %8523 }
 0x559   : > { %4021 = vadd.xlane.f32.xlu1 %v4020_v12  ;;  %4012 = vadd.xlane.f32.xlu0 %v4011_v4  ;;  %v4014_v3 = vsel %vm1118_vm0, %v10563_v57, 0.0 }
 0x55d   : > { %4015 = vadd.xlane.f32.xlu1 %v4014_v3 }
 0x56d   : > { %v3863_v16 = vpop.xlane.xlu0 %3862 }
 0x56e   : > { %v3921_v8 = vsub.f32 %v10477_v6, %v3863_v16 }
 0x570   : > { %v3971_v39 = vmul.f32 1.442695, %v3921_v8 }
 0x571   : > { %v3866_v21 = vpop.xlane.xlu1 %3865  ;;  %v3857_v55 = vpop.xlane.xlu0 %3856 }
 0x572   : > { %8525 = vpow2.f32 %v3971_v39  ;;  %v3922_v62 = vsub.f32 %v10483_v63, %v3866_v21  ;;  %v3919_v7 = vsub.f32 %v10487_v51, %v3857_v55 }
 0x574   : > { %v3973_v20 = vmul.f32 1.442695, %v3922_v62  ;;  %v3967_v31 = vmul.f32 1.442695, %v3919_v7 }
 0x575   : > { %v3860_v0 = vpop.xlane.xlu1 %3859 }
 0x576   : > { %8527 = vpow2.f32 %v3973_v20  ;;  %v3920_v59 = vsub.f32 %v10495_v18, %v3860_v0 }
 0x577   : > { %8529 = vpow2.f32 %v3967_v31 }
 0x578   : > { %v3969_v12 = vmul.f32 1.442695, %v3920_v59 }
 0x57a   : > { %8531 = vpow2.f32 %v3969_v12 }
 0x57f   : > { %v10571_v4 = vpop.eup %8525 }
 0x580   : > { %v4053_v6 = vsel %vm1118_vm0, %v10571_v4, 0.0 }
 0x581   : > { %4054 = vadd.xlane.f32.xlu0 %v4053_v6 }
 0x583   : > { %v10575_v3 = vpop.eup %8527 }
 0x584   : > { %v10577_v63 = vpop.eup %8529  ;;  %v4056_v51 = vsel %vm1118_vm0, %v10575_v3, 0.0 }
 0x585   : > { %4057 = vadd.xlane.f32.xlu1 %v4056_v51  ;;  %v4047_v18 = vsel %vm1118_vm0, %v10577_v63, 0.0 }
 0x586   : > { %4048 = vadd.xlane.f32.xlu0 %v4047_v18 }
 0x587   : > { %v10583_v16 = vpop.eup %8531 }
 0x588   : > { %v4050_v8 = vsel %vm1118_vm0, %v10583_v16, 0.0 }
 0x589   : > { %4051 = vadd.xlane.f32.xlu1 %v4050_v8 }
 0x58b   : > { %v3875_v39 = vpop.xlane.xlu0 %3874 }
 0x58c   : > { %v3925_v21 = vsub.f32 %v10501_v13, %v3875_v39 }
 0x58e   : > { %v3979_v55 = vmul.f32 1.442695, %v3925_v21 }
 0x58f   : > { %v3878_v62 = vpop.xlane.xlu1 %3877  ;;  %v3869_v7 = vpop.xlane.xlu0 %3868 }
 0x590   : > { %8533 = vpow2.f32 %v3979_v55  ;;  %v3926_v20 = vsub.f32 %v10507_v25, %v3878_v62  ;;  %v3923_v31 = vsub.f32 %v10511_v17, %v3869_v7 }
 0x592   : > { %v3981_v0 = vmul.f32 1.442695, %v3926_v20  ;;  %v3975_v59 = vmul.f32 1.442695, %v3923_v31 }
 0x593   : > { %v3872_v12 = vpop.xlane.xlu1 %3871  ;;  %v2043_v6 = vpop.permute.xlu0 %2042 }
 0x594   : > { %8535 = vpow2.f32 %v3981_v0  ;;  %v3924_v51 = vsub.f32 %v10519_v27, %v3872_v12  ;;  %2063 = vst.msk [vmem:[#allocation4 + $0x50] sm:$0xf] %vm1667_vm2, %v2043_v6 }
 0x595   : > { %8537 = vpow2.f32 %v3975_v59 }
 0x596   : > { %v3977_v18 = vmul.f32 1.442695, %v3924_v51 }
 0x597   : > { %v2045_v13 = vpop.permute.xlu1 %2044 }
 0x598   : > { %8539 = vpow2.f32 %v3977_v18  ;;  %2064 = vst.msk [vmem:[#allocation4 + $0x54] sm:$0xf] %vm1667_vm2, %v2045_v13 }
 0x59d   : > { %v10593_v8 = vpop.eup %8533 }
 0x59e   : > { %v4065_v25 = vsel %vm1118_vm0, %v10593_v8, 0.0 }
 0x59f   : > { %4066 = vadd.xlane.f32.xlu1 %v4065_v25 }
 0x5a1   : > { %v10597_v17 = vpop.eup %8535 }
 0x5a2   : > { %v10599_v39 = vpop.eup %8537  ;;  %v4068_v27 = vsel %vm1118_vm0, %v10597_v17, 0.0 }
 0x5a3   : > { %4069 = vadd.xlane.f32.xlu0 %v4068_v27  ;;  %v4059_v21 = vsel %vm1118_vm0, %v10599_v39, 0.0 }
 0x5a4   : > { %4060 = vadd.xlane.f32.xlu1 %v4059_v21 }
 0x5a5   : > { %v10605_v55 = vpop.eup %8539 }
 0x5a6   : > { %v4062_v62 = vsel %vm1118_vm0, %v10605_v55, 0.0 }
 0x5a7   : > { %4063 = vadd.xlane.f32.xlu0 %v4062_v62 }
 0x5b5   : > { %2040 = vrot.lane.b32.xlu1 %v10123_v10, %s9272_s12 }
 0x5b9   : > { %2034 = vrot.lane.b32.xlu1 %v10075_v19, %s9272_s12 }
 0x5bd   : > { %2036 = vrot.lane.b32.xlu1 %v10087_v53, %s9272_s12  ;;  %2038 = vrot.lane.b32.xlu0 %v10103_v45, %s9272_s12  ;;  %s9284_s12 = smov 80  }
 0x5c1   : > { %1933 = vrot.lane.b32.xlu1 %v9923_v56, %s12819_s30  ;;  %1931 = vrot.lane.b32.xlu0 %v9913_v52, %s12819_s30 }
 0x5c5   : > { %1929 = vrot.lane.b32.xlu1 %v9927_v60, %s12819_s30  ;;  %1927 = vrot.lane.b32.xlu0 %v9917_v54, %s12819_s30 }
 0x5c9   : > { %1925 = vrot.lane.b32.xlu1 %v9905_v46, %s12819_s30  ;;  %1923 = vrot.lane.b32.xlu0 %v9897_v42, %s12819_s30 }
 0x5cd   : > { %1921 = vrot.lane.b32.xlu1 %v9909_v50, %s12819_s30  ;;  %1919 = vrot.lane.b32.xlu0 %v9901_v44, %s12819_s30 }
 0x5d1   : > { %1917 = vrot.lane.b32.xlu1 %v9889_v36, %s12819_s30  ;;  %1915 = vrot.lane.b32.xlu0 %v9881_v32, %s12819_s30 }
 0x5d2   : > { %v4007_v7 = vpop.xlane.xlu0 %4006 }
 0x5d5   : > { %1913 = vrot.lane.b32.xlu1 %v9893_v38, %s12819_s30  ;;  %1911 = vrot.lane.b32.xlu0 %v9885_v34, %s12819_s30 }
 0x5d6   : > { %v4001_v20 = vpop.xlane.xlu0 %4000 }
 0x5d7   : > { %8541 = vrcp.f32 %v4001_v20 }
 0x5d9   : > { %1909 = vrot.lane.b32.xlu1 %v9873_v28, %s12819_s30  ;;  %1907 = vrot.lane.b32.xlu0 %v9865_v24, %s12819_s30 }
 0x5da   : > { %v4010_v31 = vpop.xlane.xlu1 %4009 }
 0x5db   : > { %8543 = vrcp.f32 %v4010_v31 }
 0x5dc   : > { %8545 = vrcp.f32 %v4007_v7 }
 0x5dd   : > { %1905 = vrot.lane.b32.xlu1 %v9877_v30, %s12819_s30  ;;  %1903 = vrot.lane.b32.xlu0 %v9869_v26, %s12819_s30 }
 0x5de   : > { %v4004_v0 = vpop.xlane.xlu1 %4003  ;;  %v4019_v59 = vpop.xlane.xlu0 %4018 }
 0x5df   : > { %8547 = vrcp.f32 %v4004_v0 }
 0x5e1   : > { %1806 = vrot.lane.b32.xlu1 %v10078_v2, %s12819_s30  ;;  %1804 = vrot.lane.b32.xlu0 %v10068_v15, %s12819_s30 }
 0x5e2   : > { %v4022_v12 = vpop.xlane.xlu1 %4021  ;;  %v4013_v6 = vpop.xlane.xlu0 %4012 }
 0x5e3   : > { %8549 = vrcp.f32 %v4022_v12 }
 0x5e4   : > { %8551 = vrcp.f32 %v4013_v6  ;;  %v8542_v18 = vpop.eup %8541 }
 0x5e5   : > { %1810 = vrot.lane.b32.xlu1 %v10106_v5, %s12819_s30  ;;  %1808 = vrot.lane.b32.xlu0 %v10090_v61, %s12819_s30  ;;  %8553 = vrcp.f32 %v4019_v59  ;;  %v4127_v62 = vmul.f32 %v8542_v18, %v10539_v1 }
 0x5e6   : > { %v4016_v51 = vpop.xlane.xlu1 %4015 }
 0x5e7   : > { %8555 = vrcp.f32 %v4016_v51 }
 0x5e8   : > { %v8544_v13 = vpop.eup %8543 }
 0x5e9   : > { %2261 = vrot.lane.b32.xlu1 %v9923_v56, %s9284_s12  ;;  %2259 = vrot.lane.b32.xlu0 %v9913_v52, %s9284_s12  ;;  %v8546_v25 = vpop.eup %8545  ;;  %v4130_v21 = vmul.f32 %v8544_v13, %v10543_v37 }
 0x5ea   : > { %v4129_v56 = vmul.f32 %v8546_v25, %v10534_v40 }
 0x5ec   : > { %v8548_v27 = vpop.eup %8547  ;;  %v4160_v52 = vpack.c.bf16 %v4130_v21, %v4129_v56 }
 0x5ed   : > { %2257 = vrot.lane.b32.xlu1 %v9927_v60, %s9284_s12  ;;  %2255 = vrot.lane.b32.xlu0 %v9917_v54, %s9284_s12  ;;  %v4128_v7 = vmul.f32 %v8548_v27, %v10547_v35  ;;  %v8438_v54 = vld [vmem:[#allocation4 + $0x50] sm:$0xff]  }
 0x5ee   : > { %v8456_v27 = vld [vmem:[#allocation23] sm:$0xff]  }
 0x5ef   : > { %v4159_v20 = vpack.c.bf16 %v4128_v7, %v4127_v62 }
 0x5f0   : > { %v8550_v31 = vpop.eup %8549 }
 0x5f1   : > { %2253 = vrot.lane.b32.xlu1 %v9905_v46, %s9284_s12  ;;  %2251 = vrot.lane.b32.xlu0 %v9897_v42, %s9284_s12  ;;  %v8552_v37 = vpop.eup %8551  ;;  %v4134_v42 = vmul.f32 %v8550_v31, %v10555_v41  ;;  %v12968_v41 = vld [vmem:[#allocation72_spill] sm:$0xff] }
 0x5f2   : > { %7941 = vmatprep.mubr.msk.bf16.mxu0 %vm1118_vm0, %v4159_v20  ;;  %v8554_v60 = vpop.eup %8553  ;;  %v4131_v46 = vmul.f32 %v8552_v37, %v10557_v58 }
 0x5f3   : > { %7942 = vmatmul.mubr.msk.bf16.vlgmr.msra.gmra.mxu0 %vm1118_vm0, %v4160_v52  ;;  %v4133_v0 = vmul.f32 %v8554_v60, %v10549_v23 }
 0x5f4   : > { %v8556_v1 = vpop.eup %8555  ;;  %7966 = vmatpush3.bf16.msra.mxu0 %v10411_v43 }
 0x5f5   : > { %7967 = vmatprep.subr.bf16.mxu0 %v8438_v54  ;;  %2249 = vrot.lane.b32.xlu1 %v9909_v50, %s9284_s12  ;;  %v4132_v40 = vmul.f32 %v8556_v1, %v10563_v57  ;;  %v4162_v43 = vpack.c.bf16 %v4134_v42, %v4133_v0 }
 0x5f6   : > { %2247 = vrot.lane.b32.xlu0 %v9901_v44, %s9284_s12 }
 0x5f7   : > { %v4161_v35 = vpack.c.bf16 %v4132_v40, %v4131_v46 }
 0x5f8   : > { %7968 = vmatpush3.bf16.msra.mxu0 %v8438_v54 }
 0x5f9   : > { %2245 = vrot.lane.b32.xlu1 %v9889_v36, %s9284_s12  ;;  %7945 = vmatprep.mubr.msk.bf16.mxu0 %vm1118_vm0, %v4161_v35 }
 0x5fa   : > { %2243 = vrot.lane.b32.xlu0 %v9881_v32, %s9284_s12 }
 0x5fb   : > { %7946 = vmatmul.mubr.msk.bf16.gmra.mxu0 %vm1118_vm0, %v4162_v43 }
 0x5fd   : > { %2241 = vrot.lane.b32.xlu1 %v9893_v38, %s9284_s12 }
 0x5fe   : > { %2239 = vrot.lane.b32.xlu0 %v9885_v34, %s9284_s12 }
 0x601   : > { %2237 = vrot.lane.b32.xlu1 %v9873_v28, %s9284_s12 }
 0x602   : > { %2235 = vrot.lane.b32.xlu0 %v9865_v24, %s9284_s12 }
 0x605   : > { %1814 = vrot.lane.b32.xlu1 %v10139_v49, %s12819_s30 }
 0x606   : > { %1812 = vrot.lane.b32.xlu0 %v10126_v11, %s12819_s30 }
 0x609   : > { %1818 = vrot.lane.b32.xlu1 %v10176_v48, %s12819_s30 }
 0x60a   : > { %1816 = vrot.lane.b32.xlu0 %v10159_v47, %s12819_s30  ;;  %v4055_v32 = vpop.xlane.xlu0 %4054  ;;  %s9285_s30 = smov 48  }
 0x60d   : > { %2233 = vrot.lane.b32.xlu1 %v9877_v30, %s9284_s12  ;;  %v12964_v30 = vld [vmem:[#allocation68_spill] sm:$0xff] }
 0x60e   : > { %2231 = vrot.lane.b32.xlu0 %v9869_v26, %s9284_s12  ;;  %v4058_v24 = vpop.xlane.xlu1 %4057 }
 0x60f   : > { %v4049_v28 = vpop.xlane.xlu0 %4048 }
 0x610   : > { %8557 = vrcp.f32 %v4049_v28 }
 0x611   : > { %2134 = vrot.lane.b32.xlu1 %v10078_v2, %s9284_s12  ;;  %v12965_v2 = vld [vmem:[#allocation71_spill] sm:$0xff] }
 0x612   : > { %2132 = vrot.lane.b32.xlu0 %v10068_v15, %s9284_s12  ;;  %v4052_v34 = vpop.xlane.xlu1 %4051 }
 0x613   : > { %8559 = vrcp.f32 %v4052_v34 }
 0x614   : > { %8561 = vrcp.f32 %v4058_v24 }
 0x615   : > { %2138 = vrot.lane.b32.xlu1 %v10106_v5, %s9284_s12 }
 0x616   : > { %2136 = vrot.lane.b32.xlu0 %v10090_v61, %s9284_s12  ;;  %v12966_v61 = vld [vmem:[#allocation70_spill] sm:$0xff] }
 0x619   : > { %1851 = vrot.lane.b32.xlu1 %v10196_v29, %s9285_s30 }
 0x61a   : > { %1849 = vrot.lane.b32.xlu0 %v10171_v33, %s9285_s30 }
 0x61d   : > { %1847 = vrot.lane.b32.xlu1 %v10216_v22, %s9285_s30  ;;  %v8558_v26 = vpop.eup %8557 }
 0x61e   : > { %1845 = vrot.lane.b32.xlu0 %v12964_v30, %s9285_s30  ;;  %v4143_v38 = vmul.f32 %v8558_v26, %v10577_v63 }
 0x620   : > { %v8560_v36 = vpop.eup %8559 }
 0x621   : > { %2142 = vrot.lane.b32.xlu1 %v10139_v49, %s9284_s12  ;;  %v4144_v44 = vmul.f32 %v8560_v36, %v10583_v16  ;;  %v12967_v49 = vld [vmem:[#allocation73_spill] sm:$0xff]  ;;  %v8562_v16 = vpop.eup %8561 }
 0x622   : > { %2140 = vrot.lane.b32.xlu0 %v10126_v11, %s9284_s12  ;;  %v4146_v18 = vmul.f32 %v8562_v16, %v10575_v3 }
 0x623   : > { %v4167_v50 = vpack.c.bf16 %v4144_v44, %v4143_v38 }
 0x625   : > { %2146 = vrot.lane.b32.xlu1 %v10176_v48, %s9284_s12  ;;  %7973 = vmatprep.mubr.msk.bf16.mxu0 %vm1118_vm0, %v4167_v50 }
 0x626   : > { %2144 = vrot.lane.b32.xlu0 %v10159_v47, %s9284_s12 }
 0x628   : > { %v4067_v15 = vpop.xlane.xlu1 %4066 }
 0x629   : > { %1843 = vrot.lane.b32.xlu1 %v12965_v2, %s9285_s30 }
 0x62a   : > { %1841 = vrot.lane.b32.xlu0 %v12966_v61, %s9285_s30 }
 0x62c   : > { %v4070_v5 = vpop.xlane.xlu0 %4069 }
 0x62d   : > { %1839 = vrot.lane.b32.xlu1 %v12967_v49, %s9285_s30  ;;  %v4061_v23 = vpop.xlane.xlu1 %4060 }
 0x62e   : > { %1837 = vrot.lane.b32.xlu0 %v12968_v41, %s9285_s30  ;;  %s12981_s30 = smov 376  }
 0x630   : > { %v4064_v11 = vpop.xlane.xlu0 %4063 }
 0x631   : > { %2179 = vrot.lane.b32.xlu1 %v10196_v29, %s9286_s0  ;;  %v2041_v48 = vpop.permute.xlu1 %2040  ;;  %8563 = vrcp.f32 %v4064_v11 }
 0x632   : > { %2062 = vst.msk [vmem:[#allocation4 + $0x4c] sm:$0xf] %vm1667_vm2, %v2041_v48  ;;  %2177 = vrot.lane.b32.xlu0 %v10171_v33, %s9286_s0  ;;  %8565 = vrcp.f32 %v4055_v32 }
 0x633   : > { %8567 = vrcp.f32 %v4061_v23 }
 0x634   : > { %v2039_v47 = vpop.permute.xlu0 %2038  ;;  %8569 = vrcp.f32 %v4070_v5 }
 0x635   : > { %2175 = vrot.lane.b32.xlu1 %v10216_v22, %s9286_s0  ;;  %v2035_v58 = vpop.permute.xlu1 %2034  ;;  %2061 = vst.msk [vmem:[#allocation4 + $0x48] sm:$0xf] %vm1667_vm2, %v2039_v47  ;;  %8571 = vrcp.f32 %v4067_v15 }
 0x636   : > { %2059 = vst.msk [vmem:[#allocation4 + $0x40] sm:$0xf] %vm1667_vm2, %v2035_v58  ;;  %2173 = vrot.lane.b32.xlu0 %v12964_v30, %s9286_s0 }
 0x638   : > { %v1932_v57 = vpop.permute.xlu0 %1931 }
 0x639   : > { %2171 = vrot.lane.b32.xlu1 %v12965_v2, %s9286_s0  ;;  %v2037_v29 = vpop.permute.xlu1 %2036  ;;  %1966 = vst.msk [vmem:[#allocation5 + $0x78] sm:$0xf] %vm1667_vm2, %v1932_v57 }
 0x63a   : > { %2060 = vst.msk [vmem:[#allocation4 + $0x44] sm:$0xf] %vm1667_vm2, %v2037_v29  ;;  %2169 = vrot.lane.b32.xlu0 %v12966_v61, %s9286_s0  ;;  %v10788_v61 = vld [vmem:[#allocation22 + $0x1] ss:$0 sm:$0xff] }
 0x63c   : > { %v1928_v33 = vpop.permute.xlu0 %1927  ;;  %v8439_v22 = vld [vmem:[#allocation4 + $0x48] sm:$0xff]  }
 0x63d   : > { %2167 = vrot.lane.b32.xlu1 %v12967_v49, %s9286_s0  ;;  %v1934_v63 = vpop.permute.xlu1 %1933  ;;  %1964 = vst.msk [vmem:[#allocation5 + $0x70] sm:$0xf] %vm1667_vm2, %v1928_v33  ;;  %7969 = vmatprep.subr.bf16.mxu0 %v8439_v22  ;;  %v10790_v49 = vld [vmem:[#allocation20 + $0x1] ss:$0 sm:$0xff] }
 0x63e   : > { %1967 = vst.msk [vmem:[#allocation5 + $0x7c] sm:$0xf] %vm1667_vm2, %v1934_v63  ;;  %2165 = vrot.lane.b32.xlu0 %v12968_v41, %s9286_s0  ;;  %v8564_v59 = vpop.eup %8563  ;;  %7970 = vmatpush3.bf16.msra.mxu0 %v8439_v22 }
 0x63f   : > { %v8566_v12 = vpop.eup %8565  ;;  %v4148_v21 = vmul.f32 %v8564_v59, %v10605_v55 }
 0x640   : > { %v1924_v6 = vpop.permute.xlu0 %1923  ;;  %v8568_v51 = vpop.eup %8567  ;;  %v4145_v62 = vmul.f32 %v8566_v12, %v10571_v4 }
 0x641   : > { %v1930_v13 = vpop.permute.xlu1 %1929  ;;  %1962 = vst.msk [vmem:[#allocation5 + $0x68] sm:$0xf] %vm1667_vm2, %v1924_v6  ;;  %v8440_v25 = vld [vmem:[#allocation4 + $0x40] sm:$0xff]   ;;  %v4147_v56 = vmul.f32 %v8568_v51, %v10599_v39  ;;  %v8570_v52 = vpop.eup %8569 }
 0x642   : > { %1965 = vst.msk [vmem:[#allocation5 + $0x74] sm:$0xf] %vm1667_vm2, %v1930_v13  ;;  %7971 = vmatprep.subr.bf16.mxu0 %v8440_v25  ;;  %v4168_v31 = vpack.c.bf16 %v4146_v18, %v4145_v62  ;;  %v8572_v55 = vpop.eup %8571  ;;  %v4150_v1 = vmul.f32 %v8570_v52, %v10597_v17 }
 0x643   : > { %7972 = vmatpush3.bf16.msra.mxu0 %v8440_v25  ;;  %v4169_v37 = vpack.c.bf16 %v4148_v21, %v4147_v56  ;;  %v4149_v46 = vmul.f32 %v8572_v55, %v10593_v8 }
 0x644   : > { %v1920_v7 = vpop.permute.xlu0 %1919  ;;  %7997 = vmatprep.subr.bf16.mxu0 %v8456_v27 }
 0x645   : > { %v1926_v20 = vpop.permute.xlu1 %1925  ;;  %1960 = vst.msk [vmem:[#allocation5 + $0x60] sm:$0xf] %vm1667_vm2, %v1920_v7  ;;  %v8441_v3 = vld [vmem:[#allocation5 + $0x78] sm:$0xff]   ;;  %v4170_v35 = vpack.c.bf16 %v4150_v1, %v4149_v46 }
 0x646   : > { %1963 = vst.msk [vmem:[#allocation5 + $0x6c] sm:$0xf] %vm1667_vm2, %v1926_v20  ;;  %8109 = vmatprep.subr.msk.bf16.mxu1 %vm1610_vm3, %v8441_v3  ;;  %7974 = vmatmul.mubr.msk.bf16.vlgmr.msra.gmra.mxu0 %vm1118_vm0, %v4168_v31  ;;  %v2824_v4 = vsel %vm1610_vm3, %v8441_v3, 0 }
 0x647   : > { %7798 = vmatpush3.bf16.xpose.msra.mxu1 %v2824_v4  ;;  %7977 = vmatprep.mubr.msk.bf16.mxu0 %vm1118_vm0, %v4169_v37 }
 0x648   : > { %v1916_v39 = vpop.permute.xlu0 %1915  ;;  %7998 = vmatpush3.bf16.msra.mxu0 %v8456_v27 }
 0x649   : > { %v1922_v60 = vpop.permute.xlu1 %1921  ;;  %1958 = vst.msk [vmem:[#allocation5 + $0x58] sm:$0xf] %vm1667_vm2, %v1916_v39  ;;  %v8442_v54 = vld [vmem:[#allocation5 + $0x70] sm:$0xff]  }
 0x64a   : > { %1961 = vst.msk [vmem:[#allocation5 + $0x64] sm:$0xf] %vm1667_vm2, %v1922_v60  ;;  %8110 = vmatprep.subr.msk.bf16.mxu1 %vm1610_vm3, %v8442_v54  ;;  %v2821_v0 = vsel %vm1610_vm3, %v8442_v54, 0 }
 0x64c   : > { %v1912_v40 = vpop.permute.xlu0 %1911 }
 0x64d   : > { %v1918_v42 = vpop.permute.xlu1 %1917  ;;  %1956 = vst.msk [vmem:[#allocation5 + $0x50] sm:$0xf] %vm1667_vm2, %v1912_v40  ;;  %v8443_v43 = vld [vmem:[#allocation5 + $0x68] sm:$0xff]  }
 0x64e   : > { %1959 = vst.msk [vmem:[#allocation5 + $0x5c] sm:$0xf] %vm1667_vm2, %v1918_v42  ;;  %7978 = vmatmul.mubr.msk.bf16.gmra.mxu0 %vm1118_vm0, %v4170_v35  ;;  %v2818_v28 = vsel %vm1610_vm3, %v8443_v43, 0 }
 0x64f   : > { %7800 = vmatpush3.bf16.xpose.msra.mxu1 %v2821_v0 }
 0x650   : > { %v1908_v17 = vpop.permute.xlu0 %1907  ;;  %8111 = vmatprep.subr.msk.bf16.mxu1 %vm1610_vm3, %v8443_v43 }
 0x651   : > { %v1914_v32 = vpop.permute.xlu1 %1913  ;;  %1954 = vst.msk [vmem:[#allocation5 + $0x48] sm:$0xf] %vm1667_vm2, %v1908_v17  ;;  %v8444_v34 = vld [vmem:[#allocation5 + $0x60] sm:$0xff]  }
 0x652   : > { %1957 = vst.msk [vmem:[#allocation5 + $0x54] sm:$0xf] %vm1667_vm2, %v1914_v32  ;;  %v2815_v44 = vsel %vm1610_vm3, %v8444_v34, 0 }
 0x654   : > { %v1904_v8 = vpop.permute.xlu0 %1903 }
 0x655   : > { %v1910_v24 = vpop.permute.xlu1 %1909  ;;  %1952 = vst.msk [vmem:[#allocation5 + $0x40] sm:$0xf] %vm1667_vm2, %v1904_v8  ;;  %v8445_v50 = vld [vmem:[#allocation5 + $0x58] sm:$0xff]  }
 0x656   : > { %1955 = vst.msk [vmem:[#allocation5 + $0x4c] sm:$0xf] %vm1667_vm2, %v1910_v24  ;;  %v2812_v29 = vsel %vm1610_vm3, %v8445_v50, 0 }
 0x657   : > { %7802 = vmatpush3.bf16.xpose.msra.mxu1 %v2818_v28 }
 0x658   : > { %v1805_v26 = vpop.permute.xlu0 %1804  ;;  %8112 = vmatprep.subr.msk.bf16.mxu1 %vm1610_vm3, %v8444_v34 }
 0x659   : > { %v1906_v30 = vpop.permute.xlu1 %1905  ;;  %1829 = vst.msk [vmem:[#allocation2 + $0x40] sm:$0xff] %vm1610_vm3, %v1805_v26  ;;  %v8446_v33 = vld [vmem:[#allocation5 + $0x50] sm:$0xff]  }
 0x65a   : > { %1953 = vst.msk [vmem:[#allocation5 + $0x44] sm:$0xf] %vm1667_vm2, %v1906_v30  ;;  %v2809_v21 = vsel %vm1610_vm3, %v8446_v33, 0 }
 0x65c   : > { %v1809_v36 = vpop.permute.xlu0 %1808 }
 0x65d   : > { %v1807_v38 = vpop.permute.xlu1 %1806  ;;  %1831 = vst.msk [vmem:[#allocation2 + $0x50] sm:$0xff] %vm1610_vm3, %v1809_v36  ;;  %v8447_v62 = vld [vmem:[#allocation5 + $0x48] sm:$0xff]  }
 0x65e   : > { %1830 = vst.msk [vmem:[#allocation2 + $0x48] sm:$0xff] %vm1610_vm3, %v1807_v38  ;;  %v2806_v31 = vsel %vm1610_vm3, %v8447_v62, 0 }
 0x65f   : > { %7804 = vmatpush3.bf16.xpose.msra.mxu1 %v2815_v44 }
 0x660   : > { %v2260_v15 = vpop.permute.xlu0 %2259  ;;  %8113 = vmatprep.subr.msk.bf16.mxu1 %vm1610_vm3, %v8445_v50  ;;  %v2313_v5 = vld [vmem:[#allocation2 + $0x40] sm:$0xff] }
 0x661   : > { %v1811_v2 = vpop.permute.xlu1 %1810  ;;  %2294 = vst.msk [vmem:[#allocation5 + $0xf8] sm:$0xf] %vm1667_vm2, %v2260_v15  ;;  %v2441_v48 = vadd.f32 %v10788_v61, %v2313_v5  ;;  %v10797_v58 = vadd.f32 %v10790_v49, %v2313_v5  ;;  %v8448_v52 = vld [vmem:[#allocation5 + $0x40] sm:$0xff]  }
 0x662   : > { %1832 = vst.msk [vmem:[#allocation2 + $0x58] sm:$0xff] %vm1610_vm3, %v1811_v2  ;;  %v2803_v60 = vsel %vm1610_vm3, %v8448_v52, 0  ;;  %v10854_v5 = vld [vmem:[#allocation23 + $0x10] sm:$0xff]  }
 0x663   : > { %8017 = vmatprep.subr.bf16.mxu0 %v10854_v5 }
 0x664   : > { %v2256_v23 = vpop.permute.xlu0 %2255  ;;  %v2315_v22 = vld [vmem:[#allocation2 + $0x50] sm:$0xff] }
 0x665   : > { %v2262_v41 = vpop.permute.xlu1 %2261  ;;  %2292 = vst.msk [vmem:[#allocation5 + $0xf0] sm:$0xf] %vm1667_vm2, %v2256_v23  ;;  %v2314_v11 = vld [vmem:[#allocation2 + $0x48] sm:$0xff]  ;;  %v10810_v51 = vadd.f32 %v10790_v49, %v2315_v22  ;;  %v2443_v42 = vadd.f32 %v10788_v61, %v2315_v22 }
 0x666   : > { %2295 = vst.msk [vmem:[#allocation5 + $0xfc] sm:$0xf] %vm1667_vm2, %v2262_v41  ;;  %v2442_v47 = vadd.f32 %v10788_v61, %v2314_v11  ;;  %v10800_v57 = vadd.f32 %v10790_v49, %v2314_v11 }
 0x667   : > { %7806 = vmatpush3.bf16.xpose.msra.mxu1 %v2812_v29 }
 0x668   : > { %v2252_v63 = vpop.permute.xlu0 %2251  ;;  %v2469_v16 = vpack.c.bf16 %v2442_v47, %v2441_v48  ;;  %v2397_v59 = vpack.c.bf16 %v10800_v57, %v10797_v58  ;;  %8114 = vmatprep.subr.msk.bf16.mxu1 %vm1610_vm3, %v8446_v33 }
 0x669   : > { %v2258_v12 = vpop.permute.xlu1 %2257  ;;  %2290 = vst.msk [vmem:[#allocation5 + $0xe8] sm:$0xf] %vm1667_vm2, %v2252_v63  ;;  %v2316_v6 = vld [vmem:[#allocation2 + $0x58] sm:$0xff] }
 0x66a   : > { %2293 = vst.msk [vmem:[#allocation5 + $0xf4] sm:$0xf] %vm1667_vm2, %v2258_v12  ;;  %7813 = vmatprep.mubr.msk.bf16.mxu1 %vm1610_vm3, %v2469_v16  ;;  %v10813_v18 = vadd.f32 %v10790_v49, %v2316_v6  ;;  %v2444_v40 = vadd.f32 %v10788_v61, %v2316_v6 }
 0x66c   : > { %v2248_v13 = vpop.permute.xlu0 %2247  ;;  %v2398_v25 = vpack.c.bf16 %v10813_v18, %v10810_v51  ;;  %v2470_v43 = vpack.c.bf16 %v2444_v40, %v2443_v42 }
 0x66d   : > { %v2254_v27 = vpop.permute.xlu1 %2253  ;;  %2288 = vst.msk [vmem:[#allocation5 + $0xe0] sm:$0xf] %vm1667_vm2, %v2248_v13  ;;  %v8449_v54 = vld [vmem:[#allocation5 + $0xf8] sm:$0xff]   ;;  %v7322_v13 = vld [vmem:[#allocation20 + $0x3] ss:$0 sm:$0xff] }
 0x66e   : > { %2291 = vst.msk [vmem:[#allocation5 + $0xec] sm:$0xf] %vm1667_vm2, %v2254_v27  ;;  %v3106_v17 = vsel %vm1610_vm3, %v8449_v54, 0 }
 0x66f   : > { %7808 = vmatpush3.bf16.xpose.msra.mxu1 %v2809_v21 }
 0x670   : > { %v2244_v7 = vpop.permute.xlu0 %2243  ;;  %8115 = vmatprep.subr.msk.bf16.mxu1 %vm1610_vm3, %v8447_v62 }
 0x671   : > { %v2250_v56 = vpop.permute.xlu1 %2249  ;;  %2286 = vst.msk [vmem:[#allocation5 + $0xd8] sm:$0xf] %vm1667_vm2, %v2244_v7  ;;  %v8450_v32 = vld [vmem:[#allocation5 + $0xf0] sm:$0xff]  }
 0x672   : > { %2289 = vst.msk [vmem:[#allocation5 + $0xe4] sm:$0xf] %vm1667_vm2, %v2250_v56  ;;  %v3103_v33 = vsel %vm1610_vm3, %v8450_v32, 0 }
 0x674   : > { %v2240_v20 = vpop.permute.xlu0 %2239 }
 0x675   : > { %v2246_v3 = vpop.permute.xlu1 %2245  ;;  %2284 = vst.msk [vmem:[#allocation5 + $0xd0] sm:$0xf] %vm1667_vm2, %v2240_v20  ;;  %v8451_v22 = vld [vmem:[#allocation5 + $0xe8] sm:$0xff]  }
 0x676   : > { %2287 = vst.msk [vmem:[#allocation5 + $0xdc] sm:$0xf] %vm1667_vm2, %v2246_v3 }
 0x677   : > { %7810 = vmatpush3.bf16.xpose.msra.mxu1 %v2806_v31  ;;  %v3100_v31 = vsel %vm1610_vm3, %v8451_v22, 0 }
 0x678   : > { %v2236_v37 = vpop.permute.xlu0 %2235  ;;  %8116 = vmatprep.subr.msk.bf16.mxu1 %vm1610_vm3, %v8448_v52 }
 0x679   : > { %v2242_v4 = vpop.permute.xlu1 %2241  ;;  %2282 = vst.msk [vmem:[#allocation5 + $0xc8] sm:$0xf] %vm1667_vm2, %v2236_v37  ;;  %v8452_v52 = vld [vmem:[#allocation5 + $0xe0] sm:$0xff]  }
 0x67a   : > { %2285 = vst.msk [vmem:[#allocation5 + $0xd4] sm:$0xf] %vm1667_vm2, %v2242_v4 }
 0x67c   : > { %v1813_v55 = vpop.permute.xlu0 %1812 }
 0x67d   : > { %v2238_v39 = vpop.permute.xlu1 %2237  ;;  %1833 = vst.msk [vmem:[#allocation2 + $0x60] sm:$0xff] %vm1610_vm3, %v1813_v55 }
 0x67e   : > { %2283 = vst.msk [vmem:[#allocation5 + $0xcc] sm:$0xf] %vm1667_vm2, %v2238_v39 }
 0x67f   : > { %7812 = vmatpush3.bf16.xpose.msra.mxu1 %v2803_v60 }
 0x680   : > { %v1817_v1 = vpop.permute.xlu0 %1816  ;;  %8125 = vmatprep.subr.msk.bf16.mxu1 %vm1610_vm3, %v8449_v54 }
 0x681   : > { %v1815_v46 = vpop.permute.xlu1 %1814  ;;  %1835 = vst.msk [vmem:[#allocation2 + $0x70] sm:$0xff] %vm1610_vm3, %v1817_v1 }
 0x682   : > { %1834 = vst.msk [vmem:[#allocation2 + $0x68] sm:$0xff] %vm1610_vm3, %v1815_v46 }
 0x684   : > { %v2232_v35 = vpop.permute.xlu0 %2231  ;;  %v2317_v8 = vld [vmem:[#allocation2 + $0x60] sm:$0xff] }
 0x685   : > { %v1819_v0 = vpop.permute.xlu1 %1818  ;;  %2280 = vst.msk [vmem:[#allocation5 + $0xc0] sm:$0xf] %vm1667_vm2, %v2232_v35  ;;  %v2445_v26 = vadd.f32 %v10788_v61, %v2317_v8  ;;  %v10847_v38 = vadd.f32 %v10790_v49, %v2317_v8 }
 0x686   : > { %1836 = vst.msk [vmem:[#allocation2 + $0x78] sm:$0xff] %vm1610_vm3, %v1819_v0  ;;  %7814 = vmatmul.mubr.msk.bf16.vlgmr.msra.gmra.mxu1 %vm1610_vm3, %v2470_v43  ;;  %v3097_v0 = vsel %vm1610_vm3, %v8452_v52, 0  ;;  %v8453_v43 = vld [vmem:[#allocation5 + $0xd8] sm:$0xff]  }
 0x687   : > { %7846 = vmatpush3.bf16.xpose.msra.mxu1 %v3106_v17 }
 0x688   : > { %v2133_v24 = vpop.permute.xlu0 %2132  ;;  %8126 = vmatprep.subr.msk.bf16.mxu1 %vm1610_vm3, %v8450_v32  ;;  %v2319_v36 = vld [vmem:[#allocation2 + $0x70] sm:$0xff] }
 0x689   : > { %v2234_v28 = vpop.permute.xlu1 %2233  ;;  %2157 = vst.msk [vmem:[#allocation2 + $0xc0] sm:$0xff] %vm1610_vm3, %v2133_v24  ;;  %v2318_v34 = vld [vmem:[#allocation2 + $0x68] sm:$0xff]  ;;  %v2447_v11 = vadd.f32 %v10788_v61, %v2319_v36  ;;  %v10862_v47 = vadd.f32 %v10790_v49, %v2319_v36  ;;  %v3094_v36 = vsel %vm1610_vm3, %v8453_v43, 0 }
 0x68a   : > { %2281 = vst.msk [vmem:[#allocation5 + $0xc4] sm:$0xf] %vm1667_vm2, %v2234_v28  ;;  %v2446_v30 = vadd.f32 %v10788_v61, %v2318_v34  ;;  %v10850_v44 = vadd.f32 %v10790_v49, %v2318_v34 }
 0x68c   : > { %v2137_v50 = vpop.permute.xlu0 %2136  ;;  %v2471_v15 = vpack.c.bf16 %v2446_v30, %v2445_v26  ;;  %v2399_v2 = vpack.c.bf16 %v10850_v44, %v10847_v38 }
 0x68d   : > { %v2135_v23 = vpop.permute.xlu1 %2134  ;;  %2159 = vst.msk [vmem:[#allocation2 + $0xd0] sm:$0xff] %vm1610_vm3, %v2137_v50  ;;  %v2320_v41 = vld [vmem:[#allocation2 + $0x78] sm:$0xff]  ;;  %v8454_v50 = vld [vmem:[#allocation5 + $0xd0] sm:$0xff]  }
 0x68e   : > { %2158 = vst.msk [vmem:[#allocation2 + $0xc8] sm:$0xff] %vm1610_vm3, %v2135_v23  ;;  %7817 = vmatprep.mubr.msk.bf16.mxu1 %vm1610_vm3, %v2471_v15  ;;  %v2448_v48 = vadd.f32 %v10788_v61, %v2320_v41  ;;  %v10865_v29 = vadd.f32 %v10790_v49, %v2320_v41  ;;  %v10875_v61 = vld [vmem:[#allocation22 + $0x3] ss:$0 sm:$0xff] }
 0x68f   : > { %7848 = vmatpush3.bf16.xpose.msra.mxu1 %v3103_v33 }
 0x690   : > { %v1850_v63 = vpop.permute.xlu0 %1849  ;;  %v2472_v16 = vpack.c.bf16 %v2448_v48, %v2447_v11  ;;  %v2400_v12 = vpack.c.bf16 %v10865_v29, %v10862_v47  ;;  %8127 = vmatprep.subr.msk.bf16.mxu1 %vm1610_vm3, %v8451_v22  ;;  %v2329_v49 = vld [vmem:[#allocation2 + $0xc0] sm:$0xff] }
 0x691   : > { %v2139_v6 = vpop.permute.xlu1 %2138  ;;  %1868 = vst.msk [vmem:[#allocation3 + $0x38] sm:$0xf] %vm1667_vm2, %v1850_v63  ;;  %v2457_v7 = vadd.f32 %v10875_v61, %v2329_v49  ;;  %v10881_v20 = vadd.f32 %v7322_v13, %v2329_v49  ;;  %v3091_v49 = vsel %vm1610_vm3, %v8454_v50, 0 }
 0x692   : > { %2160 = vst.msk [vmem:[#allocation2 + $0xd8] sm:$0xff] %vm1610_vm3, %v2139_v6  ;;  %7818 = vmatmul.mubr.msk.bf16.gmra.mxu1 %vm1610_vm3, %v2472_v16 }
 0x694   : > { %v1846_v27 = vpop.permute.xlu0 %1845  ;;  %v10886_v37 = vld [vmem:[#allocation2 + $0xd0] sm:$0xff] }
 0x695   : > { %v1852_v21 = vpop.permute.xlu1 %1851  ;;  %1866 = vst.msk [vmem:[#allocation3 + $0x30] sm:$0xf] %vm1667_vm2, %v1846_v27  ;;  %v2330_v62 = vld [vmem:[#allocation2 + $0xc8] sm:$0xff]  ;;  %v10897_v1 = vadd.f32 %v7322_v13, %v10886_v37 }
 0x696   : > { %1869 = vst.msk [vmem:[#allocation3 + $0x3c] sm:$0xf] %vm1667_vm2, %v1852_v21  ;;  %v2458_v56 = vadd.f32 %v10875_v61, %v2330_v62  ;;  %v10883_v3 = vadd.f32 %v7322_v13, %v2330_v62  ;;  %v8455_v27 = vld [vmem:[#allocation5 + $0xc8] sm:$0xff]  }
 0x697   : > { %7850 = vmatpush3.bf16.xpose.msra.mxu1 %v3100_v31 }
 0x698   : > { %v2141_v4 = vpop.permute.xlu0 %2140  ;;  %v2477_v55 = vpack.c.bf16 %v2458_v56, %v2457_v7  ;;  %v2405_v39 = vpack.c.bf16 %v10883_v3, %v10881_v20  ;;  %8128 = vmatprep.subr.msk.bf16.mxu1 %vm1610_vm3, %v8452_v52 }
 0x699   : > { %v1848_v60 = vpop.permute.xlu1 %1847  ;;  %2161 = vst.msk [vmem:[#allocation2 + $0xe0] sm:$0xff] %vm1610_vm3, %v2141_v4  ;;  %v10892_v54 = vld [vmem:[#allocation2 + $0xd8] sm:$0xff]  ;;  %v3088_v4 = vsel %vm1610_vm3, %v8455_v27, 0 }
 0x69a   : > { %1867 = vst.msk [vmem:[#allocation3 + $0x34] sm:$0xf] %vm1667_vm2, %v1848_v60  ;;  %7861 = vmatprep.mubr.msk.bf16.mxu1 %vm1610_vm3, %v2477_v55  ;;  %v10900_v46 = vadd.f32 %v7322_v13, %v10892_v54  ;;  %v8457_v55 = vld [vmem:[#allocation5 + $0xc0] sm:$0xff]  }
 0x69c   : > { %v2145_v40 = vpop.permute.xlu0 %2144  ;;  %v2406_v42 = vpack.c.bf16 %v10900_v46, %v10897_v1 }
 0x69d   : > { %v2143_v35 = vpop.permute.xlu1 %2142  ;;  %2163 = vst.msk [vmem:[#allocation2 + $0xf0] sm:$0xff] %vm1610_vm3, %v2145_v40 }
 0x69e   : > { %2162 = vst.msk [vmem:[#allocation2 + $0xe8] sm:$0xff] %vm1610_vm3, %v2143_v35 }
 0x69f   : > { %7852 = vmatpush3.bf16.xpose.msra.mxu1 %v3097_v0 }
 0x6a0   : > { %v1842_v17 = vpop.permute.xlu0 %1841  ;;  %8129 = vmatprep.subr.msk.bf16.mxu1 %vm1610_vm3, %v8453_v43  ;;  %v10910_v8 = vld [vmem:[#allocation2 + $0xe0] sm:$0xff] }
 0x6a1   : > { %v2147_v32 = vpop.permute.xlu1 %2146  ;;  %1864 = vst.msk [vmem:[#allocation3 + $0x28] sm:$0xf] %vm1667_vm2, %v1842_v17  ;;  %v10915_v26 = vadd.f32 %v7322_v13, %v10910_v8  ;;  %v10945_v17 = vld [vmem:[#allocation26 + $0x18] sm:$0xff]  }
 0x6a2   : > { %2164 = vst.msk [vmem:[#allocation2 + $0xf8] sm:$0xff] %vm1610_vm3, %v2147_v32 }
 0x6a4   : > { %v1838_v24 = vpop.permute.xlu0 %1837  ;;  %v10920_v15 = vld [vmem:[#allocation2 + $0xf0] sm:$0xff] }
 0x6a5   : > { %v1844_v28 = vpop.permute.xlu1 %1843  ;;  %1862 = vst.msk [vmem:[#allocation3 + $0x20] sm:$0xf] %vm1667_vm2, %v1838_v24  ;;  %v2334_v34 = vld [vmem:[#allocation2 + $0xe8] sm:$0xff]  ;;  %v10928_v33 = vadd.f32 %v7322_v13, %v10920_v15 }
 0x6a6   : > { %1865 = vst.msk [vmem:[#allocation3 + $0x2c] sm:$0xf] %vm1667_vm2, %v1844_v28  ;;  %v10917_v30 = vadd.f32 %v7322_v13, %v2334_v34  ;;  %v3085_v28 = vsel %vm1610_vm3, %v8457_v55, 0 }
 0x6a7   : > { %7854 = vmatpush3.bf16.xpose.msra.mxu1 %v3094_v36  ;;  %v8458_v36 = vld [vmem:[#allocation3 + $0x38] sm:$0xff]  }
 0x6a8   : > { %v2178_v23 = vpop.permute.xlu0 %2177  ;;  %v2407_v41 = vpack.c.bf16 %v10917_v30, %v10915_v26  ;;  %8130 = vmatprep.subr.msk.bf16.mxu1 %vm1610_vm3, %v8454_v50 }
 0x6a9   : > { %v1840_v11 = vpop.permute.xlu1 %1839  ;;  %2196 = vst.msk [vmem:[#allocation3 + $0x78] sm:$0xf] %vm1667_vm2, %v2178_v23  ;;  %v2336_v48 = vld [vmem:[#allocation2 + $0xf8] sm:$0xff]  ;;  %v2460_v23 = vadd.f32 %v10875_v61, %v10892_v54  ;;  %v3452_v54 = vsel %vm1610_vm3, %v8458_v36, 0 }
 0x6aa   : > { %1863 = vst.msk [vmem:[#allocation3 + $0x24] sm:$0xf] %vm1667_vm2, %v1840_v11  ;;  %v10930_v22 = vadd.f32 %v7322_v13, %v2336_v48 }
 0x6ac   : > { %v2174_v63 = vpop.permute.xlu0 %2173  ;;  %v2408_v16 = vpack.c.bf16 %v10930_v22, %v10928_v33  ;;  %v8470_v33 = vld [vmem:[#allocation26] sm:$0xff]   ;;  %v12969_v22 = vld [vmem:[#allocation54_spill] sm:$0xff] }
 0x6ad   : > { %v2180_v6 = vpop.permute.xlu1 %2179  ;;  %2194 = vst.msk [vmem:[#allocation3 + $0x70] sm:$0xf] %vm1667_vm2, %v2174_v63  ;;  %v2462_v63 = vadd.f32 %v10875_v61, %v2334_v34  ;;  %v2463_v34 = vadd.f32 %v10875_v61, %v10920_v15 }
 0x6ae   : > { %2197 = vst.msk [vmem:[#allocation3 + $0x7c] sm:$0xf] %vm1667_vm2, %v2180_v6 }
 0x6af   : > { %7856 = vmatpush3.bf16.xpose.msra.mxu1 %v3091_v49  ;;  %v2461_v49 = vadd.f32 %v10875_v61, %v10910_v8 }
 0x6b0   : > { %v2170_v21 = vpop.permute.xlu0 %2169  ;;  %8131 = vmatprep.subr.msk.bf16.mxu1 %vm1610_vm3, %v8455_v27 }
 0x6b1   : > { %v2176_v62 = vpop.permute.xlu1 %2175  ;;  %2192 = vst.msk [vmem:[#allocation3 + $0x68] sm:$0xf] %vm1667_vm2, %v2170_v21  ;;  %v2479_v21 = vpack.c.bf16 %v2462_v63, %v2461_v49 }
 0x6b2   : > { %2195 = vst.msk [vmem:[#allocation3 + $0x74] sm:$0xf] %vm1667_vm2, %v2176_v62  ;;  %v8459_v62 = vld [vmem:[#allocation3 + $0x30] sm:$0xff]  }
 0x6b3   : > { %v7943_v13 = vpop.f32.mrf.mxu0 }
 0x6b4   : > { %v2166_v7 = vpop.permute.xlu0 %2165 }
 0x6b5   : > { %v2172_v56 = vpop.permute.xlu1 %2171  ;;  %v4245_v31 = vpop.f32.mrf.mxu0  ;;  %2190 = vst.msk [vmem:[#allocation3 + $0x60] sm:$0xf] %vm1667_vm2, %v2166_v7  ;;  %v8460_v7 = vld [vmem:[#allocation3 + $0x28] sm:$0xff]   ;;  %v8462_v15 = vld [vmem:[#allocation3 + $0x78] sm:$0xff]  }
 0x6b6   : > { %2193 = vst.msk [vmem:[#allocation3 + $0x6c] sm:$0xf] %vm1667_vm2, %v2172_v56  ;;  %v3446_v56 = vsel %vm1610_vm3, %v8460_v7, 0  ;;  %v3670_v58 = vsel %vm1610_vm3, %v8462_v15, 0 }
 0x6b7   : > { %v7944_v52 = vpop.f32.mrf.mxu0  ;;  %7858 = vmatpush3.bf16.xpose.msra.mxu1 %v3088_v4  ;;  %v12973_v4 = vld [vmem:[#allocation55_spill] sm:$0xff] }
 0x6b8   : > { %8132 = vmatprep.subr.msk.bf16.mxu1 %vm1610_vm3, %v8457_v55  ;;  %v4580_v0 = vpack.c.bf16 %v7944_v52, %v7943_v13  ;;  %v3449_v13 = vsel %vm1610_vm3, %v8459_v62, 0  ;;  %v12972_v52 = vld [vmem:[#allocation56_spill] sm:$0xff] }
 0x6b9   : > { %v2168_v60 = vpop.permute.xlu1 %2167  ;;  %v4248_v40 = vpop.f32.mrf.mxu0  ;;  %v8463_v57 = vld [vmem:[#allocation3 + $0x70] sm:$0xff]   ;;  %v12974_v55 = vpack.c.bf16 %v12972_v52, %v12973_v4 }
 0x6ba   : > { %2191 = vst.msk [vmem:[#allocation3 + $0x64] sm:$0xf] %vm1667_vm2, %v2168_v60  ;;  %v4579_v35 = vpack.c.bf16 %v4248_v40, %v4245_v31  ;;  %v12975_v60 = vld [vmem:[#allocation58_spill] sm:$0xff]  ;;  %v12976_v40 = vld [vmem:[#allocation57_spill] sm:$0xff] }
 0x6bb   : > { %v7947_v43 = vpop.f32.mrf.mxu0 }
 0x6bc   : > { %7999 = vmatprep.mubr.msk.bf16.mxu0 %vm1610_vm3, %v4579_v35  ;;  %v12977_v35 = vpack.c.bf16 %v12975_v60, %v12976_v40 }
 0x6bd   : > { %v4261_v32 = vpop.f32.mrf.mxu0  ;;  %8000 = vmatmul.mubr.msk.bf16.vlgmr.msra.gmra.mxu0 %vm1610_vm3, %v4580_v0  ;;  %v8464_v51 = vld [vmem:[#allocation3 + $0x68] sm:$0xff]   ;;  %v12978_v0 = vld [vmem:[#allocation60_spill] sm:$0xff] }
 0x6be   : > { %8018 = vmatpush3.bf16.msra.mxu0 %v10854_v5  ;;  %v2459_v5 = vadd.f32 %v10875_v61, %v10886_v37  ;;  %v2464_v37 = vadd.f32 %v10875_v61, %v2336_v48  ;;  %v8461_v48 = vld [vmem:[#allocation3 + $0x20] sm:$0xff]   ;;  %v3664_v18 = vsel %vm1610_vm3, %v8464_v51, 0 }
 0x6bf   : > { %v7948_v24 = vpop.f32.mrf.mxu0  ;;  %8037 = vmatprep.subr.bf16.mxu0 %v10945_v17  ;;  %7860 = vmatpush3.bf16.xpose.msra.mxu1 %v3085_v28  ;;  %v3443_v61 = vsel %vm1610_vm3, %v8461_v48, 0 }
 0x6c0   : > { %8137 = vmatprep.subr.msk.bf16.mxu1 %vm1610_vm3, %v8458_v36  ;;  %v4582_v6 = vpack.c.bf16 %v7948_v24, %v7947_v43  ;;  %v2478_v27 = vpack.c.bf16 %v2460_v23, %v2459_v5  ;;  %v2480_v8 = vpack.c.bf16 %v2464_v37, %v2463_v34  ;;  %v12979_v43 = vld [vmem:[#allocation59_spill] sm:$0xff] }
 0x6c1   : > { %v4264_v50 = vpop.f32.mrf.mxu0 }
 0x6c2   : > { %v4581_v11 = vpack.c.bf16 %v4264_v50, %v4261_v32 }
 0x6c4   : > { %8003 = vmatprep.mubr.msk.bf16.mxu0 %vm1610_vm3, %v4581_v11 }
 0x6c5   : > { %8004 = vmatmul.mubr.msk.bf16.gmra.mxu0 %vm1610_vm3, %v4582_v6 }
 0x6c6   : > { %7862 = vmatmul.mubr.msk.bf16.vlgmr.msra.gmra.mxu1 %vm1610_vm3, %v2478_v27 }
 0x6c7   : > { %7865 = vmatprep.mubr.msk.bf16.mxu1 %vm1610_vm3, %v2479_v21  ;;  %7886 = vmatpush3.bf16.xpose.msra.mxu1 %v3452_v54 }
 0x6c8   : > { %8138 = vmatprep.subr.msk.bf16.mxu1 %vm1610_vm3, %v8459_v62 }
 0x6ce   : > { %7866 = vmatmul.mubr.msk.bf16.gmra.mxu1 %vm1610_vm3, %v2480_v8 }
 0x6cf   : > { %7888 = vmatpush3.bf16.xpose.msra.mxu1 %v3449_v13  ;;  %7893 = vmatprep.mubr.msk.bf16.mxu1 %vm1610_vm3, %v2397_v59  ;;  %v3667_v59 = vsel %vm1610_vm3, %v8463_v57, 0 }
 0x6d0   : > { %8139 = vmatprep.subr.msk.bf16.mxu1 %vm1610_vm3, %v8460_v7 }
 0x6d7   : > { %7890 = vmatpush3.bf16.xpose.msra.mxu1 %v3446_v56 }
 0x6d8   : > { %8140 = vmatprep.subr.msk.bf16.mxu1 %vm1610_vm3, %v8461_v48 }
 0x6df   : > { %7892 = vmatpush3.bf16.xpose.msra.mxu1 %v3443_v61 }
 0x6e0   : > { %8145 = vmatprep.subr.msk.bf16.mxu1 %vm1610_vm3, %v8462_v15 }
 0x6e6   : > { %7894 = vmatmul.mubr.msk.bf16.vlgmr.msra.gmra.mxu1 %vm1610_vm3, %v2398_v25  ;;  %v8465_v25 = vld [vmem:[#allocation3 + $0x60] sm:$0xff]  }
 0x6e7   : > { %7897 = vmatprep.mubr.msk.bf16.mxu1 %vm1610_vm3, %v2399_v2  ;;  %7918 = vmatpush3.bf16.xpose.msra.mxu1 %v3670_v58  ;;  %v3661_v38 = vsel %vm1610_vm3, %v8465_v25, 0 }
 0x6e8   : > { %8146 = vmatprep.subr.msk.bf16.mxu1 %vm1610_vm3, %v8463_v57 }
 0x6ee   : > { %7898 = vmatmul.mubr.msk.bf16.gmra.mxu1 %vm1610_vm3, %v2400_v12 }
 0x6ef   : > { %7920 = vmatpush3.bf16.xpose.msra.mxu1 %v3667_v59  ;;  %7925 = vmatprep.mubr.msk.bf16.mxu1 %vm1610_vm3, %v2405_v39  ;;  %v8468_v39 = vld [vmem:[#allocation26 + $0x10] sm:$0xff]  }
 0x6f0   : > { %8147 = vmatprep.subr.msk.bf16.mxu1 %vm1610_vm3, %v8464_v51 }
 0x6f7   : > { %7922 = vmatpush3.bf16.xpose.msra.mxu1 %v3664_v18 }
 0x6f8   : > { %8148 = vmatprep.subr.msk.bf16.mxu1 %vm1610_vm3, %v8465_v25 }
 0x6ff   : > { %7924 = vmatpush3.bf16.xpose.msra.mxu1 %v3661_v38 }
 0x706   : > { %7926 = vmatmul.mubr.msk.bf16.vlgmr.msra.gmra.mxu1 %vm1610_vm3, %v2406_v42  ;;  %v7975_v44 = vpop.f32.mrf.mxu0  ;;  %v8469_v42 = vld [vmem:[#allocation26 + $0x8] sm:$0xff]  }
 0x707   : > { %7929 = vmatprep.mubr.msk.bf16.mxu1 %vm1610_vm3, %v2407_v41 }
 0x708   : > { %v4447_v2 = vpop.f32.mrf.mxu0 }
 0x70a   : > { %v7976_v47 = vpop.f32.mrf.mxu0 }
 0x70b   : > { %v4781_v20 = vpack.c.bf16 %v7976_v47, %v7975_v44 }
 0x70c   : > { %v4450_v29 = vpop.f32.mrf.mxu0 }
 0x70d   : > { %v4780_v12 = vpack.c.bf16 %v4450_v29, %v4447_v2 }
 0x70e   : > { %7930 = vmatmul.mubr.msk.bf16.gmra.mxu1 %vm1610_vm3, %v2408_v16  ;;  %v7979_v3 = vpop.f32.mrf.mxu0  ;;  %v12970_v16 = vld [vmem:[#allocation53_spill] sm:$0xff] }
 0x70f   : > { %8019 = vmatprep.mubr.msk.bf16.mxu0 %vm1610_vm3, %v4780_v12  ;;  %v12971_v31 = vpack.c.bf16 %v12969_v22, %v12970_v16 }
 0x710   : > { %v4463_v1 = vpop.f32.mrf.mxu0  ;;  %8020 = vmatmul.mubr.msk.bf16.vlgmr.msra.gmra.mxu0 %vm1610_vm3, %v4781_v20 }
 0x711   : > { %8038 = vmatpush3.bf16.msra.mxu0 %v10945_v17  ;;  %v12980_v17 = vpack.c.bf16 %v12978_v0, %v12979_v43 }
 0x712   : > { %v7980_v46 = vpop.f32.mrf.mxu0  ;;  %8039 = vmatprep.subr.bf16.mxu0 %v8468_v39 }
 0x713   : > { %v4783_v41 = vpack.c.bf16 %v7980_v46, %v7979_v3 }
 0x714   : > { %v4466_v26 = vpop.f32.mrf.mxu0 }
 0x715   : > { %v4782_v30 = vpack.c.bf16 %v4466_v26, %v4463_v1  ;;  %8040 = vmatpush3.bf16.msra.mxu0 %v8468_v39 }
 0x716   : > { %8041 = vmatprep.subr.bf16.mxu0 %v8469_v42 }
 0x717   : > { %8023 = vmatprep.mubr.msk.bf16.mxu0 %vm1610_vm3, %v4782_v30 }
 0x718   : > { %8024 = vmatmul.mubr.msk.bf16.gmra.mxu0 %vm1610_vm3, %v4783_v41 }
 0x719   : > { %8042 = vmatpush3.bf16.msra.mxu0 %v8469_v42  ;;  %8045 = vmatprep.mubr.msk.bf16.mxu0 %vm1118_vm0, %v12971_v31 }
 0x71a   : > { %8043 = vmatprep.subr.bf16.mxu0 %v8470_v33 }
 0x71d   : > { %8044 = vmatpush3.bf16.msra.mxu0 %v8470_v33 }
 0x720   : > { %8046 = vmatmul.mubr.msk.bf16.vlgmr.msra.gmra.mxu0 %vm1118_vm0, %v12974_v55 }
 0x721   : > { %8049 = vmatprep.mubr.msk.bf16.mxu0 %vm1118_vm0, %v12977_v35 }
 0x728   : > { %8050 = vmatmul.mubr.msk.bf16.gmra.mxu0 %vm1118_vm0, %v12980_v17 }
 0x746   : > { %v7815_v32 = vpop.f32.mrf.mxu1 }
 0x748   : > { %v2860_v24 = vpop.f32.mrf.mxu1 }
 0x749   : > { %3207 = vrot.lane.b32.xlu0 %v2860_v24, %s9277_s29 }
 0x74a   : > { %v7816_v28 = vpop.f32.mrf.mxu1 }
 0x74c   : > { %v2863_v36 = vpop.f32.mrf.mxu1 }
 0x74d   : > { %3215 = vrot.lane.b32.xlu0 %v7815_v32, %s9275_s9  ;;  %3211 = vrot.lane.b32.xlu1 %v2863_v36, %s9278_s8 }
 0x751   : > { %3219 = vrot.lane.b32.xlu1 %v7816_v28, %s9276_s11 }
 0x752   : > { %v7819_v50 = vpop.f32.mrf.mxu1 }
 0x754   : > { %v2876_v23 = vpop.f32.mrf.mxu1 }
 0x755   : > { %3223 = vrot.lane.b32.xlu0 %v2876_v23, %s9280_s13 }
 0x756   : > { %v7820_v11 = vpop.f32.mrf.mxu1 }
 0x758   : > { %v2879_v63 = vpop.f32.mrf.mxu1 }
 0x759   : > { %3231 = vrot.lane.b32.xlu0 %v7819_v50, %s9279_s2  ;;  %3227 = vrot.lane.b32.xlu1 %v2879_v63, %s9282_s4 }
 0x75d   : > { %3235 = vrot.lane.b32.xlu1 %v7820_v11, %s12981_s30 }
 0x786   : > { %v7863_v6 = vpop.f32.mrf.mxu1 }
 0x788   : > { %v3142_v5 = vpop.f32.mrf.mxu1 }
 0x789   : > { %3271 = vrot.lane.b32.xlu0 %v3142_v5, %s9277_s29  ;;  %s13026_s29 = sshll.u32 %s9694_s10, 6  ;;  %s13110_s10 = sld [smem:[#allocation101_spill]] }
 0x78a   : > { %v7864_v49 = vpop.f32.mrf.mxu1 }
 0x78c   : > { %v3145_v27 = vpop.f32.mrf.mxu1 }
 0x78d   : > { %3279 = vrot.lane.b32.xlu0 %v7863_v6, %s9275_s9  ;;  %3275 = vrot.lane.b32.xlu1 %v3145_v27, %s9278_s8  ;;  %s12993_s9 = smov 112   ;;  %s7572_s8 = sshll.u32 %s9458_s3, 10 }
 0x78e   : > { %v7867_v21 = vpop.f32.mrf.mxu1 }
 0x790   : > { %v3158_v54 = vpop.f32.mrf.mxu1 }
 0x791   : > { %3283 = vrot.lane.b32.xlu1 %v7864_v49, %s9276_s11  ;;  %3287 = vrot.lane.b32.xlu0 %v3158_v54, %s9280_s13  ;;  %s13008_s11 = smov 64   ;;  %s13027_s13 = sld [smem:[#allocation90_spill]] }
 0x792   : > { %v7868_v62 = vpop.f32.mrf.mxu1 }
 0x794   : > { %v3161_v37 = vpop.f32.mrf.mxu1 }
 0x795   : > { %3295 = vrot.lane.b32.xlu0 %v7867_v21, %s9279_s2  ;;  %3291 = vrot.lane.b32.xlu1 %v3161_v37, %s9282_s4  ;;  %s12692_s4 = scalar_lea.hbm %s13110_s10, %s7572_s8 }
 0x797   : > { %s11615_s0 = scalar_lea.vmem %s13027_s13, %s13026_s29  ;;  %s13109_s29 = sld [smem:[#allocation51_spill]] }
 0x799   : > { %3299 = vrot.lane.b32.xlu1 %v7868_v62, %s12981_s30  ;;  %s9289_s30 = smov [#allocation35]  }
 0x79d   : > { %p13111_p3 = scmp.ne.s32.totalorder %s13109_s29, 0 }
 0x7a6   : > { %v7895_v34 = vpop.f32.mrf.mxu1 }
 0x7a8   : > { %v3488_v8 = vpop.f32.mrf.mxu1 }
 0x7aa   : > { %v7896_v13 = vpop.f32.mrf.mxu1 }
 0x7ac   : > { %v3491_v7 = vpop.f32.mrf.mxu1 }
 0x7ae   : > { %v7899_v61 = vpop.f32.mrf.mxu1 }
 0x7b0   : > { %v3504_v25 = vpop.f32.mrf.mxu1 }
 0x7b2   : > { %v7900_v20 = vpop.f32.mrf.mxu1 }
 0x7b4   : > { %v3507_v26 = vpop.f32.mrf.mxu1 }
 0x7bb   : > { %v3208_v56 = vpop.permute.xlu0 %3207 }
 0x7bc   : > { %v3489_v48 = vadd.f32 %v3488_v8, %v3208_v56 }
 0x7be   : > { %v3745_v15 = vmul.f32 0.25, %v3489_v48 }
 0x7bf   : > { %v3212_v58 = vpop.permute.xlu1 %3211  ;;  %v3216_v57 = vpop.permute.xlu0 %3215 }
 0x7c0   : > { %v3492_v59 = vadd.f32 %v3491_v7, %v3212_v58  ;;  %v3497_v51 = vadd.f32 %v7895_v34, %v3216_v57  ;;  %v11054_v18 = vsel %vm3774_vm4, -1e+30, %v3745_v15 }
 0x7c1   : > { %v3831_v38 = vsel %vm1118_vm0, %v11054_v18, -inf }
 0x7c2   : > { %v3746_v44 = vmul.f32 0.25, %v3492_v59  ;;  %v3747_v2 = vmul.f32 0.25, %v3497_v51  ;;  %3832 = vmax.xlane.f32.xlu1 %v3831_v38 }
 0x7c3   : > { %v3220_v47 = vpop.permute.xlu1 %3219 }
 0x7c4   : > { %v3500_v29 = vadd.f32 %v7896_v13, %v3220_v47  ;;  %v11060_v12 = vsel %vm3774_vm4, -1e+30, %v3746_v44  ;;  %v11066_v46 = vsel %vm3774_vm4, -1e+30, %v3747_v2 }
 0x7c5   : > { %v3834_v3 = vsel %vm1118_vm0, %v11060_v12, -inf  ;;  %v3837_v41 = vsel %vm1118_vm0, %v11066_v46, -inf }
 0x7c6   : > { %v3748_v39 = vmul.f32 0.25, %v3500_v29  ;;  %3835 = vmax.xlane.f32.xlu0 %v3834_v3  ;;  %v7927_v11 = vpop.f32.mrf.mxu1 }
 0x7c7   : > { %v3224_v1 = vpop.permute.xlu0 %3223 }
 0x7c8   : > { %v3505_v42 = vadd.f32 %v3504_v25, %v3224_v1  ;;  %v11072_v16 = vsel %vm3774_vm4, -1e+30, %v3748_v39  ;;  %v3706_v63 = vpop.f32.mrf.mxu1 }
 0x7c9   : > { %v3840_v35 = vsel %vm1118_vm0, %v11072_v16, -inf }
 0x7ca   : > { %v3749_v30 = vmul.f32 0.25, %v3505_v42  ;;  %3838 = vmax.xlane.f32.xlu0 %v3837_v41  ;;  %v7928_v5 = vpop.f32.mrf.mxu1 }
 0x7cb   : > { %v3228_v33 = vpop.permute.xlu1 %3227  ;;  %v3232_v22 = vpop.permute.xlu0 %3231 }
 0x7cc   : > { %v3508_v31 = vadd.f32 %v3507_v26, %v3228_v33  ;;  %v3513_v52 = vadd.f32 %v7899_v61, %v3232_v22  ;;  %v11076_v4 = vsel %vm3774_vm4, -1e+30, %v3749_v30  ;;  %v3709_v21 = vpop.f32.mrf.mxu1 }
 0x7cd   : > { %v3843_v55 = vsel %vm1118_vm0, %v11076_v4, -inf }
 0x7ce   : > { %v3750_v60 = vmul.f32 0.25, %v3508_v31  ;;  %v3751_v40 = vmul.f32 0.25, %v3513_v52  ;;  %3844 = vmax.xlane.f32.xlu1 %v3843_v55  ;;  %3841 = vmax.xlane.f32.xlu0 %v3840_v35  ;;  %v7931_v7 = vpop.f32.mrf.mxu1 }
 0x7cf   : > { %v3236_v0 = vpop.permute.xlu1 %3235 }
 0x7d0   : > { %v3516_v43 = vadd.f32 %v7900_v20, %v3236_v0  ;;  %v11084_v17 = vsel %vm3774_vm4, -1e+30, %v3751_v40  ;;  %v11088_v32 = vsel %vm3774_vm4, -1e+30, %v3750_v60  ;;  %v3722_v61 = vpop.f32.mrf.mxu1 }
 0x7d1   : > { %v3849_v24 = vsel %vm1118_vm0, %v11084_v17, -inf  ;;  %v3846_v28 = vsel %vm1118_vm0, %v11088_v32, -inf }
 0x7d2   : > { %v3752_v36 = vmul.f32 0.25, %v3516_v43  ;;  %3850 = vmax.xlane.f32.xlu1 %v3849_v24  ;;  %3847 = vmax.xlane.f32.xlu0 %v3846_v28  ;;  %v7932_v59 = vpop.f32.mrf.mxu1 }
 0x7d4   : > { %v11096_v50 = vsel %vm3774_vm4, -1e+30, %v3752_v36  ;;  %v3725_v2 = vpop.f32.mrf.mxu1 }
 0x7d5   : > { %v3852_v23 = vsel %vm1118_vm0, %v11096_v50, -inf }
 0x7d6   : > { %3853 = vmax.xlane.f32.xlu0 %v3852_v23 }
 0x7fb   : > { %v3272_v6 = vpop.permute.xlu0 %3271 }
 0x7fc   : > { %v3707_v49 = vadd.f32 %v3706_v63, %v3272_v6 }
 0x7fe   : > { %v3761_v54 = vmul.f32 0.25, %v3707_v49 }
 0x7ff   : > { %v3276_v27 = vpop.permute.xlu1 %3275  ;;  %v3280_v56 = vpop.permute.xlu0 %3279 }
 0x800   : > { %v3710_v62 = vadd.f32 %v3709_v21, %v3276_v27  ;;  %v11102_v37 = vsel %vm3774_vm4, -1e+30, %v3761_v54  ;;  %v3715_v57 = vadd.f32 %v7927_v11, %v3280_v56  ;;  %v11151_v21 = vpop.f32.mrf.mxu0 }
 0x801   : > { %v3879_v8 = vsel %vm1118_vm0, %v11102_v37, -inf  ;;  %12984 = vst [vmem:[#allocation70_spill] sm:$0xff] %v11151_v21 }
 0x802   : > { %v3762_v34 = vmul.f32 0.25, %v3710_v62  ;;  %3880 = vmax.xlane.f32.xlu0 %v3879_v8  ;;  %v3763_v38 = vmul.f32 0.25, %v3715_v57  ;;  %v11154_v8 = vpop.f32.mrf.mxu0 }
 0x803   : > { %v3284_v15 = vpop.permute.xlu1 %3283  ;;  %v3288_v58 = vpop.permute.xlu0 %3287  ;;  %12985 = vst [vmem:[#allocation73_spill] sm:$0xff] %v11154_v8 }
 0x804   : > { %v11108_v13 = vsel %vm3774_vm4, -1e+30, %v3762_v34  ;;  %v3723_v51 = vadd.f32 %v3722_v61, %v3288_v58  ;;  %v3718_v44 = vadd.f32 %v7928_v5, %v3284_v15  ;;  %v11114_v39 = vsel %vm3774_vm4, -1e+30, %v3763_v38 }
 0x805   : > { %v3882_v48 = vsel %vm1118_vm0, %v11108_v13, -inf  ;;  %v3885_v1 = vsel %vm1118_vm0, %v11114_v39, -inf }
 0x806   : > { %3883 = vmax.xlane.f32.xlu0 %v3882_v48  ;;  %v3765_v47 = vmul.f32 0.25, %v3723_v51  ;;  %v3764_v3 = vmul.f32 0.25, %v3718_v44  ;;  %v12994_v44 = vld [vmem:[#allocation67_spill] sm:$0xff] }
 0x807   : > { %v3292_v25 = vpop.permute.xlu1 %3291  ;;  %v3296_v20 = vpop.permute.xlu0 %3295 }
 0x808   : > { %v3726_v29 = vadd.f32 %v3725_v2, %v3292_v25  ;;  %v3731_v26 = vadd.f32 %v7931_v7, %v3296_v20  ;;  %v11120_v30 = vsel %vm3774_vm4, -1e+30, %v3765_v47  ;;  %v11126_v22 = vsel %vm3774_vm4, -1e+30, %v3764_v3  ;;  %v11160_v7 = vpop.f32.mrf.mxu0  ;;  %v12998_v3 = vld [vmem:[#allocation69_spill] sm:$0xff] }
 0x809   : > { %v3891_v41 = vsel %vm1118_vm0, %v11120_v30, -inf  ;;  %v3888_v31 = vsel %vm1118_vm0, %v11126_v22, -inf  ;;  %12986 = vst [vmem:[#allocation72_spill] sm:$0xff] %v11160_v7 }
 0x80a   : > { %v3766_v42 = vmul.f32 0.25, %v3726_v29  ;;  %3886 = vmax.xlane.f32.xlu0 %v3885_v1  ;;  %3892 = vmax.xlane.f32.xlu1 %v3891_v41  ;;  %v3767_v52 = vmul.f32 0.25, %v3731_v26  ;;  %v11166_v48 = vpop.f32.mrf.mxu0 }
 0x80b   : > { %v3300_v33 = vpop.permute.xlu1 %3299  ;;  %12987 = vst [vmem:[#allocation54_spill] sm:$0xff] %v11166_v48 }
 0x80c   : > { %v3734_v55 = vadd.f32 %v7932_v59, %v3300_v33  ;;  %v11132_v60 = vsel %vm3774_vm4, -1e+30, %v3766_v42  ;;  %v11138_v0 = vsel %vm3774_vm4, -1e+30, %v3767_v52  ;;  %v11172_v15 = vpop.f32.mrf.mxu0 }
 0x80d   : > { %v3894_v40 = vsel %vm1118_vm0, %v11132_v60, -inf  ;;  %12982 = vst [vmem:[#allocation68_spill] sm:$0xff] %v11138_v0  ;;  %v3897_v43 = vsel %vm1118_vm0, %v11138_v0, -inf  ;;  %12988 = vst [vmem:[#allocation53_spill] sm:$0xff] %v11172_v15 }
 0x80e   : > { %3889 = vmax.xlane.f32.xlu0 %v3888_v31  ;;  %v3768_v35 = vmul.f32 0.25, %v3734_v55  ;;  %v11178_v59 = vpop.f32.mrf.mxu0 }
 0x80f   : > { %12989 = vst [vmem:[#allocation56_spill] sm:$0xff] %v11178_v59 }
 0x810   : > { %v11144_v24 = vsel %vm3774_vm4, -1e+30, %v3768_v35  ;;  %v11180_v51 = vpop.f32.mrf.mxu0 }
 0x811   : > { %12983 = vst [vmem:[#allocation71_spill] sm:$0xff] %v11144_v24  ;;  %v3900_v28 = vsel %vm1118_vm0, %v11144_v24, -inf  ;;  %12990 = vst [vmem:[#allocation55_spill] sm:$0xff] %v11180_v51 }
 0x812   : > { %3895 = vmax.xlane.f32.xlu0 %v3894_v40  ;;  %v11182_v25 = vpop.f32.mrf.mxu0 }
 0x813   : > { %12991 = vst [vmem:[#allocation58_spill] sm:$0xff] %v11182_v25 }
 0x814   : > { %v11184_v38 = vpop.f32.mrf.mxu0 }
 0x815   : > { %12992 = vst [vmem:[#allocation57_spill] sm:$0xff] %v11184_v38 }
 0x816   : > { %3898 = vmax.xlane.f32.xlu0 %v3897_v43  ;;  %v11188_v2 = vpop.f32.mrf.mxu0 }
 0x817   : > { %12995 = vst [vmem:[#allocation60_spill] sm:$0xff] %v11188_v2 }
 0x818   : > { %v11190_v47 = vpop.f32.mrf.mxu0 }
 0x819   : > { %12996 = vst [vmem:[#allocation59_spill] sm:$0xff] %v11190_v47 }
 0x81a   : > { %3901 = vmax.xlane.f32.xlu0 %v3900_v28  ;;  %v11192_v20 = vpop.f32.mrf.mxu0 }
 0x81b   : > { %12997 = vst [vmem:[#allocation67_spill] sm:$0xff] %v11192_v20 }
 0x81c   : > { %v11199_v26 = vpop.f32.mrf.mxu0 }
 0x81d   : > { %12999 = vst [vmem:[#allocation69_spill] sm:$0xff] %v11199_v26 }
 0x81e   : > { %v11203_v31 = vpop.f32.mrf.mxu0 }
 0x81f   : > { %13000 = vst [vmem:[#allocation74_spill] sm:$0xff] %v11203_v31 }
 0x820   : > { %v11206_v55 = vpop.f32.mrf.mxu0 }
 0x821   : > { %13001 = vst [vmem:[#allocation75_spill] sm:$0xff] %v11206_v55 }
 0x822   : > { %v11208_v35 = vpop.f32.mrf.mxu0 }
 0x823   : > { %13002 = vst [vmem:[#allocation76_spill] sm:$0xff] %v11208_v35 }
 0x824   : > { %v8047_v43 = vpop.f32.mrf.mxu0 }
 0x826   : > { %v5111_v28 = vpop.f32.mrf.mxu0 }
 0x84b   : > { %v3833_v36 = vpop.xlane.xlu1 %3832 }
 0x84c   : > { %v3911_v23 = vsub.f32 %v11054_v18, %v3833_v36 }
 0x84e   : > { %v3951_v11 = vmul.f32 1.442695, %v3911_v23  ;;  %v11214_v23 = vld [vmem:[#allocation28] ss:$0 sm:$0xff] }
 0x84f   : > { %v3836_v63 = vpop.xlane.xlu0 %3835 }
 0x850   : > { %8573 = vpow2.f32 %v3951_v11  ;;  %v3912_v6 = vsub.f32 %v11060_v12, %v3836_v63  ;;  %v8048_v11 = vpop.f32.mrf.mxu0  ;;  %v11217_v63 = vadd.f32 %v8047_v43, %v11214_v23 }
 0x852   : > { %v3953_v5 = vmul.f32 1.442695, %v3912_v6  ;;  %v5114_v6 = vpop.f32.mrf.mxu0 }
 0x853   : > { %v3839_v49 = vpop.xlane.xlu0 %3838 }
 0x854   : > { %8575 = vpow2.f32 %v3953_v5  ;;  %v3913_v27 = vsub.f32 %v11066_v46, %v3839_v49  ;;  %v11222_v5 = vmul.f32 0.70710677, %v11217_v63  ;;  %v11225_v49 = vadd.f32 %v11214_v23, %v5111_v28 }
 0x856   : > { %v3955_v14 = vmul.f32 1.442695, %v3913_v27  ;;  %vm5160_vm5 = vcmp.ge.f32.partialorder %v11222_v5, 0.0 }
 0x857   : > { %v3842_v54 = vpop.xlane.xlu0 %3841  ;;  %v3845_v29 = vpop.xlane.xlu1 %3844 }
 0x858   : > { %8577 = vpow2.f32 %v3955_v14  ;;  %v3914_v62 = vsub.f32 %v11072_v16, %v3842_v54  ;;  %v3915_v42 = vsub.f32 %v11076_v4, %v3845_v29  ;;  %v8051_v14 = vpop.f32.mrf.mxu0  ;;  %v11230_v54 = vand.u32 2147483647, %v11222_v5 }
 0x85a   : > { %v3957_v34 = vmul.f32 1.442695, %v3914_v62  ;;  %v3959_v41 = vmul.f32 1.442695, %v3915_v42  ;;  %v11233_v62 = vmul.f32 0.70710677, %v11225_v49 }
 0x85b   : > { %v11196_v1 = vpop.xlane.xlu0 %3847  ;;  %v13004_v42 = vld [vmem:[#allocation65_spill] sm:$0xff]  ;;  %v5288_v15 = vsub.f32 0.0, %v11230_v54 }
 0x85c   : > { %8579 = vpow2.f32 %v3957_v34  ;;  %v11236_v34 = vadd.f32 %v8051_v14, %v11214_v23  ;;  %v3851_v14 = vpop.xlane.xlu1 %3850  ;;  %vm5158_vm6 = vcmp.ge.f32.partialorder %v11233_v62, 0.0 }
 0x85d   : > { %v11156_v18 = vpop.eup %8573  ;;  %8581 = vpow2.f32 %v3959_v41  ;;  %v5296_v21 = vmul.f32 %v5288_v15, %v11230_v54 }
 0x85e   : > { %v4023_v12 = vsel %vm1118_vm0, %v11156_v18, 0.0 }
 0x85f   : > { %4024 = vadd.xlane.f32.xlu1 %v4023_v12  ;;  %v3854_v33 = vpop.xlane.xlu0 %3853  ;;  %v5127_v12 = vpop.f32.mrf.mxu0 }
 0x860   : > { %v3918_v52 = vsub.f32 %v11096_v50, %v3854_v33  ;;  %v11246_v29 = vadd.f32 %v11214_v23, %v5127_v12 }
 0x861   : > { %v11162_v46 = vpop.eup %8575 }
 0x862   : > { %v4026_v56 = vsel %vm1118_vm0, %v11162_v46, 0.0  ;;  %v3965_v40 = vmul.f32 1.442695, %v3918_v52 }
 0x863   : > { %4027 = vadd.xlane.f32.xlu0 %v4026_v56  ;;  %v5184_v56 = vmul.f32 0.3275911, %v11230_v54 }
 0x864   : > { %8583 = vpow2.f32 %v3965_v40  ;;  %v11255_v40 = vmul.f32 0.70710677, %v11246_v29 }
 0x865   : > { %v11168_v16 = vpop.eup %8577  ;;  %v5192_v41 = vadd.f32 1.0, %v5184_v56  ;;  %v3917_v56 = vsub.f32 %v11084_v17, %v3851_v14  ;;  %v11274_v17 = vadd.f32 %v8048_v11, %v11214_v23  ;;  %v3916_v14 = vsub.f32 %v11088_v32, %v11196_v1 }
 0x866   : > { %v4029_v61 = vsel %vm1118_vm0, %v11168_v16, 0.0  ;;  %vm5162_vm8 = vcmp.ge.f32.partialorder %v11255_v40, 0.0 }
 0x867   : > { %4030 = vadd.xlane.f32.xlu1 %v4029_v61  ;;  %v11240_v61 = vand.u32 2147483647, %v11233_v62  ;;  %8585 = vrcp.f32 %v5192_v41  ;;  %v3963_v41 = vmul.f32 1.442695, %v3917_v56  ;;  %v11285_v56 = vadd.f32 %v11214_v23, %v5114_v6 }
 0x868   : > { %v3961_v11 = vmul.f32 1.442695, %v3916_v14 }
 0x869   : > { %v11174_v58 = vpop.eup %8579  ;;  %v5182_v33 = vmul.f32 0.3275911, %v11240_v61  ;;  %v11295_v32 = vmul.f32 0.70710677, %v11285_v56 }
 0x86a   : > { %v4032_v57 = vsel %vm1118_vm0, %v11174_v58, 0.0  ;;  %v11210_v4 = vpop.eup %8581 }
 0x86b   : > { %4033 = vadd.xlane.f32.xlu0 %v4032_v57  ;;  %v4035_v36 = vsel %vm1118_vm0, %v11210_v4, 0.0  ;;  %v11243_v57 = vmul.f32 0.70710677, %v11236_v34  ;;  %v5190_v43 = vadd.f32 1.0, %v5182_v33  ;;  %vm5159_vm10 = vcmp.ge.f32.partialorder %v11295_v32, 0.0 }
 0x86d   : > { %v11252_v52 = vand.u32 2147483647, %v11243_v57  ;;  %8587 = vrcp.f32 %v5190_v43  ;;  %vm5164_vm7 = vcmp.ge.f32.partialorder %v11243_v57, 0.0  ;;  %v5142_v57 = vmul.f32 0.5, %v11225_v49 }
 0x871   : > { %v11219_v50 = vpop.eup %8583 }
 0x872   : > { %13003 = vst [vmem:[#allocation77_spill] sm:$0xff] %v11219_v50  ;;  %v4044_v27 = vsel %vm1118_vm0, %v11219_v50, 0.0 }
 0x874   : > { %v11271_v26 = vpop.eup %8585 }
 0x875   : > { %v5216_v43 = vmul.f32 1.0614054, %v11271_v26 }
 0x877   : > { %v5224_v20 = vadd.f32 -1.4531521, %v5216_v43 }
 0x878   : > { %1882 = vrot.lane.b32.xlu1 %v12994_v44, %s12993_s9 }
 0x879   : > { %v5232_v1 = vmul.f32 %v11271_v26, %v5224_v20  ;;  %v11310_v20 = vand.u32 2147483647, %v11295_v32 }
 0x881   : > { %1884 = vrot.lane.b32.xlu0 %v12998_v3, %s12993_s9 }
 0x885   : > { %1880 = vrot.lane.b32.xlu0 %v10156_v9, %s12993_s9 }
 0x88b   : > { %v11257_v28 = vpop.xlane.xlu0 %3880 }
 0x88f   : > { %v3884_v55 = vpop.xlane.xlu0 %3883 }
 0x893   : > { %v11269_v31 = vpop.xlane.xlu0 %3886 }
 0x89c   : > { %4036 = vadd.xlane.f32.xlu1 %v4035_v36  ;;  %v5188_v36 = vmul.f32 0.3275911, %v11252_v52 }
 0x89e   : > { %v5196_v12 = vadd.f32 1.0, %v5188_v36  ;;  %v11277_v36 = vpop.eup %8587 }
 0x8a0   : > { %8589 = vrcp.f32 %v5196_v12  ;;  %v11282_v12 = vmul.f32 0.70710677, %v11274_v17 }
 0x8a1   : > { %8591 = vpow2.f32 %v3963_v41  ;;  %v5214_v41 = vmul.f32 1.0614054, %v11277_v36 }
 0x8a2   : > { %v11292_v38 = vand.u32 2147483647, %v11282_v12  ;;  %vm5161_vm9 = vcmp.ge.f32.partialorder %v11282_v12, 0.0 }
 0x8a3   : > { %v5222_v25 = vadd.f32 -1.4531521, %v5214_v41  ;;  %v5240_v41 = vadd.f32 1.4214138, %v5232_v1  ;;  %v5286_v1 = vsub.f32 0.0, %v11240_v61 }
 0x8a4   : > { %4045 = vadd.xlane.f32.xlu0 %v4044_v27  ;;  %v11261_v27 = vand.u32 2147483647, %v11255_v40  ;;  %v5185_v48 = vmul.f32 0.3275911, %v11292_v38  ;;  %v5289_v62 = vsub.f32 0.0, %v11292_v38 }
 0x8a5   : > { %v5294_v15 = vmul.f32 %v5286_v1, %v11240_v61 }
 0x8a6   : > { %v5186_v35 = vmul.f32 0.3275911, %v11261_v27 }
 0x8a8   : > { %v5194_v33 = vadd.f32 1.0, %v5186_v35  ;;  %v3890_v35 = vpop.xlane.xlu0 %3889 }
 0x8a9   : > { %v3930_v47 = vsub.f32 %v11126_v22, %v3890_v35  ;;  %v3928_v22 = vsub.f32 %v11108_v13, %v3884_v55 }
 0x8aa   : > { %8593 = vrcp.f32 %v5194_v33  ;;  %v8052_v33 = vpop.f32.mrf.mxu0 }
 0x8ab   : > { %v11299_v6 = vadd.f32 %v8052_v33, %v11214_v23  ;;  %8595 = vpow2.f32 %v3961_v11  ;;  %v3989_v14 = vmul.f32 1.442695, %v3930_v47  ;;  %v5230_v33 = vmul.f32 %v11277_v36, %v5222_v25 }
 0x8ac   : > { %v5130_v51 = vpop.f32.mrf.mxu0  ;;  %v3985_v55 = vmul.f32 1.442695, %v3928_v22  ;;  %v5193_v25 = vadd.f32 1.0, %v5185_v48  ;;  %v5292_v48 = vsub.f32 0.0, %v11252_v52 }
 0x8ad   : > { %1878 = vrot.lane.b32.xlu1 %v13004_v42, %s12993_s9  ;;  %v11289_v2 = vpop.eup %8589  ;;  %v11314_v7 = vmul.f32 0.70710677, %v11299_v6  ;;  %v11317_v13 = vadd.f32 %v11214_v23, %v5130_v51  ;;  %8597 = vpow2.f32 %v3989_v14  ;;  %v5248_v23 = vmul.f32 %v11271_v26, %v5240_v41 }
 0x8ae   : > { %v5220_v43 = vmul.f32 1.0614054, %v11289_v2  ;;  %v11303_v35 = vpop.eup %8591  ;;  %8599 = vpow2.f32 %v3985_v55  ;;  %v5300_v61 = vmul.f32 %v5292_v48, %v11252_v52 }
 0x8af   : > { %v4041_v11 = vsel %vm1118_vm0, %v11303_v35, 0.0  ;;  %v11329_v51 = vmul.f32 0.70710677, %v11317_v13  ;;  %8601 = vrcp.f32 %v5193_v25  ;;  %v5256_v0 = vadd.f32 -0.28449672, %v5248_v23 }
 0x8b0   : > { %v5228_v47 = vadd.f32 -1.4531521, %v5220_v43  ;;  %v5238_v43 = vadd.f32 1.4214138, %v5230_v33  ;;  %v5314_v52 = vmul.f32 1.442695, %v5300_v61 }
 0x8b1   : > { %v11337_v9 = vand.u32 2147483647, %v11329_v51  ;;  %v5264_v1 = vmul.f32 %v11271_v26, %v5256_v0  ;;  %vm5165_vm11 = vcmp.ge.f32.partialorder %v11314_v7, 0.0  ;;  %vm5163_vm12 = vcmp.ge.f32.partialorder %v11329_v51, 0.0 }
 0x8b2   : > { %v5236_v22 = vmul.f32 %v11289_v2, %v5228_v47  ;;  %v5246_v41 = vmul.f32 %v11277_v36, %v5238_v43  ;;  %v11348_v43 = vpop.xlane.xlu0 %3895 }
 0x8b3   : > { %v5187_v55 = vmul.f32 0.3275911, %v11337_v9  ;;  %v5272_v48 = vadd.f32 0.2548296, %v5264_v1 }
 0x8b4   : > { %v5244_v33 = vadd.f32 1.4214138, %v5236_v22  ;;  %v5254_v25 = vadd.f32 -0.28449672, %v5246_v41 }
 0x8b5   : > { %v5280_v61 = vmul.f32 %v11271_v26, %v5272_v48 }
 0x8b6   : > { %v5252_v23 = vmul.f32 %v11289_v2, %v5244_v33  ;;  %v5262_v0 = vmul.f32 %v11277_v36, %v5254_v25 }
 0x8b7   : > { %v11305_v59 = vpop.eup %8593 }
 0x8b8   : > { %v5218_v8 = vmul.f32 1.0614054, %v11305_v59  ;;  %v11340_v42 = vpop.eup %8595 }
 0x8b9   : > { %v4038_v22 = vsel %vm1118_vm0, %v11340_v42, 0.0 }
 0x8ba   : > { %1876 = vrot.lane.b32.xlu0 %v10123_v10, %s12993_s9  ;;  %v5183_v10 = vmul.f32 0.3275911, %v11310_v20  ;;  %v5226_v14 = vadd.f32 -1.4531521, %v5218_v8 }
 0x8bc   : > { %v5191_v54 = vadd.f32 1.0, %v5183_v10  ;;  %v5234_v8 = vmul.f32 %v11305_v59, %v5226_v14  ;;  %v5290_v10 = vsub.f32 0.0, %v11261_v27  ;;  %v11352_v14 = vpop.eup %8597 }
 0x8bd   : > { %v4080_v41 = vsel %vm1118_vm0, %v11352_v14, 0.0  ;;  %v11358_v33 = vpop.eup %8599 }
 0x8be   : > { %1872 = vrot.lane.b32.xlu0 %v10087_v53, %s12993_s9  ;;  %v11326_v53 = vand.u32 2147483647, %v11314_v7  ;;  %v4074_v1 = vsel %vm1118_vm0, %v11358_v33, 0.0 }
 0x8c0   : > { %v5189_v24 = vmul.f32 0.3275911, %v11326_v53 }
 0x8c2   : > { %v5197_v47 = vadd.f32 1.0, %v5189_v24  ;;  %v5298_v24 = vmul.f32 %v5290_v10, %v11261_v27  ;;  %v5270_v10 = vadd.f32 0.2548296, %v5262_v0 }
 0x8c4   : > { %v5310_v27 = vmul.f32 1.442695, %v5298_v24 }
 0x8d1   : > { %4042 = vadd.xlane.f32.xlu1 %v4041_v11  ;;  %v5306_v11 = vmul.f32 1.442695, %v5296_v21  ;;  %v5302_v21 = vmul.f32 1.442695, %v5294_v15  ;;  %v5195_v15 = vadd.f32 1.0, %v5187_v55  ;;  %v11369_v55 = vpop.xlane.xlu1 %3892 }
 0x8d3   : > { %8603 = vpow2.f32 %v5306_v11  ;;  %v5242_v11 = vadd.f32 1.4214138, %v5234_v8  ;;  %v11361_v8 = vpop.xlane.xlu0 %3898 }
 0x8d4   : > { %8605 = vrcp.f32 %v5191_v54  ;;  %v5260_v54 = vadd.f32 -0.28449672, %v5252_v23 }
 0x8d5   : > { %8607 = vpow2.f32 %v5302_v21  ;;  %v5250_v50 = vmul.f32 %v11305_v59, %v5242_v11  ;;  %v11365_v21 = vpop.eup %8601 }
 0x8d6   : > { %8609 = vrcp.f32 %v5197_v47  ;;  %v5268_v47 = vmul.f32 %v11289_v2, %v5260_v54 }
 0x8d7   : > { %8611 = vpow2.f32 %v5314_v52  ;;  %v5258_v25 = vadd.f32 -0.28449672, %v5250_v50  ;;  %v5278_v52 = vmul.f32 %v11277_v36, %v5270_v10 }
 0x8d8   : > { %8613 = vrcp.f32 %v5195_v15  ;;  %v5276_v24 = vadd.f32 0.2548296, %v5268_v47  ;;  %v11379_v15 = vpop.xlane.xlu0 %3901  ;;  %v12831_v47 = vmov -1.0  }
 0x8d9   : > { %8615 = vpow2.f32 %v5310_v27  ;;  %13005 = vst [vmem:[#allocation78_spill] sm:$0xff] %v11379_v15  ;;  %v5266_v0 = vmul.f32 %v11305_v59, %v5258_v25 }
 0x8db   : > { %v5274_v10 = vadd.f32 0.2548296, %v5266_v0  ;;  %v3929_v0 = vsub.f32 %v11114_v39, %v11269_v31  ;;  %v3927_v31 = vsub.f32 %v11102_v37, %v11257_v28 }
 0x8dd   : > { %4039 = vadd.xlane.f32.xlu0 %v4038_v22  ;;  %v5217_v22 = vmul.f32 1.0614054, %v11365_v21 }
 0x8df   : > { %v5225_v54 = vadd.f32 -1.4531521, %v5217_v22 }
 0x8e0   : > { %v8604_v23 = vpop.eup %8603 }
 0x8e1   : > { %4081 = vadd.xlane.f32.xlu0 %v4080_v41  ;;  %v11376_v11 = vpop.eup %8605  ;;  %v5320_v26 = vmul.f32 %v8604_v23, %v5280_v61  ;;  %v5284_v61 = vmul.f32 %v11289_v2, %v5276_v24  ;;  %v5168_v23 = vsel %vm5160_vm5, 1.0, %v12831_v47  ;;  %v5233_v5 = vmul.f32 %v11365_v21, %v5225_v54 }
 0x8e2   : > { %1874 = vrot.lane.b32.xlu1 %v10103_v45, %s12993_s9  ;;  %v8608_v50 = vpop.eup %8607  ;;  %v5215_v41 = vmul.f32 1.0614054, %v11376_v11  ;;  %v5282_v24 = vmul.f32 %v11305_v59, %v5274_v10 }
 0x8e3   : > { %v5328_v27 = vsub.f32 1.0, %v5320_v26  ;;  %v5241_v54 = vadd.f32 1.4214138, %v5233_v5  ;;  %v5144_v5 = vmul.f32 0.5, %v11217_v63 }
 0x8e4   : > { %v5223_v22 = vadd.f32 -1.4531521, %v5215_v41 }
 0x8e5   : > { %4075 = vadd.xlane.f32.xlu0 %v4074_v1  ;;  %v11384_v1 = vpop.eup %8609  ;;  %v5336_v26 = vmul.f32 %v5328_v27, %v5168_v23 }
 0x8e6   : > { %1870 = vrot.lane.b32.xlu1 %v10075_v19, %s12993_s9  ;;  %v5318_v19 = vmul.f32 %v8608_v50, %v5278_v52  ;;  %v8612_v25 = vpop.eup %8611  ;;  %v5231_v41 = vmul.f32 %v11376_v11, %v5223_v22  ;;  %v5297_v22 = vmul.f32 %v5289_v62, %v11292_v38 }
 0x8e7   : > { %v11391_v15 = vpop.eup %8613  ;;  %v5324_v50 = vmul.f32 %v8612_v25, %v5284_v61 }
 0x8e8   : > { %v4025_v48 = vpop.xlane.xlu1 %4024  ;;  %v5326_v52 = vsub.f32 1.0, %v5318_v19  ;;  %v8616_v27 = vpop.eup %8615  ;;  %v5344_v19 = vadd.f32 1.0, %v5336_v26  ;;  %v5219_v59 = vmul.f32 1.0614054, %v11391_v15  ;;  %v5249_v26 = vmul.f32 %v11365_v21, %v5241_v54 }
 0x8e9   : > { %8617 = vrcp.f32 %v4025_v48  ;;  %v5221_v48 = vmul.f32 1.0614054, %v11384_v1  ;;  %v5332_v23 = vsub.f32 1.0, %v5324_v50  ;;  %v5322_v39 = vmul.f32 %v8616_v27, %v5282_v24 }
 0x8ea   : > { %v13006_v50 = vmov -1.0   ;;  %v11412_v28 = vmul.f32 %v5344_v19, %v5144_v5  ;;  %v5227_v63 = vadd.f32 -1.4531521, %v5219_v59  ;;  %v3983_v27 = vmul.f32 1.442695, %v3927_v31 }
 0x8eb   : > { %v5229_v45 = vadd.f32 -1.4531521, %v5221_v48  ;;  %v5287_v48 = vsub.f32 0.0, %v11310_v20  ;;  %v5330_v62 = vsub.f32 1.0, %v5322_v39  ;;  %v5170_v19 = vsel %vm5162_vm8, 1.0, %v13006_v50 }
 0x8ec   : > { %v4028_v36 = vpop.xlane.xlu0 %4027  ;;  %13007 = vst [vmem:[#allocation79_spill] sm:$0xff] %v11412_v28  ;;  %v5171_v7 = vsel %vm5163_vm12, 1.0, %v13006_v50 }
 0x8ed   : > { %8619 = vrcp.f32 %v4028_v36  ;;  %v5166_v36 = vsel %vm5158_vm6, 1.0, %v12831_v47  ;;  %v3987_v47 = vmul.f32 1.442695, %v3929_v0  ;;  %v5237_v0 = vmul.f32 %v11384_v1, %v5229_v45 }
 0x8ee   : > { %v5334_v61 = vmul.f32 %v5326_v52, %v5166_v36  ;;  %v5239_v52 = vadd.f32 1.4214138, %v5231_v41  ;;  %v5308_v41 = vmul.f32 1.442695, %v5297_v22  ;;  %v5293_v45 = vsub.f32 0.0, %v11326_v53 }
 0x8ef   : > { %v5338_v31 = vmul.f32 %v5330_v62, %v5170_v19 }
 0x8f0   : > { %v4031_v2 = vpop.xlane.xlu1 %4030  ;;  %v5342_v24 = vadd.f32 1.0, %v5334_v61  ;;  %v5257_v61 = vadd.f32 -0.28449672, %v5249_v26  ;;  %v5247_v49 = vmul.f32 %v11376_v11, %v5239_v52 }
 0x8f1   : > { %8621 = vrcp.f32 %v4031_v2  ;;  %v5172_v2 = vsel %vm5164_vm7, 1.0, %v13006_v50 }
 0x8f2   : > { %v5340_v38 = vmul.f32 %v5332_v23, %v5172_v2  ;;  %v11426_v59 = vmul.f32 %v5342_v24, %v5142_v57  ;;  %v5265_v52 = vmul.f32 %v11365_v21, %v5257_v61  ;;  %v5255_v2 = vadd.f32 -0.28449672, %v5247_v49 }
 0x8f4   : > { %v1883_v10 = vpop.permute.xlu1 %1882  ;;  %v4034_v25 = vpop.xlane.xlu0 %4033  ;;  %13009 = vst [vmem:[#allocation80_spill] sm:$0xff] %v11426_v59  ;;  %v5348_v40 = vadd.f32 1.0, %v5340_v38  ;;  %v5273_v57 = vadd.f32 0.2548296, %v5265_v52 }
 0x8f5   : > { %1901 = vst.msk [vmem:[#allocation4 + $0x38] sm:$0xf] %vm1667_vm2, %v1883_v10  ;;  %8623 = vrcp.f32 %v4034_v25  ;;  %v5295_v10 = vmul.f32 %v5287_v48, %v11310_v20  ;;  %v5245_v25 = vadd.f32 1.4214138, %v5237_v0  ;;  %v5235_v20 = vmul.f32 %v11391_v15, %v5227_v63 }
 0x8f6   : > { %v8618_v37 = vpop.eup %8617  ;;  %8625 = vpow2.f32 %v3987_v47  ;;  %v5291_v48 = vsub.f32 0.0, %v11337_v9  ;;  %v5346_v0 = vadd.f32 1.0, %v5338_v31  ;;  %v5281_v61 = vmul.f32 %v11365_v21, %v5273_v57 }
 0x8f7   : > { %v4135_v47 = vmul.f32 %v8618_v37, %v11156_v18  ;;  %8627 = vpow2.f32 %v3983_v27  ;;  %v5304_v22 = vmul.f32 1.442695, %v5295_v10  ;;  %v5148_v18 = vmul.f32 0.5, %v11236_v34 }
 0x8f8   : > { %v1885_v36 = vpop.permute.xlu0 %1884  ;;  %8629 = vpow2.f32 %v5308_v41  ;;  %v5253_v63 = vmul.f32 %v11384_v1, %v5245_v25  ;;  %v5243_v34 = vadd.f32 1.4214138, %v5235_v20  ;;  %v5299_v62 = vmul.f32 %v5291_v48, %v11337_v9 }
 0x8f9   : > { %1902 = vst.msk [vmem:[#allocation4 + $0x3c] sm:$0xf] %vm1667_vm2, %v1885_v36  ;;  %v11438_v24 = vmul.f32 %v5348_v40, %v5148_v18  ;;  %8631 = vpow2.f32 %v5304_v22  ;;  %v5263_v41 = vmul.f32 %v11376_v11, %v5255_v2 }
 0x8fa   : > { %v8620_v54 = vpop.eup %8619  ;;  %v5251_v19 = vmul.f32 %v11391_v15, %v5243_v34 }
 0x8fb   : > { %5372 = vrot.lane.b32.xlu0 %v11412_v28, %s13008_s11  ;;  %v4136_v23 = vmul.f32 %v8620_v54, %v11162_v46  ;;  %v5301_v46 = vmul.f32 %v5293_v45, %v11326_v53  ;;  %13010 = vst [vmem:[#allocation81_spill] sm:$0xff] %v11438_v24  ;;  %v5146_v53 = vmul.f32 0.5, %v11246_v29  ;;  %v5261_v29 = vadd.f32 -0.28449672, %v5253_v63 }
 0x8fc   : > { %v1881_v39 = vpop.permute.xlu0 %1880  ;;  %v5271_v45 = vadd.f32 0.2548296, %v5263_v41 }
 0x8fd   : > { %1900 = vst.msk [vmem:[#allocation4 + $0x34] sm:$0xf] %vm1667_vm2, %v1881_v39  ;;  %v4163_v5 = vpack.c.bf16 %v4136_v23, %v4135_v47  ;;  %v5316_v38 = vmul.f32 1.442695, %v5301_v46  ;;  %v11452_v10 = vmul.f32 %v5346_v0, %v5146_v53  ;;  %v5269_v47 = vmul.f32 %v11384_v1, %v5261_v29 }
 0x8fe   : > { %v8622_v26 = vpop.eup %8621  ;;  %v5259_v23 = vadd.f32 -0.28449672, %v5251_v19  ;;  %v5279_v40 = vmul.f32 %v11376_v11, %v5271_v45  ;;  %v5169_v11 = vsel %vm5161_vm9, 1.0, %v13006_v50  ;;  %v5167_v53 = vsel %vm5159_vm10, 1.0, %v13006_v50 }
 0x8ff   : > { %5368 = vrot.lane.b32.xlu0 %v11426_v59, %s13008_s11  ;;  %7957 = vmatprep.mubr.msk.bf16.mxu1 %vm1118_vm0, %v4163_v5  ;;  %v11444_v27 = vmul.f32 %v8622_v26, %v11168_v16  ;;  %13011 = vst [vmem:[#allocation82_spill] sm:$0xff] %v11452_v10  ;;  %8633 = vpow2.f32 %v5316_v38  ;;  %v5277_v31 = vadd.f32 0.2548296, %v5269_v47  ;;  %v5143_v29 = vmul.f32 0.5, %v11285_v56 }
 0x900   : > { %v8471_v37 = vld [vmem:[#allocation4 + $0x38] sm:$0xff]   ;;  %v5267_v21 = vmul.f32 %v11391_v15, %v5259_v23  ;;  %v5147_v56 = vmul.f32 0.5, %v11317_v13 }
 0x901   : > { %7949 = vmatprep.subr.bf16.mxu1 %v8471_v37  ;;  %v5285_v48 = vmul.f32 %v11384_v1, %v5277_v31  ;;  %v3931_v31 = vsub.f32 %v11120_v30, %v11369_v55 }
 0x902   : > { %v8624_v36 = vpop.eup %8623  ;;  %7950 = vmatpush3.bf16.msra.mxu1 %v8471_v37  ;;  %v5275_v26 = vadd.f32 0.2548296, %v5267_v21 }
 0x903   : > { %v11447_v54 = vmul.f32 %v8624_v36, %v11174_v58  ;;  %5380 = vrot.lane.b32.xlu0 %v11438_v24, %s13008_s11  ;;  %v11457_v16 = vpop.eup %8625  ;;  %v5312_v58 = vmul.f32 1.442695, %v5299_v62  ;;  %v5173_v62 = vsel %vm5165_vm11, 1.0, %v13006_v50  ;;  %v3991_v21 = vmul.f32 1.442695, %v3931_v31 }
 0x904   : > { %v4077_v49 = vsel %vm1118_vm0, %v11457_v16, 0.0  ;;  %v11465_v25 = vpop.eup %8627  ;;  %v5283_v63 = vmul.f32 %v11391_v15, %v5275_v26 }
 0x905   : > { %v4164_v9 = vpack.c.bf16 %v11447_v54, %v11444_v27  ;;  %v8630_v20 = vpop.eup %8629  ;;  %8635 = vpow2.f32 %v5312_v58  ;;  %v4071_v5 = vsel %vm1118_vm0, %v11465_v25, 0.0 }
 0x906   : > { %v5321_v39 = vmul.f32 %v8630_v20, %v5281_v61  ;;  %v8632_v22 = vpop.eup %8631  ;;  %v5149_v61 = vmul.f32 0.5, %v11299_v6 }
 0x907   : > { %5376 = vrot.lane.b32.xlu0 %v11452_v10, %s13008_s11  ;;  %v5319_v46 = vmul.f32 %v8632_v22, %v5279_v40 }
 0x908   : > { %v5329_v18 = vsub.f32 1.0, %v5321_v39 }
 0x909   : > { %v5327_v37 = vsub.f32 1.0, %v5319_v46 }
 0x90a   : > { %4078 = vadd.xlane.f32.xlu1 %v4077_v49  ;;  %v5337_v2 = vmul.f32 %v5329_v18, %v5169_v11 }
 0x90b   : > { %2212 = vrot.lane.b32.xlu0 %v12998_v3, %s9284_s12  ;;  %v3932_v3 = vsub.f32 %v11132_v60, %v11348_v43  ;;  %v5335_v1 = vmul.f32 %v5327_v37, %v5167_v53  ;;  %v5145_v43 = vmul.f32 0.5, %v11274_v17 }
 0x90c   : > { %v8634_v52 = vpop.eup %8633  ;;  %v5345_v36 = vadd.f32 1.0, %v5337_v2 }
 0x90d   : > { %v5325_v0 = vmul.f32 %v8634_v52, %v5285_v48  ;;  %v3993_v34 = vmul.f32 1.442695, %v3932_v3  ;;  %v5343_v15 = vadd.f32 1.0, %v5335_v1  ;;  %v13016_v1 = vld [vmem:[#allocation77_spill] sm:$0xff] }
 0x90e   : > { %4072 = vadd.xlane.f32.xlu1 %v4071_v5  ;;  %v11485_v32 = vmul.f32 %v5345_v36, %v5145_v43 }
 0x90f   : > { %v5333_v38 = vsub.f32 1.0, %v5325_v0  ;;  %8637 = vpow2.f32 %v3993_v34  ;;  %v11491_v19 = vmul.f32 %v5343_v15, %v5143_v29 }
 0x910   : > { %13012 = vst [vmem:[#allocation83_spill] sm:$0xff] %v11485_v32  ;;  %8639 = vpow2.f32 %v3991_v21 }
 0x911   : > { %v5341_v57 = vmul.f32 %v5333_v38, %v5173_v62  ;;  %13013 = vst [vmem:[#allocation84_spill] sm:$0xff] %v11491_v19 }
 0x912   : > { %v8636_v12 = vpop.eup %8635 }
 0x913   : > { %v5323_v60 = vmul.f32 %v8636_v12, %v5283_v63  ;;  %v5349_v58 = vadd.f32 1.0, %v5341_v57  ;;  %v13018_v57 = vld [vmem:[#allocation68_spill] sm:$0xff] }
 0x915   : > { %v5331_v41 = vsub.f32 1.0, %v5323_v60  ;;  %v11496_v51 = vmul.f32 %v5349_v58, %v5149_v61 }
 0x917   : > { %v5339_v17 = vmul.f32 %v5331_v41, %v5171_v7  ;;  %13014 = vst [vmem:[#allocation85_spill] sm:$0xff] %v11496_v51  ;;  %v3933_v41 = vsub.f32 %v13018_v57, %v11361_v8 }
 0x919   : > { %v5347_v45 = vadd.f32 1.0, %v5339_v17  ;;  %v3995_v7 = vmul.f32 1.442695, %v3933_v41 }
 0x91b   : > { %v11503_v50 = vmul.f32 %v5347_v45, %v5147_v56 }
 0x91c   : > { %v11498_v23 = vpop.eup %8637 }
 0x91d   : > { %13015 = vst [vmem:[#allocation86_spill] sm:$0xff] %v11503_v50  ;;  %v4086_v6 = vsel %vm1118_vm0, %v11498_v23, 0.0  ;;  %v11516_v5 = vpop.eup %8639 }
 0x91e   : > { %v4083_v22 = vsel %vm1118_vm0, %v11516_v5, 0.0 }
 0x91f   : > { %5374 = vrot.lane.b32.xlu1 %v11485_v32, %s13008_s11 }
 0x923   : > { %5370 = vrot.lane.b32.xlu1 %v11491_v19, %s13008_s11 }
 0x925   : > { %v4037_v47 = vpop.xlane.xlu1 %4036 }
 0x927   : > { %5382 = vrot.lane.b32.xlu1 %v11496_v51, %s13008_s11 }
 0x929   : > { %v1879_v49 = vpop.permute.xlu1 %1878 }
 0x92a   : > { %1899 = vst.msk [vmem:[#allocation4 + $0x30] sm:$0xf] %vm1667_vm2, %v1879_v49  ;;  %4087 = vadd.xlane.f32.xlu0 %v4086_v6 }
 0x92b   : > { %5378 = vrot.lane.b32.xlu1 %v11503_v50, %s13008_s11 }
 0x92d   : > { %v4046_v20 = vpop.xlane.xlu0 %4045 }
 0x92f   : > { %2210 = vrot.lane.b32.xlu1 %v12994_v44, %s9284_s12 }
 0x931   : > { %v1877_v13 = vpop.permute.xlu0 %1876  ;;  %v8472_v39 = vld [vmem:[#allocation4 + $0x30] sm:$0xff]  }
 0x932   : > { %1898 = vst.msk [vmem:[#allocation4 + $0x2c] sm:$0xf] %vm1667_vm2, %v1877_v13  ;;  %7951 = vmatprep.subr.bf16.mxu1 %v8472_v39 }
 0x933   : > { %7952 = vmatpush3.bf16.msra.mxu1 %v8472_v39 }
 0x935   : > { %v1873_v40 = vpop.permute.xlu0 %1872 }
 0x936   : > { %1896 = vst.msk [vmem:[#allocation4 + $0x24] sm:$0xf] %vm1667_vm2, %v1873_v40 }
 0x953   : > { %4084 = vadd.xlane.f32.xlu1 %v4083_v22 }
 0x95a   : > { %v4043_v44 = vpop.xlane.xlu1 %4042 }
 0x95b   : > { %8641 = vrcp.f32 %v4043_v44 }
 0x95c   : > { %8643 = vrcp.f32 %v4037_v47 }
 0x95d   : > { %8645 = vrcp.f32 %v4046_v20 }
 0x95e   : > { %v1875_v18 = vpop.permute.xlu1 %1874 }
 0x95f   : > { %1897 = vst.msk [vmem:[#allocation4 + $0x28] sm:$0xf] %vm1667_vm2, %v1875_v18 }
 0x962   : > { %v1871_v46 = vpop.permute.xlu1 %1870 }
 0x963   : > { %1895 = vst.msk [vmem:[#allocation4 + $0x20] sm:$0xf] %vm1667_vm2, %v1871_v46  ;;  %v13019_v46 = vld [vmem:[#allocation63_spill] sm:$0xff] }
 0x966   : > { %v4040_v48 = vpop.xlane.xlu0 %4039  ;;  %v8473_v30 = vld [vmem:[#allocation4 + $0x28] sm:$0xff]  }
 0x967   : > { %8647 = vrcp.f32 %v4040_v48  ;;  %7953 = vmatprep.subr.bf16.mxu1 %v8473_v30  ;;  %v13020_v48 = vld [vmem:[#allocation66_spill] sm:$0xff] }
 0x968   : > { %7954 = vmatpush3.bf16.msra.mxu1 %v8473_v30  ;;  %v8642_v11 = vpop.eup %8641  ;;  %v13021_v30 = vld [vmem:[#allocation61_spill] sm:$0xff] }
 0x969   : > { %v8644_v52 = vpop.eup %8643  ;;  %v4141_v34 = vmul.f32 %v8642_v11, %v11303_v35  ;;  %v13024_v11 = vld [vmem:[#allocation62_spill] sm:$0xff] }
 0x96a   : > { %v4082_v55 = vpop.xlane.xlu0 %4081  ;;  %v8474_v26 = vld [vmem:[#allocation4 + $0x20] sm:$0xff]   ;;  %v8646_v37 = vpop.eup %8645  ;;  %v4139_v12 = vmul.f32 %v8644_v52, %v11210_v4 }
 0x96b   : > { %7955 = vmatprep.subr.bf16.mxu1 %v8474_v26  ;;  %v4142_v38 = vmul.f32 %v8646_v37, %v13016_v1  ;;  %8649 = vrcp.f32 %v4082_v55  ;;  %v13022_v55 = vld [vmem:[#allocation78_spill] sm:$0xff] }
 0x96c   : > { %7956 = vmatpush3.bf16.msra.mxu1 %v8474_v26  ;;  %v13023_v26 = vld [vmem:[#allocation71_spill] sm:$0xff] }
 0x96e   : > { %v4076_v3 = vpop.xlane.xlu0 %4075 }
 0x96f   : > { %7958 = vmatmul.mubr.msk.bf16.vlgmr.msra.gmra.mxu1 %vm1118_vm0, %v4164_v9  ;;  %v4166_v9 = vpack.c.bf16 %v4142_v38, %v4141_v34 }
 0x972   : > { %v5373_v2 = vpop.permute.xlu0 %5372 }
 0x973   : > { %v5398_v0 = vsel %vm1118_vm0, %v5373_v2, 0.0 }
 0x974   : > { %v8648_v63 = vpop.eup %8647  ;;  %5399 = vadd.xlane.f32.xlu0 %v5398_v0  ;;  %v13025_v0 = vld [vmem:[#allocation64_spill] sm:$0xff] }
 0x975   : > { %v4140_v36 = vmul.f32 %v8648_v63, %v11340_v42  ;;  %v13017_v42 = vld [vmem:[#allocation65_spill] sm:$0xff] }
 0x976   : > { %v5369_v53 = vpop.permute.xlu0 %5368 }
 0x977   : > { %v5392_v27 = vsel %vm1118_vm0, %v5369_v53, 0.0  ;;  %v4165_v54 = vpack.c.bf16 %v4140_v36, %v4139_v12 }
 0x978   : > { %5393 = vadd.xlane.f32.xlu0 %v5392_v27  ;;  %v8650_v17 = vpop.eup %8649 }
 0x979   : > { %7961 = vmatprep.mubr.msk.bf16.mxu1 %vm1118_vm0, %v4165_v54  ;;  %v11543_v56 = vmul.f32 %v8650_v17, %v11352_v14 }
 0x97a   : > { %7962 = vmatmul.mubr.msk.bf16.gmra.mxu1 %vm1118_vm0, %v4166_v9  ;;  %v5381_v60 = vpop.permute.xlu0 %5380 }
 0x97b   : > { %v5410_v43 = vsel %vm1118_vm0, %v5381_v60, 0.0 }
 0x97c   : > { %5411 = vadd.xlane.f32.xlu1 %v5410_v43 }
 0x97e   : > { %v5377_v35 = vpop.permute.xlu0 %5376 }
 0x97f   : > { %v5404_v20 = vsel %vm1118_vm0, %v5377_v35, 0.0 }
 0x982   : > { %v2213_v4 = vpop.permute.xlu0 %2212 }
 0x983   : > { %2230 = vst.msk [vmem:[#allocation4 + $0x7c] sm:$0xf] %vm1667_vm2, %v2213_v4 }
 0x98d   : > { %2206 = vrot.lane.b32.xlu1 %v13017_v42, %s9284_s12 }
 0x993   : > { %v4079_v62 = vpop.xlane.xlu1 %4078 }
 0x994   : > { %8651 = vrcp.f32 %v4079_v62 }
 0x995   : > { %8653 = vrcp.f32 %v4076_v3  ;;  %v3934_v3 = vsub.f32 %v13023_v26, %v13022_v55 }
 0x997   : > { %v4073_v15 = vpop.xlane.xlu1 %4072  ;;  %v3997_v52 = vmul.f32 1.442695, %v3934_v3 }
 0x998   : > { %8655 = vrcp.f32 %v4073_v15 }
 0x999   : > { %8657 = vpow2.f32 %v3995_v7 }
 0x99a   : > { %8659 = vpow2.f32 %v3997_v52 }
 0x99b   : > { %v5375_v29 = vpop.permute.xlu1 %5374 }
 0x99c   : > { %v5401_v58 = vsel %vm1118_vm0, %v5375_v29, 0.0 }
 0x99d   : > { %5402 = vadd.xlane.f32.xlu0 %v5401_v58 }
 0x99f   : > { %v5371_v61 = vpop.permute.xlu1 %5370 }
 0x9a0   : > { %v5395_v45 = vsel %vm1118_vm0, %v5371_v61, 0.0 }
 0x9a1   : > { %v8652_v47 = vpop.eup %8651  ;;  %5396 = vadd.xlane.f32.xlu0 %v5395_v45 }
 0x9a2   : > { %v11546_v49 = vmul.f32 %v8652_v47, %v11457_v16  ;;  %v8654_v8 = vpop.eup %8653 }
 0x9a3   : > { %v5383_v6 = vpop.permute.xlu1 %5382  ;;  %v4152_v31 = vmul.f32 %v8654_v8, %v11358_v33 }
 0x9a4   : > { %v4172_v13 = vpack.c.bf16 %v11543_v56, %v11546_v49  ;;  %v5413_v14 = vsel %vm1118_vm0, %v5383_v6, 0.0 }
 0x9a5   : > { %v8656_v39 = vpop.eup %8655  ;;  %5405 = vadd.xlane.f32.xlu0 %v5404_v20 }
 0x9a6   : > { %v4151_v40 = vmul.f32 %v8656_v39, %v11465_v25  ;;  %v11557_v18 = vpop.eup %8657 }
 0x9a7   : > { %v5379_v21 = vpop.permute.xlu1 %5378  ;;  %v4089_v25 = vsel %vm1118_vm0, %v11557_v18, 0.0  ;;  %v11571_v2 = vpop.eup %8659 }
 0x9a8   : > { %v4171_v22 = vpack.c.bf16 %v4152_v31, %v4151_v40  ;;  %v5407_v44 = vsel %vm1118_vm0, %v5379_v21, 0.0  ;;  %v4092_v37 = vsel %vm1118_vm0, %v11571_v2, 0.0 }
 0x9a9   : > { %5414 = vadd.xlane.f32.xlu0 %v5413_v14  ;;  %v5560_v14 = vld [vmem:[%s11615_s0] sm:$0xff] }
 0x9aa   : > { %7989 = vmatprep.mubr.msk.bf16.mxu1 %vm1118_vm0, %v4171_v22  ;;  %vm5568_vm13 = vcmp.gt.f32.partialorder %v5560_v14, 0.5 }
 0x9ab   : > { %v2211_v16 = vpop.permute.xlu1 %2210 }
 0x9ac   : > { %2229 = vst.msk [vmem:[#allocation4 + $0x78] sm:$0xf] %vm1667_vm2, %v2211_v16 }
 0x9ad   : > { %5408 = vadd.xlane.f32.xlu0 %v5407_v44 }
 0x9b1   : > { %4090 = vadd.xlane.f32.xlu1 %v4089_v25 }
 0x9b3   : > { %v8475_v33 = vld [vmem:[#allocation4 + $0x78] sm:$0xff]   ;;  %v4088_v63 = vpop.xlane.xlu0 %4087 }
 0x9b4   : > { %7981 = vmatprep.subr.bf16.mxu1 %v8475_v33 }
 0x9b5   : > { %7982 = vmatpush3.bf16.msra.mxu1 %v8475_v33 }
 0x9c2   : > { %2202 = vrot.lane.b32.xlu1 %v13019_v46, %s9284_s12  ;;  %v13028_v46 = vmov 0  }
 0x9c3   : > { %2208 = vrot.lane.b32.xlu0 %v13020_v48, %s9284_s12  ;;  %v5576_v48 = vsel %vm5568_vm13, 1, %v13028_v46 }
 0x9c6   : > { %2198 = vrot.lane.b32.xlu1 %v13021_v30, %s9284_s12 }
 0x9ca   : > { %2200 = vrot.lane.b32.xlu1 %v13024_v11, %s9284_s12 }
 0x9dc   : > { %v4085_v12 = vpop.xlane.xlu1 %4084 }
 0x9dd   : > { %8661 = vrcp.f32 %v4085_v12 }
 0x9de   : > { %8663 = vrcp.f32 %v4088_v63 }
 0x9e2   : > { %4093 = vadd.xlane.f32.xlu0 %v4092_v37 }
 0x9f8   : > { %2204 = vrot.lane.b32.xlu0 %v13025_v0, %s9284_s12 }
 0x9fd   : > { %v5400_v34 = vpop.xlane.xlu0 %5399 }
 0x9fe   : > { %v5418_v53 = vmul.f32 0.015625, %v5400_v34  ;;  %v8662_v34 = vpop.eup %8661 }
 0x9ff   : > { %v4155_v12 = vmul.f32 %v8662_v34, %v11516_v5 }
 0xa00   : > { %v11581_v54 = vsub.f32 %v11412_v28, %v5418_v53 }
 0xa01   : > { %v5394_v36 = vpop.xlane.xlu0 %5393 }
 0xa02   : > { %v5416_v1 = vmul.f32 0.015625, %v5394_v36  ;;  %v5434_v43 = vmul.f32 %v11581_v54, %v11581_v54 }
 0xa04   : > { %v11578_v38 = vsub.f32 %v11426_v59, %v5416_v1  ;;  %v8664_v1 = vpop.eup %8663 }
 0xa05   : > { %v5412_v27 = vpop.xlane.xlu1 %5411 }
 0xa06   : > { %v5432_v9 = vmul.f32 %v11578_v38, %v11578_v38  ;;  %v5422_v7 = vmul.f32 0.015625, %v5412_v27 }
 0xa08   : > { %5448 = vrot.lane.b32.xlu0 %v5432_v9, %s13008_s11  ;;  %v11606_v47 = vsub.f32 %v11438_v24, %v5422_v7  ;;  %v8479_v9 = vld [vmem:[#allocation23 + $0x8] sm:$0xff]  }
 0xa09   : > { %v2207_v60 = vpop.permute.xlu1 %2206 }
 0xa0a   : > { %2227 = vst.msk [vmem:[#allocation4 + $0x70] sm:$0xf] %vm1667_vm2, %v2207_v60  ;;  %v5438_v40 = vmul.f32 %v11606_v47, %v11606_v47  ;;  %v4156_v60 = vmul.f32 %v8664_v1, %v11498_v23  ;;  %v5566_v1 = vld [vmem:[%s11615_s0 + $0x30] sm:$0xff] }
 0xa0b   : > { %vm5574_vm5 = vcmp.gt.f32.partialorder %v5566_v1, 0.5 }
 0xa0c   : > { %5452 = vrot.lane.b32.xlu0 %v5434_v43, %s13008_s11 }
 0xa26   : > { %v5403_v35 = vpop.xlane.xlu0 %5402 }
 0xa27   : > { %v5419_v4 = vmul.f32 0.015625, %v5403_v35 }
 0xa29   : > { %v11591_v42 = vsub.f32 %v11485_v32, %v5419_v4 }
 0xa2a   : > { %v5397_v62 = vpop.xlane.xlu0 %5396 }
 0xa2b   : > { %v5435_v15 = vmul.f32 %v11591_v42, %v11591_v42  ;;  %v5417_v57 = vmul.f32 0.015625, %v5397_v62  ;;  %v4173_v62 = vpack.c.bf16 %v4156_v60, %v4155_v12  ;;  %v5582_v12 = vsel %vm5574_vm5, 1, %v13028_v46 }
 0xa2c   : > { %v9288_v60 = vmov 0.0  }
 0xa2d   : > { %v11596_v41 = vsub.f32 %v11491_v19, %v5417_v57  ;;  %5454 = vrot.lane.b32.xlu1 %v5435_v15, %s13008_s11  ;;  %5626 = vst.msk [vmem:[#allocation7 + $0x10] sm:$0xff] %vm1118_vm0, %v9288_v60  ;;  %5627 = vst.msk [vmem:[#allocation7 + $0x18] sm:$0xff] %vm1118_vm0, %v9288_v60 }
 0xa2e   : > { %v5406_v29 = vpop.xlane.xlu0 %5405  ;;  %5624 = vst.msk [vmem:[#allocation7] sm:$0xff] %vm1118_vm0, %v9288_v60  ;;  %5625 = vst.msk [vmem:[#allocation7 + $0x8] sm:$0xff] %vm1118_vm0, %v9288_v60 }
 0xa2f   : > { %v5433_v58 = vmul.f32 %v11596_v41, %v11596_v41  ;;  %v5420_v17 = vmul.f32 0.015625, %v5406_v29  ;;  %v7959_v52 = vpop.f32.mrf.mxu1  ;;  %5628 = vst.msk [vmem:[#allocation7 + $0x20] sm:$0xff] %vm1118_vm0, %v9288_v60  ;;  %5629 = vst.msk [vmem:[#allocation7 + $0x28] sm:$0xff] %vm1118_vm0, %v9288_v60 }
 0xa30   : > { %5630 = vst.msk [vmem:[#allocation7 + $0x30] sm:$0xff] %vm1118_vm0, %v9288_v60  ;;  %5631 = vst.msk [vmem:[#allocation7 + $0x38] sm:$0xff] %vm1118_vm0, %v9288_v60 }
 0xa31   : > { %v11602_v61 = vsub.f32 %v11452_v10, %v5420_v17  ;;  %5450 = vrot.lane.b32.xlu1 %v5433_v58, %s13008_s11  ;;  %v4346_v37 = vpop.f32.mrf.mxu1  ;;  %5632 = vst.msk [vmem:[#allocation7 + $0x40] sm:$0xff] %vm1118_vm0, %v9288_v60  ;;  %5633 = vst.msk [vmem:[#allocation7 + $0x48] sm:$0xff] %vm1118_vm0, %v9288_v60 }
 0xa32   : > { %v5415_v45 = vpop.xlane.xlu0 %5414  ;;  %5634 = vst.msk [vmem:[#allocation7 + $0x50] sm:$0xff] %vm1118_vm0, %v9288_v60 }
 0xa33   : > { %v5436_v8 = vmul.f32 %v11602_v61, %v11602_v61  ;;  %v5423_v6 = vmul.f32 0.015625, %v5415_v45  ;;  %v7960_v27 = vpop.f32.mrf.mxu1 }
 0xa34   : > { %v4683_v49 = vpack.c.bf16 %v7960_v27, %v7959_v52  ;;  %v7472_v52 = vld [vmem:[%s12760_s20] ss:$0 sm:$0xff] }
 0xa35   : > { %v11618_v20 = vsub.f32 %v11496_v51, %v5423_v6  ;;  %5456 = vrot.lane.b32.xlu0 %v5436_v8, %s13008_s11  ;;  %v4349_v43 = vpop.f32.mrf.mxu1 }
 0xa36   : > { %v5409_v39 = vpop.xlane.xlu0 %5408  ;;  %v4682_v17 = vpack.c.bf16 %v4349_v43, %v4346_v37  ;;  %v5564_v37 = vld [vmem:[%s11615_s0 + $0x20] sm:$0xff] }
 0xa37   : > { %v5439_v31 = vmul.f32 %v11618_v20, %v11618_v20  ;;  %v5421_v21 = vmul.f32 0.015625, %v5409_v39 }
 0xa39   : > { %v11627_v22 = vsub.f32 %v11503_v50, %v5421_v21  ;;  %5460 = vrot.lane.b32.xlu0 %v5438_v40, %s13008_s11  ;;  %5462 = vrot.lane.b32.xlu1 %v5439_v31, %s13008_s11 }
 0xa3a   : > { %v4091_v16 = vpop.xlane.xlu1 %4090  ;;  %v2209_v25 = vpop.permute.xlu0 %2208 }
 0xa3b   : > { %v5437_v44 = vmul.f32 %v11627_v22, %v11627_v22  ;;  %2228 = vst.msk [vmem:[#allocation4 + $0x74] sm:$0xf] %vm1667_vm2, %v2209_v25  ;;  %v7963_v15 = vpop.f32.mrf.mxu1 }
 0xa3d   : > { %5458 = vrot.lane.b32.xlu1 %v5437_v44, %s13008_s11  ;;  %v4362_v29 = vpop.f32.mrf.mxu1 }
 0xa3e   : > { %v2203_v33 = vpop.permute.xlu1 %2202 }
 0xa3f   : > { %2225 = vst.msk [vmem:[#allocation4 + $0x68] sm:$0xf] %vm1667_vm2, %v2203_v33  ;;  %v7964_v45 = vpop.f32.mrf.mxu1 }
 0xa40   : > { %v4685_v8 = vpack.c.bf16 %v7964_v45, %v7963_v15 }
 0xa41   : > { %5585 = vperm.xlu1 %8383, %v5576_v48   ;;  %v4365_v56 = vpop.f32.mrf.mxu1  ;;  %v5562_v48 = vld [vmem:[%s11615_s0 + $0x10] sm:$0xff] }
 0xa42   : > { %v2199_v30 = vpop.permute.xlu1 %2198  ;;  %v8476_v55 = vld [vmem:[#allocation4 + $0x70] sm:$0xff]   ;;  %vm5570_vm14 = vcmp.gt.f32.partialorder %v5562_v48, 0.5 }
 0xa43   : > { %2223 = vst.msk [vmem:[#allocation4 + $0x60] sm:$0xf] %vm1667_vm2, %v2199_v30  ;;  %7983 = vmatprep.subr.bf16.mxu1 %v8476_v55  ;;  %v5561_v30 = vld [vmem:[%s11615_s0 + $0x8] sm:$0xff] }
 0xa44   : > { %7984 = vmatpush3.bf16.msra.mxu1 %v8476_v55  ;;  %v5578_v55 = vsel %vm5570_vm14, 1, %v13028_v46  ;;  %vm5569_vm15 = vcmp.gt.f32.partialorder %v5561_v30, 0.5 }
 0xa46   : > { %v2201_v26 = vpop.permute.xlu1 %2200 }
 0xa47   : > { %2224 = vst.msk [vmem:[#allocation4 + $0x64] sm:$0xf] %vm1667_vm2, %v2201_v26  ;;  %v7471_v26 = vld [vmem:[#allocation29] ss:$0 sm:$0xff] }
 0xa4e   : > { %v8478_v36 = vld [vmem:[#allocation4 + $0x60] sm:$0xff]  }
 0xa6b   : > { %v4094_v3 = vpop.xlane.xlu0 %4093 }
 0xa6c   : > { %8665 = vrcp.f32 %v4094_v3  ;;  %v5577_v3 = vsel %vm5569_vm15, 1, %v13028_v46 }
 0xa6d   : > { %8667 = vrcp.f32 %v4091_v16 }
 0xa6f   : > { %v2205_v11 = vpop.permute.xlu0 %2204 }
 0xa70   : > { %2226 = vst.msk [vmem:[#allocation4 + $0x6c] sm:$0xf] %vm1667_vm2, %v2205_v11  ;;  %v5563_v11 = vld [vmem:[%s11615_s0 + $0x18] sm:$0xff]  ;;  %vm5572_vm2 = vcmp.gt.f32.partialorder %v5564_v37, 0.5 }
 0xa71   : > { %vm5571_vm1 = vcmp.gt.f32.partialorder %v5563_v11, 0.5 }
 0xa72   : > { %v5579_v34 = vsel %vm5571_vm1, 1, %v13028_v46 }
 0xa77   : > { %v8477_v0 = vld [vmem:[#allocation4 + $0x68] sm:$0xff]  }
 0xa78   : > { %7985 = vmatprep.subr.bf16.mxu1 %v8477_v0 }
 0xa79   : > { %7986 = vmatpush3.bf16.msra.mxu1 %v8477_v0  ;;  %v8666_v4 = vpop.eup %8665  ;;  %v8480_v0 = vld [vmem:[#allocation23 + $0x18] sm:$0xff]  }
 0xa7a   : > { %v5449_v53 = vpop.permute.xlu0 %5448  ;;  %7987 = vmatprep.subr.bf16.mxu1 %v8478_v36  ;;  %v8668_v57 = vpop.eup %8667  ;;  %v4158_v23 = vmul.f32 %v8666_v4, %v11571_v2 }
 0xa7b   : > { %v5472_v5 = vsel %vm1118_vm0, %v5449_v53, 0.0  ;;  %v4157_v7 = vmul.f32 %v8668_v57, %v11557_v18  ;;  %v5580_v53 = vsel %vm5572_vm2, 1, %v13028_v46 }
 0xa7d   : > { %7988 = vmatpush3.bf16.msra.mxu1 %v8478_v36  ;;  %v4174_v58 = vpack.c.bf16 %v4158_v23, %v4157_v7  ;;  %v5565_v36 = vld [vmem:[%s11615_s0 + $0x28] sm:$0xff] }
 0xa7e   : > { %v5453_v63 = vpop.permute.xlu0 %5452  ;;  %8007 = vmatprep.subr.bf16.mxu1 %v8479_v9  ;;  %vm5573_vm4 = vcmp.gt.f32.partialorder %v5565_v36, 0.5 }
 0xa7f   : > { %v5478_v35 = vsel %vm1118_vm0, %v5453_v63, 0.0  ;;  %v5581_v27 = vsel %vm5573_vm4, 1, %v13028_v46 }
 0xa80   : > { %5479 = vadd.xlane.f32.xlu0 %v5478_v35  ;;  %7990 = vmatmul.mubr.msk.bf16.vlgmr.msra.gmra.mxu1 %vm1118_vm0, %v4172_v13  ;;  %v4684_v13 = vpack.c.bf16 %v4365_v56, %v4362_v29 }
 0xa81   : > { %7993 = vmatprep.mubr.msk.bf16.mxu1 %vm1118_vm0, %v4173_v62  ;;  %8008 = vmatpush3.bf16.msra.mxu1 %v8479_v9  ;;  %v5567_v9 = vld [vmem:[%s11615_s0 + $0x38] sm:$0xff] }
 0xa82   : > { %8027 = vmatprep.subr.bf16.mxu1 %v8480_v0  ;;  %vm5575_vm6 = vcmp.gt.f32.partialorder %v5567_v9, 0.5 }
 0xa83   : > { %v5583_v63 = vsel %vm5575_vm6, 1, %v13028_v46 }
 0xa84   : > { %5473 = vadd.xlane.f32.xlu0 %v5472_v5 }
 0xa88   : > { %7994 = vmatmul.mubr.msk.bf16.gmra.mxu1 %vm1118_vm0, %v4174_v58 }
 0xa89   : > { %8009 = vmatprep.mubr.msk.bf16.mxu1 %vm1610_vm3, %v4682_v17 }
 0xa90   : > { %8010 = vmatmul.mubr.msk.bf16.vlgmr.msra.gmra.mxu1 %vm1610_vm3, %v4683_v49 }
 0xa91   : > { %8013 = vmatprep.mubr.msk.bf16.mxu1 %vm1610_vm3, %v4684_v13  ;;  %8028 = vmatpush3.bf16.msra.mxu1 %v8480_v0 }
 0xa98   : > { %8014 = vmatmul.mubr.msk.bf16.gmra.mxu1 %vm1610_vm3, %v4685_v8 }
 0xa9f   : > { %v5455_v2 = vpop.permute.xlu1 %5454 }
 0xaa0   : > { %v5481_v18 = vsel %vm1118_vm0, %v5455_v2, 0.0 }
 0xaa1   : > { %5482 = vadd.xlane.f32.xlu0 %v5481_v18 }
 0xaa3   : > { %v5451_v6 = vpop.permute.xlu1 %5450 }
 0xaa4   : > { %v5475_v39 = vsel %vm1118_vm0, %v5451_v6, 0.0 }
 0xaa5   : > { %5476 = vadd.xlane.f32.xlu1 %v5475_v39 }
 0xaa7   : > { %v5457_v40 = vpop.permute.xlu0 %5456 }
 0xaa8   : > { %v5484_v25 = vsel %vm1118_vm0, %v5457_v40, 0.0 }
 0xaab   : > { %v5463_v31 = vpop.permute.xlu1 %5462  ;;  %v5461_v21 = vpop.permute.xlu0 %5460 }
 0xaac   : > { %v5493_v14 = vsel %vm1118_vm0, %v5463_v31, 0.0  ;;  %v5490_v16 = vsel %vm1118_vm0, %v5461_v21, 0.0 }
 0xaad   : > { %5494 = vadd.xlane.f32.xlu0 %v5493_v14  ;;  %5491 = vadd.xlane.f32.xlu1 %v5490_v16 }
 0xaaf   : > { %v5459_v44 = vpop.permute.xlu1 %5458 }
 0xab0   : > { %v5487_v33 = vsel %vm1118_vm0, %v5459_v44, 0.0 }
 0xab1   : > { %5488 = vadd.xlane.f32.xlu0 %v5487_v33  ;;  %5485 = vadd.xlane.f32.xlu1 %v5484_v25 }
 0xabc   : > { %v5586_v35 = vpop.permute.xlu1 %5585 }
 0xabd   : > { %vm5608_vm8 = vcmp.eq.s32.totalorder %v5586_v35, 1 }
 0xac2   : > { %5591 = vperm.xlu1 %8383, %v5578_v55  }
 0xac6   : > { %5533 = vrot.lane.b32.xlu1 %v7471_v26, %s13008_s11 }
 0xac7   : > { %5588 = vperm.xlu0 %8384, %v5577_v3  }
 0xaca   : > { %5549 = vrot.lane.b32.xlu1 %v7472_v52, %s13008_s11 }
 0xace   : > { %5594 = vperm.xlu1 %8383, %v5579_v34  }
 0xad2   : > { %5597 = vperm.xlu1 %8383, %v5580_v53  }
 0xad6   : > { %5600 = vperm.xlu1 %8383, %v5581_v27  }
 0xada   : > { %5603 = vperm.xlu1 %8383, %v5582_v12  }
 0xade   : > { %5606 = vperm.xlu1 %8383, %v5583_v63  }
 0xb09   : > { %v5480_v46 = vpop.xlane.xlu0 %5479 }
 0xb0a   : > { %v5498_v15 = vmul.f32 0.015625, %v5480_v46 }
 0xb0c   : > { %v5506_v7 = vadd.f32 1e-05, %v5498_v15 }
 0xb0d   : > { %v5474_v43 = vpop.xlane.xlu0 %5473 }
 0xb0e   : > { %v5496_v4 = vmul.f32 0.015625, %v5474_v43 }
 0xb10   : > { %v5504_v57 = vadd.f32 1e-05, %v5496_v4 }
 0xb12   : > { %8669 = vrsqrt.f32 %v5504_v57 }
 0xb1f   : > { %v8670_v16 = vpop.eup %8669 }
 0xb20   : > { %v5520_v11 = vmul.f32 %v8670_v16, %v11578_v38 }
 0xb2a   : > { %v5483_v62 = vpop.xlane.xlu0 %5482 }
 0xb2b   : > { %v5499_v5 = vmul.f32 0.015625, %v5483_v62 }
 0xb2d   : > { %v5507_v17 = vadd.f32 1e-05, %v5499_v5 }
 0xb2e   : > { %v5477_v23 = vpop.xlane.xlu1 %5476 }
 0xb2f   : > { %v5497_v29 = vmul.f32 0.015625, %v5477_v23 }
 0xb31   : > { %v5505_v58 = vadd.f32 1e-05, %v5497_v29 }
 0xb33   : > { %8671 = vrsqrt.f32 %v5505_v58 }
 0xb34   : > { %8673 = vrsqrt.f32 %v5506_v7 }
 0xb35   : > { %8675 = vrsqrt.f32 %v5507_v17 }
 0xb36   : > { %v5492_v45 = vpop.xlane.xlu1 %5491  ;;  %v5495_v56 = vpop.xlane.xlu0 %5494 }
 0xb37   : > { %v5502_v49 = vmul.f32 0.015625, %v5492_v45  ;;  %v5503_v13 = vmul.f32 0.015625, %v5495_v56 }
 0xb39   : > { %v5510_v8 = vadd.f32 1e-05, %v5502_v49  ;;  %v5511_v40 = vadd.f32 1e-05, %v5503_v13 }
 0xb3a   : > { %v5486_v2 = vpop.xlane.xlu1 %5485  ;;  %v5489_v18 = vpop.xlane.xlu0 %5488 }
 0xb3b   : > { %v5500_v6 = vmul.f32 0.015625, %v5486_v2  ;;  %v5501_v39 = vmul.f32 0.015625, %v5489_v18  ;;  %8677 = vrsqrt.f32 %v5510_v8 }
 0xb3d   : > { %v5508_v31 = vadd.f32 1e-05, %v5500_v6  ;;  %v5509_v21 = vadd.f32 1e-05, %v5501_v39 }
 0xb3e   : > { %v5592_v14 = vpop.permute.xlu1 %5591 }
 0xb3f   : > { %8679 = vrsqrt.f32 %v5508_v31  ;;  %vm5610_vm10 = vcmp.eq.s32.totalorder %v5592_v14, 1 }
 0xb40   : > { %v8672_v44 = vpop.eup %8671  ;;  %8681 = vrsqrt.f32 %v5509_v21  ;;  %v7991_v25 = vpop.f32.mrf.mxu1 }
 0xb41   : > { %8683 = vrsqrt.f32 %v5511_v40  ;;  %v5521_v33 = vmul.f32 %v8672_v44, %v11596_v41  ;;  %v8674_v48 = vpop.eup %8673 }
 0xb42   : > { %v11704_v30 = vpop.permute.xlu1 %5533  ;;  %v8676_v55 = vpop.eup %8675  ;;  %v5522_v34 = vmul.f32 %v8674_v48, %v11581_v54  ;;  %v8481_v48 = vld [vmem:[#allocation31 + $0x18] sm:$0xff]  }
 0xb43   : > { %v4548_v26 = vpop.f32.mrf.mxu1  ;;  %v5589_v3 = vpop.permute.xlu0 %5588  ;;  %v5537_v37 = vmul.f32 %v11704_v30, %v5521_v33  ;;  %v5536_v0 = vmul.f32 %v11704_v30, %v5520_v11  ;;  %v5523_v53 = vmul.f32 %v8676_v55, %v11591_v42  ;;  %v8482_v55 = vld [vmem:[#allocation31 + $0x10] sm:$0xff]   ;;  %8053 = vmatprep.subr.bf16.mxu1 %v8481_v48  ;;  %v8484_v11 = vld [vmem:[#allocation31] sm:$0xff]  }
 0xb44   : > { %vm5609_vm7 = vcmp.eq.s32.totalorder %v5589_v3, 1  ;;  %v5538_v9 = vmul.f32 %v11704_v30, %v5522_v34  ;;  %v8483_v3 = vld [vmem:[#allocation31 + $0x8] sm:$0xff]   ;;  %v11741_v34 = vld [vmem:[%s12761_s21 + $0x1] ss:$0 sm:$0xff] }
 0xb45   : > { %v7992_v52 = vpop.f32.mrf.mxu1  ;;  %v5539_v38 = vmul.f32 %v11704_v30, %v5523_v53 }
 0xb46   : > { %v5550_v36 = vpop.permute.xlu1 %5549  ;;  %v4879_v62 = vpack.c.bf16 %v7992_v52, %v7991_v25  ;;  %v8485_v52 = vld [vmem:[#allocation32 + $0x18] sm:$0xff]  }
 0xb47   : > { %v5553_v41 = vadd.f32 %v5550_v36, %v5537_v37  ;;  %v4551_v1 = vpop.f32.mrf.mxu1  ;;  %v5552_v27 = vadd.f32 %v5550_v36, %v5536_v0  ;;  %v5554_v4 = vadd.f32 %v5550_v36, %v5538_v9  ;;  %v5555_v54 = vadd.f32 %v5550_v36, %v5539_v38  ;;  %v11736_v37 = vld [vmem:[%s12761_s21] ss:$0 sm:$0xff]  ;;  %v5706_v0 = vld [vmem:[#allocation7 + $0x1] sm:$0xff] }
 0xb48   : > { %v4878_v12 = vpack.c.bf16 %v4551_v1, %v4548_v26  ;;  %v8678_v42 = vpop.eup %8677  ;;  %v5719_v53 = vmul.f32 %v11741_v34, %v5706_v0  ;;  %v11748_v1 = vld [vmem:[%s12761_s21 + $0x2] ss:$0 sm:$0xff]  ;;  %v5764_v38 = vld [vmem:[#allocation7 + $0x3] sm:$0xff] }
 0xb49   : > { %v5617_v63 = vsel %vm5609_vm7, 0.0, %v5553_v41  ;;  %v7995_v46 = vpop.f32.mrf.mxu1  ;;  %v5616_v43 = vsel %vm5608_vm8, 0.0, %v5552_v27  ;;  %v5618_v58 = vsel %vm5610_vm10, 0.0, %v5554_v4  ;;  %v5526_v49 = vmul.f32 %v8678_v42, %v11606_v47  ;;  %v5735_v41 = vld [vmem:[#allocation7 + $0x2] sm:$0xff]  ;;  %13029 = vst [vmem:[#allocation77_spill] sm:$0xff] %v11748_v1 }
 0xb4a   : > { %v5595_v15 = vpop.permute.xlu1 %5594  ;;  %5645 = vrot.lane.b32.xlu0 %v5616_v43, %s13008_s11  ;;  %5647 = vrot.lane.b32.xlu1 %v5617_v63, %s13008_s11  ;;  %v11754_v63 = vld [vmem:[%s12761_s21 + $0x3] ss:$0 sm:$0xff] }
 0xb4b   : > { %vm5611_vm9 = vcmp.eq.s32.totalorder %v5595_v15, 1  ;;  %8029 = vmatprep.mubr.msk.bf16.mxu1 %vm1610_vm3, %v4878_v12  ;;  %v4564_v57 = vpop.f32.mrf.mxu1  ;;  %v5542_v21 = vmul.f32 %v11704_v30, %v5526_v49  ;;  %v5748_v12 = vmul.f32 %v11748_v1, %v5735_v41  ;;  %13030 = vst [vmem:[#allocation65_spill] sm:$0xff] %v11754_v63  ;;  %v5777_v4 = vmul.f32 %v11754_v63, %v5764_v38  ;;  %v11760_v15 = vld [vmem:[%s12761_s21 + $0x4] ss:$0 sm:$0xff] }
 0xb4c   : > { %v8680_v35 = vpop.eup %8679  ;;  %v5619_v5 = vsel %vm5611_vm9, 0.0, %v5555_v54  ;;  %8030 = vmatmul.mubr.msk.bf16.vlgmr.msra.gmra.mxu1 %vm1610_vm3, %v4879_v62  ;;  %v5793_v62 = vld [vmem:[#allocation7 + $0x4] sm:$0xff]  ;;  %13031 = vst [vmem:[#allocation68_spill] sm:$0xff] %v11760_v15 }
 0xb4d   : > { %v8682_v23 = vpop.eup %8681  ;;  %v7996_v29 = vpop.f32.mrf.mxu1  ;;  %v5524_v7 = vmul.f32 %v8680_v35, %v11602_v61  ;;  %v5558_v14 = vadd.f32 %v5550_v36, %v5542_v21  ;;  %8054 = vmatpush3.bf16.msra.mxu1 %v8481_v48  ;;  %v5822_v35 = vld [vmem:[#allocation7 + $0x5] sm:$0xff]  ;;  %v13038_v48 = vld [vmem:[#allocation53_spill] sm:$0xff] }
 0xb4e   : > { %v8684_v17 = vpop.eup %8683  ;;  %v5598_v45 = vpop.permute.xlu1 %5597  ;;  %5649 = vrot.lane.b32.xlu0 %v5618_v58, %s13008_s11  ;;  %5651 = vrot.lane.b32.xlu1 %v5619_v5, %s13008_s11  ;;  %v5525_v56 = vmul.f32 %v8682_v23, %v11627_v22  ;;  %v4881_v39 = vpack.c.bf16 %v7996_v29, %v7995_v46  ;;  %v11766_v5 = vld [vmem:[%s12761_s21 + $0x5] ss:$0 sm:$0xff]  ;;  %v5851_v58 = vld [vmem:[#allocation7 + $0x6] sm:$0xff] }
 0xb4f   : > { %v5540_v13 = vmul.f32 %v11704_v30, %v5524_v7  ;;  %v4567_v8 = vpop.f32.mrf.mxu1  ;;  %v5527_v61 = vmul.f32 %v8684_v17, %v11618_v20  ;;  %vm5612_vm11 = vcmp.eq.s32.totalorder %v5598_v45, 1  ;;  %8055 = vmatprep.subr.bf16.mxu1 %v8482_v55  ;;  %13032 = vst [vmem:[#allocation63_spill] sm:$0xff] %v11766_v5  ;;  %v5835_v7 = vmul.f32 %v11766_v5, %v5822_v35  ;;  %v11772_v17 = vld [vmem:[%s12761_s21 + $0x6] ss:$0 sm:$0xff] }
 0xb50   : > { %v4880_v2 = vpack.c.bf16 %v4567_v8, %v4564_v57  ;;  %v5541_v18 = vmul.f32 %v11704_v30, %v5525_v56  ;;  %v5806_v57 = vmul.f32 %v11760_v15, %v5793_v62  ;;  %13033 = vst [vmem:[#allocation66_spill] sm:$0xff] %v11772_v17 }
 0xb51   : > { %v5556_v6 = vadd.f32 %v5550_v36, %v5540_v13  ;;  %v5543_v20 = vmul.f32 %v11704_v30, %v5527_v61  ;;  %8056 = vmatpush3.bf16.msra.mxu1 %v8482_v55  ;;  %v5677_v30 = vld [vmem:[#allocation7] sm:$0xff]  ;;  %v8011_v27 = vpop.f32.mrf.mxu1  ;;  %v5864_v13 = vmul.f32 %v11772_v17, %v5851_v58 }
 0xb52   : > { %v5601_v40 = vpop.permute.xlu1 %5600  ;;  %v5557_v31 = vadd.f32 %v5550_v36, %v5541_v18  ;;  %8033 = vmatprep.mubr.msk.bf16.mxu1 %vm1610_vm3, %v4880_v2  ;;  %8057 = vmatprep.subr.bf16.mxu1 %v8483_v3  ;;  %v7444_v2 = vld [vmem:[#allocation25] ss:$0 sm:$0xff]  ;;  %v5880_v18 = vld [vmem:[#allocation7 + $0x7] sm:$0xff] }
 0xb53   : > { %v5620_v22 = vsel %vm5612_vm11, 0.0, %v5556_v6  ;;  %vm5613_vm12 = vcmp.eq.s32.totalorder %v5601_v40, 1  ;;  %v5559_v33 = vadd.f32 %v5550_v36, %v5543_v20  ;;  %v5690_v36 = vmul.f32 %v11736_v37, %v5677_v30  ;;  %v4741_v46 = vpop.f32.mrf.mxu1  ;;  %v11779_v6 = vld [vmem:[%s12761_s21 + $0x7] ss:$0 sm:$0xff]  ;;  %v13036_v20 = vld [vmem:[#allocation72_spill] sm:$0xff] }
 0xb54   : > { %v5621_v47 = vsel %vm5613_vm12, 0.0, %v5557_v31  ;;  %8034 = vmatmul.mubr.msk.bf16.gmra.mxu1 %vm1610_vm3, %v4881_v39  ;;  %5653 = vrot.lane.b32.xlu0 %v5620_v22, %s13008_s11  ;;  %v13034_v39 = vld [vmem:[#allocation70_spill] sm:$0xff]  ;;  %v5893_v21 = vmul.f32 %v11779_v6, %v5880_v18  ;;  %v4680_v55 = vadd.f32 %v13038_v48, %v7444_v2  ;;  %vm5635_vm3 = vcmask 521216  }
 0xb55   : > { %5655 = vrot.lane.b32.xlu1 %v5621_v47, %s13008_s11  ;;  %8058 = vmatpush3.bf16.msra.mxu1 %v8483_v3  ;;  %v5727_v9 = vadd.f32 %v5719_v53, %v5690_v36  ;;  %v8012_v54 = vpop.f32.mrf.mxu1  ;;  %v4676_v40 = vadd.f32 %v13034_v39, %v7444_v2  ;;  %v11794_v30 = vld [vmem:[%s12761_s21 + $0x8] ss:$0 sm:$0xff]  ;;  %5636 = vst.msk [vmem:[#allocation7 + $0x58] sm:$0x3f] %vm5635_vm3, %v9288_v60  ;;  %v11813_v60 = vld [vmem:[%s12761_s21 + $0x9] ss:$0 sm:$0xff] }
 0xb56   : > { %v5604_v16 = vpop.permute.xlu1 %5603  ;;  %8059 = vmatprep.subr.bf16.mxu1 %v8484_v11  ;;  %13043 = vst [vmem:[#allocation78_spill] sm:$0xff] %v11813_v60 }
 0xb57   : > { %vm5614_vm13 = vcmp.eq.s32.totalorder %v5604_v16, 1  ;;  %v5756_v43 = vadd.f32 %v5748_v12, %v5727_v9  ;;  %v4744_v23 = vpop.f32.mrf.mxu1 }
 0xb58   : > { %v5622_v44 = vsel %vm5614_vm13, 0.0, %v5558_v14  ;;  %v13035_v14 = vld [vmem:[#allocation73_spill] sm:$0xff] }
 0xb59   : > { %5657 = vrot.lane.b32.xlu0 %v5622_v44, %s13008_s11  ;;  %8060 = vmatpush3.bf16.msra.mxu1 %v8484_v11  ;;  %v5785_v42 = vadd.f32 %v5777_v4, %v5756_v43  ;;  %v8015_v45 = vpop.f32.mrf.mxu1  ;;  %v4674_v16 = vadd.f32 %v7444_v2, %v13035_v14  ;;  %v4677_v44 = vadd.f32 %v13036_v20, %v7444_v2  ;;  %v11835_v14 = vld [vmem:[%s12761_s21 + $0xa] ss:$0 sm:$0xff] }
 0xb5a   : > { %v5607_v25 = vpop.permute.xlu1 %5606  ;;  %8085 = vmatprep.subr.bf16.mxu1 %v8485_v52  ;;  %v4774_v11 = vadd.f32 %v8011_v27, %v4676_v40  ;;  %v13040_v52 = vld [vmem:[#allocation55_spill] sm:$0xff]  ;;  %v4778_v12 = vadd.f32 %v8015_v45, %v4680_v55  ;;  %v13056_v55 = vld [vmem:[#allocation74_spill] sm:$0xff] }
 0xb5b   : > { %vm5615_vm14 = vcmp.eq.s32.totalorder %v5607_v25, 1  ;;  %v5814_v29 = vadd.f32 %v5806_v57, %v5785_v42  ;;  %v4757_v61 = vpop.f32.mrf.mxu1  ;;  %v13037_v25 = vld [vmem:[#allocation54_spill] sm:$0xff]  ;;  %v4681_v0 = vadd.f32 %v13040_v52, %v7444_v2  ;;  %v4772_v36 = vadd.f32 %v4741_v46, %v4674_v16 }
 0xb5c   : > { %v5623_v26 = vsel %vm5615_vm14, 0.0, %v5559_v33  ;;  %v4675_v33 = vadd.f32 %v7444_v2, %v13037_v25  ;;  %v4775_v53 = vadd.f32 %v8012_v54, %v4677_v44  ;;  %v13052_v44 = vld [vmem:[#allocation67_spill] sm:$0xff] }
 0xb5d   : > { %5659 = vrot.lane.b32.xlu1 %v5623_v26, %s13008_s11  ;;  %v5843_v49 = vadd.f32 %v5835_v7, %v5814_v29  ;;  %v13039_v26 = vld [vmem:[#allocation56_spill] sm:$0xff]  ;;  %v8016_v41 = vpop.f32.mrf.mxu1  ;;  %v13041_v29 = vld [vmem:[#allocation58_spill] sm:$0xff] }
 0xb5e   : > { %v4678_v3 = vadd.f32 %v7444_v2, %v13039_v26  ;;  %v4773_v9 = vadd.f32 %v4744_v23, %v4675_v33  ;;  %v11808_v7 = vadd.f32 %v7444_v2, %v13041_v29  ;;  %v4779_v58 = vadd.f32 %v8016_v41, %v4681_v0  ;;  %v13054_v33 = vld [vmem:[#allocation69_spill] sm:$0xff] }
 0xb5f   : > { %v5872_v31 = vadd.f32 %v5864_v13, %v5843_v49  ;;  %v13044_v13 = vld [vmem:[#allocation57_spill] sm:$0xff]  ;;  %v11842_v48 = vadd.f32 %v13054_v33, %v4778_v12 }
 0xb60   : > { %v4776_v38 = vadd.f32 %v4757_v61, %v4678_v3  ;;  %13042 = vst [vmem:[#allocation61_spill] sm:$0xff] %v11808_v7  ;;  %v11839_v25 = vadd.f32 %v13052_v44, %v4773_v9  ;;  %v11892_v44 = vld [vmem:[%s12761_s21 + $0xe] ss:$0 sm:$0xff] }
 0xb61   : > { %v5901_v43 = vadd.f32 %v5893_v21, %v5872_v31  ;;  %v13048_v31 = vld [vmem:[#allocation60_spill] sm:$0xff]  ;;  %13055 = vst [vmem:[#allocation54_spill] sm:$0xff] %v11842_v48 }
 0xb62   : > { %v11827_v21 = vadd.f32 %v13048_v31, %v4772_v36  ;;  %13053 = vst [vmem:[#allocation72_spill] sm:$0xff] %v11839_v25  ;;  %v11845_v26 = vadd.f32 %v13056_v55, %v4776_v38 }
 0xb64   : > { %13049 = vst [vmem:[#allocation70_spill] sm:$0xff] %v11827_v21  ;;  %13057 = vst [vmem:[#allocation53_spill] sm:$0xff] %v11845_v26 }
 0xbbc   : > { %v5648_v56 = vpop.permute.xlu1 %5647  ;;  %v5646_v8 = vpop.permute.xlu0 %5645 }
 0xbbd   : > { %5670 = vst.msk [vmem:[#allocation7 + $0x17] sm:$0xff] %vm1118_vm0, %v5648_v56  ;;  %5669 = vst.msk [vmem:[#allocation7 + $0xf] sm:$0xff] %vm1118_vm0, %v5646_v8  ;;  %v11818_v8 = vadd.f32 %v13044_v13, %v4774_v11 }
 0xbbf   : > { %13045 = vst [vmem:[#allocation71_spill] sm:$0xff] %v11818_v8 }
 0xbc0   : > { %v5652_v22 = vpop.permute.xlu1 %5651  ;;  %v5650_v47 = vpop.permute.xlu0 %5649 }
 0xbc1   : > { %5672 = vst.msk [vmem:[#allocation7 + $0x27] sm:$0xff] %vm1118_vm0, %v5652_v22  ;;  %5671 = vst.msk [vmem:[#allocation7 + $0x1f] sm:$0xff] %vm1118_vm0, %v5650_v47  ;;  %v13050_v22 = vld [vmem:[#allocation59_spill] sm:$0xff] }
 0xbc2   : > { %v11830_v47 = vadd.f32 %v13050_v22, %v4775_v53  ;;  %v11887_v22 = vld [vmem:[%s12761_s21 + $0xd] ss:$0 sm:$0xff] }
 0xbc4   : > { %v5678_v4 = vld [vmem:[#allocation7 + $0x8] sm:$0xff]  ;;  %v11797_v62 = vld [vmem:[#allocation7 + $0x10] sm:$0xff]  ;;  %13051 = vst [vmem:[#allocation73_spill] sm:$0xff] %v11830_v47 }
 0xbc5   : > { %v5707_v42 = vld [vmem:[#allocation7 + $0x9] sm:$0xff]  ;;  %v5691_v27 = vmul.f32 %v11736_v37, %v5678_v4  ;;  %v5692_v57 = vmul.f32 %v11736_v37, %v11797_v62  ;;  %v11803_v35 = vld [vmem:[#allocation7 + $0x11] sm:$0xff]  ;;  %v5915_v23 = vmul.f32 %v11794_v30, %v5678_v4  ;;  %v11855_v12 = vmul.f32 %v11794_v30, %v11797_v62 }
 0xbc6   : > { %v5720_v46 = vmul.f32 %v11741_v34, %v5707_v42  ;;  %v5736_v54 = vld [vmem:[#allocation7 + $0xa] sm:$0xff]  ;;  %v5721_v45 = vmul.f32 %v11741_v34, %v11803_v35  ;;  %v5654_v49 = vpop.permute.xlu0 %5653  ;;  %v11820_v61 = vld [vmem:[#allocation7 + $0x12] sm:$0xff]  ;;  %v5937_v41 = vmul.f32 %v11813_v60, %v5707_v42  ;;  %v5938_v55 = vmul.f32 %v11813_v60, %v11803_v35 }
 0xbc7   : > { %v5765_v56 = vld [vmem:[#allocation7 + $0xb] sm:$0xff]  ;;  %13046 = vst [vmem:[#allocation62_spill] sm:$0xff] %v11820_v61  ;;  %v5749_v2 = vmul.f32 %v11748_v1, %v5736_v54  ;;  %v11823_v39 = vld [vmem:[#allocation7 + $0x13] sm:$0xff]  ;;  %5673 = vst.msk [vmem:[#allocation7 + $0x2f] sm:$0xff] %vm1118_vm0, %v5654_v49  ;;  %v5656_v40 = vpop.permute.xlu1 %5655  ;;  %v5923_v53 = vadd.f32 %v5915_v23, %v5901_v43  ;;  %v5750_v4 = vmul.f32 %v11748_v1, %v11820_v61 }
 0xbc8   : > { %v5728_v18 = vadd.f32 %v5720_v46, %v5691_v27  ;;  %13047 = vst [vmem:[#allocation64_spill] sm:$0xff] %v11823_v39  ;;  %v5729_v16 = vadd.f32 %v5721_v45, %v5692_v57  ;;  %v5794_v20 = vld [vmem:[#allocation7 + $0xc] sm:$0xff]  ;;  %5674 = vst.msk [vmem:[#allocation7 + $0x37] sm:$0xff] %vm1118_vm0, %v5656_v40  ;;  %v5778_v11 = vmul.f32 %v11754_v63, %v5765_v56  ;;  %v11857_v38 = vld [vmem:[#allocation7 + $0x18] sm:$0xff] }
 0xbc9   : > { %v5823_v52 = vld [vmem:[#allocation7 + $0xd] sm:$0xff]  ;;  %v5779_v9 = vmul.f32 %v11754_v63, %v11823_v39  ;;  %v5807_v43 = vmul.f32 %v11760_v15, %v5794_v20  ;;  %v5945_v23 = vadd.f32 %v5937_v41, %v5923_v53  ;;  %v5959_v42 = vmul.f32 %v11835_v14, %v5736_v54  ;;  %v11864_v45 = vld [vmem:[#allocation7 + $0x20] sm:$0xff] }
 0xbca   : > { %v5757_v3 = vadd.f32 %v5749_v2, %v5728_v18  ;;  %v5852_v0 = vld [vmem:[#allocation7 + $0xe] sm:$0xff]  ;;  %v11866_v49 = vld [vmem:[#allocation7 + $0x19] sm:$0xff]  ;;  %v11868_v13 = vld [vmem:[#allocation7 + $0x21] sm:$0xff]  ;;  %v5758_v2 = vadd.f32 %v5750_v4, %v5729_v16  ;;  %v5836_v54 = vmul.f32 %v11766_v5, %v5823_v52  ;;  %v5693_v4 = vmul.f32 %v11736_v37, %v11857_v38 }
 0xbcb   : > { %v5881_v36 = vld [vmem:[#allocation7 + $0xf] sm:$0xff]  ;;  %v5658_v29 = vpop.permute.xlu0 %5657  ;;  %v11873_v18 = vld [vmem:[%s12761_s21 + $0xb] ss:$0 sm:$0xff]  ;;  %v5865_v40 = vmul.f32 %v11772_v17, %v5852_v0  ;;  %v11929_v50 = vld [vmem:[#allocation7 + $0x1a] sm:$0xff]  ;;  %v11937_v26 = vmul.f32 %v11892_v44, %v5852_v0 }
 0xbcc   : > { %v13058_v27 = vld [vmem:[#allocation75_spill] sm:$0xff]  ;;  %v5786_v46 = vadd.f32 %v5778_v11, %v5757_v3  ;;  %v5894_v31 = vmul.f32 %v11779_v6, %v5881_v36  ;;  %5675 = vst.msk [vmem:[#allocation7 + $0x3f] sm:$0xff] %vm1118_vm0, %v5658_v29  ;;  %v11903_v3 = vmul.f32 %v11835_v14, %v11820_v61  ;;  %v5967_v11 = vadd.f32 %v5959_v42, %v5945_v23  ;;  %v11931_v10 = vld [vmem:[#allocation7 + $0x22] sm:$0xff] }
 0xbcd   : > { %v11860_v57 = vadd.f32 %v13058_v27, %v4779_v58  ;;  %v11878_v58 = vld [vmem:[%s12761_s21 + $0xc] ss:$0 sm:$0xff]  ;;  %v11897_v16 = vld [vmem:[%s12761_s21 + $0xf] ss:$0 sm:$0xff]  ;;  %v11908_v53 = vld [vmem:[%s12761_s21 + $0x10] ss:$0 sm:$0xff]  ;;  %v5694_v27 = vmul.f32 %v11736_v37, %v11864_v45  ;;  %v5981_v42 = vmul.f32 %v11873_v18, %v5765_v56  ;;  %v11926_v29 = vmul.f32 %v11873_v18, %v11823_v39 }
 0xbce   : > { %v5815_v33 = vadd.f32 %v5807_v43, %v5786_v46  ;;  %v11913_v41 = vld [vmem:[%s12761_s21 + $0x11] ss:$0 sm:$0xff]  ;;  %v5722_v46 = vmul.f32 %v11741_v34, %v11866_v49  ;;  %v5723_v43 = vmul.f32 %v11741_v34, %v11868_v13  ;;  %v6003_v51 = vmul.f32 %v11878_v58, %v5794_v20  ;;  %v11947_v20 = vld [vmem:[#allocation7 + $0x1b] sm:$0xff]  ;;  %v11969_v25 = vld [vmem:[#allocation7 + $0x24] sm:$0xff] }
 0xbcf   : > { %13059 = vst [vmem:[#allocation56_spill] sm:$0xff] %v11860_v57  ;;  %13060 = vst [vmem:[#allocation55_spill] sm:$0xff] %v11913_v41  ;;  %v5660_v24 = vpop.permute.xlu1 %5659  ;;  %v5787_v7 = vadd.f32 %v5779_v9, %v5758_v2  ;;  %v11934_v57 = vmul.f32 %v11887_v22, %v5823_v52  ;;  %v11940_v56 = vmul.f32 %v11897_v16, %v5881_v36  ;;  %v11957_v36 = vld [vmem:[#allocation7 + $0x23] sm:$0xff]  ;;  %v11959_v2 = vld [vmem:[#allocation7 + $0x14] sm:$0xff] }
 0xbd0   : > { %v5844_v23 = vadd.f32 %v5836_v54, %v5815_v33  ;;  %v11942_v54 = vld [vmem:[#allocation7 + $0x2a] sm:$0xff]  ;;  %5676 = vst.msk [vmem:[#allocation7 + $0x47] sm:$0xff] %vm1118_vm0, %v5660_v24  ;;  %v11951_v9 = vmul.f32 %v11908_v53, %v11797_v62  ;;  %v11955_v52 = vmul.f32 %v11913_v41, %v11803_v35  ;;  %v5730_v0 = vadd.f32 %v5722_v46, %v5693_v4  ;;  %v11981_v46 = vld [vmem:[#allocation7 + $0x15] sm:$0xff] }
 0xbd1   : > { %v11944_v33 = vld [vmem:[#allocation7 + $0x2b] sm:$0xff]  ;;  %v5989_v32 = vadd.f32 %v5981_v42, %v5967_v11  ;;  %v5731_v24 = vadd.f32 %v5723_v43, %v5694_v27  ;;  %v5752_v62 = vmul.f32 %v11748_v1, %v11931_v10  ;;  %v11973_v4 = vmul.f32 %v11748_v1, %v11942_v54  ;;  %v12012_v39 = vld [vmem:[#allocation7 + $0x17] sm:$0xff] }
 0xbd2   : > { %13061 = vst [vmem:[#allocation58_spill] sm:$0xff] %v11944_v33  ;;  %v5873_v48 = vadd.f32 %v5865_v40, %v5844_v23  ;;  %v11961_v28 = vld [vmem:[#allocation7 + $0x30] sm:$0xff]  ;;  %v5751_v40 = vmul.f32 %v11748_v1, %v11929_v50  ;;  %v11967_v23 = vld [vmem:[#allocation7 + $0x1c] sm:$0xff]  ;;  %v11977_v11 = vmul.f32 %v11754_v63, %v11944_v33  ;;  %v5780_v27 = vmul.f32 %v11754_v63, %v11947_v20  ;;  %v11989_v21 = vld [vmem:[#allocation7 + $0x25] sm:$0xff] }
 0xbd3   : > { %13062 = vst [vmem:[#allocation57_spill] sm:$0xff] %v11961_v28  ;;  %13063 = vst [vmem:[#allocation60_spill] sm:$0xff] %v11973_v4  ;;  %v5760_v42 = vadd.f32 %v5752_v62, %v5731_v24  ;;  %v5781_v47 = vmul.f32 %v11754_v63, %v11957_v36  ;;  %v5696_v19 = vmul.f32 %v11736_v37, %v11961_v28  ;;  %v11998_v24 = vld [vmem:[#allocation7 + $0x16] sm:$0xff] }
 0xbd4   : > { %v5902_v35 = vadd.f32 %v5894_v31, %v5873_v48  ;;  %13064 = vst [vmem:[#allocation59_spill] sm:$0xff] %v11977_v11  ;;  %v5759_v43 = vadd.f32 %v5751_v40, %v5730_v0  ;;  %v5808_v48 = vmul.f32 %v11760_v15, %v11959_v2  ;;  %v11987_v31 = vld [vmem:[#allocation7 + $0x1d] sm:$0xff]  ;;  %v5809_v59 = vmul.f32 %v11760_v15, %v11967_v23  ;;  %v12000_v40 = vld [vmem:[#allocation7 + $0x31] sm:$0xff] }
 0xbd5   : > { %v5810_v0 = vmul.f32 %v11760_v15, %v11969_v25  ;;  %13065 = vst [vmem:[#allocation67_spill] sm:$0xff] %v12000_v40  ;;  %v5789_v11 = vadd.f32 %v5781_v47, %v5760_v42  ;;  %v5837_v4 = vmul.f32 %v11766_v5, %v11981_v46  ;;  %v6011_v1 = vadd.f32 %v6003_v51, %v5989_v32  ;;  %v12016_v42 = vld [vmem:[#allocation7 + $0x1f] sm:$0xff] }
 0xbd6   : > { %v5924_v8 = vadd.f32 %v11855_v12, %v5902_v35  ;;  %v5788_v62 = vadd.f32 %v5780_v27, %v5759_v43  ;;  %v5816_v63 = vadd.f32 %v5808_v48, %v5787_v7  ;;  %v12004_v12 = vld [vmem:[#allocation7 + $0x1e] sm:$0xff]  ;;  %v12006_v35 = vld [vmem:[#allocation7 + $0x26] sm:$0xff]  ;;  %v5838_v33 = vmul.f32 %v11766_v5, %v11987_v31 }
 0xbd7   : > { %v5839_v15 = vmul.f32 %v11766_v5, %v11989_v21  ;;  %v5818_v47 = vadd.f32 %v5810_v0, %v5789_v11  ;;  %v5866_v43 = vmul.f32 %v11772_v17, %v11998_v24  ;;  %v12018_v48 = vld [vmem:[#allocation7 + $0x27] sm:$0xff]  ;;  %v5725_v51 = vmul.f32 %v11741_v34, %v12000_v40 }
 0xbd8   : > { %v5946_v28 = vadd.f32 %v5938_v55, %v5924_v8  ;;  %v5817_v27 = vadd.f32 %v5809_v59, %v5788_v62  ;;  %v5845_v7 = vadd.f32 %v5837_v4, %v5816_v63  ;;  %v5867_v8 = vmul.f32 %v11772_v17, %v12004_v12  ;;  %v12027_v55 = vld [vmem:[#allocation7 + $0x28] sm:$0xff] }
 0xbd9   : > { %v5868_v59 = vmul.f32 %v11772_v17, %v12006_v35  ;;  %v12029_v63 = vld [vmem:[#allocation7 + $0x29] sm:$0xff]  ;;  %v5847_v11 = vadd.f32 %v5839_v15, %v5818_v47  ;;  %v5895_v62 = vmul.f32 %v11779_v6, %v12012_v39  ;;  %v5896_v5 = vmul.f32 %v11779_v6, %v12016_v42 }
 0xbda   : > { %v5968_v32 = vadd.f32 %v11903_v3, %v5946_v28  ;;  %v5846_v4 = vadd.f32 %v5838_v33, %v5817_v27  ;;  %v5874_v0 = vadd.f32 %v5866_v43, %v5845_v7  ;;  %v6033_v28 = vadd.f32 %v11934_v57, %v6011_v1 }
 0xbdb   : > { %v12036_v3 = vmul.f32 %v11813_v60, %v12000_v40  ;;  %v5897_v17 = vmul.f32 %v11779_v6, %v12018_v48  ;;  %v5876_v61 = vadd.f32 %v5868_v59, %v5847_v11  ;;  %v5917_v15 = vmul.f32 %v11794_v30, %v11857_v38 }
 0xbdc   : > { %v5875_v41 = vadd.f32 %v5867_v8, %v5846_v4  ;;  %v5903_v33 = vadd.f32 %v5895_v62, %v5874_v0  ;;  %v5990_v27 = vadd.f32 %v11926_v29, %v5968_v32  ;;  %v5695_v1 = vmul.f32 %v11736_v37, %v12027_v55 }
 0xbdd   : > { %v5724_v57 = vmul.f32 %v11741_v34, %v12029_v63  ;;  %v5918_v47 = vmul.f32 %v11794_v30, %v11864_v45  ;;  %v5905_v43 = vadd.f32 %v5897_v17, %v5876_v61  ;;  %v5939_v8 = vmul.f32 %v11813_v60, %v11866_v49 }
 0xbde   : > { %v5904_v7 = vadd.f32 %v5896_v5, %v5875_v41  ;;  %v5925_v40 = vadd.f32 %v5917_v15, %v5903_v33  ;;  %v6055_v59 = vadd.f32 %v11937_v26, %v6033_v28  ;;  %v12054_v4 = vadd.f32 %v5725_v51, %v5696_v19 }
 0xbdf   : > { %v5919_v29 = vmul.f32 %v11794_v30, %v12027_v55  ;;  %v5940_v32 = vmul.f32 %v11813_v60, %v11868_v13  ;;  %v5961_v5 = vmul.f32 %v11835_v14, %v11929_v50  ;;  %v6004_v17 = vmul.f32 %v11878_v58, %v11959_v2 }
 0xbe0   : > { %v5926_v11 = vadd.f32 %v5918_v47, %v5904_v7  ;;  %v5947_v0 = vadd.f32 %v5939_v8, %v5925_v40  ;;  %v12064_v61 = vadd.f32 %v5724_v57, %v5695_v1  ;;  %v5962_v19 = vmul.f32 %v11835_v14, %v11931_v10 }
 0xbe1   : > { %v5927_v41 = vadd.f32 %v5919_v29, %v5905_v43  ;;  %v5983_v26 = vmul.f32 %v11873_v18, %v11947_v20  ;;  %v6012_v28 = vadd.f32 %v6004_v17, %v5990_v27  ;;  %v6026_v40 = vmul.f32 %v11887_v22, %v11981_v46  ;;  %v12092_v17 = vld [vmem:[%s12761_s21 + $0x12] ss:$0 sm:$0xff] }
 0xbe2   : > { %v5948_v51 = vadd.f32 %v5940_v32, %v5926_v11  ;;  %v5969_v62 = vadd.f32 %v5961_v5, %v5947_v0  ;;  %v6077_v33 = vadd.f32 %v11940_v56, %v6055_v59  ;;  %v5941_v15 = vmul.f32 %v11813_v60, %v12029_v63  ;;  %13066 = vst [vmem:[#allocation69_spill] sm:$0xff] %v12092_v17  ;;  %v12282_v60 = vld [vmem:[#allocation7 + $0x36] sm:$0xff] }
 0xbe3   : > { %v5984_v1 = vmul.f32 %v11873_v18, %v11957_v36  ;;  %v6005_v57 = vmul.f32 %v11878_v58, %v11967_v23  ;;  %v6034_v43 = vadd.f32 %v6026_v40, %v6012_v28  ;;  %v6048_v27 = vmul.f32 %v11892_v44, %v11998_v24 }
 0xbe4   : > { %v5970_v47 = vadd.f32 %v5962_v19, %v5948_v51  ;;  %v5991_v7 = vadd.f32 %v5983_v26, %v5969_v62  ;;  %v5949_v8 = vadd.f32 %v5941_v15, %v5927_v41  ;;  %v5963_v29 = vmul.f32 %v11835_v14, %v11942_v54  ;;  %v8489_v41 = vld [vmem:[#allocation34 + $0x18] sm:$0xff]  }
 0xbe5   : > { %v6006_v56 = vmul.f32 %v11878_v58, %v11969_v25  ;;  %v6027_v59 = vmul.f32 %v11887_v22, %v11987_v31  ;;  %v6056_v0 = vadd.f32 %v6048_v27, %v6034_v43  ;;  %v6070_v5 = vmul.f32 %v11897_v16, %v12012_v39  ;;  %8069 = vmatprep.subr.bf16.mxu0 %v8489_v41  ;;  %v13068_v27 = vld [vmem:[#allocation62_spill] sm:$0xff] }
 0xbe6   : > { %v5992_v32 = vadd.f32 %v5984_v1, %v5970_v47  ;;  %v6013_v11 = vadd.f32 %v6005_v57, %v5991_v7  ;;  %v6028_v19 = vmul.f32 %v11887_v22, %v11989_v21  ;;  %v6049_v26 = vmul.f32 %v11892_v44, %v12004_v12  ;;  %v12106_v57 = vld [vmem:[%s12761_s21 + $0x13] ss:$0 sm:$0xff]  ;;  %8070 = vmatpush3.bf16.msra.mxu0 %v8489_v41 }
 0xbe7   : > { %v6050_v51 = vmul.f32 %v11892_v44, %v12006_v35  ;;  %v6099_v62 = vadd.f32 %v11951_v9, %v6077_v33  ;;  %v6078_v15 = vadd.f32 %v6070_v5, %v6056_v0  ;;  %v6092_v1 = vmul.f32 %v11908_v53, %v11857_v38  ;;  %13067 = vst [vmem:[#allocation74_spill] sm:$0xff] %v12106_v57  ;;  %v12118_v0 = vld [vmem:[%s12761_s21 + $0x14] ss:$0 sm:$0xff] }
 0xbe8   : > { %v6014_v28 = vadd.f32 %v6006_v56, %v5992_v32  ;;  %v6035_v40 = vadd.f32 %v6027_v59, %v6013_v11  ;;  %v5971_v47 = vadd.f32 %v5963_v29, %v5949_v8  ;;  %v6071_v7 = vmul.f32 %v11897_v16, %v12016_v42  ;;  %v13069_v32 = vld [vmem:[#allocation55_spill] sm:$0xff]  ;;  %13070 = vst [vmem:[#allocation75_spill] sm:$0xff] %v12118_v0  ;;  %v13071_v5 = vld [vmem:[#allocation64_spill] sm:$0xff] }
 0xbe9   : > { %v6121_v43 = vadd.f32 %v11955_v52, %v6099_v62  ;;  %v6135_v9 = vmul.f32 %v12092_v17, %v13068_v27  ;;  %v6100_v59 = vadd.f32 %v6092_v1, %v6078_v15  ;;  %v6114_v11 = vmul.f32 %v13069_v32, %v11866_v49 }
 0xbea   : > { %v6036_v33 = vadd.f32 %v6028_v19, %v6014_v28  ;;  %v6057_v56 = vadd.f32 %v6049_v26, %v6035_v40  ;;  %v6072_v8 = vmul.f32 %v11897_v16, %v12018_v48  ;;  %v6093_v52 = vmul.f32 %v11908_v53, %v11864_v45  ;;  %v12131_v40 = vld [vmem:[%s12761_s21 + $0x15] ss:$0 sm:$0xff] }
 0xbeb   : > { %v6143_v29 = vadd.f32 %v6135_v9, %v6121_v43  ;;  %v6157_v41 = vmul.f32 %v12106_v57, %v13071_v5  ;;  %v6122_v62 = vadd.f32 %v6114_v11, %v6100_v59  ;;  %v6136_v28 = vmul.f32 %v12092_v17, %v11929_v50  ;;  %13072 = vst [vmem:[#allocation62_spill] sm:$0xff] %v12131_v40 }
 0xbec   : > { %v6058_v19 = vadd.f32 %v6050_v51, %v6036_v33  ;;  %v6079_v26 = vadd.f32 %v6071_v7, %v6057_v56  ;;  %v6094_v15 = vmul.f32 %v11908_v53, %v12027_v55  ;;  %v6115_v1 = vmul.f32 %v13069_v32, %v11868_v13  ;;  %v12144_v56 = vld [vmem:[%s12761_s21 + $0x16] ss:$0 sm:$0xff] }
 0xbed   : > { %v6165_v43 = vadd.f32 %v6157_v41, %v6143_v29  ;;  %v6179_v51 = vmul.f32 %v12118_v0, %v11959_v2  ;;  %v6144_v9 = vadd.f32 %v6136_v28, %v6122_v62  ;;  %v6158_v33 = vmul.f32 %v12106_v57, %v11947_v20 }
 0xbee   : > { %v6080_v7 = vadd.f32 %v6072_v8, %v6058_v19  ;;  %v6101_v27 = vadd.f32 %v6093_v52, %v6079_v26  ;;  %v6116_v59 = vmul.f32 %v13069_v32, %v12029_v63  ;;  %v6137_v11 = vmul.f32 %v12092_v17, %v11931_v10  ;;  %v12157_v19 = vld [vmem:[%s12761_s21 + $0x17] ss:$0 sm:$0xff]  ;;  %v13073_v26 = vld [vmem:[#allocation58_spill] sm:$0xff]  ;;  %v12274_v32 = vld [vmem:[#allocation7 + $0x2f] sm:$0xff] }
 0xbef   : > { %v6187_v29 = vadd.f32 %v6179_v51, %v6165_v43  ;;  %v6201_v2 = vmul.f32 %v12131_v40, %v11981_v46  ;;  %v6166_v5 = vadd.f32 %v6158_v33, %v6144_v9  ;;  %v6180_v41 = vmul.f32 %v12118_v0, %v11967_v23 }
 0xbf0   : > { %v6102_v8 = vadd.f32 %v6094_v15, %v6080_v7  ;;  %v6123_v52 = vadd.f32 %v6115_v1, %v6101_v27  ;;  %v5985_v62 = vmul.f32 %v11873_v18, %v13073_v26  ;;  %v6159_v28 = vmul.f32 %v12106_v57, %v11957_v36  ;;  %v12170_v27 = vld [vmem:[%s12761_s21 + $0x18] ss:$0 sm:$0xff] }
 0xbf1   : > { %v6209_v43 = vadd.f32 %v6201_v2, %v6187_v29  ;;  %v6223_v46 = vmul.f32 %v12144_v56, %v11998_v24  ;;  %v6188_v51 = vadd.f32 %v6180_v41, %v6166_v5  ;;  %v6202_v7 = vmul.f32 %v12131_v40, %v11987_v31 }
 0xbf2   : > { %v6124_v15 = vadd.f32 %v6116_v59, %v6102_v8  ;;  %v6145_v1 = vadd.f32 %v6137_v11, %v6123_v52  ;;  %v12172_v9 = vadd.f32 %v5985_v62, %v5971_v47  ;;  %v6138_v33 = vmul.f32 %v12092_v17, %v11942_v54  ;;  %v12185_v47 = vld [vmem:[%s12761_s21 + $0x19] ss:$0 sm:$0xff] }
 0xbf3   : > { %v6231_v29 = vadd.f32 %v6223_v46, %v6209_v43  ;;  %v6245_v24 = vmul.f32 %v12157_v19, %v12012_v39  ;;  %v6181_v11 = vmul.f32 %v12118_v0, %v11969_v25  ;;  %v6210_v2 = vadd.f32 %v6202_v7, %v6188_v51 }
 0xbf4   : > { %v6167_v59 = vadd.f32 %v6159_v28, %v6145_v1  ;;  %v6224_v8 = vmul.f32 %v12144_v56, %v12004_v12  ;;  %v6160_v52 = vmul.f32 %v12106_v57, %v13073_v26  ;;  %v6203_v5 = vmul.f32 %v12131_v40, %v11989_v21  ;;  %v12198_v1 = vld [vmem:[%s12761_s21 + $0x1a] ss:$0 sm:$0xff]  ;;  %v12259_v57 = vld [vmem:[%s12761_s21 + $0x1e] ss:$0 sm:$0xff] }
 0xbf5   : > { %v6253_v39 = vadd.f32 %v6245_v24, %v6231_v29  ;;  %v6267_v41 = vmul.f32 %v12170_v27, %v11857_v38  ;;  %v6146_v62 = vadd.f32 %v6138_v33, %v6124_v15  ;;  %v6246_v46 = vmul.f32 %v12157_v19, %v12016_v42  ;;  %v12206_v15 = vld [vmem:[#allocation7 + $0x32] sm:$0xff] }
 0xbf6   : > { %v6189_v28 = vadd.f32 %v6181_v11, %v6167_v59  ;;  %v6232_v43 = vadd.f32 %v6224_v8, %v6210_v2  ;;  %v6225_v51 = vmul.f32 %v12144_v56, %v12006_v35  ;;  %v6247_v7 = vmul.f32 %v12157_v19, %v12018_v48  ;;  %v12215_v11 = vld [vmem:[%s12761_s21 + $0x1b] ss:$0 sm:$0xff] }
 0xbf7   : > { %v6275_v29 = vadd.f32 %v6267_v41, %v6253_v39  ;;  %v6289_v38 = vmul.f32 %v12185_v47, %v11866_v49  ;;  %v6268_v42 = vmul.f32 %v12170_v27, %v11864_v45  ;;  %v6269_v59 = vmul.f32 %v12170_v27, %v12027_v55  ;;  %v12230_v41 = vld [vmem:[%s12761_s21 + $0x1c] ss:$0 sm:$0xff] }
 0xbf8   : > { %v6211_v33 = vadd.f32 %v6203_v5, %v6189_v28  ;;  %v6254_v24 = vadd.f32 %v6246_v46, %v6232_v43  ;;  %v6290_v48 = vmul.f32 %v12185_v47, %v11868_v13  ;;  %v6291_v49 = vmul.f32 %v12185_v47, %v12029_v63  ;;  %v12223_v5 = vld [vmem:[#allocation7 + $0x33] sm:$0xff]  ;;  %v13074_v13 = vld [vmem:[#allocation77_spill] sm:$0xff] }
 0xbf9   : > { %v6297_v2 = vadd.f32 %v6289_v38, %v6275_v29  ;;  %v6311_v8 = vmul.f32 %v12198_v1, %v11929_v50  ;;  %v12225_v45 = vadd.f32 %v6160_v52, %v6146_v62  ;;  %v5754_v28 = vmul.f32 %v13074_v13, %v12206_v15  ;;  %v12234_v43 = vld [vmem:[#allocation7 + $0x2c] sm:$0xff]  ;;  %v12243_v62 = vld [vmem:[%s12761_s21 + $0x1d] ss:$0 sm:$0xff]  ;;  %v13075_v46 = vld [vmem:[#allocation60_spill] sm:$0xff] }
 0xbfa   : > { %v6233_v55 = vadd.f32 %v6225_v51, %v6211_v33  ;;  %v6276_v39 = vadd.f32 %v6268_v42, %v6254_v24  ;;  %v6312_v63 = vmul.f32 %v12198_v1, %v11931_v10  ;;  %v6333_v52 = vmul.f32 %v12215_v11, %v11947_v20  ;;  %v13076_v24 = vld [vmem:[#allocation65_spill] sm:$0xff]  ;;  %v12250_v10 = vld [vmem:[#allocation7 + $0x34] sm:$0xff] }
 0xbfb   : > { %v6319_v50 = vadd.f32 %v6311_v8, %v6297_v2  ;;  %v5761_v51 = vadd.f32 %v13075_v46, %v12064_v61  ;;  %v5762_v33 = vadd.f32 %v5754_v28, %v12054_v4  ;;  %v5783_v42 = vmul.f32 %v13076_v24, %v12223_v5  ;;  %v12252_v2 = vld [vmem:[#allocation7 + $0x2d] sm:$0xff] }
 0xbfc   : > { %v6255_v29 = vadd.f32 %v6247_v7, %v6233_v55  ;;  %v6298_v38 = vadd.f32 %v6290_v48, %v6276_v39  ;;  %v6355_v8 = vmul.f32 %v12230_v41, %v11967_v23  ;;  %v13077_v61 = vld [vmem:[#allocation59_spill] sm:$0xff]  ;;  %v13078_v4 = vld [vmem:[#allocation68_spill] sm:$0xff]  ;;  %v6334_v39 = vmul.f32 %v12215_v11, %v11957_v36 }
 0xbfd   : > { %v6341_v20 = vadd.f32 %v6333_v52, %v6319_v50  ;;  %v5790_v7 = vadd.f32 %v13077_v61, %v5761_v51  ;;  %v5811_v48 = vmul.f32 %v13078_v4, %v12234_v43  ;;  %v6377_v28 = vmul.f32 %v12243_v62, %v11987_v31  ;;  %v12268_v52 = vld [vmem:[#allocation7 + $0x2e] sm:$0xff] }
 0xbfe   : > { %v6320_v55 = vadd.f32 %v6312_v63, %v6298_v38  ;;  %v5791_v50 = vadd.f32 %v5783_v42, %v5762_v33  ;;  %v5812_v46 = vmul.f32 %v13078_v4, %v12250_v10  ;;  %v13079_v51 = vld [vmem:[#allocation63_spill] sm:$0xff]  ;;  %v6277_v63 = vadd.f32 %v6269_v59, %v6255_v29  ;;  %v12280_v33 = vld [vmem:[#allocation7 + $0x35] sm:$0xff] }
 0xbff   : > { %v6363_v23 = vadd.f32 %v6355_v8, %v6341_v20  ;;  %v5819_v17 = vadd.f32 %v5811_v48, %v5790_v7  ;;  %v5840_v61 = vmul.f32 %v13079_v51, %v12252_v2  ;;  %v6356_v36 = vmul.f32 %v12230_v41, %v11969_v25  ;;  %v13080_v7 = vld [vmem:[#allocation66_spill] sm:$0xff] }
 0xc00   : > { %v6342_v38 = vadd.f32 %v6334_v39, %v6320_v55  ;;  %v6399_v31 = vmul.f32 %v12259_v57, %v12004_v12  ;;  %v5820_v20 = vadd.f32 %v5812_v46, %v5791_v50  ;;  %v5869_v48 = vmul.f32 %v13080_v7, %v12268_v52 }
 0xc01   : > { %v6385_v42 = vadd.f32 %v6377_v28, %v6363_v23  ;;  %v5848_v8 = vadd.f32 %v5840_v61, %v5819_v17  ;;  %v6378_v59 = vmul.f32 %v12243_v62, %v11989_v21  ;;  %v6400_v25 = vmul.f32 %v12259_v57, %v12006_v35  ;;  %v12295_v17 = vld [vmem:[%s12762_s22] ss:$0 sm:$0xff] }
 0xc02   : > { %v6364_v4 = vadd.f32 %v6356_v36, %v6342_v38  ;;  %v6007_v12 = vmul.f32 %v11878_v58, %v12234_v43  ;;  %v5841_v55 = vmul.f32 %v13079_v51, %v12280_v33  ;;  %v5898_v28 = vmul.f32 %v11779_v6, %v12274_v32  ;;  %v13081_v38 = vld [vmem:[#allocation57_spill] sm:$0xff] }
 0xc03   : > { %v6407_v29 = vadd.f32 %v6399_v31, %v6385_v42  ;;  %v5877_v39 = vadd.f32 %v5869_v48, %v5848_v8  ;;  %v6299_v21 = vadd.f32 %v6291_v49, %v6277_v63  ;;  %v5870_v35 = vmul.f32 %v13080_v7, %v12282_v60 }
 0xc04   : > { %v6386_v50 = vadd.f32 %v6378_v59, %v6364_v4  ;;  %v6015_v23 = vadd.f32 %v6007_v12, %v12172_v9  ;;  %v5849_v46 = vadd.f32 %v5841_v55, %v5820_v20  ;;  %v5920_v36 = vmul.f32 %v11794_v30, %v13081_v38 }
 0xc05   : > { %v5906_v61 = vadd.f32 %v5898_v28, %v5877_v39  ;;  %v5964_v31 = vmul.f32 %v11835_v14, %v12206_v15  ;;  %v6422_v8 = vadd.f32 %v12295_v17, %v6407_v29  ;;  %v6029_v49 = vmul.f32 %v11887_v22, %v12252_v2 }
 0xc06   : > { %v6408_v42 = vadd.f32 %v6400_v25, %v6386_v50  ;;  %v6182_v4 = vmul.f32 %v12118_v0, %v12234_v43  ;;  %v5986_v9 = vmul.f32 %v11873_v18, %v12223_v5  ;;  %v6008_v20 = vmul.f32 %v11878_v58, %v12250_v10 }
 0xc07   : > { %v5928_v63 = vadd.f32 %v5920_v36, %v5906_v61  ;;  %v6030_v48 = vmul.f32 %v11887_v22, %v12280_v33  ;;  %v6037_v25 = vadd.f32 %v6029_v49, %v6015_v23  ;;  %v6204_v29 = vmul.f32 %v12131_v40, %v12252_v2  ;;  %v12330_v61 = vpop.f32.mrf.mxu1  ;;  %v13083_v36 = vld [vmem:[#allocation80_spill] sm:$0xff] }
 0xc08   : > { %v6423_v59 = vadd.f32 %v12295_v17, %v6408_v42  ;;  %v6190_v12 = vadd.f32 %v6182_v4, %v12225_v45  ;;  %v12323_v55 = vadd.f32 %v5870_v35, %v5849_v46  ;;  %v6051_v28 = vmul.f32 %v11892_v44, %v12268_v52  ;;  %13082 = vst [vmem:[#allocation64_spill] sm:$0xff] %v12330_v61  ;;  %v13084_v23 = vld [vmem:[#allocation84_spill] sm:$0xff] }
 0xc09   : > { %v5950_v39 = vadd.f32 %v12036_v3, %v5928_v63  ;;  %v6313_v50 = vmul.f32 %v12198_v1, %v11942_v54  ;;  %v6430_v42 = vmul.f32 %v6422_v8, %v13083_v36  ;;  %v6226_v4 = vmul.f32 %v12144_v56, %v12268_v52 }
 0xc0a   : > { %v6431_v49 = vmul.f32 %v6423_v59, %v13084_v23  ;;  %v6212_v45 = vadd.f32 %v6204_v29, %v6190_v12  ;;  %v12338_v3 = vmul.f32 %v11892_v44, %v12282_v60  ;;  %v6335_v63 = vmul.f32 %v12215_v11, %v13073_v26  ;;  %v13085_v59 = vld [vmem:[#allocation71_spill] sm:$0xff]  ;;  %v13086_v23 = vld [vmem:[#allocation70_spill] sm:$0xff] }
 0xc0b   : > { %v5972_v35 = vadd.f32 %v5964_v31, %v5950_v39  ;;  %v6321_v46 = vadd.f32 %v6313_v50, %v6299_v21  ;;  %v6059_v61 = vadd.f32 %v6051_v28, %v6037_v25  ;;  %v6248_v8 = vmul.f32 %v12157_v19, %v12274_v32  ;;  %v12347_v39 = vld [vmem:[#allocation7 + $0x38] sm:$0xff] }
 0xc0c   : > { %v6438_v54 = vpack.c.bf16 %v6431_v49, %v6430_v42  ;;  %v8031_v40 = vpop.f32.mrf.mxu1  ;;  %v6234_v0 = vadd.f32 %v6226_v4, %v6212_v45  ;;  %v6357_v31 = vmul.f32 %v12230_v41, %v12234_v43  ;;  %v12349_v21 = vld [vmem:[#allocation7 + $0x39] sm:$0xff]  ;;  %v6073_v26 = vmul.f32 %v11897_v16, %v12274_v32  ;;  %v13087_v4 = vld [vmem:[#allocation67_spill] sm:$0xff] }
 0xc0d   : > { %v4970_v12 = vadd.f32 %v8031_v40, %v13085_v59  ;;  %v5994_v29 = vadd.f32 %v5986_v9, %v5972_v35  ;;  %v6343_v36 = vadd.f32 %v6335_v63, %v6321_v46  ;;  %v6095_v25 = vmul.f32 %v11908_v53, %v13081_v38  ;;  %v12362_v45 = vld [vmem:[#allocation7 + $0x3a] sm:$0xff] }
 0xc0e   : > { %8061 = vmatprep.mubr.msk.bf16.mxu1 %vm1118_vm0, %v6438_v54  ;;  %v6256_v28 = vadd.f32 %v6248_v8, %v6234_v0  ;;  %v6270_v40 = vmul.f32 %v12170_v27, %v13081_v38  ;;  %v4937_v9 = vpop.f32.mrf.mxu1  ;;  %v6379_v42 = vmul.f32 %v12243_v62, %v12252_v2  ;;  %v6292_v35 = vmul.f32 %v12185_v47, %v13087_v4  ;;  %v13088_v54 = vld [vmem:[#allocation73_spill] sm:$0xff] }
 0xc0f   : > { %4978 = vst.msk [vmem:[#allocation6 + $0x10] sm:$0xff] %vm1118_vm0, %v4970_v12  ;;  %v6016_v43 = vadd.f32 %v6008_v20, %v5994_v29  ;;  %v6365_v50 = vadd.f32 %v6357_v31, %v6343_v36  ;;  %v4968_v49 = vadd.f32 %v4937_v9, %v13086_v23  ;;  %v5697_v38 = vmul.f32 %v11736_v37, %v12347_v39  ;;  %v12374_v59 = vld [vmem:[#allocation7 + $0x3b] sm:$0xff] }
 0xc10   : > { %v6278_v32 = vadd.f32 %v6270_v40, %v6256_v28  ;;  %v8032_v0 = vpop.f32.mrf.mxu1  ;;  %v5726_v46 = vmul.f32 %v11741_v34, %v12349_v21  ;;  %v6081_v20 = vadd.f32 %v6073_v26, %v6059_v61  ;;  %v6401_v2 = vmul.f32 %v12259_v57, %v12268_v52  ;;  %v12376_v12 = vld [vmem:[#allocation7 + $0x37] sm:$0xff] }
 0xc11   : > { %v6387_v63 = vadd.f32 %v6379_v42, %v6365_v50  ;;  %4976 = vst.msk [vmem:[#allocation6] sm:$0xff] %vm1118_vm0, %v4968_v49  ;;  %v4971_v8 = vadd.f32 %v8032_v0, %v13088_v54  ;;  %v6314_v37 = vmul.f32 %v12198_v1, %v12206_v15  ;;  %v5755_v34 = vmul.f32 %v13074_v13, %v12362_v45  ;;  %v12382_v61 = vld [vmem:[#allocation7 + $0x3c] sm:$0xff]  ;;  %v13089_v40 = vld [vmem:[#allocation72_spill] sm:$0xff] }
 0xc12   : > { %v6300_v29 = vadd.f32 %v6292_v35, %v6278_v32  ;;  %v4940_v36 = vpop.f32.mrf.mxu1  ;;  %v5734_v31 = vadd.f32 %v5726_v46, %v5697_v38  ;;  %v6038_v52 = vadd.f32 %v6030_v48, %v6016_v43  ;;  %v6336_v26 = vmul.f32 %v12215_v11, %v12223_v5  ;;  %v12390_v49 = vld [vmem:[#allocation7 + $0x3d] sm:$0xff]  ;;  %v13090_v35 = vld [vmem:[#allocation68_spill] sm:$0xff] }
 0xc13   : > { %v6409_v28 = vadd.f32 %v6401_v2, %v6387_v63  ;;  %4979 = vst.msk [vmem:[#allocation6 + $0x18] sm:$0xff] %vm1118_vm0, %v4971_v8  ;;  %v4969_v9 = vadd.f32 %v4940_v36, %v13089_v40  ;;  %v5784_v23 = vmul.f32 %v13076_v24, %v12374_v59  ;;  %v5899_v13 = vmul.f32 %v11779_v6, %v12376_v12  ;;  %v12401_v38 = vld [vmem:[#allocation7 + $0x3e] sm:$0xff] }
 0xc14   : > { %v6322_v50 = vadd.f32 %v6314_v37, %v6300_v29  ;;  %v5763_v42 = vadd.f32 %v5755_v34, %v5734_v31  ;;  %v6103_v32 = vadd.f32 %v6095_v25, %v6081_v20  ;;  %v6358_v48 = vmul.f32 %v12230_v41, %v12250_v10  ;;  %v12403_v63 = vld [vmem:[#allocation7 + $0x3f] sm:$0xff] }
 0xc15   : > { %v6380_v43 = vmul.f32 %v12243_v62, %v12280_v33  ;;  %4977 = vst.msk [vmem:[#allocation6 + $0x8] sm:$0xff] %vm1118_vm0, %v4969_v9  ;;  %v5813_v0 = vmul.f32 %v13090_v35, %v12382_v61  ;;  %v5907_v2 = vadd.f32 %v5899_v13, %v12323_v55  ;;  %v12406_v25 = vld [vmem:[#allocation7 + $0x40] sm:$0xff]  ;;  %v5921_v20 = vmul.f32 %v11794_v30, %v12347_v39  ;;  %v13092_v35 = vld [vmem:[#allocation79_spill] sm:$0xff] }
 0xc16   : > { %v6344_v24 = vadd.f32 %v6336_v26, %v6322_v50  ;;  %v5792_v46 = vadd.f32 %v5784_v23, %v5763_v42  ;;  %v12410_v54 = vld [vmem:[#allocation7 + $0x41] sm:$0xff]  ;;  %v6060_v8 = vadd.f32 %v12338_v3, %v6038_v52  ;;  %v6402_v29 = vmul.f32 %v12259_v57, %v12282_v60 }
 0xc17   : > { %v6424_v37 = vadd.f32 %v12295_v17, %v6409_v28  ;;  %v5842_v36 = vmul.f32 %v13079_v51, %v12390_v49  ;;  %v5929_v55 = vadd.f32 %v5921_v20, %v5907_v2  ;;  %v13091_v26 = vld [vmem:[#allocation78_spill] sm:$0xff]  ;;  %v5871_v50 = vmul.f32 %v13080_v7, %v12401_v38 }
 0xc18   : > { %v6366_v31 = vadd.f32 %v6358_v48, %v6344_v24  ;;  %v5821_v34 = vadd.f32 %v5813_v0, %v5792_v46  ;;  %v5943_v40 = vmul.f32 %v13091_v26, %v12349_v21  ;;  %v12420_v9 = vld [vmem:[#allocation7 + $0x42] sm:$0xff]  ;;  %v5900_v3 = vmul.f32 %v11779_v6, %v12403_v63 }
 0xc19   : > { %v5922_v52 = vmul.f32 %v11794_v30, %v12406_v25  ;;  %v5944_v51 = vmul.f32 %v13091_v26, %v12410_v54  ;;  %v12430_v28 = vld [vmem:[#allocation7 + $0x43] sm:$0xff]  ;;  %v5965_v48 = vmul.f32 %v11835_v14, %v12362_v45  ;;  %v6432_v0 = vmul.f32 %v6424_v37, %v13092_v35 }
 0xc1a   : > { %v6388_v42 = vadd.f32 %v6380_v43, %v6366_v31  ;;  %v5850_v23 = vadd.f32 %v5842_v36, %v5821_v34  ;;  %v5951_v13 = vadd.f32 %v5943_v40, %v5929_v55  ;;  %v5966_v7 = vmul.f32 %v11835_v14, %v12420_v9  ;;  %v12439_v30 = vld [vmem:[#allocation7 + $0x44] sm:$0xff]  ;;  %v13093_v31 = vld [vmem:[#allocation55_spill] sm:$0xff] }
 0xc1b   : > { %v5987_v6 = vmul.f32 %v11873_v18, %v12374_v59  ;;  %v6074_v24 = vmul.f32 %v11897_v16, %v12376_v12  ;;  %v5988_v20 = vmul.f32 %v11873_v18, %v12430_v28  ;;  %v6009_v37 = vmul.f32 %v11878_v58, %v12382_v61 }
 0xc1c   : > { %v6410_v46 = vadd.f32 %v6402_v29, %v6388_v42  ;;  %v5879_v43 = vadd.f32 %v5871_v50, %v5850_v23  ;;  %v5973_v2 = vadd.f32 %v5965_v48, %v5951_v13  ;;  %v6096_v14 = vmul.f32 %v11908_v53, %v12347_v39  ;;  %v13095_v13 = vld [vmem:[#allocation83_spill] sm:$0xff] }
 0xc1d   : > { %v6082_v36 = vadd.f32 %v6074_v24, %v6060_v8  ;;  %v6117_v34 = vmul.f32 %v13093_v31, %v13087_v4  ;;  %v6010_v29 = vmul.f32 %v11878_v58, %v12439_v30  ;;  %v6118_v18 = vmul.f32 %v13093_v31, %v12349_v21  ;;  %v13094_v8 = vld [vmem:[#allocation69_spill] sm:$0xff] }
 0xc1e   : > { %v6425_v55 = vadd.f32 %v12295_v17, %v6410_v46  ;;  %v5908_v26 = vadd.f32 %v5900_v3, %v5879_v43  ;;  %v5995_v40 = vadd.f32 %v5987_v6, %v5973_v2  ;;  %v6139_v23 = vmul.f32 %v13094_v8, %v12206_v15  ;;  %v12461_v3 = vld [vmem:[#allocation7 + $0x45] sm:$0xff] }
 0xc1f   : > { %v6104_v50 = vadd.f32 %v6096_v14, %v6082_v36  ;;  %v6125_v42 = vadd.f32 %v6117_v34, %v6103_v32  ;;  %v6031_v4 = vmul.f32 %v11887_v22, %v12390_v49  ;;  %v6140_v58 = vmul.f32 %v13094_v8, %v12362_v45  ;;  %v13096_v43 = vld [vmem:[#allocation74_spill] sm:$0xff] }
 0xc20   : > { %v6433_v48 = vmul.f32 %v6425_v55, %v13095_v13  ;;  %v5930_v35 = vadd.f32 %v5922_v52, %v5908_v26  ;;  %v6017_v24 = vadd.f32 %v6009_v37, %v5995_v40  ;;  %v6161_v32 = vmul.f32 %v13096_v43, %v12223_v5  ;;  %v8486_v37 = vld [vmem:[#allocation32 + $0x10] sm:$0xff]  }
 0xc21   : > { %v6126_v6 = vadd.f32 %v6118_v18, %v6104_v50  ;;  %v6147_v46 = vadd.f32 %v6139_v23, %v6125_v42  ;;  %v6053_v52 = vmul.f32 %v11892_v44, %v12401_v38  ;;  %v12469_v14 = vld [vmem:[#allocation7 + $0x46] sm:$0xff]  ;;  %v6162_v55 = vmul.f32 %v13096_v43, %v12374_v59  ;;  %v8701_v42 = vld [vmem:[#allocation32 + $0x18] sm:$0xff]  }
 0xc22   : > { %v6439_v2 = vpack.c.bf16 %v6433_v48, %v6432_v0  ;;  %v5952_v36 = vadd.f32 %v5944_v51, %v5930_v35  ;;  %v6039_v15 = vadd.f32 %v6031_v4, %v6017_v24  ;;  %v13097_v40 = vld [vmem:[#allocation75_spill] sm:$0xff]  ;;  %v6032_v51 = vmul.f32 %v11887_v22, %v12461_v3 }
 0xc23   : > { %v6148_v34 = vadd.f32 %v6140_v58, %v6126_v6  ;;  %v6169_v26 = vadd.f32 %v6161_v32, %v6147_v46  ;;  %v6183_v50 = vmul.f32 %v13097_v40, %v12250_v10  ;;  %v6075_v18 = vmul.f32 %v11897_v16, %v12403_v63  ;;  %v12480_v23 = vld [vmem:[#allocation7 + $0x47] sm:$0xff]  ;;  %v8035_v58 = vpop.f32.mrf.mxu1 }
 0xc24   : > { %8062 = vmatmul.mubr.msk.bf16.vlgmr.msra.gmra.mxu1 %vm1118_vm0, %v6439_v2  ;;  %v5974_v5 = vadd.f32 %v5966_v7, %v5952_v36  ;;  %v6061_v0 = vadd.f32 %v6053_v52, %v6039_v15  ;;  %v6184_v48 = vmul.f32 %v13097_v40, %v12382_v61  ;;  %v13098_v10 = vld [vmem:[#allocation62_spill] sm:$0xff]  ;;  %v6054_v22 = vmul.f32 %v11892_v44, %v12469_v14 }
 0xc25   : > { %8086 = vmatpush3.bf16.msra.mxu1 %v8701_v42  ;;  %v6170_v13 = vadd.f32 %v6162_v55, %v6148_v34  ;;  %v6191_v35 = vadd.f32 %v6183_v50, %v6169_v26  ;;  %v6205_v24 = vmul.f32 %v13098_v10, %v12280_v33  ;;  %v6097_v6 = vmul.f32 %v11908_v53, %v12406_v25  ;;  %v8487_v46 = vld [vmem:[#allocation32 + $0x8] sm:$0xff]   ;;  %v8488_v42 = vld [vmem:[#allocation32] sm:$0xff]  }
 0xc26   : > { %v5996_v7 = vadd.f32 %v5988_v20, %v5974_v5  ;;  %v6083_v4 = vadd.f32 %v6075_v18, %v6061_v0  ;;  %8087 = vmatprep.subr.bf16.mxu1 %v8486_v37  ;;  %v12490_v32 = vld [vmem:[#allocation7 + $0x48] sm:$0xff]  ;;  %v6206_v36 = vmul.f32 %v13098_v10, %v12390_v49  ;;  %v6227_v33 = vmul.f32 %v12144_v56, %v12282_v60  ;;  %v4953_v18 = vpop.f32.mrf.mxu1 }
 0xc27   : > { %v6192_v2 = vadd.f32 %v6184_v48, %v6170_v13  ;;  %v6213_v15 = vadd.f32 %v6205_v24, %v6191_v35  ;;  %v6076_v44 = vmul.f32 %v11897_v16, %v12480_v23  ;;  %v6119_v34 = vmul.f32 %v13093_v31, %v12410_v54 }
 0xc28   : > { %v6018_v20 = vadd.f32 %v6010_v29, %v5996_v7  ;;  %v6105_v52 = vadd.f32 %v6097_v6, %v6083_v4  ;;  %v6228_v26 = vmul.f32 %v12144_v56, %v12401_v38  ;;  %v6249_v5 = vmul.f32 %v12157_v19, %v12376_v12 }
 0xc29   : > { %v6214_v55 = vadd.f32 %v6206_v36, %v6192_v2  ;;  %v6235_v50 = vadd.f32 %v6227_v33, %v6213_v15  ;;  %8088 = vmatpush3.bf16.msra.mxu1 %v8486_v37  ;;  %v6098_v60 = vmul.f32 %v11908_v53, %v12490_v32  ;;  %v6141_v16 = vmul.f32 %v13094_v8, %v12420_v9  ;;  %v8036_v15 = vpop.f32.mrf.mxu1 }
 0xc2a   : > { %v6040_v0 = vadd.f32 %v6032_v51, %v6018_v20  ;;  %v6127_v29 = vadd.f32 %v6119_v34, %v6105_v52  ;;  %8089 = vmatprep.subr.bf16.mxu1 %v8487_v46  ;;  %v6250_v48 = vmul.f32 %v12157_v19, %v12403_v63  ;;  %v6271_v12 = vmul.f32 %v12170_v27, %v12347_v39 }
 0xc2b   : > { %v6236_v13 = vadd.f32 %v6228_v26, %v6214_v55  ;;  %v6257_v35 = vadd.f32 %v6249_v5, %v6235_v50  ;;  %v6163_v53 = vmul.f32 %v13096_v43, %v12430_v28  ;;  %v6185_v24 = vmul.f32 %v13097_v40, %v12439_v30  ;;  %v13099_v55 = vld [vmem:[#allocation54_spill] sm:$0xff]  ;;  %v13100_v5 = vld [vmem:[#allocation53_spill] sm:$0xff] }
 0xc2c   : > { %v6062_v37 = vadd.f32 %v6054_v22, %v6040_v0  ;;  %v6149_v51 = vadd.f32 %v6141_v16, %v6127_v29  ;;  %v6272_v4 = vmul.f32 %v12170_v27, %v12406_v25  ;;  %v6293_v63 = vmul.f32 %v12185_v47, %v12349_v21  ;;  %v6107_v21 = vld [vmem:[#allocation7 + $0x49] sm:$0xff]  ;;  %v13101_v29 = vld [vmem:[#allocation56_spill] sm:$0xff] }
 0xc2d   : > { %v6258_v7 = vadd.f32 %v6250_v48, %v6236_v13  ;;  %v6279_v6 = vadd.f32 %v6271_v12, %v6257_v35  ;;  %8090 = vmatpush3.bf16.msra.mxu1 %v8487_v46  ;;  %v6207_v39 = vmul.f32 %v13098_v10, %v12461_v3  ;;  %v6294_v22 = vmul.f32 %v12185_v47, %v12410_v54  ;;  %v6129_v13 = vld [vmem:[#allocation7 + $0x4a] sm:$0xff]  ;;  %v13103_v48 = vld [vmem:[#allocation64_spill] sm:$0xff] }
 0xc2e   : > { %v6084_v2 = vadd.f32 %v6076_v44, %v6062_v37  ;;  %v6171_v36 = vadd.f32 %v6163_v53, %v6149_v51  ;;  %8091 = vmatprep.subr.bf16.mxu1 %v8488_v42  ;;  %v6315_v25 = vmul.f32 %v12198_v1, %v12362_v45  ;;  %v6316_v52 = vmul.f32 %v12198_v1, %v12420_v9  ;;  %v13102_v45 = vld [vmem:[#allocation61_spill] sm:$0xff] }
 0xc2f   : > { %v6280_v33 = vadd.f32 %v6272_v4, %v6258_v7  ;;  %v6301_v20 = vadd.f32 %v6293_v63, %v6279_v6  ;;  %v6337_v34 = vmul.f32 %v12215_v11, %v12374_v59  ;;  %v4974_v26 = vadd.f32 %v8035_v58, %v13099_v55  ;;  %v6173_v6 = vld [vmem:[#allocation7 + $0x4c] sm:$0xff] }
 0xc30   : > { %v6106_v46 = vadd.f32 %v6098_v60, %v6084_v2  ;;  %v6193_v44 = vadd.f32 %v6185_v24, %v6171_v36  ;;  %v4972_v0 = vadd.f32 %v4953_v18, %v13100_v5  ;;  %v4975_v16 = vadd.f32 %v8036_v15, %v13101_v29  ;;  %v6195_v15 = vld [vmem:[#allocation7 + $0x4d] sm:$0xff] }
 0xc31   : > { %v6302_v50 = vadd.f32 %v6294_v22, %v6280_v33  ;;  %v6323_v54 = vadd.f32 %v6315_v25, %v6301_v20  ;;  %8092 = vmatpush3.bf16.msra.mxu1 %v8488_v42  ;;  %v4777_v35 = vadd.f32 %v13103_v48, %v13102_v45  ;;  %v6229_v60 = vmul.f32 %v12144_v56, %v12469_v14  ;;  %v6151_v42 = vld [vmem:[#allocation7 + $0x4b] sm:$0xff] }
 0xc32   : > { %v6215_v9 = vadd.f32 %v6207_v39, %v6193_v44  ;;  %4982 = vst.msk [vmem:[#allocation6 + $0x30] sm:$0xff] %vm1118_vm0, %v4974_v26  ;;  %v6120_v59 = vmul.f32 %v13093_v31, %v6107_v21  ;;  %v6338_v12 = vmul.f32 %v12215_v11, %v12430_v28  ;;  %v6359_v37 = vmul.f32 %v12230_v41, %v12382_v61  ;;  %v6239_v20 = vld [vmem:[#allocation7 + $0x4f] sm:$0xff] }
 0xc33   : > { %v6324_v58 = vadd.f32 %v6316_v52, %v6302_v50  ;;  %v6345_v18 = vadd.f32 %v6337_v34, %v6323_v54  ;;  %4980 = vst.msk [vmem:[#allocation6 + $0x20] sm:$0xff] %vm1118_vm0, %v4972_v0  ;;  %4983 = vst.msk [vmem:[#allocation6 + $0x38] sm:$0xff] %vm1118_vm0, %v4975_v16  ;;  %v6251_v53 = vmul.f32 %v12157_v19, %v12480_v23  ;;  %v6217_v34 = vld [vmem:[#allocation7 + $0x4e] sm:$0xff] }
 0xc34   : > { %v6237_v51 = vadd.f32 %v6229_v60, %v6215_v9  ;;  %v6128_v24 = vadd.f32 %v6120_v59, %v6106_v46  ;;  %v6142_v31 = vmul.f32 %v13094_v8, %v6129_v13  ;;  %v6360_v28 = vmul.f32 %v12230_v41, %v12439_v30  ;;  %v6261_v0 = vld [vmem:[#allocation7 + $0x50] sm:$0xff] }
 0xc35   : > { %v6346_v7 = vadd.f32 %v6338_v12, %v6324_v58  ;;  %v6367_v4 = vadd.f32 %v6359_v37, %v6345_v18  ;;  %v6381_v61 = vmul.f32 %v12243_v62, %v12390_v49  ;;  %v6164_v36 = vmul.f32 %v13096_v43, %v6151_v42  ;;  %v4956_v43 = vpop.f32.mrf.mxu1  ;;  %v6283_v9 = vld [vmem:[#allocation7 + $0x51] sm:$0xff]  ;;  %v13106_v12 = vld [vmem:[#allocation86_spill] sm:$0xff] }
 0xc36   : > { %v6259_v63 = vadd.f32 %v6251_v53, %v6237_v51  ;;  %v6150_v2 = vadd.f32 %v6142_v31, %v6128_v24  ;;  %v6273_v39 = vmul.f32 %v12170_v27, %v12490_v32  ;;  %v6382_v8 = vmul.f32 %v12243_v62, %v12461_v3  ;;  %v13104_v3 = vld [vmem:[#allocation76_spill] sm:$0xff] }
 0xc37   : > { %v6368_v23 = vadd.f32 %v6360_v28, %v6346_v7  ;;  %v6389_v22 = vadd.f32 %v6381_v61, %v6367_v4  ;;  %v6403_v30 = vmul.f32 %v12259_v57, %v12401_v38  ;;  %v6186_v49 = vmul.f32 %v13097_v40, %v6173_v6  ;;  %v6305_v37 = vld [vmem:[#allocation7 + $0x52] sm:$0xff] }
 0xc38   : > { %v6172_v33 = vadd.f32 %v6164_v36, %v6150_v2  ;;  %v6281_v25 = vadd.f32 %v6273_v39, %v6259_v63  ;;  %v6295_v52 = vmul.f32 %v12185_v47, %v6107_v21  ;;  %v6404_v32 = vmul.f32 %v12259_v57, %v12469_v14  ;;  %v6327_v31 = vld [vmem:[#allocation7 + $0x53] sm:$0xff] }
 0xc39   : > { %v6390_v46 = vadd.f32 %v6382_v8, %v6368_v23  ;;  %v6411_v44 = vadd.f32 %v6403_v30, %v6389_v22  ;;  %v4875_v55 = vadd.f32 %v13104_v3, %v4777_v35  ;;  %v6208_v38 = vmul.f32 %v13098_v10, %v6195_v15  ;;  %v6349_v4 = vld [vmem:[#allocation7 + $0x54] sm:$0xff] }
 0xc3a   : > { %v6194_v26 = vadd.f32 %v6186_v49, %v6172_v33  ;;  %v6303_v50 = vadd.f32 %v6295_v52, %v6281_v25  ;;  %v6317_v54 = vmul.f32 %v12198_v1, %v6129_v13  ;;  %v6252_v21 = vmul.f32 %v12157_v19, %v6239_v20  ;;  %v13105_v19 = vld [vmem:[#allocation82_spill] sm:$0xff]  ;;  %v6371_v63 = vld [vmem:[#allocation7 + $0x55] sm:$0xff] }
 0xc3b   : > { %v6412_v40 = vadd.f32 %v6404_v32, %v6390_v46  ;;  %v6426_v5 = vadd.f32 %v12295_v17, %v6411_v44  ;;  %v4973_v29 = vadd.f32 %v4956_v43, %v4875_v55  ;;  %v6230_v14 = vmul.f32 %v12144_v56, %v6217_v34  ;;  %v4985_v20 = vld [vmem:[#allocation6 + $0x8] sm:$0xff]  ;;  %v13107_v25 = vld [vmem:[#allocation81_spill] sm:$0xff]  ;;  %v4986_v3 = vld [vmem:[#allocation6 + $0x10] sm:$0xff] }
 0xc3c   : > { %v6216_v16 = vadd.f32 %v6208_v38, %v6194_v26  ;;  %v6325_v45 = vadd.f32 %v6317_v54, %v6303_v50  ;;  %v6339_v48 = vmul.f32 %v12215_v11, %v6151_v42  ;;  %v6274_v13 = vmul.f32 %v12170_v27, %v6261_v0  ;;  %v4984_v46 = vld [vmem:[#allocation6] sm:$0xff]  ;;  %v4987_v44 = vld [vmem:[#allocation6 + $0x18] sm:$0xff]  ;;  %v4990_v38 = vld [vmem:[#allocation6 + $0x30] sm:$0xff] }
 0xc3d   : > { %v6427_v35 = vadd.f32 %v12295_v17, %v6412_v40  ;;  %4981 = vst.msk [vmem:[#allocation6 + $0x28] sm:$0xff] %vm1118_vm0, %v4973_v29  ;;  %v6361_v59 = vmul.f32 %v12230_v41, %v6173_v6  ;;  %v6434_v58 = vmul.f32 %v6426_v5, %v13105_v19  ;;  %v6296_v51 = vmul.f32 %v12185_v47, %v6283_v9  ;;  %v6393_v47 = vld [vmem:[#allocation7 + $0x56] sm:$0xff]  ;;  %v8490_v54 = vld [vmem:[#allocation34 + $0x10] sm:$0xff]   ;;  %v8491_v40 = vld [vmem:[#allocation34 + $0x8] sm:$0xff]  }
 0xc3e   : > { %v6238_v10 = vadd.f32 %v6230_v14, %v6216_v16  ;;  %v6347_v60 = vadd.f32 %v6339_v48, %v6325_v45  ;;  %v6383_v53 = vmul.f32 %v12243_v62, %v6195_v15  ;;  %v6318_v28 = vmul.f32 %v12198_v1, %v6305_v37  ;;  %8071 = vmatprep.subr.bf16.mxu0 %v8490_v54  ;;  %v8492_v5 = vld [vmem:[#allocation34] sm:$0xff]  }
 0xc3f   : > { %v6435_v18 = vmul.f32 %v6427_v35, %v13106_v12  ;;  %v6340_v6 = vmul.f32 %v12215_v11, %v6327_v31  ;;  %v6362_v36 = vmul.f32 %v12230_v41, %v6349_v4  ;;  %v6384_v23 = vmul.f32 %v12243_v62, %v6371_v63  ;;  %v13108_v41 = vld [vmem:[#allocation85_spill] sm:$0xff]  ;;  %8072 = vmatpush3.bf16.msra.mxu0 %v8490_v54 }
 0xc40   : > { %v6260_v56 = vadd.f32 %v6252_v21, %v6238_v10  ;;  %v6369_v42 = vadd.f32 %v6361_v59, %v6347_v60  ;;  %v6405_v8 = vmul.f32 %v12259_v57, %v6217_v34  ;;  %v6406_v1 = vmul.f32 %v12259_v57, %v6393_v47  ;;  %v4988_v34 = vld [vmem:[#allocation6 + $0x20] sm:$0xff]  ;;  %8073 = vmatprep.subr.bf16.mxu0 %v8491_v40  ;;  %v8702_v47 = vld [vmem:[%s9709_s6 + $0x10] sm:$0xff] }
 0xc41   : > { %v6440_v24 = vpack.c.bf16 %v6435_v18, %v6434_v58  ;;  %v6558_v32 = vpack.c.bf16 %v4985_v20, %v4984_v46  ;;  %v6559_v26 = vpack.c.bf16 %v4987_v44, %v4986_v3  ;;  %v7505_v16 = vld [vmem:[%s12764_s24] ss:$0 sm:$0xff]  ;;  %v8704_v20 = vld [vmem:[%s9709_s6 + $0x8] sm:$0xff] }
 0xc42   : > { %v6282_v7 = vadd.f32 %v6274_v13, %v6260_v56  ;;  %v6391_v27 = vadd.f32 %v6383_v53, %v6369_v42 }
 0xc43   : > { %8065 = vmatprep.mubr.msk.bf16.mxu1 %vm1118_vm0, %v6440_v24  ;;  %8074 = vmatpush3.bf16.msra.mxu0 %v8491_v40 }
 0xc44   : > { %v6304_v61 = vadd.f32 %v6296_v51, %v6282_v7  ;;  %v6413_v30 = vadd.f32 %v6405_v8, %v6391_v27  ;;  %v4989_v57 = vld [vmem:[#allocation6 + $0x28] sm:$0xff]  ;;  %8075 = vmatprep.subr.bf16.mxu0 %v8492_v5  ;;  %v7530_v7 = vld [vmem:[%s12767_s27] ss:$0 sm:$0xff] }
 0xc45   : > { %v6560_v55 = vpack.c.bf16 %v4989_v57, %v4988_v34 }
 0xc46   : > { %v6326_v2 = vadd.f32 %v6318_v28, %v6304_v61  ;;  %v6428_v49 = vadd.f32 %v12295_v17, %v6413_v30 }
 0xc47   : > { %8076 = vmatpush3.bf16.msra.mxu0 %v8492_v5 }
 0xc48   : > { %v6348_v39 = vadd.f32 %v6340_v6, %v6326_v2  ;;  %v6436_v52 = vmul.f32 %v6428_v49, %v13107_v25 }
 0xc4a   : > { %v6370_v22 = vadd.f32 %v6362_v36, %v6348_v39 }
 0xc4c   : > { %v6392_v15 = vadd.f32 %v6384_v23, %v6370_v22 }
 0xc4e   : > { %v6414_v33 = vadd.f32 %v6406_v1, %v6392_v15  ;;  %v8703_v15 = vld [vmem:[%s9709_s6] sm:$0xff] }
 0xc50   : > { %v6429_v11 = vadd.f32 %v12295_v17, %v6414_v33  ;;  %v4991_v17 = vld [vmem:[#allocation6 + $0x38] sm:$0xff] }
 0xc51   : > { %v6561_v50 = vpack.c.bf16 %v4991_v17, %v4990_v38 }
 0xc52   : > { %v6437_v43 = vmul.f32 %v6429_v11, %v13108_v41 }
 0xc54   : > { %v6441_v62 = vpack.c.bf16 %v6437_v43, %v6436_v52  ;;  %v8705_v52 = vld [vmem:[%s9709_s6 + $0x18] sm:$0xff] }
 0xc56   : > { %8066 = vmatmul.mubr.msk.bf16.gmra.mxu1 %vm1118_vm0, %v6441_v62 }
 0xc57   : > { %8093 = vmatprep.mubr.msk.bf16.mxu1 %vm1118_vm0, %v6558_v32 }
 0xc5e   : > { %8094 = vmatmul.mubr.msk.bf16.vlgmr.msra.gmra.mxu1 %vm1118_vm0, %v6559_v26 }
 0xc5f   : > { %8097 = vmatprep.mubr.msk.bf16.mxu1 %vm1118_vm0, %v6560_v55 }
 0xc66   : > { %8098 = vmatmul.mubr.msk.bf16.gmra.mxu1 %vm1118_vm0, %v6561_v50 }
 0xce4   : > { %v8063_v21 = vpop.f32.mrf.mxu1 }
 0xce5   : > { %v6536_v9 = vadd.f32 %v8063_v21, %v7505_v16  ;;  %v8706_v21 = vld [vmem:[%s9709_s6 + $0x20] sm:$0xff] }
 0xce6   : > { %v6527_v0 = vpop.f32.mrf.mxu1 }
 0xce7   : > { %v6528_v48 = vadd.f32 %v7505_v16, %v6527_v0 }
 0xce8   : > { %v8064_v29 = vpop.f32.mrf.mxu1 }
 0xce9   : > { %v6539_v14 = vadd.f32 %v8064_v29, %v7505_v16 }
 0xcea   : > { %v6530_v45 = vpop.f32.mrf.mxu1 }
 0xceb   : > { %v6531_v35 = vadd.f32 %v7505_v16, %v6530_v45  ;;  %v6571_v13 = vpack.c.bf16 %v6539_v14, %v6536_v9  ;;  %v8707_v45 = vld [vmem:[%s9709_s6 + $0x30] sm:$0xff] }
 0xced   : > { %v6570_v10 = vpack.c.bf16 %v6531_v35, %v6528_v48  ;;  %v8708_v35 = vld [vmem:[%s9709_s6 + $0x28] sm:$0xff] }
 0xcef   : > { %8077 = vmatprep.mubr.msk.bf16.mxu0 %vm1118_vm0, %v6570_v10 }
 0xcf0   : > { %8078 = vmatmul.mubr.msk.bf16.vlgmr.msra.gmra.mxu0 %vm1118_vm0, %v6571_v13 }
 0xd16   : > { %v8067_v60 = vpop.f32.mrf.mxu1 }
 0xd17   : > { %v6552_v56 = vadd.f32 %v8067_v60, %v7505_v16  ;;  %v8709_v60 = vld [vmem:[%s9709_s6 + $0x38] sm:$0xff]  ;;  %s1089_s6 = sand.u32 1, %s9240_s5  }
 0xd18   : > { %v6543_v59 = vpop.f32.mrf.mxu1  ;;  %s7248_s9 = sshll.u32 %s1089_s6, 6  ;;  %s12700_s3 = scalar_lea.sflag [#allocation10], %s1089_s6 }
 0xd19   : > { %v6544_v18 = vadd.f32 %v7505_v16, %v6543_v59  ;;  %s12665_s11 = scalar_lea.vmem [#allocation35], %s7248_s9  ;;  %s9156_s9 = sshll.u32 %s9289_s30, 4  ;;  %s9157_s9 = int_to_ptr.vmem [resolvable:$false] %s9156_s9 }
 0xd1a   : > { %v8068_v19 = vpop.f32.mrf.mxu1  ;;  %s6963_s2 = sshll.u32 %s12665_s11, 4  ;;  %s9158_s8 = scalar_lea.vmem %s9157_s9, 2048  ;;  %s12694_s2 = int_to_ptr.vmem [resolvable:$true] %s6963_s2 }
 0xd1b   : > { %v6555_v58 = vadd.f32 %v8068_v19, %v7505_v16  ;;  %s9152_s12 = scalar_lea.vmem %s12694_s2, 1024  ;;  %p9159_p10 = scmp.lt.s32.totalorder %s12694_s2, %s9157_s9 }
 0xd1c   : > { %v6546_v12 = vpop.f32.mrf.mxu1  ;;  %p9153_p12 = scmp.ne.s32.totalorder %s12694_s2, %s9152_s12  ;;  %p9160_p4 = scmp.lt.s32.totalorder %s9158_s8, %s9152_s12 }
 0xd1d   : > { %v6547_v37 = vadd.f32 %v7505_v16, %v6546_v12  ;;  %v6573_v42 = vpack.c.bf16 %v6555_v58, %v6552_v56 }
 0xd1e   : > { %v8095_v53 = vpop.f32.mrf.mxu1  ;;  %p9154_p5 = pnand %p9153_p12, %p13111_p3  ;;  %p9161_p7 = por %p9160_p4, %p9159_p10 }
 0xd1f   : > { %v6572_v51 = vpack.c.bf16 %v6547_v37, %v6544_v18 }
 0xd20   : > { %v6753_v24 = vpop.f32.mrf.mxu1  ;;  %p9155_p6 = pneg %p9154_p5 }
 0xd21   : > { %8081 = vmatprep.mubr.msk.bf16.mxu0 %vm1118_vm0, %v6572_v51 }
 0xd22   : > { %8082 = vmatmul.mubr.msk.bf16.gmra.mxu0 %vm1118_vm0, %v6573_v42  ;;  %v8096_v27 = vpop.f32.mrf.mxu1  ;;  %p9162_p8 = pnand %p9161_p7, %p9155_p6 }
 0xd24   : > { %v6756_v23 = vpop.f32.mrf.mxu1 }
 0xd26   : > { %v8099_v32 = vpop.f32.mrf.mxu1 }
 0xd28   : > { %v6769_v62 = vpop.f32.mrf.mxu1 }
 0xd2a   : > { %v8100_v34 = vpop.f32.mrf.mxu1 }
 0xd2c   : > { %v6772_v54 = vpop.f32.mrf.mxu1 }
 0xdb0   : > { %v8079_v31 = vpop.f32.mrf.mxu0 }
 0xdb1   : > { %v6762_v28 = vadd.f32 %v8095_v53, %v8079_v31 }
 0xdb2   : > { %v6652_v4 = vpop.f32.mrf.mxu0 }
 0xdb3   : > { %v6793_v61 = vadd.f32 %v7530_v7, %v6762_v28  ;;  %v6754_v6 = vadd.f32 %v6753_v24, %v6652_v4 }
 0xdb4   : > { %v8080_v63 = vpop.f32.mrf.mxu0 }
 0xdb5   : > { %v6791_v2 = vadd.f32 %v7530_v7, %v6754_v6  ;;  %v6765_v36 = vadd.f32 %v8096_v27, %v8080_v63  ;;  %v6801_v39 = vadd.f32 %v8702_v47, %v6793_v61 }
 0xdb6   : > { %v6655_v8 = vpop.f32.mrf.mxu0 }
 0xdb7   : > { %v6794_v22 = vadd.f32 %v7530_v7, %v6765_v36  ;;  %v6757_v1 = vadd.f32 %v6756_v23, %v6655_v8  ;;  %v6815_v30 = vsel %vm1118_vm0, %v6801_v39, 0.0  ;;  %v6799_v33 = vadd.f32 %v8703_v15, %v6791_v2 }
 0xdb8   : > { %6816 = vadd.xlane.f32.xlu0 %v6815_v30 }
 0xdb9   : > { %v6792_v49 = vadd.f32 %v7530_v7, %v6757_v1  ;;  %v6809_v11 = vsel %vm1118_vm0, %v6799_v33, 0.0  ;;  %v6802_v41 = vadd.f32 %v8705_v52, %v6794_v22 }
 0xdbb   : > { %v6800_v25 = vadd.f32 %v8704_v20, %v6792_v49  ;;  %v6818_v46 = vsel %vm1118_vm0, %v6802_v41, 0.0 }
 0xdbc   : > { %6810 = vadd.xlane.f32.xlu0 %v6809_v11 }
 0xdbd   : > { %v6812_v43 = vsel %vm1118_vm0, %v6800_v25, 0.0 }
 0xdbe   : > { %6813 = vadd.xlane.f32.xlu1 %v6812_v43 }
 0xdc0   : > { %6819 = vadd.xlane.f32.xlu0 %v6818_v46 }
 0xde2   : > { %v8083_v57 = vpop.f32.mrf.mxu0 }
 0xde3   : > { %v6778_v44 = vadd.f32 %v8099_v32, %v8083_v57 }
 0xde4   : > { %v6668_v3 = vpop.f32.mrf.mxu0 }
 0xde5   : > { %v6770_v55 = vadd.f32 %v6769_v62, %v6668_v3  ;;  %v6797_v17 = vadd.f32 %v7530_v7, %v6778_v44 }
 0xde6   : > { %v8084_v26 = vpop.f32.mrf.mxu0 }
 0xde7   : > { %v6795_v38 = vadd.f32 %v7530_v7, %v6770_v55  ;;  %v6781_v50 = vadd.f32 %v8100_v34, %v8084_v26  ;;  %v6805_v48 = vadd.f32 %v8707_v45, %v6797_v17  ;;  %v7532_v45 = vld [vmem:[#allocation17] ss:$0 sm:$0xff] }
 0xde8   : > { %v6671_v40 = vpop.f32.mrf.mxu0 }
 0xde9   : > { %v6773_v5 = vadd.f32 %v6772_v54, %v6671_v40  ;;  %v6803_v0 = vadd.f32 %v8706_v21, %v6795_v38  ;;  %v6798_v29 = vadd.f32 %v7530_v7, %v6781_v50  ;;  %v6827_v10 = vsel %vm1118_vm0, %v6805_v48, 0.0 }
 0xdeb   : > { %v6796_v16 = vadd.f32 %v7530_v7, %v6773_v5  ;;  %v6821_v14 = vsel %vm1118_vm0, %v6803_v0, 0.0  ;;  %v6806_v59 = vadd.f32 %v8709_v60, %v6798_v29 }
 0xdec   : > { %6822 = vadd.xlane.f32.xlu1 %v6821_v14 }
 0xded   : > { %v6804_v9 = vadd.f32 %v8708_v35, %v6796_v16  ;;  %v6830_v19 = vsel %vm1118_vm0, %v6806_v59, 0.0  ;;  %v7531_v16 = vld [vmem:[#allocation16] ss:$0 sm:$0xff] }
 0xdef   : > { %v6824_v13 = vsel %vm1118_vm0, %v6804_v9, 0.0 }
 0xdf0   : > { %6828 = vadd.xlane.f32.xlu1 %v6827_v10  ;;  %6825 = vadd.xlane.f32.xlu0 %v6824_v13 }
 0xdf4   : > { %6831 = vadd.xlane.f32.xlu0 %v6830_v19 }
 0xe41   : > { %v6817_v58 = vpop.xlane.xlu0 %6816 }
 0xe42   : > { %v6835_v12 = vmul.f32 0.015625, %v6817_v58 }
 0xe44   : > { %v12620_v18 = vsub.f32 %v6801_v39, %v6835_v12 }
 0xe45   : > { %v6811_v37 = vpop.xlane.xlu0 %6810 }
 0xe46   : > { %v6833_v56 = vmul.f32 0.015625, %v6811_v37  ;;  %v6851_v51 = vmul.f32 %v12620_v18, %v12620_v18 }
 0xe47   : > { %v6814_v42 = vpop.xlane.xlu1 %6813 }
 0xe48   : > { %v12624_v53 = vsub.f32 %v6799_v33, %v6833_v56  ;;  %v6834_v24 = vmul.f32 0.015625, %v6814_v42  ;;  %v6863_v31 = vsel %vm1118_vm0, %v6851_v51, 0.0 }
 0xe49   : > { %v6820_v7 = vpop.xlane.xlu0 %6819  ;;  %6864 = vadd.xlane.f32.xlu1 %v6863_v31 }
 0xe4a   : > { %v6836_v28 = vmul.f32 0.015625, %v6820_v7  ;;  %v6849_v27 = vmul.f32 %v12624_v53, %v12624_v53  ;;  %v12629_v4 = vsub.f32 %v6800_v25, %v6834_v24 }
 0xe4c   : > { %v12631_v61 = vsub.f32 %v6802_v41, %v6836_v28  ;;  %v6857_v6 = vsel %vm1118_vm0, %v6849_v27, 0.0  ;;  %v6850_v36 = vmul.f32 %v12629_v4, %v12629_v4 }
 0xe4d   : > { %6858 = vadd.xlane.f32.xlu1 %v6857_v6 }
 0xe4e   : > { %v6852_v63 = vmul.f32 %v12631_v61, %v12631_v61  ;;  %v6860_v47 = vsel %vm1118_vm0, %v6850_v36, 0.0 }
 0xe50   : > { %v6866_v2 = vsel %vm1118_vm0, %v6852_v63, 0.0 }
 0xe51   : > { %6867 = vadd.xlane.f32.xlu0 %v6866_v2 }
 0xe55   : > { %6861 = vadd.xlane.f32.xlu0 %v6860_v47 }
 0xe75   : > { %v6823_v39 = vpop.xlane.xlu1 %6822 }
 0xe76   : > { %v6837_v23 = vmul.f32 0.015625, %v6823_v39 }
 0xe78   : > { %v12640_v8 = vsub.f32 %v6803_v0, %v6837_v23 }
 0xe79   : > { %v6829_v22 = vpop.xlane.xlu1 %6828  ;;  %v6826_v1 = vpop.xlane.xlu0 %6825 }
 0xe7a   : > { %v6839_v30 = vmul.f32 0.015625, %v6829_v22  ;;  %v6838_v15 = vmul.f32 0.015625, %v6826_v1  ;;  %v6853_v33 = vmul.f32 %v12640_v8, %v12640_v8 }
 0xe7c   : > { %v12644_v49 = vsub.f32 %v6805_v48, %v6839_v30  ;;  %v12646_v11 = vsub.f32 %v6804_v9, %v6838_v15  ;;  %v6869_v20 = vsel %vm1118_vm0, %v6853_v33, 0.0 }
 0xe7d   : > { %6870 = vadd.xlane.f32.xlu1 %v6869_v20  ;;  %v6832_v25 = vpop.xlane.xlu0 %6831 }
 0xe7e   : > { %v6840_v52 = vmul.f32 0.015625, %v6832_v25  ;;  %v6855_v41 = vmul.f32 %v12644_v49, %v12644_v49  ;;  %v6854_v43 = vmul.f32 %v12646_v11, %v12646_v11 }
 0xe80   : > { %v12653_v46 = vsub.f32 %v6806_v59, %v6840_v52  ;;  %v6875_v32 = vsel %vm1118_vm0, %v6855_v41, 0.0  ;;  %v6872_v62 = vsel %vm1118_vm0, %v6854_v43, 0.0 }
 0xe81   : > { %6876 = vadd.xlane.f32.xlu1 %v6875_v32  ;;  %6873 = vadd.xlane.f32.xlu0 %v6872_v62 }
 0xe82   : > { %v6856_v57 = vmul.f32 %v12653_v46, %v12653_v46 }
 0xe84   : > { %v6878_v44 = vsel %vm1118_vm0, %v6856_v57, 0.0 }
 0xe85   : > { %6879 = vadd.xlane.f32.xlu0 %v6878_v44 }
 0xed2   : > { %v6865_v34 = vpop.xlane.xlu1 %6864 }
 0xed3   : > { %v6883_v3 = vmul.f32 0.015625, %v6865_v34 }
 0xed5   : > { %v6891_v55 = vadd.f32 1e-05, %v6883_v3 }
 0xed6   : > { %v6859_v26 = vpop.xlane.xlu1 %6858 }
 0xed7   : > { %8685 = vrsqrt.f32 %v6891_v55  ;;  %v6881_v17 = vmul.f32 0.015625, %v6859_v26 }
 0xed9   : > { %v6889_v38 = vadd.f32 1e-05, %v6881_v17 }
 0xeda   : > { %v6868_v50 = vpop.xlane.xlu0 %6867 }
 0xedb   : > { %8687 = vrsqrt.f32 %v6889_v38  ;;  %v6884_v54 = vmul.f32 0.015625, %v6868_v50 }
 0xedd   : > { %v6892_v40 = vadd.f32 1e-05, %v6884_v54 }
 0xede   : > { %v6862_v5 = vpop.xlane.xlu0 %6861 }
 0xedf   : > { %8689 = vrsqrt.f32 %v6892_v40  ;;  %v6882_v21 = vmul.f32 0.015625, %v6862_v5 }
 0xee1   : > { %v6890_v0 = vadd.f32 1e-05, %v6882_v21 }
 0xee3   : > { %8691 = vrsqrt.f32 %v6890_v0 }
 0xee4   : > { %v8686_v29 = vpop.eup %8685 }
 0xee5   : > { %v6907_v14 = vmul.f32 %v8686_v29, %v12620_v18 }
 0xee7   : > { %v6921_v48 = vmul.f32 %v7531_v16, %v6907_v14 }
 0xee8   : > { %v8688_v35 = vpop.eup %8687 }
 0xee9   : > { %v6935_v9 = vadd.f32 %v7532_v45, %v6921_v48  ;;  %v6905_v10 = vmul.f32 %v8688_v35, %v12624_v53 }
 0xeeb   : > { %6943 = vst.msk [vmem:[%s12665_s11 + $0x10] sm:$0xff] %vm1118_vm0, %v6935_v9  ;;  %v6919_v13 = vmul.f32 %v7531_v16, %v6905_v10 }
 0xeec   : > { %v8690_v60 = vpop.eup %8689 }
 0xeed   : > { %v6933_v59 = vadd.f32 %v7532_v45, %v6919_v13  ;;  %v6908_v19 = vmul.f32 %v8690_v60, %v12631_v61 }
 0xeef   : > { %6941 = vst.msk [vmem:[%s12665_s11] sm:$0xff] %vm1118_vm0, %v6933_v59  ;;  %v6922_v58 = vmul.f32 %v7531_v16, %v6908_v19 }
 0xef0   : > { %v8692_v12 = vpop.eup %8691 }
 0xef1   : > { %v6936_v18 = vadd.f32 %v7532_v45, %v6922_v58  ;;  %v6906_v37 = vmul.f32 %v8692_v12, %v12629_v4 }
 0xef3   : > { %6944 = vst.msk [vmem:[%s12665_s11 + $0x18] sm:$0xff] %vm1118_vm0, %v6936_v18  ;;  %v6920_v56 = vmul.f32 %v7531_v16, %v6906_v37 }
 0xef5   : > { %v6934_v51 = vadd.f32 %v7532_v45, %v6920_v56 }
 0xef7   : > { %6942 = vst.msk [vmem:[%s12665_s11 + $0x8] sm:$0xff] %vm1118_vm0, %v6934_v51 }
 0xf06   : > { %v6871_v42 = vpop.xlane.xlu1 %6870 }
 0xf07   : > { %v6885_v53 = vmul.f32 0.015625, %v6871_v42 }
 0xf09   : > { %v6893_v24 = vadd.f32 1e-05, %v6885_v53 }
 0xf0a   : > { %v6877_v31 = vpop.xlane.xlu1 %6876  ;;  %v6874_v7 = vpop.xlane.xlu0 %6873 }
 0xf0b   : > { %8693 = vrsqrt.f32 %v6893_v24  ;;  %v6887_v28 = vmul.f32 0.015625, %v6877_v31  ;;  %v6886_v27 = vmul.f32 0.015625, %v6874_v7 }
 0xf0d   : > { %v6895_v61 = vadd.f32 1e-05, %v6887_v28  ;;  %v6894_v6 = vadd.f32 1e-05, %v6886_v27 }
 0xf0e   : > { %v6880_v63 = vpop.xlane.xlu0 %6879 }
 0xf0f   : > { %8695 = vrsqrt.f32 %v6895_v61  ;;  %v6888_v4 = vmul.f32 0.015625, %v6880_v63 }
 0xf10   : > { %8697 = vrsqrt.f32 %v6894_v6 }
 0xf11   : > { %v6896_v2 = vadd.f32 1e-05, %v6888_v4 }
 0xf13   : > { %8699 = vrsqrt.f32 %v6896_v2 }
 0xf18   : > { %v8694_v36 = vpop.eup %8693 }
 0xf19   : > { %v6909_v47 = vmul.f32 %v8694_v36, %v12640_v8 }
 0xf1b   : > { %v6923_v39 = vmul.f32 %v7531_v16, %v6909_v47 }
 0xf1c   : > { %v8696_v23 = vpop.eup %8695 }
 0xf1d   : > { %v8698_v22 = vpop.eup %8697  ;;  %v6937_v1 = vadd.f32 %v7532_v45, %v6923_v39  ;;  %v6911_v30 = vmul.f32 %v8696_v23, %v12644_v49 }
 0xf1e   : > { %v6910_v15 = vmul.f32 %v8698_v22, %v12646_v11 }
 0xf1f   : > { %6945 = vst.msk [vmem:[%s12665_s11 + $0x20] sm:$0xff] %vm1118_vm0, %v6937_v1  ;;  %v6925_v33 = vmul.f32 %v7531_v16, %v6911_v30 }
 0xf20   : > { %v8700_v20 = vpop.eup %8699  ;;  %v6924_v25 = vmul.f32 %v7531_v16, %v6910_v15 }
 0xf21   : > { %v6939_v52 = vadd.f32 %v7532_v45, %v6925_v33  ;;  %v6912_v8 = vmul.f32 %v8700_v20, %v12653_v46 }
 0xf22   : > { %v6938_v41 = vadd.f32 %v7532_v45, %v6924_v25 }
 0xf23   : > { %6947 = vst.msk [vmem:[%s12665_s11 + $0x30] sm:$0xff] %vm1118_vm0, %v6939_v52  ;;  %v6926_v43 = vmul.f32 %v7531_v16, %v6912_v8 }
 0xf24   : > { %6946 = vst.msk [vmem:[%s12665_s11 + $0x28] sm:$0xff] %vm1118_vm0, %v6938_v41 }
 0xf25   : > { %v6940_v49 = vadd.f32 %v7532_v45, %v6926_v43 }
 0xf27   : > { %6948 = vst.msk [vmem:[%s12665_s11 + $0x38] sm:$0xff] %vm1118_vm0, %v6940_v49 }
 0xf28   : > { %9165 = shalt.err (!%p9162_p8)
}
 0xf29   : > { %s9166_s6 = scalar_lea.hbm %s12692_s4, 1024  ;;  %s9170_s0 = scalar_lea.hbm %s13110_s10, 2048 }
 0xf2a   : > { %p9167_p11 = scmp.ne.s32.totalorder %s12692_s4, %s9166_s6  ;;  %p9171_p1 = scmp.lt.s32.totalorder %s12692_s4, %s13110_s10 }
 0xf2b   : > { %p9172_p2 = scmp.lt.s32.totalorder %s9170_s0, %s9166_s6 }
 0xf2c   : > { %p9168_p13 = pnand %p9167_p11, %p13111_p3 }
 0xf2d   : > { %p9173_p9 = por %p9172_p2, %p9171_p1 }
 0xf2e   : > { %p9169_p0 = pneg %p9168_p13 }
 0xf30   : > { %p9174_p12 = pnand %p9173_p9, %p9169_p0 }
 0xf32   : > { %9177 = shalt.err (!%p9174_p12)
}
 0xf33   : > { %s9290_s12 = smov 128   ;;  %s9291_s9 = smov 8  }
 0xf34   : > { %8217 = dma.vmem_to_hbm [thread:$0]  (%p13111_p3), %s12694_s2, 1024, %s12692_s4, %s12700_s3, %s9290_s12, %s9290_s12, %s9291_s9  }
 0xf35 PF: > { %s13112_s8 = sld [smem:[#allocation48_spill]] }
 0xf36   : > { %s13113_s11 = sld [smem:[#allocation46_spill]] }
 0xf37   : > { %s13114_s13 = sld [smem:[#allocation52_spill]] }
 0xf3b   : > { %p8309_p5 = scmp.ge.s32.totalorder %s13112_s8, 2 }
 0xf3c   : > { %s6978_s7 = sand.u32 1, %s13113_s11  }
 0xf3d   : > { %p13115_p6 = scmp.ne.s32.totalorder %s13114_s13, 0  ;;  %s6979_s1 = scalar_lea.sflag [#allocation10], %s6978_s7 }
 0xf3f   : > { %p8272_p10 = pnand %p8309_p5, %p13115_p6 }
 0xf41   : > { %p8273_p4 = pneg %p8272_p10 }
 0xf43   : > { %9231 = dma.done.wait (%p8273_p4), %s6979_s1, 1024  }
 0xf44   : > { %9233 = vsyncadd (%p8273_p4), %s6979_s1, 4294966272  ;;  %s13116_s30 = sld [smem:[#allocation49_spill]]  ;;  %s13119_s8 = smov %s9240_s5 }
 0xf45   : > { %s13117_s6 = sld [smem:[#allocation47_spill]] }
 0xf46   : > { %s13118_s9 = sld [smem:[#allocation50_spill]] }
 0xf4a   : > { %p47_p7 = scmp.ge.s32.totalorder %s13116_s30, 4  }
 0xf4b   : > { %s13120_s5 = smov %s13117_s6 }
 0xf4c   :  { %49 = sbr.rel (!%p47_p7) target bundleno = 28 (0x1c), region = 257 }
 0xf51   :  { %6984 = vsyncpa [#allocation9], 1 }
 0xf52   :  { %6986 = vsyncpa [#allocation9 + $0x1], 1 }
 0xf53   :  { %6987 = vsyncpa [#allocation12], 1 }
 0xf54   :  { %6988 = vsyncpa [#allocation15], 1 }
 0xf55   :  { %6989 = vsyncpa [#allocation18], 1 }
 0xf56   :  { %6990 = vsyncpa [#allocation21], 1 }
 0xf57   :  { %6991 = vsyncpa [#allocation24], 1 }
 0xf58   :  { %6992 = vsyncpa [#allocation27], 1 }
 0xf59   :  { %6993 = vsyncpa [#allocation30], 1 }
 0xf5a   :  { %6994 = vsyncpa [#allocation33], 1 }
 0xf5b   :  { %6995 = vsyncpa [#allocation10], 1 }
 0xf5c   :  { %6997 = vsyncpa [#allocation10 + $0x1], 1 }

</bundles_post_ra>
